<compile_context>
chip_gen: v5e
topology: v5e:2x2
jax: 0.10.0
libtpu: 0.0.40
codegen_flags: <defaults>
</compile_context>

<pallas_src>
import jax
import jax.numpy as jnp
from jax import lax
from jax.experimental import pallas as pl
from jax.experimental.pallas import tpu as pltpu

EPS = 1e-5
LANES = 128
W_LPAD = 8            # left halo padded to a full sublane tile -> interior stores are 8-aligned
W_RPAD = 8            # keeps the padded width a multiple of 8 (only 1 right column is read/zeroed)
MXU_DTYPE = jnp.bfloat16   # matmul-operand dtype; accumulation and BN math stay f32


def _round_up(x, m):
    return (x + m - 1) // m * m


def _conv3x3_accum(xpad_ref, w_ref, n, h, w, cp):
    """3x3 'SAME' conv as 9 accumulating MXU dots (no im2col scratch).

    xpad_ref: (n, h+2, w+W_LPAD+W_RPAD, cp) f32 VMEM ref; zero halo, interior at
              [:, 1:h+1, W_LPAD:W_LPAD+w, :]
    w_ref:    (9*cp, cp) bf16 VMEM ref, rows ordered (dy, dx, cin)
    returns:  (n*h*w, cp) f32 accumulator
    """
    rows = n * h * w
    acc = None
    for dy in range(3):
        for dx in range(3):
            t = dy * 3 + dx
            col0 = W_LPAD - 1 + dx
            # Static-bound windowed load of just this tap straight off the ref; the full
            # padded buffer is never materialized as a single value.
            # TODO(synk): 6 of 9 taps start 1 sublane off an 8-boundary (col0 = 7/9); the
            # resulting shifts are cheap at these shapes but could be removed by folding
            # the dx shift into the accumulating-dot row indexing.
            tap = xpad_ref[:, dy:dy + h, col0:col0 + w, :].reshape(rows, cp)
            part = jnp.dot(tap.astype(MXU_DTYPE), w_ref[t * cp:(t + 1) * cp, :],
                           preferred_element_type=jnp.float32)
            acc = part if acc is None else acc + part
    return acc


def _bn_scale_bias(y2d, gamma, beta, rows, cp):
    """BatchNorm (training/batch stats) folded to per-channel scale & bias (all f32).

    sum and sum-of-squares are accumulated in ONE chunked traversal of the conv
    accumulator (it lives spilled in VMEM; each chunk is re-read exactly once).
    """
    s = jnp.zeros((1, cp), jnp.float32)
    ss = jnp.zeros((1, cp), jnp.float32)
    chunk = 128
    for r0 in range(0, rows, chunk):
        r1 = min(r0 + chunk, rows)
        blk = y2d[r0:r1, :]
        s = s + jnp.sum(blk, axis=0, keepdims=True)
        ss = ss + jnp.sum(blk * blk, axis=0, keepdims=True)
    inv_rows = 1.0 / float(rows)
    mean = s * inv_rows
    var = jnp.maximum(ss * inv_rows - mean * mean, 0.0)   # clamp: E[x^2]-E[x]^2 can dip < 0
    scale = gamma * lax.rsqrt(var + EPS)                  # EUP slot (otherwise idle)
    bias = beta - mean * scale
    return scale, bias


def fused_block_kernel(x_ref, w1_ref, g1_ref, b1_ref, w2_ref, g2_ref, b2_ref,
                       o_ref, xpad_ref):
    n, h, w, cp = x_ref.shape
    rows = n * h * w
    wtot = w + W_LPAD + W_RPAD

    # --- stage 0: halo-pad x into the VMEM scratch ---------------------------------------
    # Zero ONLY the halo strips the taps actually read; the interior is fully overwritten.
    zrow = jnp.zeros((n, 1, wtot, cp), xpad_ref.dtype)
    xpad_ref[:, 0:1, :, :] = zrow                                    # top halo row
    xpad_ref[:, h + 1:h + 2, :, :] = zrow                            # bottom halo row
    zcol = jnp.zeros((n, h, 1, cp), xpad_ref.dtype)
    xpad_ref[:, 1:h + 1, W_LPAD - 1:W_LPAD, :] = zcol                # only left col read (dx=0)
    xpad_ref[:, 1:h + 1, W_LPAD + w:W_LPAD + w + 1, :] = zcol        # only right col read (dx=2)
    # Interior store is sublane-aligned (offset 8, width w) and lane-dense (cp % 128 == 0).
    xpad_ref[:, 1:h + 1, W_LPAD:W_LPAD + w, :] = x_ref[...]

    # --- stage 1: conv1 (9 accumulating MXU dots) -> BN1 -> ReLU -------------------------
    acc1 = _conv3x3_accum(xpad_ref, w1_ref, n, h, w, cp)
    scale1, bias1 = _bn_scale_bias(acc1, g1_ref[...], b1_ref[...], rows, cp)
    h1 = jnp.maximum(acc1 * scale1 + bias1, 0.0)

    # --- stage 2: reuse xpad_ref as h1's halo buffer (halo is still zero; only the --------
    # interior changes) -- h1 never round-trips to HBM and no second scratch is needed.
    xpad_ref[:, 1:h + 1, W_LPAD:W_LPAD + w, :] = h1.reshape(n, h, w, cp)

    # --- stage 3: conv2 -> BN2 -> + residual -> ReLU --------------------------------------
    acc2 = _conv3x3_accum(xpad_ref, w2_ref, n, h, w, cp)
    scale2, bias2 = _bn_scale_bias(acc2, g2_ref[...], b2_ref[...], rows, cp)
    residual = x_ref[...].reshape(rows, cp)                 # f32 residual (exact)
    y = jnp.maximum(acc2 * scale2 + bias2 + residual, 0.0)
    o_ref[...] = y.reshape(n, h, w, cp)                     # lane-dense unmasked stores


@jax.jit
def resnet_block(x_nchw, w1, g1, b1, w2, g2, b2):
    """Forward pass of the PyTorch `block` (stride=1, downsample=None).

    x_nchw: (N, C, H, W) f32;  w1, w2: (3, 3, Cin, Cout) HWIO f32;  g*, b*: (Cout,) f32.
    (The PyTorch module only type-checks with Cin == Cout, stride=1, no downsample.)
    """
    x = jnp.transpose(x_nchw, (0, 2, 3, 1)).astype(jnp.float32)   # NCHW -> NHWC
    n, h, w, c = x.shape
    cout = w1.shape[-1]
    cp = _round_up(max(c, cout, LANES), LANES)                    # lane-dense channel width
    # TODO(synk): for tiny real C (e.g. 4), pack (tap, cin) jointly into one K <= 128 tile
    # instead of padding every tap's Cin to 128 (drops MXU K from 9*128 to 128).

    xp = jnp.pad(x, ((0, 0), (0, 0), (0, 0), (0, cp - c)))

    def pad_w(wgt):   # (3,3,Cin,Cout) -> (9*cp, cp) bf16, rows ordered (dy, dx, cin)
        wp = jnp.pad(wgt, ((0, 0), (0, 0), (0, cp - c), (0, cp - cout)))
        return wp.reshape(9 * cp, cp).astype(MXU_DTYPE)

    def pad_v(v):     # (Cout,) -> (1, cp) f32; padded channels get 0 -> outputs stay exactly 0
        return jnp.pad(v, (0, cp - cout)).reshape(1, cp).astype(jnp.float32)

    w1p, w2p = pad_w(w1), pad_w(w2)
    g1p, b1p, g2p, b2p = pad_v(g1), pad_v(b1), pad_v(g2), pad_v(b2)

    vmem = pl.BlockSpec(memory_space=pltpu.MemorySpace.VMEM)

    # TODO(synk): production shapes (N=32, C=256, H=W=56) need an N/H grid with
    # dimension_semantics=("parallel", ...) (v7x megacore, double-buffered DMA) and a
    # two-pass cross-tile BatchNorm (per-tile sum/sumsq accumulators finalized via pl.when);
    # a single invocation is used here because BN batch stats span the whole (tiny) batch.
    out_p = pl.pallas_call(
        fused_block_kernel,
        out_shape=jax.ShapeDtypeStruct((n, h, w, cp), jnp.float32),
        in_specs=[vmem] * 7,
        out_specs=vmem,
        scratch_shapes=[
            pltpu.VMEM((n, h + 2, w + W_LPAD + W_RPAD, cp), jnp.float32),  # shared halo buffer
        ],
        compiler_params=pltpu.CompilerParams(
            vmem_limit_bytes=48 * 1024 * 1024,   # stays under v7x's 64 MiB physical VMEM
        ),
    )(xp, w1p, g1p, b1p, w2p, g2p, b2p)

    # TODO(synk): accept/produce NHWC directly to drop the transpose/pad/slice HBM passes.
    return jnp.transpose(out_p[..., :cout], (0, 3, 1, 2))    # drop lane padding, NHWC -> NCHW


def reference_block(x_nchw, w1, g1, b1, w2, g2, b2):
    """Pure-JAX reference mirroring the PyTorch forward (BN in training mode)."""
    def conv(x, wgt):
        return lax.conv_general_dilated(
            x, wgt, window_strides=(1, 1), padding="SAME",
            dimension_numbers=("NHWC", "HWIO", "NHWC"))

    def bn(x, g, b):
        m = jnp.mean(x, axis=(0, 1, 2))
        v = jnp.mean(jnp.square(x - m), axis=(0, 1, 2))
        return (x - m) * lax.rsqrt(v + EPS) * g + b

    x = jnp.transpose(x_nchw, (0, 2, 3, 1))
    hact = jax.nn.relu(bn(conv(x, w1), g1, b1))
    o = bn(conv(hact, w2), g2, b2) + x
    return jnp.transpose(jax.nn.relu(o), (0, 3, 1, 2))


if __name__ == "__main__":
    # Small shapes consistent with the module: N=2, C_in=C_out=4, H=W=16.
    N, C, H, W = 2, 4, 16, 16

    key = jax.random.PRNGKey(0)
    kx, kw1, kw2, kg1, kb1, kg2, kb2 = jax.random.split(key, 7)

    x = jax.random.normal(kx, (N, C, H, W), jnp.float32)
    # Conv weights in HWIO layout (3, 3, Cin, Cout), deterministic init.
    w1 = jax.random.normal(kw1, (3, 3, C, C), jnp.float32) * 0.1
    w2 = jax.random.normal(kw2, (3, 3, C, C), jnp.float32) * 0.1
    # BatchNorm affine params (perturbed from defaults to exercise the scale/bias path).
    g1 = 1.0 + 0.1 * jax.random.normal(kg1, (C,), jnp.float32)
    b1 = 0.1 * jax.random.normal(kb1, (C,), jnp.float32)
    g2 = 1.0 + 0.1 * jax.random.normal(kg2, (C,), jnp.float32)
    b2 = 0.1 * jax.random.normal(kb2, (C,), jnp.float32)

    out = jax.block_until_ready(resnet_block(x, w1, g1, b1, w2, g2, b2))
    ref = reference_block(x, w1, g1, b1, w2, g2, b2)

    assert out.shape == (N, C, H, W)
    # Tolerance widened vs the pure-f32 version: MXU operands are bf16 (BN statistics and
    # the residual stay f32), which introduces ~1e-2-level element-wise rounding.
    assert jnp.allclose(out, ref, atol=2e-2, rtol=2e-2), "mismatch vs JAX reference"

    print("KERNEL_OK")
</pallas_src>

<mosaic_0001>
module attributes {stable_mosaic.version = 11 : i64} {
  func.func @fused_block_kernel(%arg0: memref<2x16x16x128xf32, #tpu.memory_space<vmem>>, %arg1: memref<1152x128xbf16, #tpu.memory_space<vmem>>, %arg2: memref<1x128xf32, #tpu.memory_space<vmem>>, %arg3: memref<1x128xf32, #tpu.memory_space<vmem>>, %arg4: memref<1152x128xbf16, #tpu.memory_space<vmem>>, %arg5: memref<1x128xf32, #tpu.memory_space<vmem>>, %arg6: memref<1x128xf32, #tpu.memory_space<vmem>>, %arg7: memref<2x16x16x128xf32, #tpu.memory_space<vmem>>, %arg8: memref<2x18x32x128xf32, #tpu.memory_space<vmem>>) attributes {dimension_semantics = [], scalar_prefetch = 0 : i64, scratch_operands = 1 : i64, tpu.core_type = #tpu.core_type<tc>} {
    %cst = arith.constant 0.000000e+00 : f32
    %0 = vector.broadcast %cst : f32 to vector<2x1x32x128xf32>
    %c0 = arith.constant 0 : index
    %c0_0 = arith.constant 0 : index
    %c0_1 = arith.constant 0 : index
    %c0_2 = arith.constant 0 : index
    %1 = vector.load %arg8[%c0, %c0_0, %c0_1, %c0_2] : memref<2x18x32x128xf32, #tpu.memory_space<vmem>>, vector<2x1x32x128xf32>
    tpu.vector_store %arg8[%c0, %c0_0, %c0_1, %c0_2], %0 {strides = array<i32>} : memref<2x18x32x128xf32, #tpu.memory_space<vmem>>, vector<2x1x32x128xf32>,
    %c0_3 = arith.constant 0 : index
    %c17 = arith.constant 17 : index
    %c0_4 = arith.constant 0 : index
    %c0_5 = arith.constant 0 : index
    %2 = vector.load %arg8[%c0_3, %c17, %c0_4, %c0_5] : memref<2x18x32x128xf32, #tpu.memory_space<vmem>>, vector<2x1x32x128xf32>
    tpu.vector_store %arg8[%c0_3, %c17, %c0_4, %c0_5], %0 {strides = array<i32>} : memref<2x18x32x128xf32, #tpu.memory_space<vmem>>, vector<2x1x32x128xf32>,
    %cst_6 = arith.constant 0.000000e+00 : f32
    %3 = vector.broadcast %cst_6 : f32 to vector<2x16x1x128xf32>
    %c0_7 = arith.constant 0 : index
    %c1 = arith.constant 1 : index
    %c7 = arith.constant 7 : index
    %c0_8 = arith.constant 0 : index
    %4 = vector.load %arg8[%c0_7, %c1, %c7, %c0_8] : memref<2x18x32x128xf32, #tpu.memory_space<vmem>>, vector<2x16x1x128xf32>
    tpu.vector_store %arg8[%c0_7, %c1, %c7, %c0_8], %3 {strides = array<i32>} : memref<2x18x32x128xf32, #tpu.memory_space<vmem>>, vector<2x16x1x128xf32>,
    %c0_9 = arith.constant 0 : index
    %c1_10 = arith.constant 1 : index
    %c24 = arith.constant 24 : index
    %c0_11 = arith.constant 0 : index
    %5 = vector.load %arg8[%c0_9, %c1_10, %c24, %c0_11] : memref<2x18x32x128xf32, #tpu.memory_space<vmem>>, vector<2x16x1x128xf32>
    tpu.vector_store %arg8[%c0_9, %c1_10, %c24, %c0_11], %3 {strides = array<i32>} : memref<2x18x32x128xf32, #tpu.memory_space<vmem>>, vector<2x16x1x128xf32>,
    %c0_12 = arith.constant 0 : index
    %c0_13 = arith.constant 0 : index
    %c0_14 = arith.constant 0 : index
    %c0_15 = arith.constant 0 : index
    %6 = vector.load %arg0[%c0_12, %c0_13, %c0_14, %c0_15] : memref<2x16x16x128xf32, #tpu.memory_space<vmem>>, vector<2x16x16x128xf32>
    %c0_16 = arith.constant 0 : index
    %c1_17 = arith.constant 1 : index
    %c8 = arith.constant 8 : index
    %c0_18 = arith.constant 0 : index
    %7 = vector.load %arg8[%c0_16, %c1_17, %c8, %c0_18] : memref<2x18x32x128xf32, #tpu.memory_space<vmem>>, vector<2x16x16x128xf32>
    tpu.vector_store %arg8[%c0_16, %c1_17, %c8, %c0_18], %6 {strides = array<i32>} : memref<2x18x32x128xf32, #tpu.memory_space<vmem>>, vector<2x16x16x128xf32>,
    %c0_19 = arith.constant 0 : index
    %c0_20 = arith.constant 0 : index
    %c7_21 = arith.constant 7 : index
    %c0_22 = arith.constant 0 : index
    %8 = vector.load %arg8[%c0_19, %c0_20, %c7_21, %c0_22] : memref<2x18x32x128xf32, #tpu.memory_space<vmem>>, vector<2x16x16x128xf32>
    %9 = vector.shape_cast %8 : vector<2x16x16x128xf32> to vector<512x128xf32>
    %10 = arith.truncf %9 : vector<512x128xf32> to vector<512x128xbf16>
    %c0_23 = arith.constant 0 : index
    %c0_24 = arith.constant 0 : index
    %11 = vector.load %arg1[%c0_23, %c0_24] : memref<1152x128xbf16, #tpu.memory_space<vmem>>, vector<128x128xbf16>
    %cst_25 = arith.constant dense<0.000000e+00> : vector<512x128xf32>
    %12 = tpu.matmul %10, %11, %cst_25 {dimension_numbers = #tpu.dot_dimension_numbers<[1], [0], [0], [1], [0, 0, 1, 1], [], []>} : vector<512x128xbf16>, vector<128x128xbf16>, vector<512x128xf32> -> vector<512x128xf32>
    %c0_26 = arith.constant 0 : index
    %c0_27 = arith.constant 0 : index
    %c8_28 = arith.constant 8 : index
    %c0_29 = arith.constant 0 : index
    %13 = vector.load %arg8[%c0_26, %c0_27, %c8_28, %c0_29] : memref<2x18x32x128xf32, #tpu.memory_space<vmem>>, vector<2x16x16x128xf32>
    %14 = vector.shape_cast %13 : vector<2x16x16x128xf32> to vector<512x128xf32>
    %15 = arith.truncf %14 : vector<512x128xf32> to vector<512x128xbf16>
    %c128 = arith.constant 128 : index
    %c0_30 = arith.constant 0 : index
    %16 = vector.load %arg1[%c128, %c0_30] : memref<1152x128xbf16, #tpu.memory_space<vmem>>, vector<128x128xbf16>
    %cst_31 = arith.constant dense<0.000000e+00> : vector<512x128xf32>
    %17 = tpu.matmul %15, %16, %cst_31 {dimension_numbers = #tpu.dot_dimension_numbers<[1], [0], [0], [1], [0, 0, 1, 1], [], []>} : vector<512x128xbf16>, vector<128x128xbf16>, vector<512x128xf32> -> vector<512x128xf32>
    %18 = arith.addf %12, %17 : vector<512x128xf32>
    %c0_32 = arith.constant 0 : index
    %c0_33 = arith.constant 0 : index
    %c9 = arith.constant 9 : index
    %c0_34 = arith.constant 0 : index
    %19 = vector.load %arg8[%c0_32, %c0_33, %c9, %c0_34] : memref<2x18x32x128xf32, #tpu.memory_space<vmem>>, vector<2x16x16x128xf32>
    %20 = vector.shape_cast %19 : vector<2x16x16x128xf32> to vector<512x128xf32>
    %21 = arith.truncf %20 : vector<512x128xf32> to vector<512x128xbf16>
    %c256 = arith.constant 256 : index
    %c0_35 = arith.constant 0 : index
    %22 = vector.load %arg1[%c256, %c0_35] : memref<1152x128xbf16, #tpu.memory_space<vmem>>, vector<128x128xbf16>
    %cst_36 = arith.constant dense<0.000000e+00> : vector<512x128xf32>
    %23 = tpu.matmul %21, %22, %cst_36 {dimension_numbers = #tpu.dot_dimension_numbers<[1], [0], [0], [1], [0, 0, 1, 1], [], []>} : vector<512x128xbf16>, vector<128x128xbf16>, vector<512x128xf32> -> vector<512x128xf32>
    %24 = arith.addf %18, %23 : vector<512x128xf32>
    %c0_37 = arith.constant 0 : index
    %c1_38 = arith.constant 1 : index
    %c7_39 = arith.constant 7 : index
    %c0_40 = arith.constant 0 : index
    %25 = vector.load %arg8[%c0_37, %c1_38, %c7_39, %c0_40] : memref<2x18x32x128xf32, #tpu.memory_space<vmem>>, vector<2x16x16x128xf32>
    %26 = vector.shape_cast %25 : vector<2x16x16x128xf32> to vector<512x128xf32>
    %27 = arith.truncf %26 : vector<512x128xf32> to vector<512x128xbf16>
    %c384 = arith.constant 384 : index
    %c0_41 = arith.constant 0 : index
    %28 = vector.load %arg1[%c384, %c0_41] : memref<1152x128xbf16, #tpu.memory_space<vmem>>, vector<128x128xbf16>
    %cst_42 = arith.constant dense<0.000000e+00> : vector<512x128xf32>
    %29 = tpu.matmul %27, %28, %cst_42 {dimension_numbers = #tpu.dot_dimension_numbers<[1], [0], [0], [1], [0, 0, 1, 1], [], []>} : vector<512x128xbf16>, vector<128x128xbf16>, vector<512x128xf32> -> vector<512x128xf32>
    %30 = arith.addf %24, %29 : vector<512x128xf32>
    %c0_43 = arith.constant 0 : index
    %c1_44 = arith.constant 1 : index
    %c8_45 = arith.constant 8 : index
    %c0_46 = arith.constant 0 : index
    %31 = vector.load %arg8[%c0_43, %c1_44, %c8_45, %c0_46] : memref<2x18x32x128xf32, #tpu.memory_space<vmem>>, vector<2x16x16x128xf32>
    %32 = vector.shape_cast %31 : vector<2x16x16x128xf32> to vector<512x128xf32>
    %33 = arith.truncf %32 : vector<512x128xf32> to vector<512x128xbf16>
    %c512 = arith.constant 512 : index
    %c0_47 = arith.constant 0 : index
    %34 = vector.load %arg1[%c512, %c0_47] : memref<1152x128xbf16, #tpu.memory_space<vmem>>, vector<128x128xbf16>
    %cst_48 = arith.constant dense<0.000000e+00> : vector<512x128xf32>
    %35 = tpu.matmul %33, %34, %cst_48 {dimension_numbers = #tpu.dot_dimension_numbers<[1], [0], [0], [1], [0, 0, 1, 1], [], []>} : vector<512x128xbf16>, vector<128x128xbf16>, vector<512x128xf32> -> vector<512x128xf32>
    %36 = arith.addf %30, %35 : vector<512x128xf32>
    %c0_49 = arith.constant 0 : index
    %c1_50 = arith.constant 1 : index
    %c9_51 = arith.constant 9 : index
    %c0_52 = arith.constant 0 : index
    %37 = vector.load %arg8[%c0_49, %c1_50, %c9_51, %c0_52] : memref<2x18x32x128xf32, #tpu.memory_space<vmem>>, vector<2x16x16x128xf32>
    %38 = vector.shape_cast %37 : vector<2x16x16x128xf32> to vector<512x128xf32>
    %39 = arith.truncf %38 : vector<512x128xf32> to vector<512x128xbf16>
    %c640 = arith.constant 640 : index
    %c0_53 = arith.constant 0 : index
    %40 = vector.load %arg1[%c640, %c0_53] : memref<1152x128xbf16, #tpu.memory_space<vmem>>, vector<128x128xbf16>
    %cst_54 = arith.constant dense<0.000000e+00> : vector<512x128xf32>
    %41 = tpu.matmul %39, %40, %cst_54 {dimension_numbers = #tpu.dot_dimension_numbers<[1], [0], [0], [1], [0, 0, 1, 1], [], []>} : vector<512x128xbf16>, vector<128x128xbf16>, vector<512x128xf32> -> vector<512x128xf32>
    %42 = arith.addf %36, %41 : vector<512x128xf32>
    %c0_55 = arith.constant 0 : index
    %c2 = arith.constant 2 : index
    %c7_56 = arith.constant 7 : index
    %c0_57 = arith.constant 0 : index
    %43 = vector.load %arg8[%c0_55, %c2, %c7_56, %c0_57] : memref<2x18x32x128xf32, #tpu.memory_space<vmem>>, vector<2x16x16x128xf32>
    %44 = vector.shape_cast %43 : vector<2x16x16x128xf32> to vector<512x128xf32>
    %45 = arith.truncf %44 : vector<512x128xf32> to vector<512x128xbf16>
    %c768 = arith.constant 768 : index
    %c0_58 = arith.constant 0 : index
    %46 = vector.load %arg1[%c768, %c0_58] : memref<1152x128xbf16, #tpu.memory_space<vmem>>, vector<128x128xbf16>
    %cst_59 = arith.constant dense<0.000000e+00> : vector<512x128xf32>
    %47 = tpu.matmul %45, %46, %cst_59 {dimension_numbers = #tpu.dot_dimension_numbers<[1], [0], [0], [1], [0, 0, 1, 1], [], []>} : vector<512x128xbf16>, vector<128x128xbf16>, vector<512x128xf32> -> vector<512x128xf32>
    %48 = arith.addf %42, %47 : vector<512x128xf32>
    %c0_60 = arith.constant 0 : index
    %c2_61 = arith.constant 2 : index
    %c8_62 = arith.constant 8 : index
    %c0_63 = arith.constant 0 : index
    %49 = vector.load %arg8[%c0_60, %c2_61, %c8_62, %c0_63] : memref<2x18x32x128xf32, #tpu.memory_space<vmem>>, vector<2x16x16x128xf32>
    %50 = vector.shape_cast %49 : vector<2x16x16x128xf32> to vector<512x128xf32>
    %51 = arith.truncf %50 : vector<512x128xf32> to vector<512x128xbf16>
    %c896 = arith.constant 896 : index
    %c0_64 = arith.constant 0 : index
    %52 = vector.load %arg1[%c896, %c0_64] : memref<1152x128xbf16, #tpu.memory_space<vmem>>, vector<128x128xbf16>
    %cst_65 = arith.constant dense<0.000000e+00> : vector<512x128xf32>
    %53 = tpu.matmul %51, %52, %cst_65 {dimension_numbers = #tpu.dot_dimension_numbers<[1], [0], [0], [1], [0, 0, 1, 1], [], []>} : vector<512x128xbf16>, vector<128x128xbf16>, vector<512x128xf32> -> vector<512x128xf32>
    %54 = arith.addf %48, %53 : vector<512x128xf32>
    %c0_66 = arith.constant 0 : index
    %c2_67 = arith.constant 2 : index
    %c9_68 = arith.constant 9 : index
    %c0_69 = arith.constant 0 : index
    %55 = vector.load %arg8[%c0_66, %c2_67, %c9_68, %c0_69] : memref<2x18x32x128xf32, #tpu.memory_space<vmem>>, vector<2x16x16x128xf32>
    %56 = vector.shape_cast %55 : vector<2x16x16x128xf32> to vector<512x128xf32>
    %57 = arith.truncf %56 : vector<512x128xf32> to vector<512x128xbf16>
    %c1024 = arith.constant 1024 : index
    %c0_70 = arith.constant 0 : index
    %58 = vector.load %arg1[%c1024, %c0_70] : memref<1152x128xbf16, #tpu.memory_space<vmem>>, vector<128x128xbf16>
    %cst_71 = arith.constant dense<0.000000e+00> : vector<512x128xf32>
    %59 = tpu.matmul %57, %58, %cst_71 {dimension_numbers = #tpu.dot_dimension_numbers<[1], [0], [0], [1], [0, 0, 1, 1], [], []>} : vector<512x128xbf16>, vector<128x128xbf16>, vector<512x128xf32> -> vector<512x128xf32>
    %60 = arith.addf %54, %59 : vector<512x128xf32>
    %c0_72 = arith.constant 0 : index
    %c0_73 = arith.constant 0 : index
    %61 = vector.load %arg2[%c0_72, %c0_73] : memref<1x128xf32, #tpu.memory_space<vmem>>, vector<1x128xf32>
    %c0_74 = arith.constant 0 : index
    %c0_75 = arith.constant 0 : index
    %62 = vector.load %arg3[%c0_74, %c0_75] : memref<1x128xf32, #tpu.memory_space<vmem>>, vector<1x128xf32>
    %cst_76 = arith.constant 0.000000e+00 : f32
    %63 = vector.broadcast %cst_76 : f32 to vector<1x128xf32>
    %cst_77 = arith.constant 0.000000e+00 : f32
    %64 = vector.broadcast %cst_77 : f32 to vector<1x128xf32>
    %65 = vector.extract_strided_slice %60 {offsets = [0, 0], sizes = [128, 128], strides = [1, 1]} : vector<512x128xf32> to vector<128x128xf32>
    %cst_78 = arith.constant dense<0.000000e+00> : vector<128xf32>
    %66 = vector.multi_reduction <add>, %65, %cst_78 [0] : vector<128x128xf32> to vector<128xf32>
    %67 = vector.shape_cast %66 : vector<128xf32> to vector<1x128xf32>
    %68 = arith.addf %63, %67 : vector<1x128xf32>
    %69 = arith.mulf %65, %65 : vector<128x128xf32>
    %cst_79 = arith.constant dense<0.000000e+00> : vector<128xf32>
    %70 = vector.multi_reduction <add>, %69, %cst_79 [0] : vector<128x128xf32> to vector<128xf32>
    %71 = vector.shape_cast %70 : vector<128xf32> to vector<1x128xf32>
    %72 = arith.addf %64, %71 : vector<1x128xf32>
    %73 = vector.extract_strided_slice %60 {offsets = [128, 0], sizes = [128, 128], strides = [1, 1]} : vector<512x128xf32> to vector<128x128xf32>
    %cst_80 = arith.constant dense<0.000000e+00> : vector<128xf32>
    %74 = vector.multi_reduction <add>, %73, %cst_80 [0] : vector<128x128xf32> to vector<128xf32>
    %75 = vector.shape_cast %74 : vector<128xf32> to vector<1x128xf32>
    %76 = arith.addf %68, %75 : vector<1x128xf32>
    %77 = arith.mulf %73, %73 : vector<128x128xf32>
    %cst_81 = arith.constant dense<0.000000e+00> : vector<128xf32>
    %78 = vector.multi_reduction <add>, %77, %cst_81 [0] : vector<128x128xf32> to vector<128xf32>
    %79 = vector.shape_cast %78 : vector<128xf32> to vector<1x128xf32>
    %80 = arith.addf %72, %79 : vector<1x128xf32>
    %81 = vector.extract_strided_slice %60 {offsets = [256, 0], sizes = [128, 128], strides = [1, 1]} : vector<512x128xf32> to vector<128x128xf32>
    %cst_82 = arith.constant dense<0.000000e+00> : vector<128xf32>
    %82 = vector.multi_reduction <add>, %81, %cst_82 [0] : vector<128x128xf32> to vector<128xf32>
    %83 = vector.shape_cast %82 : vector<128xf32> to vector<1x128xf32>
    %84 = arith.addf %76, %83 : vector<1x128xf32>
    %85 = arith.mulf %81, %81 : vector<128x128xf32>
    %cst_83 = arith.constant dense<0.000000e+00> : vector<128xf32>
    %86 = vector.multi_reduction <add>, %85, %cst_83 [0] : vector<128x128xf32> to vector<128xf32>
    %87 = vector.shape_cast %86 : vector<128xf32> to vector<1x128xf32>
    %88 = arith.addf %80, %87 : vector<1x128xf32>
    %89 = vector.extract_strided_slice %60 {offsets = [384, 0], sizes = [128, 128], strides = [1, 1]} : vector<512x128xf32> to vector<128x128xf32>
    %cst_84 = arith.constant dense<0.000000e+00> : vector<128xf32>
    %90 = vector.multi_reduction <add>, %89, %cst_84 [0] : vector<128x128xf32> to vector<128xf32>
    %91 = vector.shape_cast %90 : vector<128xf32> to vector<1x128xf32>
    %92 = arith.addf %84, %91 : vector<1x128xf32>
    %93 = arith.mulf %89, %89 : vector<128x128xf32>
    %cst_85 = arith.constant dense<0.000000e+00> : vector<128xf32>
    %94 = vector.multi_reduction <add>, %93, %cst_85 [0] : vector<128x128xf32> to vector<128xf32>
    %95 = vector.shape_cast %94 : vector<128xf32> to vector<1x128xf32>
    %96 = arith.addf %88, %95 : vector<1x128xf32>
    %cst_86 = arith.constant 0.001953125 : f32
    %97 = vector.broadcast %cst_86 : f32 to vector<1x128xf32>
    %98 = arith.mulf %92, %97 : vector<1x128xf32>
    %cst_87 = arith.constant 0.001953125 : f32
    %99 = vector.broadcast %cst_87 : f32 to vector<1x128xf32>
    %100 = arith.mulf %96, %99 : vector<1x128xf32>
    %101 = arith.mulf %98, %98 : vector<1x128xf32>
    %102 = arith.subf %100, %101 : vector<1x128xf32>
    %cst_88 = arith.constant 0.000000e+00 : f32
    %103 = vector.broadcast %cst_88 : f32 to vector<1x128xf32>
    %104 = arith.maximumf %102, %103 : vector<1x128xf32>
    %cst_89 = arith.constant 9.99999974E-6 : f32
    %105 = vector.broadcast %cst_89 : f32 to vector<1x128xf32>
    %106 = arith.addf %104, %105 : vector<1x128xf32>
    %107 = math.rsqrt %106 : vector<1x128xf32>
    %108 = arith.mulf %61, %107 : vector<1x128xf32>
    %109 = arith.mulf %98, %108 : vector<1x128xf32>
    %110 = arith.subf %62, %109 : vector<1x128xf32>
    %111 = vector.broadcast %108 : vector<1x128xf32> to vector<512x128xf32>
    %112 = arith.mulf %60, %111 : vector<512x128xf32>
    %113 = vector.broadcast %110 : vector<1x128xf32> to vector<512x128xf32>
    %114 = arith.addf %112, %113 : vector<512x128xf32>
    %cst_90 = arith.constant 0.000000e+00 : f32
    %115 = vector.broadcast %cst_90 : f32 to vector<512x128xf32>
    %116 = arith.maximumf %114, %115 : vector<512x128xf32>
    %117 = vector.shape_cast %116 : vector<512x128xf32> to vector<2x16x16x128xf32>
    %c0_91 = arith.constant 0 : index
    %c1_92 = arith.constant 1 : index
    %c8_93 = arith.constant 8 : index
    %c0_94 = arith.constant 0 : index
    %118 = vector.load %arg8[%c0_91, %c1_92, %c8_93, %c0_94] : memref<2x18x32x128xf32, #tpu.memory_space<vmem>>, vector<2x16x16x128xf32>
    tpu.vector_store %arg8[%c0_91, %c1_92, %c8_93, %c0_94], %117 {strides = array<i32>} : memref<2x18x32x128xf32, #tpu.memory_space<vmem>>, vector<2x16x16x128xf32>,
    %c0_95 = arith.constant 0 : index
    %c0_96 = arith.constant 0 : index
    %c7_97 = arith.constant 7 : index
    %c0_98 = arith.constant 0 : index
    %119 = vector.load %arg8[%c0_95, %c0_96, %c7_97, %c0_98] : memref<2x18x32x128xf32, #tpu.memory_space<vmem>>, vector<2x16x16x128xf32>
    %120 = vector.shape_cast %119 : vector<2x16x16x128xf32> to vector<512x128xf32>
    %121 = arith.truncf %120 : vector<512x128xf32> to vector<512x128xbf16>
    %c0_99 = arith.constant 0 : index
    %c0_100 = arith.constant 0 : index
    %122 = vector.load %arg4[%c0_99, %c0_100] : memref<1152x128xbf16, #tpu.memory_space<vmem>>, vector<128x128xbf16>
    %cst_101 = arith.constant dense<0.000000e+00> : vector<512x128xf32>
    %123 = tpu.matmul %121, %122, %cst_101 {dimension_numbers = #tpu.dot_dimension_numbers<[1], [0], [0], [1], [0, 0, 1, 1], [], []>} : vector<512x128xbf16>, vector<128x128xbf16>, vector<512x128xf32> -> vector<512x128xf32>
    %c0_102 = arith.constant 0 : index
    %c0_103 = arith.constant 0 : index
    %c8_104 = arith.constant 8 : index
    %c0_105 = arith.constant 0 : index
    %124 = vector.load %arg8[%c0_102, %c0_103, %c8_104, %c0_105] : memref<2x18x32x128xf32, #tpu.memory_space<vmem>>, vector<2x16x16x128xf32>
    %125 = vector.shape_cast %124 : vector<2x16x16x128xf32> to vector<512x128xf32>
    %126 = arith.truncf %125 : vector<512x128xf32> to vector<512x128xbf16>
    %c128_106 = arith.constant 128 : index
    %c0_107 = arith.constant 0 : index
    %127 = vector.load %arg4[%c128_106, %c0_107] : memref<1152x128xbf16, #tpu.memory_space<vmem>>, vector<128x128xbf16>
    %cst_108 = arith.constant dense<0.000000e+00> : vector<512x128xf32>
    %128 = tpu.matmul %126, %127, %cst_108 {dimension_numbers = #tpu.dot_dimension_numbers<[1], [0], [0], [1], [0, 0, 1, 1], [], []>} : vector<512x128xbf16>, vector<128x128xbf16>, vector<512x128xf32> -> vector<512x128xf32>
    %129 = arith.addf %123, %128 : vector<512x128xf32>
    %c0_109 = arith.constant 0 : index
    %c0_110 = arith.constant 0 : index
    %c9_111 = arith.constant 9 : index
    %c0_112 = arith.constant 0 : index
    %130 = vector.load %arg8[%c0_109, %c0_110, %c9_111, %c0_112] : memref<2x18x32x128xf32, #tpu.memory_space<vmem>>, vector<2x16x16x128xf32>
    %131 = vector.shape_cast %130 : vector<2x16x16x128xf32> to vector<512x128xf32>
    %132 = arith.truncf %131 : vector<512x128xf32> to vector<512x128xbf16>
    %c256_113 = arith.constant 256 : index
    %c0_114 = arith.constant 0 : index
    %133 = vector.load %arg4[%c256_113, %c0_114] : memref<1152x128xbf16, #tpu.memory_space<vmem>>, vector<128x128xbf16>
    %cst_115 = arith.constant dense<0.000000e+00> : vector<512x128xf32>
    %134 = tpu.matmul %132, %133, %cst_115 {dimension_numbers = #tpu.dot_dimension_numbers<[1], [0], [0], [1], [0, 0, 1, 1], [], []>} : vector<512x128xbf16>, vector<128x128xbf16>, vector<512x128xf32> -> vector<512x128xf32>
    %135 = arith.addf %129, %134 : vector<512x128xf32>
    %c0_116 = arith.constant 0 : index
    %c1_117 = arith.constant 1 : index
    %c7_118 = arith.constant 7 : index
    %c0_119 = arith.constant 0 : index
    %136 = vector.load %arg8[%c0_116, %c1_117, %c7_118, %c0_119] : memref<2x18x32x128xf32, #tpu.memory_space<vmem>>, vector<2x16x16x128xf32>
    %137 = vector.shape_cast %136 : vector<2x16x16x128xf32> to vector<512x128xf32>
    %138 = arith.truncf %137 : vector<512x128xf32> to vector<512x128xbf16>
    %c384_120 = arith.constant 384 : index
    %c0_121 = arith.constant 0 : index
    %139 = vector.load %arg4[%c384_120, %c0_121] : memref<1152x128xbf16, #tpu.memory_space<vmem>>, vector<128x128xbf16>
    %cst_122 = arith.constant dense<0.000000e+00> : vector<512x128xf32>
    %140 = tpu.matmul %138, %139, %cst_122 {dimension_numbers = #tpu.dot_dimension_numbers<[1], [0], [0], [1], [0, 0, 1, 1], [], []>} : vector<512x128xbf16>, vector<128x128xbf16>, vector<512x128xf32> -> vector<512x128xf32>
    %141 = arith.addf %135, %140 : vector<512x128xf32>
    %c0_123 = arith.constant 0 : index
    %c1_124 = arith.constant 1 : index
    %c8_125 = arith.constant 8 : index
    %c0_126 = arith.constant 0 : index
    %142 = vector.load %arg8[%c0_123, %c1_124, %c8_125, %c0_126] : memref<2x18x32x128xf32, #tpu.memory_space<vmem>>, vector<2x16x16x128xf32>
    %143 = vector.shape_cast %142 : vector<2x16x16x128xf32> to vector<512x128xf32>
    %144 = arith.truncf %143 : vector<512x128xf32> to vector<512x128xbf16>
    %c512_127 = arith.constant 512 : index
    %c0_128 = arith.constant 0 : index
    %145 = vector.load %arg4[%c512_127, %c0_128] : memref<1152x128xbf16, #tpu.memory_space<vmem>>, vector<128x128xbf16>
    %cst_129 = arith.constant dense<0.000000e+00> : vector<512x128xf32>
    %146 = tpu.matmul %144, %145, %cst_129 {dimension_numbers = #tpu.dot_dimension_numbers<[1], [0], [0], [1], [0, 0, 1, 1], [], []>} : vector<512x128xbf16>, vector<128x128xbf16>, vector<512x128xf32> -> vector<512x128xf32>
    %147 = arith.addf %141, %146 : vector<512x128xf32>
    %c0_130 = arith.constant 0 : index
    %c1_131 = arith.constant 1 : index
    %c9_132 = arith.constant 9 : index
    %c0_133 = arith.constant 0 : index
    %148 = vector.load %arg8[%c0_130, %c1_131, %c9_132, %c0_133] : memref<2x18x32x128xf32, #tpu.memory_space<vmem>>, vector<2x16x16x128xf32>
    %149 = vector.shape_cast %148 : vector<2x16x16x128xf32> to vector<512x128xf32>
    %150 = arith.truncf %149 : vector<512x128xf32> to vector<512x128xbf16>
    %c640_134 = arith.constant 640 : index
    %c0_135 = arith.constant 0 : index
    %151 = vector.load %arg4[%c640_134, %c0_135] : memref<1152x128xbf16, #tpu.memory_space<vmem>>, vector<128x128xbf16>
    %cst_136 = arith.constant dense<0.000000e+00> : vector<512x128xf32>
    %152 = tpu.matmul %150, %151, %cst_136 {dimension_numbers = #tpu.dot_dimension_numbers<[1], [0], [0], [1], [0, 0, 1, 1], [], []>} : vector<512x128xbf16>, vector<128x128xbf16>, vector<512x128xf32> -> vector<512x128xf32>
    %153 = arith.addf %147, %152 : vector<512x128xf32>
    %c0_137 = arith.constant 0 : index
    %c2_138 = arith.constant 2 : index
    %c7_139 = arith.constant 7 : index
    %c0_140 = arith.constant 0 : index
    %154 = vector.load %arg8[%c0_137, %c2_138, %c7_139, %c0_140] : memref<2x18x32x128xf32, #tpu.memory_space<vmem>>, vector<2x16x16x128xf32>
    %155 = vector.shape_cast %154 : vector<2x16x16x128xf32> to vector<512x128xf32>
    %156 = arith.truncf %155 : vector<512x128xf32> to vector<512x128xbf16>
    %c768_141 = arith.constant 768 : index
    %c0_142 = arith.constant 0 : index
    %157 = vector.load %arg4[%c768_141, %c0_142] : memref<1152x128xbf16, #tpu.memory_space<vmem>>, vector<128x128xbf16>
    %cst_143 = arith.constant dense<0.000000e+00> : vector<512x128xf32>
    %158 = tpu.matmul %156, %157, %cst_143 {dimension_numbers = #tpu.dot_dimension_numbers<[1], [0], [0], [1], [0, 0, 1, 1], [], []>} : vector<512x128xbf16>, vector<128x128xbf16>, vector<512x128xf32> -> vector<512x128xf32>
    %159 = arith.addf %153, %158 : vector<512x128xf32>
    %c0_144 = arith.constant 0 : index
    %c2_145 = arith.constant 2 : index
    %c8_146 = arith.constant 8 : index
    %c0_147 = arith.constant 0 : index
    %160 = vector.load %arg8[%c0_144, %c2_145, %c8_146, %c0_147] : memref<2x18x32x128xf32, #tpu.memory_space<vmem>>, vector<2x16x16x128xf32>
    %161 = vector.shape_cast %160 : vector<2x16x16x128xf32> to vector<512x128xf32>
    %162 = arith.truncf %161 : vector<512x128xf32> to vector<512x128xbf16>
    %c896_148 = arith.constant 896 : index
    %c0_149 = arith.constant 0 : index
    %163 = vector.load %arg4[%c896_148, %c0_149] : memref<1152x128xbf16, #tpu.memory_space<vmem>>, vector<128x128xbf16>
    %cst_150 = arith.constant dense<0.000000e+00> : vector<512x128xf32>
    %164 = tpu.matmul %162, %163, %cst_150 {dimension_numbers = #tpu.dot_dimension_numbers<[1], [0], [0], [1], [0, 0, 1, 1], [], []>} : vector<512x128xbf16>, vector<128x128xbf16>, vector<512x128xf32> -> vector<512x128xf32>
    %165 = arith.addf %159, %164 : vector<512x128xf32>
    %c0_151 = arith.constant 0 : index
    %c2_152 = arith.constant 2 : index
    %c9_153 = arith.constant 9 : index
    %c0_154 = arith.constant 0 : index
    %166 = vector.load %arg8[%c0_151, %c2_152, %c9_153, %c0_154] : memref<2x18x32x128xf32, #tpu.memory_space<vmem>>, vector<2x16x16x128xf32>
    %167 = vector.shape_cast %166 : vector<2x16x16x128xf32> to vector<512x128xf32>
    %168 = arith.truncf %167 : vector<512x128xf32> to vector<512x128xbf16>
    %c1024_155 = arith.constant 1024 : index
    %c0_156 = arith.constant 0 : index
    %169 = vector.load %arg4[%c1024_155, %c0_156] : memref<1152x128xbf16, #tpu.memory_space<vmem>>, vector<128x128xbf16>
    %cst_157 = arith.constant dense<0.000000e+00> : vector<512x128xf32>
    %170 = tpu.matmul %168, %169, %cst_157 {dimension_numbers = #tpu.dot_dimension_numbers<[1], [0], [0], [1], [0, 0, 1, 1], [], []>} : vector<512x128xbf16>, vector<128x128xbf16>, vector<512x128xf32> -> vector<512x128xf32>
    %171 = arith.addf %165, %170 : vector<512x128xf32>
    %c0_158 = arith.constant 0 : index
    %c0_159 = arith.constant 0 : index
    %172 = vector.load %arg5[%c0_158, %c0_159] : memref<1x128xf32, #tpu.memory_space<vmem>>, vector<1x128xf32>
    %c0_160 = arith.constant 0 : index
    %c0_161 = arith.constant 0 : index
    %173 = vector.load %arg6[%c0_160, %c0_161] : memref<1x128xf32, #tpu.memory_space<vmem>>, vector<1x128xf32>
    %cst_162 = arith.constant 0.000000e+00 : f32
    %174 = vector.broadcast %cst_162 : f32 to vector<1x128xf32>
    %cst_163 = arith.constant 0.000000e+00 : f32
    %175 = vector.broadcast %cst_163 : f32 to vector<1x128xf32>
    %176 = vector.extract_strided_slice %171 {offsets = [0, 0], sizes = [128, 128], strides = [1, 1]} : vector<512x128xf32> to vector<128x128xf32>
    %cst_164 = arith.constant dense<0.000000e+00> : vector<128xf32>
    %177 = vector.multi_reduction <add>, %176, %cst_164 [0] : vector<128x128xf32> to vector<128xf32>
    %178 = vector.shape_cast %177 : vector<128xf32> to vector<1x128xf32>
    %179 = arith.addf %174, %178 : vector<1x128xf32>
    %180 = arith.mulf %176, %176 : vector<128x128xf32>
    %cst_165 = arith.constant dense<0.000000e+00> : vector<128xf32>
    %181 = vector.multi_reduction <add>, %180, %cst_165 [0] : vector<128x128xf32> to vector<128xf32>
    %182 = vector.shape_cast %181 : vector<128xf32> to vector<1x128xf32>
    %183 = arith.addf %175, %182 : vector<1x128xf32>
    %184 = vector.extract_strided_slice %171 {offsets = [128, 0], sizes = [128, 128], strides = [1, 1]} : vector<512x128xf32> to vector<128x128xf32>
    %cst_166 = arith.constant dense<0.000000e+00> : vector<128xf32>
    %185 = vector.multi_reduction <add>, %184, %cst_166 [0] : vector<128x128xf32> to vector<128xf32>
    %186 = vector.shape_cast %185 : vector<128xf32> to vector<1x128xf32>
    %187 = arith.addf %179, %186 : vector<1x128xf32>
    %188 = arith.mulf %184, %184 : vector<128x128xf32>
    %cst_167 = arith.constant dense<0.000000e+00> : vector<128xf32>
    %189 = vector.multi_reduction <add>, %188, %cst_167 [0] : vector<128x128xf32> to vector<128xf32>
    %190 = vector.shape_cast %189 : vector<128xf32> to vector<1x128xf32>
    %191 = arith.addf %183, %190 : vector<1x128xf32>
    %192 = vector.extract_strided_slice %171 {offsets = [256, 0], sizes = [128, 128], strides = [1, 1]} : vector<512x128xf32> to vector<128x128xf32>
    %cst_168 = arith.constant dense<0.000000e+00> : vector<128xf32>
    %193 = vector.multi_reduction <add>, %192, %cst_168 [0] : vector<128x128xf32> to vector<128xf32>
    %194 = vector.shape_cast %193 : vector<128xf32> to vector<1x128xf32>
    %195 = arith.addf %187, %194 : vector<1x128xf32>
    %196 = arith.mulf %192, %192 : vector<128x128xf32>
    %cst_169 = arith.constant dense<0.000000e+00> : vector<128xf32>
    %197 = vector.multi_reduction <add>, %196, %cst_169 [0] : vector<128x128xf32> to vector<128xf32>
    %198 = vector.shape_cast %197 : vector<128xf32> to vector<1x128xf32>
    %199 = arith.addf %191, %198 : vector<1x128xf32>
    %200 = vector.extract_strided_slice %171 {offsets = [384, 0], sizes = [128, 128], strides = [1, 1]} : vector<512x128xf32> to vector<128x128xf32>
    %cst_170 = arith.constant dense<0.000000e+00> : vector<128xf32>
    %201 = vector.multi_reduction <add>, %200, %cst_170 [0] : vector<128x128xf32> to vector<128xf32>
    %202 = vector.shape_cast %201 : vector<128xf32> to vector<1x128xf32>
    %203 = arith.addf %195, %202 : vector<1x128xf32>
    %204 = arith.mulf %200, %200 : vector<128x128xf32>
    %cst_171 = arith.constant dense<0.000000e+00> : vector<128xf32>
    %205 = vector.multi_reduction <add>, %204, %cst_171 [0] : vector<128x128xf32> to vector<128xf32>
    %206 = vector.shape_cast %205 : vector<128xf32> to vector<1x128xf32>
    %207 = arith.addf %199, %206 : vector<1x128xf32>
    %cst_172 = arith.constant 0.001953125 : f32
    %208 = vector.broadcast %cst_172 : f32 to vector<1x128xf32>
    %209 = arith.mulf %203, %208 : vector<1x128xf32>
    %cst_173 = arith.constant 0.001953125 : f32
    %210 = vector.broadcast %cst_173 : f32 to vector<1x128xf32>
    %211 = arith.mulf %207, %210 : vector<1x128xf32>
    %212 = arith.mulf %209, %209 : vector<1x128xf32>
    %213 = arith.subf %211, %212 : vector<1x128xf32>
    %cst_174 = arith.constant 0.000000e+00 : f32
    %214 = vector.broadcast %cst_174 : f32 to vector<1x128xf32>
    %215 = arith.maximumf %213, %214 : vector<1x128xf32>
    %cst_175 = arith.constant 9.99999974E-6 : f32
    %216 = vector.broadcast %cst_175 : f32 to vector<1x128xf32>
    %217 = arith.addf %215, %216 : vector<1x128xf32>
    %218 = math.rsqrt %217 : vector<1x128xf32>
    %219 = arith.mulf %172, %218 : vector<1x128xf32>
    %220 = arith.mulf %209, %219 : vector<1x128xf32>
    %221 = arith.subf %173, %220 : vector<1x128xf32>
    %c0_176 = arith.constant 0 : index
    %c0_177 = arith.constant 0 : index
    %c0_178 = arith.constant 0 : index
    %c0_179 = arith.constant 0 : index
    %222 = vector.load %arg0[%c0_176, %c0_177, %c0_178, %c0_179] : memref<2x16x16x128xf32, #tpu.memory_space<vmem>>, vector<2x16x16x128xf32>
    %223 = vector.shape_cast %222 : vector<2x16x16x128xf32> to vector<512x128xf32>
    %224 = vector.broadcast %219 : vector<1x128xf32> to vector<512x128xf32>
    %225 = arith.mulf %171, %224 : vector<512x128xf32>
    %226 = vector.broadcast %221 : vector<1x128xf32> to vector<512x128xf32>
    %227 = arith.addf %225, %226 : vector<512x128xf32>
    %228 = arith.addf %227, %223 : vector<512x128xf32>
    %cst_180 = arith.constant 0.000000e+00 : f32
    %229 = vector.broadcast %cst_180 : f32 to vector<512x128xf32>
    %230 = arith.maximumf %228, %229 : vector<512x128xf32>
    %231 = vector.shape_cast %230 : vector<512x128xf32> to vector<2x16x16x128xf32>
    %c0_181 = arith.constant 0 : index
    %c0_182 = arith.constant 0 : index
    %c0_183 = arith.constant 0 : index
    %c0_184 = arith.constant 0 : index
    %232 = vector.load %arg7[%c0_181, %c0_182, %c0_183, %c0_184] : memref<2x16x16x128xf32, #tpu.memory_space<vmem>>, vector<2x16x16x128xf32>
    tpu.vector_store %arg7[%c0_181, %c0_182, %c0_183, %c0_184], %231 {strides = array<i32>} : memref<2x16x16x128xf32, #tpu.memory_space<vmem>>, vector<2x16x16x128xf32>,
    return
  }
}

</mosaic_0001>

<bundles_post_ra>
// kernel: resnet_block.1
= control target key start
LH: loop header
LB: loop body
LE: loop exit
PB: predicated region body
PF: predicated region fallthrough
CT: control target
= control target key end

     0   :  { %v8977_v2 = vmov 0.0   ;;  %v8978_v23 = vmov 0.0|0.0   ;;  %s12826_s1 = inlined_call_operand.vmem [shape: bf16[1152,128], index: 1, kind: input, shape index: {}]   ;;  %s12827_s0 = inlined_call_operand.vmem [shape: f32[2,16,16,128], index: 0, kind: input, shape index: {}]   ;;  %s12828_s4 = inlined_call_operand.vmem [shape: bf16[1152,128], index: 4, kind: input, shape index: {}]   ;;  %s12829_s2 = inlined_call_operand.vmem [shape: f32[1,128], index: 2, kind: input, shape index: {}]   ;;  %s12830_s3 = inlined_call_operand.vmem [shape: f32[1,128], index: 3, kind: input, shape index: {}]   ;;  %s12831_s5 = inlined_call_operand.vmem [shape: f32[1,128], index: 5, kind: input, shape index: {}]   ;;  %s12832_s6 = inlined_call_operand.vmem [shape: f32[1,128], index: 6, kind: input, shape index: {}]   ;;  %s12833_s7 = inlined_call_operand.vmem [shape: f32[2,16,16,128], index: 7, kind: output, shape index: {}]  }
   0x1   :  { %v8824_v0 = vld [vmem:[%s12826_s1 + $0x78] sm:$0xff]  ;;  %31 = vst [vmem:[#allocation2 + $0x248] sm:$0xff] %v8977_v2  ;;  %v8823_v3 = vld [vmem:[%s12826_s1 + $0x70] sm:$0xff]  ;;  %v8822_v5 = vld [vmem:[%s12826_s1 + $0x68] sm:$0xff] }
   0x2   :  { %v8816_v1 = vld [vmem:[%s12826_s1 + $0x38] sm:$0xff]  ;;  %32 = vst [vmem:[#allocation2 + $0x250] sm:$0xff] %v8977_v2  ;;  %8953 = vmatpush.bf16.msra.mxu2 %v8824_v0  ;;  %v8815_v4 = vld [vmem:[%s12826_s1 + $0x30] sm:$0xff]  ;;  %508 = vmatpush.bf16.msra.mxu0 %v8824_v0  ;;  %v8814_v6 = vld [vmem:[%s12826_s1 + $0x28] sm:$0xff] }
   0x3   :  { %8961 = vmatpush.bf16.msra.mxu3 %v8816_v1  ;;  %26 = vst [vmem:[#allocation2] sm:$0xff] %v8977_v2  ;;  %725 = vmatpush.bf16.msra.mxu1 %v8816_v1  ;;  %v8821_v7 = vld [vmem:[%s12826_s1 + $0x60] sm:$0xff]  ;;  %v8820_v9 = vld [vmem:[%s12826_s1 + $0x58] sm:$0xff]  ;;  %v8819_v11 = vld [vmem:[%s12826_s1 + $0x50] sm:$0xff] }
   0x4   :  { %27 = vst [vmem:[#allocation2 + $0x8] sm:$0xff] %v8977_v2  ;;  %v8813_v8 = vld [vmem:[%s12826_s1 + $0x20] sm:$0xff]  ;;  %v8812_v10 = vld [vmem:[%s12826_s1 + $0x18] sm:$0xff]  ;;  %v8811_v12 = vld [vmem:[%s12826_s1 + $0x10] sm:$0xff] }
   0x5   :  { %28 = vst [vmem:[#allocation2 + $0x10] sm:$0xff] %v8977_v2  ;;  %v8818_v13 = vld [vmem:[%s12826_s1 + $0x48] sm:$0xff]  ;;  %v8817_v15 = vld [vmem:[%s12826_s1 + $0x40] sm:$0xff]  ;;  %v8832_v24 = vld [vmem:[%s12826_s1 + $0xb8] sm:$0xff] }
   0x6   :  { %29 = vst [vmem:[#allocation2 + $0x18] sm:$0xff] %v8977_v2  ;;  %8954 = vmatpush.bf16.msra.mxu2 %v8823_v3  ;;  %509 = vmatpush.bf16.msra.mxu0 %v8823_v3  ;;  %v8810_v14 = vld [vmem:[%s12826_s1 + $0x8] sm:$0xff]  ;;  %v8809_v16 = vld [vmem:[%s12826_s1] sm:$0xff]  ;;  %v8840_v25 = vld [vmem:[%s12826_s1 + $0xf8] sm:$0xff] }
   0x7   :  { %8962 = vmatpush.bf16.msra.mxu3 %v8815_v4  ;;  %30 = vst [vmem:[#allocation2 + $0x240] sm:$0xff] %v8977_v2  ;;  %726 = vmatpush.bf16.msra.mxu1 %v8815_v4  ;;  %v8848_v26 = vld [vmem:[%s12826_s1 + $0x138] sm:$0xff]  ;;  %v140_v27 = vld [vmem:[%s12827_s0 + $0x100] sm:$0xff]  ;;  %v141_v28 = vld [vmem:[%s12827_s0 + $0x108] sm:$0xff] }
   0x8   :  { %33 = vst [vmem:[#allocation2 + $0x258] sm:$0xff] %v8977_v2  ;;  %v429_v29 = vpack.c.bf16 %v141_v28, %v140_v27  ;;  %v108_v30 = vld [vmem:[%s12827_s0] sm:$0xff]  ;;  %v109_v31 = vld [vmem:[%s12827_s0 + $0x8] sm:$0xff]  ;;  %v142_v33 = vld [vmem:[%s12827_s0 + $0x110] sm:$0xff] }
   0x9   :  { %35 = vst [vmem:[#allocation2 + $0x220] sm:$0xff] %v8977_v2  ;;  %v269_v18 = vld [vmem:[#allocation2 + $0x24f] sm:$0xff]  ;;  %v413_v32 = vpack.c.bf16 %v109_v31, %v108_v30  ;;  %v143_v34 = vld [vmem:[%s12827_s0 + $0x118] sm:$0xff]  ;;  %v144_v42 = vld [vmem:[%s12827_s0 + $0x120] sm:$0xff] }
   0xa   :  { %36 = vst [vmem:[#allocation2 + $0x228] sm:$0xff] %v8977_v2  ;;  %8955 = vmatpush.bf16.msra.mxu2 %v8822_v5  ;;  %510 = vmatpush.bf16.msra.mxu0 %v8822_v5  ;;  %v430_v35 = vpack.c.bf16 %v143_v34, %v142_v33  ;;  %v110_v36 = vld [vmem:[%s12827_s0 + $0x10] sm:$0xff]  ;;  %v111_v37 = vld [vmem:[%s12827_s0 + $0x18] sm:$0xff]  ;;  %v145_v43 = vld [vmem:[%s12827_s0 + $0x128] sm:$0xff] }
   0xb   :  { %8963 = vmatpush.bf16.msra.mxu3 %v8814_v6  ;;  %37 = vst [vmem:[#allocation2 + $0x230] sm:$0xff] %v8977_v2  ;;  %727 = vmatpush.bf16.msra.mxu1 %v8814_v6  ;;  %v236_v19 = vld [vmem:[#allocation2 + $0x7] sm:$0xff]  ;;  %v8831_v38 = vld [vmem:[%s12826_s1 + $0xb0] sm:$0xff]  ;;  %v414_v39 = vpack.c.bf16 %v111_v37, %v110_v36  ;;  %v431_v44 = vpack.c.bf16 %v145_v43, %v144_v42  ;;  %v147_v55 = vld [vmem:[%s12827_s0 + $0x138] sm:$0xff] }
   0xc   :  { %38 = vst [vmem:[#allocation2 + $0x238] sm:$0xff] %v8977_v2  ;;  %v237_v20 = vld [vmem:[#allocation2 + $0xf] sm:$0xff]  ;;  %v112_v46 = vld [vmem:[%s12827_s0 + $0x20] sm:$0xff]  ;;  %v115_v58 = vld [vmem:[%s12827_s0 + $0x38] sm:$0xff] }
   0xd   :  { %39 = vst [vmem:[#allocation2 + $0x460] sm:$0xff] %v8977_v2  ;;  %v300_v22 = vpack.c.bf16 %v237_v20, %v236_v19  ;;  %v8839_v40 = vld [vmem:[%s12826_s1 + $0xf0] sm:$0xff]  ;;  %v113_v48 = vld [vmem:[%s12827_s0 + $0x28] sm:$0xff]  ;;  %v148_v5 = vld [vmem:[%s12827_s0 + $0x140] sm:$0xff] }
   0xe   :  { %40 = vst [vmem:[#allocation2 + $0x468] sm:$0xff] %v8977_v2  ;;  %8956 = vmatpush.bf16.msra.mxu2 %v8821_v7  ;;  %511 = vmatpush.bf16.msra.mxu0 %v8821_v7  ;;  %v268_v17 = vld [vmem:[#allocation2 + $0x247] sm:$0xff]  ;;  %v8847_v41 = vld [vmem:[%s12826_s1 + $0x130] sm:$0xff]  ;;  %v415_v53 = vpack.c.bf16 %v113_v48, %v112_v46 }
   0xf   :  { %8964 = vmatpush.bf16.msra.mxu3 %v8813_v8  ;;  %41 = vst [vmem:[#allocation2 + $0x470] sm:$0xff] %v8977_v2  ;;  %728 = vmatpush.bf16.msra.mxu1 %v8813_v8  ;;  %v316_v21 = vpack.c.bf16 %v269_v18, %v268_v17  ;;  %v146_v54 = vld [vmem:[%s12827_s0 + $0x130] sm:$0xff]  ;;  %v8830_v1 = vld [vmem:[%s12826_s1 + $0xa8] sm:$0xff]  ;;  %v116_v8 = vld [vmem:[%s12827_s0 + $0x40] sm:$0xff] }
  0x10   :  { %42 = vst [vmem:[#allocation2 + $0x478] sm:$0xff] %v8977_v2  ;;  %v432_v56 = vpack.c.bf16 %v147_v55, %v146_v54  ;;  %v114_v57 = vld [vmem:[%s12827_s0 + $0x30] sm:$0xff]  ;;  %v8838_v3 = vld [vmem:[%s12826_s1 + $0xe8] sm:$0xff]  ;;  %v151_v18 = vld [vmem:[%s12827_s0 + $0x158] sm:$0xff] }
  0x11   :  { %44 = vst [vmem:[#allocation2 + $0x27] sm:$0x1] %v8977_v2  ;;  %v8846_v4 = vld [vmem:[%s12826_s1 + $0x128] sm:$0xff]  ;;  %v150_v17 = vld [vmem:[%s12827_s0 + $0x150] sm:$0xff] }
  0x12   :  { %45 = vst [vmem:[#allocation2 + $0x47] sm:$0x1] %v8977_v2  ;;  %8957 = vmatpush.bf16.msra.mxu2 %v8820_v9  ;;  %512 = vmatpush.bf16.msra.mxu0 %v8820_v9  ;;  %v149_v6 = vld [vmem:[%s12827_s0 + $0x148] sm:$0xff]  ;;  %v434_v19 = vpack.c.bf16 %v151_v18, %v150_v17  ;;  %v118_v20 = vld [vmem:[%s12827_s0 + $0x50] sm:$0xff] }
  0x13   :  { %8965 = vmatpush.bf16.msra.mxu3 %v8812_v10  ;;  %46 = vst [vmem:[#allocation2 + $0x67] sm:$0x1] %v8977_v2  ;;  %729 = vmatpush.bf16.msra.mxu1 %v8812_v10  ;;  %v433_v7 = vpack.c.bf16 %v149_v6, %v148_v5  ;;  %v117_v9 = vld [vmem:[%s12827_s0 + $0x48] sm:$0xff] }
  0x14   :  { %47 = vst [vmem:[#allocation2 + $0x87] sm:$0x1] %v8977_v2 }
  0x15   :  { %48 = vst [vmem:[#allocation2 + $0xa7] sm:$0x1] %v8977_v2 }
  0x16   :  { %49 = vst [vmem:[#allocation2 + $0xc7] sm:$0x1] %v8977_v2  ;;  %8958 = vmatpush.bf16.msra.mxu2 %v8819_v11  ;;  %513 = vmatpush.bf16.msra.mxu0 %v8819_v11 }
  0x17   :  { %8966 = vmatpush.bf16.msra.mxu3 %v8811_v12  ;;  %50 = vst [vmem:[#allocation2 + $0xe7] sm:$0x1] %v8977_v2  ;;  %730 = vmatpush.bf16.msra.mxu1 %v8811_v12 }
  0x18   :  { %51 = vst [vmem:[#allocation2 + $0x107] sm:$0x1] %v8977_v2 }
  0x19   :  { %52 = vst [vmem:[#allocation2 + $0x127] sm:$0x1] %v8977_v2 }
  0x1a   :  { %53 = vst [vmem:[#allocation2 + $0x147] sm:$0x1] %v8977_v2  ;;  %8959 = vmatpush.bf16.msra.mxu2 %v8818_v13  ;;  %514 = vmatpush.bf16.msra.mxu0 %v8818_v13 }
  0x1b   :  { %8967 = vmatpush.bf16.msra.mxu3 %v8810_v14  ;;  %54 = vst [vmem:[#allocation2 + $0x167] sm:$0x1] %v8977_v2  ;;  %731 = vmatpush.bf16.msra.mxu1 %v8810_v14 }
  0x1c   :  { %55 = vst [vmem:[#allocation2 + $0x187] sm:$0x1] %v8977_v2 }
  0x1d   :  { %56 = vst [vmem:[#allocation2 + $0x1a7] sm:$0x1] %v8977_v2 }
  0x1e   :  { %57 = vst [vmem:[#allocation2 + $0x1c7] sm:$0x1] %v8977_v2  ;;  %8960 = vmatpush.bf16.msra.mxu2 %v8817_v15  ;;  %515 = vmatpush.bf16.msra.mxu0 %v8817_v15 }
  0x1f   :  { %8968 = vmatpush.bf16.msra.mxu3 %v8809_v16  ;;  %58 = vst [vmem:[#allocation2 + $0x1e7] sm:$0x1] %v8977_v2  ;;  %732 = vmatpush.bf16.msra.mxu1 %v8809_v16  ;;  %v417_v16 = vpack.c.bf16 %v117_v9, %v116_v8 }
  0x20   :  { %59 = vst [vmem:[#allocation2 + $0x207] sm:$0x1] %v8977_v2 }
  0x21   :  { %60 = vst [vmem:[#allocation2 + $0x267] sm:$0x1] %v8977_v2  ;;  %596 = vmatmul.bf16.vlgmr.msra.gmra.mxu2 %v8978_v23  ;;  %516 = vmatmul.bf16.vlgmr.msra.gmra.mxu0 %v8978_v23 }
  0x22   :  { %61 = vst [vmem:[#allocation2 + $0x287] sm:$0x1] %v8977_v2  ;;  %813 = vmatmul.bf16.vlgmr.msra.gmra.mxu3 %v316_v21  ;;  %733 = vmatmul.bf16.vlgmr.msra.gmra.mxu1 %v300_v22  ;;  %v119_v21 = vld [vmem:[%s12827_s0 + $0x58] sm:$0xff] }
  0x23   :  { %62 = vst [vmem:[#allocation2 + $0x2a7] sm:$0x1] %v8977_v2  ;;  %1054 = vmatpush.bf16.msrb.mxu2 %v8832_v24  ;;  %1447 = vmatpush.bf16.msrb.mxu3 %v8840_v25 }
  0x24   :  { %63 = vst [vmem:[#allocation2 + $0x2c7] sm:$0x1] %v8977_v2  ;;  %1840 = vmatpush.bf16.msrb.mxu0 %v8848_v26 }
  0x25   :  { %64 = vst [vmem:[#allocation2 + $0x2e7] sm:$0x1] %v8977_v2 }
  0x26   :  { %65 = vst [vmem:[#allocation2 + $0x307] sm:$0x1] %v8977_v2 }
  0x27   :  { %66 = vst [vmem:[#allocation2 + $0x327] sm:$0x1] %v8977_v2  ;;  %1055 = vmatpush.bf16.msrb.mxu2 %v8831_v38  ;;  %1448 = vmatpush.bf16.msrb.mxu3 %v8839_v40 }
  0x28   :  { %67 = vst [vmem:[#allocation2 + $0x347] sm:$0x1] %v8977_v2  ;;  %1841 = vmatpush.bf16.msrb.mxu0 %v8847_v41 }
  0x29   :  { %68 = vst [vmem:[#allocation2 + $0x367] sm:$0x1] %v8977_v2 }
  0x2a   :  { %69 = vst [vmem:[#allocation2 + $0x387] sm:$0x1] %v8977_v2 }
  0x2b   :  { %70 = vst [vmem:[#allocation2 + $0x3a7] sm:$0x1] %v8977_v2  ;;  %1056 = vmatpush.bf16.msrb.mxu2 %v8830_v1  ;;  %1449 = vmatpush.bf16.msrb.mxu3 %v8838_v3  ;;  %v157_v3 = vld [vmem:[%s12827_s0 + $0x188] sm:$0xff] }
  0x2c   :  { %71 = vst [vmem:[#allocation2 + $0x3c7] sm:$0x1] %v8977_v2  ;;  %1842 = vmatpush.bf16.msrb.mxu0 %v8846_v4  ;;  %v124_v4 = vld [vmem:[%s12827_s0 + $0x80] sm:$0xff] }
  0x2d   :  { %72 = vst [vmem:[#allocation2 + $0x3e7] sm:$0x1] %v8977_v2 }
  0x2e   :  { %73 = vst [vmem:[#allocation2 + $0x407] sm:$0x1] %v8977_v2 }
  0x2f   :  { %74 = vst [vmem:[#allocation2 + $0x427] sm:$0x1] %v8977_v2 }
  0x30   :  { %75 = vst [vmem:[#allocation2 + $0x447] sm:$0x1] %v8977_v2 }
  0x31   :  { %76 = vst [vmem:[#allocation2 + $0x38] sm:$0x1] %v8977_v2  ;;  %601 = vmatmul.bf16.gmra.mxu2 %v429_v29  ;;  %521 = vmatmul.bf16.gmra.mxu0 %v413_v32  ;;  %v418_v29 = vpack.c.bf16 %v119_v21, %v118_v20  ;;  %v152_v32 = vld [vmem:[%s12827_s0 + $0x160] sm:$0xff] }
  0x32   :  { %77 = vst [vmem:[#allocation2 + $0x58] sm:$0x1] %v8977_v2 }
  0x33   :  { %78 = vst [vmem:[#allocation2 + $0x78] sm:$0x1] %v8977_v2 }
  0x34   :  { %79 = vst [vmem:[#allocation2 + $0x98] sm:$0x1] %v8977_v2 }
  0x35   :  { %80 = vst [vmem:[#allocation2 + $0xb8] sm:$0x1] %v8977_v2 }
  0x36   :  { %81 = vst [vmem:[#allocation2 + $0xd8] sm:$0x1] %v8977_v2 }
  0x37   :  { %82 = vst [vmem:[#allocation2 + $0xf8] sm:$0x1] %v8977_v2 }
  0x38   :  { %83 = vst [vmem:[#allocation2 + $0x118] sm:$0x1] %v8977_v2 }
  0x39   :  { %84 = vst [vmem:[#allocation2 + $0x138] sm:$0x1] %v8977_v2 }
  0x3a   :  { %85 = vst [vmem:[#allocation2 + $0x158] sm:$0x1] %v8977_v2 }
  0x3b   :  { %86 = vst [vmem:[#allocation2 + $0x178] sm:$0x1] %v8977_v2 }
  0x3c   :  { %87 = vst [vmem:[#allocation2 + $0x198] sm:$0x1] %v8977_v2 }
  0x3d   :  { %88 = vst [vmem:[#allocation2 + $0x1b8] sm:$0x1] %v8977_v2 }
  0x3e   :  { %89 = vst [vmem:[#allocation2 + $0x1d8] sm:$0x1] %v8977_v2 }
  0x3f   :  { %90 = vst [vmem:[#allocation2 + $0x1f8] sm:$0x1] %v8977_v2 }
  0x40   :  { %91 = vst [vmem:[#allocation2 + $0x218] sm:$0x1] %v8977_v2 }
  0x41   :  { %92 = vst [vmem:[#allocation2 + $0x278] sm:$0x1] %v8977_v2  ;;  %606 = vmatmul.bf16.gmra.mxu2 %v430_v35  ;;  %526 = vmatmul.bf16.gmra.mxu0 %v414_v39  ;;  %v120_v35 = vld [vmem:[%s12827_s0 + $0x60] sm:$0xff] }
  0x42   :  { %93 = vst [vmem:[#allocation2 + $0x298] sm:$0x1] %v8977_v2 }
  0x43   :  { %94 = vst [vmem:[#allocation2 + $0x2b8] sm:$0x1] %v8977_v2 }
  0x44   :  { %95 = vst [vmem:[#allocation2 + $0x2d8] sm:$0x1] %v8977_v2 }
  0x45   :  { %96 = vst [vmem:[#allocation2 + $0x2f8] sm:$0x1] %v8977_v2 }
  0x46   :  { %97 = vst [vmem:[#allocation2 + $0x318] sm:$0x1] %v8977_v2 }
  0x47   :  { %98 = vst [vmem:[#allocation2 + $0x338] sm:$0x1] %v8977_v2 }
  0x48   :  { %99 = vst [vmem:[#allocation2 + $0x358] sm:$0x1] %v8977_v2 }
  0x49   :  { %100 = vst [vmem:[#allocation2 + $0x378] sm:$0x1] %v8977_v2 }
  0x4a   :  { %101 = vst [vmem:[#allocation2 + $0x398] sm:$0x1] %v8977_v2 }
  0x4b   :  { %102 = vst [vmem:[#allocation2 + $0x3b8] sm:$0x1] %v8977_v2 }
  0x4c   :  { %103 = vst [vmem:[#allocation2 + $0x3d8] sm:$0x1] %v8977_v2 }
  0x4d   :  { %104 = vst [vmem:[#allocation2 + $0x3f8] sm:$0x1] %v8977_v2 }
  0x4e   :  { %105 = vst [vmem:[#allocation2 + $0x418] sm:$0x1] %v8977_v2 }
  0x4f   :  { %106 = vst [vmem:[#allocation2 + $0x438] sm:$0x1] %v8977_v2 }
  0x50   :  { %107 = vst [vmem:[#allocation2 + $0x458] sm:$0x1] %v8977_v2  ;;  %v416_v2 = vpack.c.bf16 %v115_v58, %v114_v57 }
  0x51   :  { %204 = vst [vmem:[#allocation2 + $0x268] sm:$0xff] %v140_v27  ;;  %611 = vmatmul.bf16.gmra.mxu2 %v431_v44  ;;  %531 = vmatmul.bf16.gmra.mxu0 %v415_v53  ;;  %v154_v44 = vld [vmem:[%s12827_s0 + $0x170] sm:$0xff] }
  0x52   :  { %205 = vst [vmem:[#allocation2 + $0x270] sm:$0xff] %v141_v28  ;;  %v8829_v28 = vld [vmem:[%s12826_s1 + $0xa0] sm:$0xff] }
  0x53   :  { %172 = vst [vmem:[#allocation2 + $0x28] sm:$0xff] %v108_v30  ;;  %1057 = vmatpush.bf16.msrb.mxu2 %v8829_v28  ;;  %v8837_v30 = vld [vmem:[%s12826_s1 + $0xe0] sm:$0xff] }
  0x54   :  { %173 = vst [vmem:[#allocation2 + $0x30] sm:$0xff] %v109_v31  ;;  %v8845_v31 = vld [vmem:[%s12826_s1 + $0x120] sm:$0xff]  ;;  %1450 = vmatpush.bf16.msrb.mxu3 %v8837_v30 }
  0x55   :  { %206 = vst [vmem:[#allocation2 + $0x288] sm:$0xff] %v142_v33  ;;  %v153_v33 = vld [vmem:[%s12827_s0 + $0x168] sm:$0xff]  ;;  %1843 = vmatpush.bf16.msrb.mxu0 %v8845_v31  ;;  %v8827_v31 = vld [vmem:[%s12826_s1 + $0x90] sm:$0xff] }
  0x56   :  { %207 = vst [vmem:[#allocation2 + $0x290] sm:$0xff] %v143_v34  ;;  %v435_v34 = vpack.c.bf16 %v153_v33, %v152_v32 }
  0x57   :  { %174 = vst [vmem:[#allocation2 + $0x48] sm:$0xff] %v110_v36  ;;  %v121_v36 = vld [vmem:[%s12827_s0 + $0x68] sm:$0xff] }
  0x58   :  { %v270_v45 = vld [vmem:[#allocation2 + $0x267] sm:$0xff]  ;;  %175 = vst [vmem:[#allocation2 + $0x50] sm:$0xff] %v111_v37 }
  0x59   :  { %v271_v47 = vld [vmem:[#allocation2 + $0x26f] sm:$0xff]  ;;  %208 = vst [vmem:[#allocation2 + $0x2a8] sm:$0xff] %v144_v42 }
  0x5a   :  { %v317_v49 = vpack.c.bf16 %v271_v47, %v270_v45  ;;  %v238_v50 = vld [vmem:[#allocation2 + $0x27] sm:$0xff]  ;;  %209 = vst [vmem:[#allocation2 + $0x2b0] sm:$0xff] %v145_v43  ;;  %v419_v43 = vpack.c.bf16 %v121_v36, %v120_v35  ;;  %v155_v45 = vld [vmem:[%s12827_s0 + $0x178] sm:$0xff] }
  0x5b   :  { %v239_v51 = vld [vmem:[#allocation2 + $0x2f] sm:$0xff]  ;;  %176 = vst [vmem:[#allocation2 + $0x68] sm:$0xff] %v112_v46 }
  0x5c   :  { %818 = vmatmul.bf16.gmra.mxu3 %v317_v49  ;;  %v301_v52 = vpack.c.bf16 %v239_v51, %v238_v50  ;;  %177 = vst [vmem:[#allocation2 + $0x70] sm:$0xff] %v113_v48  ;;  %v272_v59 = vld [vmem:[#allocation2 + $0x287] sm:$0xff]  ;;  %v436_v48 = vpack.c.bf16 %v155_v45, %v154_v44  ;;  %v122_v50 = vld [vmem:[%s12827_s0 + $0x70] sm:$0xff]  ;;  %v123_v51 = vld [vmem:[%s12827_s0 + $0x78] sm:$0xff] }
  0x5d   :  { %210 = vst [vmem:[#allocation2 + $0x2c8] sm:$0xff] %v146_v54  ;;  %v273_v60 = vld [vmem:[#allocation2 + $0x28f] sm:$0xff] }
  0x5e   :  { %738 = vmatmul.bf16.gmra.mxu1 %v301_v52  ;;  %211 = vst [vmem:[#allocation2 + $0x2d0] sm:$0xff] %v147_v55  ;;  %v240_v61 = vld [vmem:[#allocation2 + $0x47] sm:$0xff]  ;;  %v318_v63 = vpack.c.bf16 %v273_v60, %v272_v59  ;;  %v420_v59 = vpack.c.bf16 %v123_v51, %v122_v50  ;;  %v8836_v60 = vld [vmem:[%s12826_s1 + $0xd8] sm:$0xff] }
  0x5f   :  { %178 = vst [vmem:[#allocation2 + $0x88] sm:$0xff] %v114_v57  ;;  %v241_v62 = vld [vmem:[#allocation2 + $0x4f] sm:$0xff]  ;;  %1451 = vmatpush.bf16.msrb.mxu3 %v8836_v60  ;;  %v163_v60 = vld [vmem:[%s12827_s0 + $0x1b8] sm:$0xff] }
  0x60   :  { %179 = vst [vmem:[#allocation2 + $0x90] sm:$0xff] %v115_v58  ;;  %v302_v0 = vpack.c.bf16 %v241_v62, %v240_v61  ;;  %v274_v10 = vld [vmem:[#allocation2 + $0x2a7] sm:$0xff]  ;;  %v8828_v58 = vld [vmem:[%s12826_s1 + $0x98] sm:$0xff] }
  0x61   :  { %616 = vmatmul.bf16.gmra.mxu2 %v432_v56  ;;  %536 = vmatmul.bf16.gmra.mxu0 %v416_v2  ;;  %212 = vst [vmem:[#allocation2 + $0x2e8] sm:$0xff] %v148_v5  ;;  %v275_v11 = vld [vmem:[#allocation2 + $0x2af] sm:$0xff]  ;;  %v156_v2 = vld [vmem:[%s12827_s0 + $0x180] sm:$0xff] }
  0x62   :  { %213 = vst [vmem:[#allocation2 + $0x2f0] sm:$0xff] %v149_v6  ;;  %v242_v12 = vld [vmem:[#allocation2 + $0x67] sm:$0xff]  ;;  %v319_v14 = vpack.c.bf16 %v275_v11, %v274_v10  ;;  %1058 = vmatpush.bf16.msrb.mxu2 %v8828_v58 }
  0x63   :  { %180 = vst [vmem:[#allocation2 + $0xa8] sm:$0xff] %v116_v8  ;;  %v243_v13 = vld [vmem:[#allocation2 + $0x6f] sm:$0xff] }
  0x64   :  { %181 = vst [vmem:[#allocation2 + $0xb0] sm:$0xff] %v117_v9  ;;  %v303_v15 = vpack.c.bf16 %v243_v13, %v242_v12  ;;  %v276_v22 = vld [vmem:[#allocation2 + $0x2c7] sm:$0xff]  ;;  %v437_v13 = vpack.c.bf16 %v157_v3, %v156_v2 }
  0x65   :  { %214 = vst [vmem:[#allocation2 + $0x308] sm:$0xff] %v150_v17  ;;  %v277_v23 = vld [vmem:[#allocation2 + $0x2cf] sm:$0xff] }
  0x66   :  { %215 = vst [vmem:[#allocation2 + $0x310] sm:$0xff] %v151_v18  ;;  %v244_v24 = vld [vmem:[#allocation2 + $0x87] sm:$0xff]  ;;  %v320_v26 = vpack.c.bf16 %v277_v23, %v276_v22  ;;  %v158_v17 = vld [vmem:[%s12827_s0 + $0x190] sm:$0xff]  ;;  %v159_v18 = vld [vmem:[%s12827_s0 + $0x198] sm:$0xff]  ;;  %1059 = vmatpush.bf16.msrb.mxu2 %v8827_v31 }
  0x67   :  { %182 = vst [vmem:[#allocation2 + $0xc8] sm:$0xff] %v118_v20  ;;  %v245_v25 = vld [vmem:[#allocation2 + $0x8f] sm:$0xff] }
  0x68   :  { %183 = vst [vmem:[#allocation2 + $0xd0] sm:$0xff] %v119_v21  ;;  %v304_v27 = vpack.c.bf16 %v245_v25, %v244_v24  ;;  %v278_v37 = vld [vmem:[#allocation2 + $0x2e7] sm:$0xff]  ;;  %v126_v20 = vld [vmem:[%s12827_s0 + $0x90] sm:$0xff]  ;;  %v127_v21 = vld [vmem:[%s12827_s0 + $0x98] sm:$0xff] }
  0x69   :  { %216 = vst [vmem:[#allocation2 + $0x328] sm:$0xff] %v152_v32  ;;  %v279_v38 = vld [vmem:[#allocation2 + $0x2ef] sm:$0xff]  ;;  %v422_v32 = vpack.c.bf16 %v127_v21, %v126_v20 }
  0x6a   :  { %217 = vst [vmem:[#allocation2 + $0x330] sm:$0xff] %v153_v33  ;;  %v246_v39 = vld [vmem:[#allocation2 + $0xa7] sm:$0xff]  ;;  %v321_v41 = vpack.c.bf16 %v279_v38, %v278_v37  ;;  %v8835_v33 = vld [vmem:[%s12826_s1 + $0xd0] sm:$0xff] }
  0x6b   :  { %184 = vst [vmem:[#allocation2 + $0xe8] sm:$0xff] %v120_v35  ;;  %v247_v40 = vld [vmem:[#allocation2 + $0xaf] sm:$0xff]  ;;  %1452 = vmatpush.bf16.msrb.mxu3 %v8835_v33 }
  0x6c   :  { %823 = vmatmul.bf16.gmra.mxu3 %v318_v63  ;;  %185 = vst [vmem:[#allocation2 + $0xf0] sm:$0xff] %v121_v36  ;;  %v305_v42 = vpack.c.bf16 %v247_v40, %v246_v39  ;;  %v280_v52 = vld [vmem:[#allocation2 + $0x307] sm:$0xff]  ;;  %v8844_v63 = vld [vmem:[%s12826_s1 + $0x118] sm:$0xff] }
  0x6d   :  { %218 = vst [vmem:[#allocation2 + $0x348] sm:$0xff] %v154_v44  ;;  %v281_v53 = vld [vmem:[#allocation2 + $0x30f] sm:$0xff]  ;;  %1844 = vmatpush.bf16.msrb.mxu0 %v8844_v63  ;;  %v160_v36 = vld [vmem:[%s12827_s0 + $0x1a0] sm:$0xff] }
  0x6e   :  { %743 = vmatmul.bf16.gmra.mxu1 %v302_v0  ;;  %219 = vst [vmem:[#allocation2 + $0x350] sm:$0xff] %v155_v45  ;;  %v248_v54 = vld [vmem:[#allocation2 + $0xc7] sm:$0xff]  ;;  %v322_v56 = vpack.c.bf16 %v281_v53, %v280_v52  ;;  %v130_v63 = vld [vmem:[%s12827_s0 + $0xb0] sm:$0xff] }
  0x6f   :  { %186 = vst [vmem:[#allocation2 + $0x108] sm:$0xff] %v122_v50  ;;  %v249_v55 = vld [vmem:[#allocation2 + $0xcf] sm:$0xff]  ;;  %v128_v39 = vld [vmem:[%s12827_s0 + $0xa0] sm:$0xff] }
  0x70   :  { %187 = vst [vmem:[#allocation2 + $0x110] sm:$0xff] %v123_v51  ;;  %v306_v57 = vpack.c.bf16 %v249_v55, %v248_v54  ;;  %v125_v5 = vld [vmem:[%s12827_s0 + $0x88] sm:$0xff] }
  0x71   :  { %621 = vmatmul.bf16.gmra.mxu2 %v433_v7  ;;  %541 = vmatmul.bf16.gmra.mxu0 %v417_v16  ;;  %220 = vst [vmem:[#allocation2 + $0x368] sm:$0xff] %v156_v2  ;;  %v282_v6 = vld [vmem:[#allocation2 + $0x327] sm:$0xff]  ;;  %v283_v7 = vld [vmem:[#allocation2 + $0x32f] sm:$0xff]  ;;  %v131_v2 = vld [vmem:[%s12827_s0 + $0xb8] sm:$0xff] }
  0x72   :  { %221 = vst [vmem:[#allocation2 + $0x370] sm:$0xff] %v157_v3  ;;  %v250_v9 = vld [vmem:[#allocation2 + $0xe7] sm:$0xff]  ;;  %v323_v11 = vpack.c.bf16 %v283_v7, %v282_v6 }
  0x73   :  { %188 = vst [vmem:[#allocation2 + $0x128] sm:$0xff] %v124_v4  ;;  %v251_v10 = vld [vmem:[#allocation2 + $0xef] sm:$0xff] }
  0x74   :  { %189 = vst [vmem:[#allocation2 + $0x130] sm:$0xff] %v125_v5  ;;  %v307_v12 = vpack.c.bf16 %v251_v10, %v250_v9  ;;  %v284_v22 = vld [vmem:[#allocation2 + $0x347] sm:$0xff] }
  0x75   :  { %222 = vst [vmem:[#allocation2 + $0x388] sm:$0xff] %v158_v17  ;;  %v285_v23 = vld [vmem:[#allocation2 + $0x34f] sm:$0xff] }
  0x76   :  { %223 = vst [vmem:[#allocation2 + $0x390] sm:$0xff] %v159_v18  ;;  %v252_v25 = vld [vmem:[#allocation2 + $0x107] sm:$0xff] }
  0x77   :  { %190 = vst [vmem:[#allocation2 + $0x148] sm:$0xff] %v126_v20  ;;  %v161_v37 = vld [vmem:[%s12827_s0 + $0x1a8] sm:$0xff] }
  0x78   :  { %191 = vst [vmem:[#allocation2 + $0x150] sm:$0xff] %v127_v21  ;;  %v129_v40 = vld [vmem:[%s12827_s0 + $0xa8] sm:$0xff]  ;;  %v439_v51 = vpack.c.bf16 %v161_v37, %v160_v36 }
  0x79   :  { %224 = vst [vmem:[#allocation2 + $0x3a8] sm:$0xff] %v160_v36  ;;  %v287_v44 = vld [vmem:[#allocation2 + $0x36f] sm:$0xff]  ;;  %v423_v55 = vpack.c.bf16 %v129_v40, %v128_v39 }
  0x7a   :  { %225 = vst [vmem:[#allocation2 + $0x3b0] sm:$0xff] %v161_v37  ;;  %v8834_v20 = vld [vmem:[%s12826_s1 + $0xc8] sm:$0xff] }
  0x7b   :  { %192 = vst [vmem:[#allocation2 + $0x168] sm:$0xff] %v128_v39  ;;  %1453 = vmatpush.bf16.msrb.mxu3 %v8834_v20  ;;  %v8842_v31 = vld [vmem:[%s12826_s1 + $0x108] sm:$0xff] }
  0x7c   :  { %828 = vmatmul.bf16.gmra.mxu3 %v319_v14  ;;  %193 = vst [vmem:[#allocation2 + $0x170] sm:$0xff] %v129_v40 }
  0x7d   :  { %227 = vst [vmem:[#allocation2 + $0x3d0] sm:$0xff] %v163_v60 }
  0x7e   :  { %748 = vmatmul.bf16.gmra.mxu1 %v303_v15  ;;  %v421_v15 = vpack.c.bf16 %v125_v5, %v124_v4  ;;  %194 = vst [vmem:[#allocation2 + $0x188] sm:$0xff] %v130_v63  ;;  %v288_v4 = vld [vmem:[#allocation2 + $0x387] sm:$0xff]  ;;  %v289_v5 = vld [vmem:[#allocation2 + $0x38f] sm:$0xff] }
  0x7f   :  { %195 = vst [vmem:[#allocation2 + $0x190] sm:$0xff] %v131_v2  ;;  %v256_v9 = vld [vmem:[#allocation2 + $0x147] sm:$0xff]  ;;  %v257_v10 = vld [vmem:[#allocation2 + $0x14f] sm:$0xff] }
  0x81   :  { %626 = vmatmul.bf16.gmra.mxu2 %v434_v19  ;;  %546 = vmatmul.bf16.gmra.mxu0 %v418_v29  ;;  %v438_v29 = vpack.c.bf16 %v159_v18, %v158_v17  ;;  %v8826_v18 = vld [vmem:[%s12826_s1 + $0x88] sm:$0xff] }
  0x82   :  { %1060 = vmatpush.bf16.msrb.mxu2 %v8826_v18  ;;  %v291_v33 = vld [vmem:[#allocation2 + $0x3af] sm:$0xff]  ;;  %v258_v37 = vld [vmem:[#allocation2 + $0x167] sm:$0xff] }
  0x83   :  { %v259_v39 = vld [vmem:[#allocation2 + $0x16f] sm:$0xff]  ;;  %v8825_v18 = vld [vmem:[%s12826_s1 + $0x80] sm:$0xff] }
  0x86   :  { %1061 = vmatpush.bf16.msrb.mxu2 %v8825_v18 }
  0x8c   :  { %833 = vmatmul.bf16.gmra.mxu3 %v320_v26  ;;  %v253_v26 = vld [vmem:[#allocation2 + $0x10f] sm:$0xff] }
  0x8d   :  { %v308_v28 = vpack.c.bf16 %v253_v26, %v252_v25  ;;  %v165_v25 = vld [vmem:[%s12827_s0 + $0x1c8] sm:$0xff] }
  0x8e   :  { %753 = vmatmul.bf16.gmra.mxu1 %v304_v27  ;;  %v324_v27 = vpack.c.bf16 %v285_v23, %v284_v22  ;;  %229 = vst [vmem:[#allocation2 + $0x3f0] sm:$0xff] %v165_v25 }
  0x91   :  { %631 = vmatmul.bf16.gmra.mxu2 %v435_v34  ;;  %551 = vmatmul.bf16.gmra.mxu0 %v419_v43  ;;  %v286_v43 = vld [vmem:[#allocation2 + $0x367] sm:$0xff] }
  0x9c   :  { %838 = vmatmul.bf16.gmra.mxu3 %v321_v41  ;;  %v8843_v41 = vld [vmem:[%s12826_s1 + $0x110] sm:$0xff] }
  0x9d   :  { %1845 = vmatpush.bf16.msrb.mxu0 %v8843_v41  ;;  %v311_v41 = vpack.c.bf16 %v259_v39, %v258_v37 }
  0x9e   :  { %758 = vmatmul.bf16.gmra.mxu1 %v305_v42  ;;  %v517_v46 = vpop.f32.mrf.mxu0 }
  0x9f   :  { %v734_v47 = vpop.f32.mrf.mxu1 }
  0xa0   :  { %v9273_v49 = vadd.f32 %v734_v47, %v517_v46  ;;  %v254_v46 = vld [vmem:[#allocation2 + $0x127] sm:$0xff]  ;;  %v255_v47 = vld [vmem:[#allocation2 + $0x12f] sm:$0xff] }
  0xa1   :  { %636 = vmatmul.bf16.gmra.mxu2 %v436_v48  ;;  %556 = vmatmul.bf16.gmra.mxu0 %v420_v59  ;;  %v325_v48 = vpack.c.bf16 %v287_v44, %v286_v43  ;;  %v309_v50 = vpack.c.bf16 %v255_v47, %v254_v46  ;;  %v162_v59 = vld [vmem:[%s12827_s0 + $0x1b0] sm:$0xff] }
  0xa2   :  { %226 = vst [vmem:[#allocation2 + $0x3c8] sm:$0xff] %v162_v59  ;;  %1846 = vmatpush.bf16.msrb.mxu0 %v8842_v31 }
  0xa4   :  { %v597_v61 = vpop.f32.mrf.mxu2 }
  0xa5   :  { %v814_v62 = vpop.f32.mrf.mxu3 }
  0xa6   :  { %v9290_v0 = vadd.f32 %v814_v62, %v597_v61  ;;  %v9292_v1 = vpop.f32.mrf.mxu0 }
  0xa7   :  { %v9334_v35 = vpop.f32.mrf.mxu1 }
  0xac   :  { %843 = vmatmul.bf16.gmra.mxu3 %v322_v56  ;;  %v9306_v8 = vpop.f32.mrf.mxu2 }
  0xad   :  { %v9353_v42 = vpop.f32.mrf.mxu3 }
  0xae   :  { %763 = vmatmul.bf16.gmra.mxu1 %v306_v57  ;;  %v522_v14 = vpop.f32.mrf.mxu0 }
  0xb1   :  { %641 = vmatmul.bf16.gmra.mxu2 %v437_v13  ;;  %561 = vmatmul.bf16.gmra.mxu0 %v421_v15  ;;  %v310_v13 = vpack.c.bf16 %v257_v10, %v256_v9 }
  0xb4   :  { %v602_v16 = vpop.f32.mrf.mxu2 }
  0xb6   :  { %v9314_v19 = vpop.f32.mrf.mxu0 }
  0xbc   :  { %848 = vmatmul.bf16.gmra.mxu3 %v323_v11  ;;  %v9322_v24 = vpop.f32.mrf.mxu2 }
  0xbe   :  { %768 = vmatmul.bf16.gmra.mxu1 %v307_v12  ;;  %v9324_v30 = vpop.f32.mrf.mxu0  ;;  %v326_v12 = vpack.c.bf16 %v289_v5, %v288_v4  ;;  %v260_v5 = vld [vmem:[#allocation2 + $0x187] sm:$0xff] }
  0xc1   :  { %646 = vmatmul.bf16.gmra.mxu2 %v438_v29  ;;  %566 = vmatmul.bf16.gmra.mxu0 %v422_v32  ;;  %v290_v32 = vld [vmem:[#allocation2 + $0x3a7] sm:$0xff] }
  0xc4   :  { %v9332_v34 = vpop.f32.mrf.mxu2 }
  0xc6   :  { %v9342_v38 = vpop.f32.mrf.mxu0 }
  0xcc   :  { %853 = vmatmul.bf16.gmra.mxu3 %v324_v27  ;;  %v9355_v45 = vpop.f32.mrf.mxu2  ;;  %v132_v27 = vld [vmem:[%s12827_s0 + $0xc0] sm:$0xff] }
  0xcd   :  { %196 = vst [vmem:[#allocation2 + $0x1a8] sm:$0xff] %v132_v27 }
  0xce   :  { %773 = vmatmul.bf16.gmra.mxu1 %v308_v28  ;;  %v9357_v53 = vpop.f32.mrf.mxu0  ;;  %v133_v28 = vld [vmem:[%s12827_s0 + $0xc8] sm:$0xff] }
  0xcf   :  { %197 = vst [vmem:[#allocation2 + $0x1b0] sm:$0xff] %v133_v28 }
  0xd1   :  { %651 = vmatmul.bf16.gmra.mxu2 %v439_v51  ;;  %571 = vmatmul.bf16.gmra.mxu0 %v423_v55 }
  0xd4   :  { %v9361_v56 = vpop.f32.mrf.mxu2 }
  0xd6   :  { %v9371_v62 = vpop.f32.mrf.mxu0 }
  0xdb   :  { %v739_v52 = vpop.f32.mrf.mxu1 }
  0xdc   :  { %v9359_v54 = vadd.f32 %v739_v52, %v522_v14  ;;  %858 = vmatmul.bf16.gmra.mxu3 %v325_v48  ;;  %v9382_v6 = vpop.f32.mrf.mxu2  ;;  %v440_v14 = vpack.c.bf16 %v163_v60, %v162_v59  ;;  %v425_v48 = vpack.c.bf16 %v133_v28, %v132_v27  ;;  %v166_v52 = vld [vmem:[%s12827_s0 + $0x1d0] sm:$0xff]  ;;  %v136_v27 = vld [vmem:[%s12827_s0 + $0xe0] sm:$0xff] }
  0xdd   :  { %230 = vst [vmem:[#allocation2 + $0x408] sm:$0xff] %v166_v52 }
  0xde   :  { %778 = vmatmul.bf16.gmra.mxu1 %v309_v50  ;;  %v9390_v17 = vpop.f32.mrf.mxu0  ;;  %200 = vst [vmem:[#allocation2 + $0x1e8] sm:$0xff] %v136_v27 }
  0xdf   :  { %v819_v57 = vpop.f32.mrf.mxu3 }
  0xe0   :  { %v9363_v58 = vadd.f32 %v819_v57, %v602_v16  ;;  %v134_v57 = vld [vmem:[%s12827_s0 + $0xd0] sm:$0xff] }
  0xe1   :  { %656 = vmatmul.bf16.gmra.mxu2 %v440_v14  ;;  %198 = vst [vmem:[#allocation2 + $0x1c8] sm:$0xff] %v134_v57 }
  0xe3   :  { %v741_v61 = vpop.f32.mrf.mxu1 }
  0xe4   :  { %v9380_v3 = vadd.f32 %v741_v61, %v9314_v19  ;;  %v424_v19 = vpack.c.bf16 %v131_v2, %v130_v63  ;;  %v9398_v21 = vpop.f32.mrf.mxu2  ;;  %v292_v61 = vld [vmem:[#allocation2 + $0x3c7] sm:$0xff]  ;;  %v293_v63 = vld [vmem:[#allocation2 + $0x3cf] sm:$0xff] }
  0xe5   :  { %v328_v10 = vpack.c.bf16 %v293_v63, %v292_v61  ;;  %v8854_v63 = vld [vmem:[%s12826_s1 + $0x168] sm:$0xff] }
  0xe6   :  { %576 = vmatmul.bf16.gmra.mxu0 %v424_v19 }
  0xe7   :  { %v821_v7 = vpop.f32.mrf.mxu3 }
  0xe8   :  { %v9385_v11 = vadd.f32 %v821_v7, %v9322_v24  ;;  %v164_v24 = vld [vmem:[%s12827_s0 + $0x1c0] sm:$0xff]  ;;  %v261_v7 = vld [vmem:[#allocation2 + $0x18f] sm:$0xff] }
  0xe9   :  { %228 = vst [vmem:[#allocation2 + $0x3e8] sm:$0xff] %v164_v24  ;;  %v441_v43 = vpack.c.bf16 %v165_v25, %v164_v24  ;;  %v168_v24 = vld [vmem:[%s12827_s0 + $0x1e0] sm:$0xff]  ;;  %v169_v25 = vld [vmem:[%s12827_s0 + $0x1e8] sm:$0xff] }
  0xea   :  { %232 = vst [vmem:[#allocation2 + $0x428] sm:$0xff] %v168_v24 }
  0xeb   :  { %v744_v15 = vpop.f32.mrf.mxu1  ;;  %233 = vst [vmem:[#allocation2 + $0x430] sm:$0xff] %v169_v25 }
  0xec   :  { %v9388_v16 = vadd.f32 %v744_v15, %v9324_v30  ;;  %863 = vmatmul.bf16.gmra.mxu3 %v326_v12  ;;  %v9418_v30 = vpop.f32.mrf.mxu0  ;;  %v312_v12 = vpack.c.bf16 %v261_v7, %v260_v5  ;;  %v8853_v5 = vld [vmem:[%s12826_s1 + $0x160] sm:$0xff] }
  0xee   :  { %783 = vmatmul.bf16.gmra.mxu1 %v310_v13 }
  0xef   :  { %v824_v22 = vpop.f32.mrf.mxu3 }
  0xf0   :  { %v9401_v23 = vadd.f32 %v824_v22, %v9332_v34  ;;  %v9423_v34 = vpop.f32.mrf.mxu2 }
  0xf1   :  { %661 = vmatmul.bf16.gmra.mxu2 %v441_v43 }
  0xf3   :  { %v746_v26 = vpop.f32.mrf.mxu1 }
  0xf4   :  { %v9416_v29 = vadd.f32 %v746_v26, %v9342_v38  ;;  %v327_v38 = vpack.c.bf16 %v291_v33, %v290_v32  ;;  %v9431_v47 = vpop.f32.mrf.mxu0  ;;  %v8841_v32 = vld [vmem:[%s12826_s1 + $0x100] sm:$0xff] }
  0xf5   :  { %v294_v33 = vld [vmem:[#allocation2 + $0x3e7] sm:$0xff]  ;;  %1847 = vmatpush.bf16.msrb.mxu0 %v8841_v32  ;;  %v8851_v32 = vld [vmem:[%s12826_s1 + $0x150] sm:$0xff] }
  0xf6   :  { %581 = vmatmul.bf16.gmra.mxu0 %v425_v48 }
  0xf7   :  { %v826_v36 = vpop.f32.mrf.mxu3 }
  0xf8   :  { %v9426_v40 = vadd.f32 %v826_v36, %v9355_v45  ;;  %v9433_v50 = vpop.f32.mrf.mxu2  ;;  %v295_v36 = vld [vmem:[#allocation2 + $0x3ef] sm:$0xff] }
  0xfa   :  { %12970 = vst [vmem:[#allocation3_spill] sm:$0xff] %v9426_v40 }
  0xfb   :  { %v749_v44 = vpop.f32.mrf.mxu1 }
  0xfc   :  { %v9429_v46 = vadd.f32 %v749_v44, %v9357_v53  ;;  %868 = vmatmul.bf16.gmra.mxu3 %v327_v38  ;;  %v167_v53 = vld [vmem:[%s12827_s0 + $0x1d8] sm:$0xff]  ;;  %v9453_v60 = vpop.f32.mrf.mxu0  ;;  %v262_v38 = vld [vmem:[#allocation2 + $0x1a7] sm:$0xff]  ;;  %v329_v44 = vpack.c.bf16 %v295_v36, %v294_v33  ;;  %v1681_v36 = vld [vmem:[#allocation2 + $0x30] sm:$0xff] }
  0xfd   :  { %231 = vst [vmem:[#allocation2 + $0x410] sm:$0xff] %v167_v53  ;;  %v442_v13 = vpack.c.bf16 %v167_v53, %v166_v52  ;;  %v8855_v53 = vld [vmem:[%s12826_s1 + $0x170] sm:$0xff]  ;;  %v1680_v33 = vld [vmem:[#allocation2 + $0x28] sm:$0xff] }
  0xfe   :  { %788 = vmatmul.bf16.gmra.mxu1 %v311_v41  ;;  %v263_v41 = vld [vmem:[#allocation2 + $0x1af] sm:$0xff] }
  0xff   :  { %v829_v51 = vpop.f32.mrf.mxu3  ;;  %v313_v48 = vpack.c.bf16 %v263_v41, %v262_v38  ;;  %v1744_v41 = vpack.c.bf16 %v1681_v36, %v1680_v33 }
 0x100   :  { %v9436_v45 = vadd.f32 %v829_v51, %v9361_v56  ;;  %v135_v56 = vld [vmem:[%s12827_s0 + $0xd8] sm:$0xff]  ;;  %v9455_v2 = vpop.f32.mrf.mxu2  ;;  %v443_v51 = vpack.c.bf16 %v169_v25, %v168_v24 }
 0x101   :  { %199 = vst [vmem:[#allocation2 + $0x1d0] sm:$0xff] %v135_v56  ;;  %666 = vmatmul.bf16.gmra.mxu2 %v442_v13  ;;  %v426_v19 = vpack.c.bf16 %v135_v56, %v134_v57  ;;  %v895_v25 = vld [vmem:[#allocation2 + $0x11] sm:$0xff] }
 0x102   :  { %12971 = vst [vmem:[#allocation4_spill] sm:$0xff] %v9436_v45 }
 0x103   :  { %v751_v55 = vpop.f32.mrf.mxu1 }
 0x104   :  { %v9451_v59 = vadd.f32 %v751_v55, %v9371_v62  ;;  %v9463_v15 = vpop.f32.mrf.mxu0  ;;  %v297_v13 = vld [vmem:[#allocation2 + $0x40f] sm:$0xff] }
 0x106   :  { %586 = vmatmul.bf16.gmra.mxu0 %v426_v19  ;;  %v264_v19 = vld [vmem:[#allocation2 + $0x1c7] sm:$0xff] }
 0x107   :  { %v831_v4 = vpop.f32.mrf.mxu3 }
 0x108   :  { %v9458_v9 = vadd.f32 %v831_v4, %v9382_v6  ;;  %v8833_v6 = vld [vmem:[%s12826_s1 + $0xc0] sm:$0xff]  ;;  %v9471_v20 = vpop.f32.mrf.mxu2 }
 0x109   :  { %1454 = vmatpush.bf16.msrb.mxu3 %v8833_v6  ;;  %v8852_v6 = vld [vmem:[%s12826_s1 + $0x158] sm:$0xff] }
 0x10a   :  { %12972 = vst [vmem:[#allocation5_spill] sm:$0xff] %v9458_v9 }
 0x10b   :  { %v754_v14 = vpop.f32.mrf.mxu1 }
 0x10c   :  { %v9461_v62 = vadd.f32 %v754_v14, %v9390_v17  ;;  %873 = vmatmul.bf16.gmra.mxu3 %v328_v10  ;;  %v9491_v31 = vpop.f32.mrf.mxu0 }
 0x10e   :  { %793 = vmatmul.bf16.gmra.mxu1 %v312_v12  ;;  %v296_v12 = vld [vmem:[#allocation2 + $0x407] sm:$0xff] }
 0x10f   :  { %v834_v22 = vpop.f32.mrf.mxu3  ;;  %v330_v24 = vpack.c.bf16 %v297_v13, %v296_v12  ;;  %v266_v12 = vld [vmem:[#allocation2 + $0x1e7] sm:$0xff] }
 0x110   :  { %v9474_v17 = vadd.f32 %v834_v22, %v9398_v21  ;;  %v137_v21 = vld [vmem:[%s12827_s0 + $0xe8] sm:$0xff]  ;;  %v9496_v37 = vpop.f32.mrf.mxu2 }
 0x111   :  { %201 = vst [vmem:[#allocation2 + $0x1f0] sm:$0xff] %v137_v21  ;;  %671 = vmatmul.bf16.gmra.mxu2 %v443_v51  ;;  %v427_v56 = vpack.c.bf16 %v137_v21, %v136_v27 }
 0x112   :  { %12973 = vst [vmem:[#allocation6_spill] sm:$0xff] %v9474_v17 }
 0x113   :  { %v756_v26 = vpop.f32.mrf.mxu1 }
 0x114   :  { %v9489_v28 = vadd.f32 %v756_v26, %v9418_v30  ;;  %v8856_v30 = vld [vmem:[%s12826_s1 + $0x178] sm:$0xff]  ;;  %v9510_v57 = vpop.f32.mrf.mxu0 }
 0x115   :  { %2233 = vmatpush.bf16.msrb.mxu1 %v8856_v30  ;;  %v8872_v30 = vld [vmem:[%s12826_s1 + $0x1f8] sm:$0xff] }
 0x116   :  { %591 = vmatmul.bf16.gmra.mxu0 %v427_v56  ;;  %3020 = vmatpush.bf16.msra.mxu3 %v8872_v30 }
 0x117   :  { %v836_v39 = vpop.f32.mrf.mxu3 }
 0x118   :  { %v9502_v43 = vadd.f32 %v836_v39, %v9423_v34  ;;  %v9512_v34 = vpop.f32.mrf.mxu2 }
 0x119   :  { %2234 = vmatpush.bf16.msrb.mxu1 %v8855_v53  ;;  %v8849_v53 = vld [vmem:[%s12826_s1 + $0x140] sm:$0xff] }
 0x11a   :  { %12974 = vst [vmem:[#allocation7_spill] sm:$0xff] %v9502_v43 }
 0x11b   :  { %v759_v52 = vpop.f32.mrf.mxu1 }
 0x11c   :  { %v9508_v55 = vadd.f32 %v759_v52, %v9431_v47  ;;  %878 = vmatmul.bf16.gmra.mxu3 %v329_v44  ;;  %v9526_v10 = vpop.f32.mrf.mxu0 }
 0x11d   :  { %2235 = vmatpush.bf16.msrb.mxu1 %v8854_v63  ;;  %v8880_v63 = vld [vmem:[%s12826_s1 + $0x238] sm:$0xff] }
 0x11e   :  { %798 = vmatmul.bf16.gmra.mxu1 %v313_v48  ;;  %3413 = vmatpush.bf16.msra.mxu0 %v8880_v63  ;;  %v2075_v63 = vld [vmem:[#allocation2 + $0x49] sm:$0xff] }
 0x11f   :  { %v839_v61 = vpop.f32.mrf.mxu3 }
 0x120   :  { %v9518_v4 = vadd.f32 %v839_v61, %v9433_v50  ;;  %v9528_v14 = vpop.f32.mrf.mxu2  ;;  %v265_v50 = vld [vmem:[#allocation2 + $0x1cf] sm:$0xff] }
 0x121   :  { %2236 = vmatpush.bf16.msrb.mxu1 %v8853_v5  ;;  %v314_v26 = vpack.c.bf16 %v265_v50, %v264_v19  ;;  %v299_v5 = vld [vmem:[#allocation2 + $0x42f] sm:$0xff] }
 0x122   :  { %12975 = vst [vmem:[#allocation8_spill] sm:$0xff] %v9518_v4  ;;  %v2073_v19 = vld [vmem:[#allocation2 + $0x29] sm:$0xff]  ;;  %v2074_v50 = vld [vmem:[#allocation2 + $0x31] sm:$0xff] }
 0x123   :  { %v761_v47 = vpop.f32.mrf.mxu1 }
 0x124   :  { %v9524_v7 = vadd.f32 %v761_v47, %v9453_v60  ;;  %v894_v60 = vld [vmem:[#allocation2 + $0x9] sm:$0xff]  ;;  %v557_v38 = vpop.f32.mrf.mxu0 }
 0x125   :  { %2237 = vmatpush.bf16.msrb.mxu1 %v8852_v6  ;;  %v958_v27 = vpack.c.bf16 %v895_v25, %v894_v60  ;;  %v298_v47 = vld [vmem:[#allocation2 + $0x427] sm:$0xff]  ;;  %v2137_v60 = vpack.c.bf16 %v2074_v50, %v2073_v19 }
 0x126   :  { %1848 = vmatmul.bf16.vlgmr.msrb.gmra.mxu0 %v1744_v41  ;;  %v1684_v19 = vld [vmem:[#allocation2 + $0x68] sm:$0xff] }
 0x127   :  { %v841_v18 = vpop.f32.mrf.mxu3  ;;  %1062 = vmatmul.bf16.vlgmr.msrb.gmra.mxu2 %v958_v27  ;;  %v1683_v27 = vld [vmem:[#allocation2 + $0x50] sm:$0xff] }
 0x128   :  { %v9534_v22 = vadd.f32 %v841_v18, %v9455_v2  ;;  %v8864_v2 = vld [vmem:[%s12826_s1 + $0x1b8] sm:$0xff]  ;;  %v9548_v44 = vpop.f32.mrf.mxu2  ;;  %v267_v18 = vld [vmem:[#allocation2 + $0x1ef] sm:$0xff] }
 0x129   :  { %2238 = vmatpush.bf16.msrb.mxu1 %v8851_v32  ;;  %2627 = vmatpush.bf16.msra.mxu2 %v8864_v2 }
 0x12a   :  { %12976 = vst [vmem:[#allocation9_spill] sm:$0xff] %v9534_v22 }
 0x12b   :  { %v764_v21 = vpop.f32.mrf.mxu1 }
 0x12c   :  { %v9540_v39 = vadd.f32 %v764_v21, %v9463_v15  ;;  %883 = vmatmul.bf16.gmra.mxu3 %v330_v24  ;;  %v8850_v15 = vld [vmem:[%s12826_s1 + $0x148] sm:$0xff]  ;;  %v559_v61 = vpop.f32.mrf.mxu0  ;;  %v9568_v24 = vpack.c.bf16 %v267_v18, %v266_v12 }
 0x12d   :  { %2239 = vmatpush.bf16.msrb.mxu1 %v8850_v15  ;;  %v1287_v15 = vld [vmem:[#allocation2 + $0x27] sm:$0xff] }
 0x12e   :  { %803 = vmatmul.bf16.gmra.mxu1 %v314_v26  ;;  %v1682_v26 = vld [vmem:[#allocation2 + $0x48] sm:$0xff] }
 0x12f   :  { %v844_v48 = vpop.f32.mrf.mxu3  ;;  %v1745_v33 = vpack.c.bf16 %v1683_v27, %v1682_v26 }
 0x130   :  { %v9554_v51 = vadd.f32 %v844_v48, %v9471_v20  ;;  %v639_v20 = vpop.f32.mrf.mxu2 }
 0x131   :  { %2240 = vmatpush.bf16.msrb.mxu1 %v8849_v53 }
 0x132   :  { %12977 = vst [vmem:[#allocation10_spill] sm:$0xff] %v9554_v51 }
 0x133   :  { %v766_v52 = vpop.f32.mrf.mxu1 }
 0x134   :  { %v9560_v56 = vadd.f32 %v766_v52, %v9491_v31  ;;  %v331_v31 = vpack.c.bf16 %v299_v5, %v298_v47  ;;  %v562_v32 = vpop.f32.mrf.mxu0  ;;  %v2076_v47 = vld [vmem:[#allocation2 + $0x51] sm:$0xff] }
 0x136   :  { %1853 = vmatmul.bf16.gmra.mxu0 %v1745_v33 }
 0x137   :  { %v846_v13 = vpop.f32.mrf.mxu3  ;;  %1067 = vmatmul.bf16.gmra.mxu2 %v2137_v60 }
 0x138   :  { %v9566_v6 = vadd.f32 %v846_v13, %v9496_v37  ;;  %v642_v37 = vpop.f32.mrf.mxu2  ;;  %v2138_v13 = vpack.c.bf16 %v2076_v47, %v2075_v63  ;;  %v2078_v63 = vld [vmem:[#allocation2 + $0x71] sm:$0xff] }
 0x13a   :  { %12978 = vst [vmem:[#allocation11_spill] sm:$0xff] %v9566_v6 }
 0x13b   :  { %v769_v25 = vpop.f32.mrf.mxu1 }
 0x13c   :  { %v9571_v21 = vadd.f32 %v769_v25, %v9510_v57  ;;  %888 = vmatmul.bf16.gmra.mxu3 %v331_v31  ;;  %v564_v48 = vpop.f32.mrf.mxu0  ;;  %v1288_v57 = vld [vmem:[#allocation2 + $0x2f] sm:$0xff] }
 0x13d   :  { %v1351_v12 = vpack.c.bf16 %v1288_v57, %v1287_v15  ;;  %v1290_v15 = vld [vmem:[#allocation2 + $0x4f] sm:$0xff] }
 0x13e   :  { %808 = vmatmul.bf16.gmra.mxu1 %v9568_v24 }
 0x13f   :  { %v849_v36 = vpop.f32.mrf.mxu3 }
 0x140   :  { %v9575_v2 = vadd.f32 %v849_v36, %v9512_v34  ;;  %v644_v53 = vpop.f32.mrf.mxu2  ;;  %v1685_v34 = vld [vmem:[#allocation2 + $0x70] sm:$0xff] }
 0x141   :  { %v1746_v31 = vpack.c.bf16 %v1685_v34, %v1684_v19  ;;  %v1686_v19 = vld [vmem:[#allocation2 + $0x88] sm:$0xff]  ;;  %v1687_v34 = vld [vmem:[#allocation2 + $0x90] sm:$0xff] }
 0x142   :  { %12979 = vst [vmem:[#allocation12_spill] sm:$0xff] %v9575_v2 }
 0x143   :  { %v771_v41 = vpop.f32.mrf.mxu1 }
 0x144   :  { %v9578_v30 = vadd.f32 %v771_v41, %v9526_v10  ;;  %v567_v10 = vpop.f32.mrf.mxu0  ;;  %v1289_v41 = vld [vmem:[#allocation2 + $0x47] sm:$0xff] }
 0x146   :  { %1858 = vmatmul.bf16.gmra.mxu0 %v1746_v31 }
 0x147   :  { %v851_v52 = vpop.f32.mrf.mxu3  ;;  %1072 = vmatmul.bf16.gmra.mxu2 %v2138_v13 }
 0x148   :  { %v9581_v5 = vadd.f32 %v851_v52, %v9528_v14  ;;  %v647_v26 = vpop.f32.mrf.mxu2  ;;  %v2077_v52 = vld [vmem:[#allocation2 + $0x69] sm:$0xff] }
 0x14a   :  { %12980 = vst [vmem:[#allocation13_spill] sm:$0xff] %v9581_v5 }
 0x14b   :  { %v774_v18 = vpop.f32.mrf.mxu1 }
 0x14c   :  { %v9583_v50 = vadd.f32 %v774_v18, %v557_v38  ;;  %1455 = vmatmul.bf16.vlgmr.msrb.gmra.mxu3 %v1351_v12  ;;  %v569_v36 = vpop.f32.mrf.mxu0  ;;  %v1352_v12 = vpack.c.bf16 %v1290_v15, %v1289_v41  ;;  %v1291_v15 = vld [vmem:[#allocation2 + $0x67] sm:$0xff] }
 0x14e   :  { %2241 = vmatmul.bf16.vlgmr.msrb.gmra.mxu1 %v2137_v60  ;;  %v2139_v60 = vpack.c.bf16 %v2078_v63, %v2077_v52 }
 0x14f   :  { %v854_v25 = vpop.f32.mrf.mxu3 }
 0x150   :  { %v9586_v27 = vadd.f32 %v854_v25, %v9548_v44  ;;  %v649_v38 = vpop.f32.mrf.mxu2 }
 0x152   :  { %12981 = vst [vmem:[#allocation14_spill] sm:$0xff] %v9586_v27 }
 0x153   :  { %v776_v14 = vpop.f32.mrf.mxu1 }
 0x154   :  { %v9588_v33 = vadd.f32 %v776_v14, %v559_v61  ;;  %v572_v44 = vpop.f32.mrf.mxu0  ;;  %v1747_v61 = vpack.c.bf16 %v1687_v34, %v1686_v19  ;;  %v1688_v34 = vld [vmem:[#allocation2 + $0xa8] sm:$0xff] }
 0x156   :  { %1863 = vmatmul.bf16.gmra.mxu0 %v1747_v61  ;;  %v1689_v61 = vld [vmem:[#allocation2 + $0xb0] sm:$0xff] }
 0x157   :  { %v856_v57 = vpop.f32.mrf.mxu3  ;;  %1077 = vmatmul.bf16.gmra.mxu2 %v2139_v60 }
 0x158   :  { %v9590_v47 = vadd.f32 %v856_v57, %v639_v20  ;;  %v652_v14 = vpop.f32.mrf.mxu2  ;;  %v1292_v57 = vld [vmem:[#allocation2 + $0x6f] sm:$0xff] }
 0x15a   :  { %12982 = vst [vmem:[#allocation15_spill] sm:$0xff] %v9590_v47  ;;  %v1353_v47 = vpack.c.bf16 %v1292_v57, %v1291_v15 }
 0x15b   :  { %v779_v18 = vpop.f32.mrf.mxu1 }
 0x15c   :  { %v9592_v31 = vadd.f32 %v779_v18, %v562_v32  ;;  %1460 = vmatmul.bf16.gmra.mxu3 %v1352_v12  ;;  %v574_v41 = vpop.f32.mrf.mxu0  ;;  %v2079_v32 = vld [vmem:[#allocation2 + $0x89] sm:$0xff]  ;;  %v2080_v18 = vld [vmem:[#allocation2 + $0x91] sm:$0xff] }
 0x15d   :  { %v2140_v19 = vpack.c.bf16 %v2080_v18, %v2079_v32  ;;  %v8879_v32 = vld [vmem:[%s12826_s1 + $0x230] sm:$0xff]  ;;  %v1293_v18 = vld [vmem:[#allocation2 + $0x87] sm:$0xff] }
 0x15e   :  { %2246 = vmatmul.bf16.gmra.mxu1 %v2138_v13  ;;  %3414 = vmatpush.bf16.msra.mxu0 %v8879_v32 }
 0x15f   :  { %v859_v25 = vpop.f32.mrf.mxu3 }
 0x160   :  { %v9594_v27 = vadd.f32 %v859_v25, %v642_v37  ;;  %v654_v63 = vpop.f32.mrf.mxu2 }
 0x162   :  { %12983 = vst [vmem:[#allocation16_spill] sm:$0xff] %v9594_v27 }
 0x163   :  { %v781_v5 = vpop.f32.mrf.mxu1 }
 0x164   :  { %v9596_v20 = vadd.f32 %v781_v5, %v564_v48  ;;  %v577_v37 = vpop.f32.mrf.mxu0  ;;  %v8863_v48 = vld [vmem:[%s12826_s1 + $0x1b0] sm:$0xff]  ;;  %v1748_v5 = vpack.c.bf16 %v1689_v61, %v1688_v34 }
 0x165   :  { %2628 = vmatpush.bf16.msra.mxu2 %v8863_v48  ;;  %v2081_v61 = vld [vmem:[#allocation2 + $0xa9] sm:$0xff]  ;;  %v2082_v48 = vld [vmem:[#allocation2 + $0xb1] sm:$0xff] }
 0x166   :  { %1868 = vmatmul.bf16.gmra.mxu0 %v1748_v5 }
 0x167   :  { %v861_v52 = vpop.f32.mrf.mxu3  ;;  %1082 = vmatmul.bf16.gmra.mxu2 %v2140_v19 }
 0x168   :  { %v9598_v12 = vadd.f32 %v861_v52, %v644_v53  ;;  %v8871_v53 = vld [vmem:[%s12826_s1 + $0x1f0] sm:$0xff]  ;;  %v657_v15 = vpop.f32.mrf.mxu2 }
 0x169   :  { %3021 = vmatpush.bf16.msra.mxu3 %v8871_v53 }
 0x16a   :  { %12984 = vst [vmem:[#allocation17_spill] sm:$0xff] %v9598_v12 }
 0x16b   :  { %v784_v13 = vpop.f32.mrf.mxu1 }
 0x16c   :  { %v9600_v2 = vadd.f32 %v784_v13, %v567_v10  ;;  %1465 = vmatmul.bf16.gmra.mxu3 %v1353_v47  ;;  %v579_v52 = vpop.f32.mrf.mxu0  ;;  %v1294_v13 = vld [vmem:[#allocation2 + $0x8f] sm:$0xff] }
 0x16d   :  { %v1354_v53 = vpack.c.bf16 %v1294_v13, %v1293_v18  ;;  %v1295_v13 = vld [vmem:[#allocation2 + $0xa7] sm:$0xff] }
 0x16e   :  { %2251 = vmatmul.bf16.gmra.mxu1 %v2139_v60 }
 0x16f   :  { %v864_v25 = vpop.f32.mrf.mxu3 }
 0x170   :  { %v9608_v10 = vadd.f32 %v864_v25, %v647_v26  ;;  %v659_v60 = vpop.f32.mrf.mxu2  ;;  %v2141_v26 = vpack.c.bf16 %v2082_v48, %v2081_v61 }
 0x172   :  { %12985 = vst [vmem:[#allocation18_spill] sm:$0xff] %v9608_v10  ;;  %v1690_v10 = vld [vmem:[#allocation2 + $0xc8] sm:$0xff] }
 0x173   :  { %v786_v47 = vpop.f32.mrf.mxu1 }
 0x174   :  { %v9610_v57 = vadd.f32 %v786_v47, %v569_v36  ;;  %v1691_v36 = vld [vmem:[#allocation2 + $0xd0] sm:$0xff]  ;;  %v582_v12 = vpop.f32.mrf.mxu0 }
 0x175   :  { %v1749_v27 = vpack.c.bf16 %v1691_v36, %v1690_v10  ;;  %v1692_v36 = vld [vmem:[#allocation2 + $0xe8] sm:$0xff] }
 0x177   :  { %v866_v34 = vpop.f32.mrf.mxu3  ;;  %1087 = vmatmul.bf16.gmra.mxu2 %v2141_v26  ;;  %1873 = vmatmul.bf16.gmra.mxu0 %v1749_v27  ;;  %v1693_v27 = vld [vmem:[#allocation2 + $0xf0] sm:$0xff] }
 0x178   :  { %v9615_v5 = vadd.f32 %v866_v34, %v649_v38  ;;  %v662_v32 = vpop.f32.mrf.mxu2  ;;  %v1296_v34 = vld [vmem:[#allocation2 + $0xaf] sm:$0xff] }
 0x17a   :  { %12986 = vst [vmem:[#allocation19_spill] sm:$0xff] %v9615_v5  ;;  %v1355_v5 = vpack.c.bf16 %v1296_v34, %v1295_v13  ;;  %v1297_v34 = vld [vmem:[#allocation2 + $0xc7] sm:$0xff] }
 0x17b   :  { %v789_v25 = vpop.f32.mrf.mxu1 }
 0x17c   :  { %v9617_v47 = vadd.f32 %v789_v25, %v572_v44  ;;  %1470 = vmatmul.bf16.gmra.mxu3 %v1354_v53  ;;  %v584_v18 = vpop.f32.mrf.mxu0  ;;  %v2083_v44 = vld [vmem:[#allocation2 + $0xc9] sm:$0xff]  ;;  %v2084_v25 = vld [vmem:[#allocation2 + $0xd1] sm:$0xff] }
 0x17d   :  { %v2142_v10 = vpack.c.bf16 %v2084_v25, %v2083_v44 }
 0x17e   :  { %2256 = vmatmul.bf16.gmra.mxu1 %v2140_v19 }
 0x17f   :  { %v869_v6 = vpop.f32.mrf.mxu3 }
 0x180   :  { %v9619_v51 = vadd.f32 %v869_v6, %v652_v14  ;;  %v664_v48 = vpop.f32.mrf.mxu2 }
 0x182   :  { %12987 = vst [vmem:[#allocation20_spill] sm:$0xff] %v9619_v51 }
 0x183   :  { %v791_v22 = vpop.f32.mrf.mxu1 }
 0x184   :  { %v9621_v38 = vadd.f32 %v791_v22, %v574_v41  ;;  %v587_v6 = vpop.f32.mrf.mxu0  ;;  %v1750_v22 = vpack.c.bf16 %v1693_v27, %v1692_v36  ;;  %v1694_v27 = vld [vmem:[#allocation2 + $0x108] sm:$0xff] }
 0x187   :  { %v871_v61 = vpop.f32.mrf.mxu3  ;;  %1092 = vmatmul.bf16.gmra.mxu2 %v2142_v10  ;;  %1878 = vmatmul.bf16.gmra.mxu0 %v1750_v22  ;;  %v1695_v22 = vld [vmem:[#allocation2 + $0x110] sm:$0xff] }
 0x188   :  { %v9623_v53 = vadd.f32 %v871_v61, %v654_v63  ;;  %v667_v41 = vpop.f32.mrf.mxu2  ;;  %v1298_v61 = vld [vmem:[#allocation2 + $0xcf] sm:$0xff] }
 0x18a   :  { %12988 = vst [vmem:[#allocation21_spill] sm:$0xff] %v9623_v53  ;;  %v1356_v53 = vpack.c.bf16 %v1298_v61, %v1297_v34  ;;  %v1299_v61 = vld [vmem:[#allocation2 + $0xe7] sm:$0xff] }
 0x18b   :  { %v794_v19 = vpop.f32.mrf.mxu1 }
 0x18c   :  { %v9625_v4 = vadd.f32 %v794_v19, %v577_v37  ;;  %1475 = vmatmul.bf16.gmra.mxu3 %v1355_v5  ;;  %v589_v13 = vpop.f32.mrf.mxu0  ;;  %v2085_v37 = vld [vmem:[#allocation2 + $0xe9] sm:$0xff]  ;;  %v2086_v19 = vld [vmem:[#allocation2 + $0xf1] sm:$0xff] }
 0x18d   :  { %v2143_v36 = vpack.c.bf16 %v2086_v19, %v2085_v37 }
 0x18e   :  { %2261 = vmatmul.bf16.gmra.mxu1 %v2141_v26 }
 0x18f   :  { %v874_v14 = vpop.f32.mrf.mxu3 }
 0x190   :  { %v9627_v51 = vadd.f32 %v874_v14, %v657_v15  ;;  %v669_v25 = vpop.f32.mrf.mxu2 }
 0x192   :  { %12989 = vst [vmem:[#allocation22_spill] sm:$0xff] %v9627_v51 }
 0x193   :  { %v796_v43 = vpop.f32.mrf.mxu1 }
 0x194   :  { %v9629_v63 = vadd.f32 %v796_v43, %v579_v52  ;;  %v592_v15 = vpop.f32.mrf.mxu0  ;;  %v1751_v43 = vpack.c.bf16 %v1695_v22, %v1694_v27 }
 0x197   :  { %v876_v44 = vpop.f32.mrf.mxu3  ;;  %1097 = vmatmul.bf16.gmra.mxu2 %v2143_v36  ;;  %1883 = vmatmul.bf16.gmra.mxu0 %v1751_v43  ;;  %v1696_v43 = vld [vmem:[#allocation2 + $0x128] sm:$0xff] }
 0x198   :  { %v9631_v5 = vadd.f32 %v876_v44, %v659_v60  ;;  %v672_v14 = vpop.f32.mrf.mxu2  ;;  %v1300_v44 = vld [vmem:[#allocation2 + $0xef] sm:$0xff] }
 0x199   :  { %v1357_v27 = vpack.c.bf16 %v1300_v44, %v1299_v61 }
 0x19a   :  { %12990 = vst [vmem:[#allocation23_spill] sm:$0xff] %v9631_v5  ;;  %v1697_v5 = vld [vmem:[#allocation2 + $0x130] sm:$0xff] }
 0x19b   :  { %v799_v26 = vpop.f32.mrf.mxu1 }
 0x19c   :  { %v9633_v17 = vadd.f32 %v799_v26, %v582_v12  ;;  %1480 = vmatmul.bf16.gmra.mxu3 %v1356_v53  ;;  %v594_v34 = vpop.f32.mrf.mxu0  ;;  %v2087_v12 = vld [vmem:[#allocation2 + $0x109] sm:$0xff]  ;;  %v2088_v53 = vld [vmem:[#allocation2 + $0x111] sm:$0xff] }
 0x19e   :  { %2266 = vmatmul.bf16.gmra.mxu1 %v2142_v10  ;;  %v2144_v10 = vpack.c.bf16 %v2088_v53, %v2087_v12 }
 0x19f   :  { %v879_v52 = vpop.f32.mrf.mxu3 }
 0x1a0   :  { %v9635_v51 = vadd.f32 %v879_v52, %v662_v32  ;;  %v9639_v19 = vpop.f32.mrf.mxu2  ;;  %v1752_v52 = vpack.c.bf16 %v1697_v5, %v1696_v43  ;;  %v8878_v5 = vld [vmem:[%s12826_s1 + $0x228] sm:$0xff]  ;;  %v737_v43 = vadd.f32 %v9334_v35, %v9292_v1 }
 0x1a1   :  { %3415 = vmatpush.bf16.msra.mxu0 %v8878_v5 }
 0x1a2   :  { %12991 = vst [vmem:[#allocation24_spill] sm:$0xff] %v9635_v51 }
 0x1a3   :  { %v801_v9 = vpop.f32.mrf.mxu1 }
 0x1a4   :  { %v9637_v60 = vadd.f32 %v801_v9, %v584_v18  ;;  %v9645_v9 = vpop.f32.mrf.mxu0  ;;  %v8862_v18 = vld [vmem:[%s12826_s1 + $0x1a8] sm:$0xff] }
 0x1a5   :  { %2629 = vmatpush.bf16.msra.mxu2 %v8862_v18 }
 0x1a7   :  { %v881_v37 = vpop.f32.mrf.mxu3  ;;  %1102 = vmatmul.bf16.gmra.mxu2 %v2144_v10  ;;  %1888 = vmatmul.bf16.gmra.mxu0 %v1752_v52  ;;  %v2089_v52 = vld [vmem:[#allocation2 + $0x129] sm:$0xff] }
 0x1a8   :  { %v9641_v26 = vadd.f32 %v881_v37, %v664_v48  ;;  %v8870_v48 = vld [vmem:[%s12826_s1 + $0x1e8] sm:$0xff] }
 0x1a9   :  { %3022 = vmatpush.bf16.msra.mxu3 %v8870_v48  ;;  %v2090_v48 = vld [vmem:[#allocation2 + $0x131] sm:$0xff] }
 0x1aa   :  { %12992 = vst [vmem:[#allocation25_spill] sm:$0xff] %v9641_v26  ;;  %v1699_v26 = vld [vmem:[#allocation2 + $0x150] sm:$0xff] }
 0x1ab   :  { %v804_v22 = vpop.f32.mrf.mxu1 }
 0x1ac   :  { %v9643_v32 = vadd.f32 %v804_v22, %v587_v6  ;;  %1485 = vmatmul.bf16.gmra.mxu3 %v1357_v27  ;;  %v1063_v6 = vpop.f32.mrf.mxu2  ;;  %v9658_v27 = vpop.f32.mrf.mxu0  ;;  %v1301_v22 = vld [vmem:[#allocation2 + $0x107] sm:$0xff] }
 0x1ad   :  { %v1223_v37 = vadd.f32 %v1063_v6, %v9273_v49  ;;  %v2145_v6 = vpack.c.bf16 %v2090_v48, %v2089_v52  ;;  %v2091_v48 = vld [vmem:[#allocation2 + $0x149] sm:$0xff] }
 0x1ae   :  { %2271 = vmatmul.bf16.gmra.mxu1 %v2143_v36  ;;  %v1302_v36 = vld [vmem:[#allocation2 + $0x10f] sm:$0xff] }
 0x1af   :  { %v884_v61 = vpop.f32.mrf.mxu3 }
 0x1b0   :  { %v9653_v44 = vadd.f32 %v884_v61, %v667_v41 }
 0x1b2   :  { %12993 = vst [vmem:[#allocation26_spill] sm:$0xff] %v9653_v44  ;;  %v1698_v44 = vld [vmem:[#allocation2 + $0x148] sm:$0xff] }
 0x1b3   :  { %v806_v12 = vpop.f32.mrf.mxu1  ;;  %v1753_v1 = vpack.c.bf16 %v1699_v26, %v1698_v44 }
 0x1b4   :  { %v9656_v53 = vadd.f32 %v806_v12, %v589_v13  ;;  %v1065_v41 = vpop.f32.mrf.mxu2  ;;  %v1358_v13 = vpack.c.bf16 %v1302_v36, %v1301_v22  ;;  %v9669_v45 = vpop.f32.mrf.mxu0 }
 0x1b5   :  { %v1224_v61 = vadd.f32 %v1065_v41, %v737_v43 }
 0x1b7   :  { %v886_v18 = vpop.f32.mrf.mxu3  ;;  %1107 = vmatmul.bf16.gmra.mxu2 %v2145_v6  ;;  %1893 = vmatmul.bf16.gmra.mxu0 %v1753_v1  ;;  %v1701_v1 = vld [vmem:[#allocation2 + $0x170] sm:$0xff] }
 0x1b8   :  { %v9665_v49 = vadd.f32 %v886_v18, %v669_v25  ;;  %v1304_v18 = vld [vmem:[#allocation2 + $0x12f] sm:$0xff] }
 0x1bb   :  { %v809_v12 = vpop.f32.mrf.mxu1 }
 0x1bc   :  { %v9667_v51 = vadd.f32 %v809_v12, %v592_v15  ;;  %1490 = vmatmul.bf16.gmra.mxu3 %v1358_v13  ;;  %v1068_v5 = vpop.f32.mrf.mxu2  ;;  %v9676_v43 = vpop.f32.mrf.mxu0  ;;  %v1303_v15 = vld [vmem:[#allocation2 + $0x127] sm:$0xff]  ;;  %v2092_v13 = vld [vmem:[#allocation2 + $0x151] sm:$0xff] }
 0x1bd   :  { %v1225_v25 = vadd.f32 %v1068_v5, %v9359_v54  ;;  %v2146_v44 = vpack.c.bf16 %v2092_v13, %v2091_v48  ;;  %v1700_v54 = vld [vmem:[#allocation2 + $0x168] sm:$0xff] }
 0x1be   :  { %2276 = vmatmul.bf16.gmra.mxu1 %v2144_v10  ;;  %v1359_v10 = vpack.c.bf16 %v1304_v18, %v1303_v15  ;;  %v1306_v48 = vld [vmem:[#allocation2 + $0x14f] sm:$0xff] }
 0x1bf   :  { %v889_v35 = vpop.f32.mrf.mxu3 }
 0x1c0   :  { %v9671_v40 = vadd.f32 %v889_v35, %v672_v14  ;;  %v1754_v35 = vpack.c.bf16 %v1701_v1, %v1700_v54  ;;  %v2094_v54 = vld [vmem:[#allocation2 + $0x171] sm:$0xff] }
 0x1c2   :  { %12994 = vst [vmem:[#allocation27_spill] sm:$0xff] %v9671_v40 }
 0x1c3   :  { %v811_v22 = vpop.f32.mrf.mxu1 }
 0x1c4   :  { %v9674_v36 = vadd.f32 %v811_v22, %v594_v34  ;;  %v1070_v52 = vpop.f32.mrf.mxu2  ;;  %v9682_v34 = vpop.f32.mrf.mxu0 }
 0x1c5   :  { %v1226_v14 = vadd.f32 %v1070_v52, %v9380_v3  ;;  %v1305_v52 = vld [vmem:[#allocation2 + $0x147] sm:$0xff] }
 0x1c6   :  { %v1360_v1 = vpack.c.bf16 %v1306_v48, %v1305_v52 }
 0x1c7   :  { %v891_v41 = vpop.f32.mrf.mxu3  ;;  %1112 = vmatmul.bf16.gmra.mxu2 %v2146_v44  ;;  %1898 = vmatmul.bf16.gmra.mxu0 %v1754_v35 }
 0x1c8   :  { %v9679_v26 = vadd.f32 %v891_v41, %v9639_v19 }
 0x1ca   :  { %12995 = vst [vmem:[#allocation28_spill] sm:$0xff] %v9679_v26  ;;  %v2093_v26 = vld [vmem:[#allocation2 + $0x169] sm:$0xff] }
 0x1cb   :  { %v2242_v12 = vpop.f32.mrf.mxu1 }
 0x1cc   :  { %1495 = vmatmul.bf16.gmra.mxu3 %v1359_v10  ;;  %v1073_v22 = vpop.f32.mrf.mxu2  ;;  %v9688_v41 = vpop.f32.mrf.mxu0 }
 0x1cd   :  { %v1227_v19 = vadd.f32 %v1073_v22, %v9388_v16  ;;  %v2147_v16 = vpack.c.bf16 %v2094_v54, %v2093_v26 }
 0x1ce   :  { %2281 = vmatmul.bf16.gmra.mxu1 %v2145_v6 }
 0x1cf   :  { %v1456_v5 = vpop.f32.mrf.mxu3 }
 0x1d0   :  { %v1616_v40 = vadd.f32 %v1456_v5, %v1223_v37 }
 0x1d2   :  { %v2009_v15 = vadd.f32 %v9645_v9, %v1616_v40  ;;  %v1702_v40 = vld [vmem:[#allocation2 + $0x188] sm:$0xff]  ;;  %v1703_v9 = vld [vmem:[#allocation2 + $0x190] sm:$0xff] }
 0x1d3   :  { %v2244_v18 = vpop.f32.mrf.mxu1 }
 0x1d4   :  { %v9686_v3 = vadd.f32 %v2242_v12, %v2009_v15  ;;  %v1075_v10 = vpop.f32.mrf.mxu2  ;;  %v9694_v22 = vpop.f32.mrf.mxu0  ;;  %v1755_v15 = vpack.c.bf16 %v1703_v9, %v1702_v40 }
 0x1d5   :  { %v1228_v35 = vadd.f32 %v1075_v10, %v9416_v29  ;;  %v1308_v10 = vld [vmem:[#allocation2 + $0x16f] sm:$0xff] }
 0x1d6   :  { %12996 = vst [vmem:[#allocation29_spill] sm:$0xff] %v9686_v3 }
 0x1d7   :  { %v1458_v13 = vpop.f32.mrf.mxu3  ;;  %1117 = vmatmul.bf16.gmra.mxu2 %v2147_v16  ;;  %1903 = vmatmul.bf16.gmra.mxu0 %v1755_v15  ;;  %v1705_v15 = vld [vmem:[#allocation2 + $0x1b0] sm:$0xff] }
 0x1d8   :  { %v1617_v6 = vadd.f32 %v1458_v13, %v1224_v61 }
 0x1da   :  { %v2010_v37 = vadd.f32 %v9658_v27, %v1617_v6 }
 0x1db   :  { %v2247_v5 = vpop.f32.mrf.mxu1 }
 0x1dc   :  { %1500 = vmatmul.bf16.gmra.mxu3 %v1360_v1  ;;  %v9692_v12 = vadd.f32 %v2244_v18, %v2010_v37  ;;  %v1078_v61 = vpop.f32.mrf.mxu2  ;;  %v9702_v13 = vpop.f32.mrf.mxu0  ;;  %v1307_v18 = vld [vmem:[#allocation2 + $0x167] sm:$0xff] }
 0x1dd   :  { %v9697_v29 = vadd.f32 %v1078_v61, %v9429_v46  ;;  %v2095_v1 = vld [vmem:[#allocation2 + $0x189] sm:$0xff]  ;;  %v1361_v40 = vpack.c.bf16 %v1308_v10, %v1307_v18 }
 0x1de   :  { %2286 = vmatmul.bf16.gmra.mxu1 %v2146_v44  ;;  %v2096_v44 = vld [vmem:[#allocation2 + $0x191] sm:$0xff] }
 0x1df   :  { %v1461_v3 = vpop.f32.mrf.mxu3 }
 0x1e0   :  { %v1618_v52 = vadd.f32 %v1461_v3, %v1225_v25  ;;  %v2148_v3 = vpack.c.bf16 %v2096_v44, %v2095_v1  ;;  %v8877_v44 = vld [vmem:[%s12826_s1 + $0x220] sm:$0xff] }
 0x1e1   :  { %3416 = vmatpush.bf16.msra.mxu0 %v8877_v44 }
 0x1e2   :  { %v2011_v27 = vadd.f32 %v9669_v45, %v1618_v52  ;;  %v1704_v45 = vld [vmem:[#allocation2 + $0x1a8] sm:$0xff]  ;;  %v8861_v52 = vld [vmem:[%s12826_s1 + $0x1a0] sm:$0xff] }
 0x1e3   :  { %v2249_v26 = vpop.f32.mrf.mxu1  ;;  %2630 = vmatpush.bf16.msra.mxu2 %v8861_v52 }
 0x1e4   :  { %v9700_v48 = vadd.f32 %v2247_v5, %v2011_v27  ;;  %v1080_v6 = vpop.f32.mrf.mxu2  ;;  %v9708_v61 = vpop.f32.mrf.mxu0 }
 0x1e5   :  { %v1230_v25 = vadd.f32 %v1080_v6, %v9451_v59  ;;  %v8869_v59 = vld [vmem:[%s12826_s1 + $0x1e0] sm:$0xff] }
 0x1e6   :  { %3023 = vmatpush.bf16.msra.mxu3 %v8869_v59  ;;  %v1706_v59 = vld [vmem:[#allocation2 + $0x1c8] sm:$0xff] }
 0x1e7   :  { %v1463_v54 = vpop.f32.mrf.mxu3  ;;  %1122 = vmatmul.bf16.gmra.mxu2 %v2148_v3 }
 0x1e8   :  { %v1619_v37 = vadd.f32 %v1463_v54, %v1226_v14  ;;  %v1756_v14 = vpack.c.bf16 %v1705_v15, %v1704_v45  ;;  %v2097_v45 = vld [vmem:[#allocation2 + $0x1a9] sm:$0xff] }
 0x1ea   :  { %v2012_v46 = vadd.f32 %v9676_v43, %v1619_v37  ;;  %1908 = vmatmul.bf16.gmra.mxu0 %v1756_v14  ;;  %v1310_v37 = vld [vmem:[#allocation2 + $0x18f] sm:$0xff] }
 0x1eb   :  { %v2252_v9 = vpop.f32.mrf.mxu1 }
 0x1ec   :  { %1505 = vmatmul.bf16.gmra.mxu3 %v1361_v40  ;;  %v9706_v5 = vadd.f32 %v2249_v26, %v2012_v46  ;;  %v1083_v27 = vpop.f32.mrf.mxu2  ;;  %v9720_v1 = vpop.f32.mrf.mxu0 }
 0x1ed   :  { %v1231_v18 = vadd.f32 %v1083_v27, %v9461_v62 }
 0x1ee   :  { %2291 = vmatmul.bf16.gmra.mxu1 %v2147_v16  ;;  %v1309_v16 = vld [vmem:[#allocation2 + $0x187] sm:$0xff] }
 0x1ef   :  { %v1466_v43 = vpop.f32.mrf.mxu3  ;;  %v1362_v62 = vpack.c.bf16 %v1310_v37, %v1309_v16 }
 0x1f0   :  { %v1620_v26 = vadd.f32 %v1466_v43, %v1227_v19  ;;  %v2098_v19 = vld [vmem:[#allocation2 + $0x1b1] sm:$0xff] }
 0x1f1   :  { %v2149_v52 = vpack.c.bf16 %v2098_v19, %v2097_v45  ;;  %v1707_v43 = vld [vmem:[#allocation2 + $0x1d0] sm:$0xff] }
 0x1f2   :  { %v2013_v10 = vadd.f32 %v9682_v34, %v1620_v26  ;;  %v1312_v45 = vld [vmem:[#allocation2 + $0x1af] sm:$0xff] }
 0x1f3   :  { %v2254_v54 = vpop.f32.mrf.mxu1 }
 0x1f4   :  { %v9718_v6 = vadd.f32 %v2252_v9, %v2013_v10  ;;  %v1085_v46 = vpop.f32.mrf.mxu2  ;;  %v9729_v26 = vpop.f32.mrf.mxu0  ;;  %v1757_v10 = vpack.c.bf16 %v1707_v43, %v1706_v59 }
 0x1f5   :  { %v1232_v34 = vadd.f32 %v1085_v46, %v9489_v28 }
 0x1f7   :  { %v1468_v40 = vpop.f32.mrf.mxu3  ;;  %1127 = vmatmul.bf16.gmra.mxu2 %v2149_v52 }
 0x1f8   :  { %v1621_v15 = vadd.f32 %v1468_v40, %v1228_v35 }
 0x1fa   :  { %v2014_v9 = vadd.f32 %v9688_v41, %v1621_v15  ;;  %1913 = vmatmul.bf16.gmra.mxu0 %v1757_v10 }
 0x1fb   :  { %v2257_v14 = vpop.f32.mrf.mxu1 }
 0x1fc   :  { %1510 = vmatmul.bf16.gmra.mxu3 %v1362_v62  ;;  %v9727_v27 = vadd.f32 %v2254_v54, %v2014_v9  ;;  %v1088_v35 = vpop.f32.mrf.mxu2  ;;  %v9736_v46 = vpop.f32.mrf.mxu0  ;;  %v1311_v54 = vld [vmem:[#allocation2 + $0x1a7] sm:$0xff] }
 0x1fd   :  { %v1233_v28 = vadd.f32 %v1088_v35, %v9508_v55  ;;  %v2099_v62 = vld [vmem:[#allocation2 + $0x1c9] sm:$0xff]  ;;  %v1363_v59 = vpack.c.bf16 %v1312_v45, %v1311_v54 }
 0x1fe   :  { %2296 = vmatmul.bf16.gmra.mxu1 %v2148_v3  ;;  %v2100_v3 = vld [vmem:[#allocation2 + $0x1d1] sm:$0xff] }
 0x1ff   :  { %v1471_v44 = vpop.f32.mrf.mxu3  ;;  %v2150_v55 = vpack.c.bf16 %v2100_v3, %v2099_v62  ;;  %v1314_v62 = vld [vmem:[#allocation2 + $0x1cf] sm:$0xff] }
 0x200   :  { %v1622_v16 = vadd.f32 %v1471_v44, %v9697_v29  ;;  %v1709_v44 = vld [vmem:[#allocation2 + $0x1f0] sm:$0xff] }
 0x202   :  { %v2015_v41 = vadd.f32 %v9694_v22, %v1622_v16  ;;  %v1708_v22 = vld [vmem:[#allocation2 + $0x1e8] sm:$0xff] }
 0x203   :  { %v2259_v37 = vpop.f32.mrf.mxu1  ;;  %v1758_v16 = vpack.c.bf16 %v1709_v44, %v1708_v22 }
 0x204   :  { %v9734_v40 = vadd.f32 %v2257_v14, %v2015_v41  ;;  %v1090_v15 = vpop.f32.mrf.mxu2  ;;  %v9742_v35 = vpop.f32.mrf.mxu0 }
 0x205   :  { %v1234_v43 = vadd.f32 %v1090_v15, %v9524_v7 }
 0x207   :  { %v1473_v19 = vpop.f32.mrf.mxu3  ;;  %1132 = vmatmul.bf16.gmra.mxu2 %v2150_v55 }
 0x208   :  { %v1623_v9 = vadd.f32 %v1473_v19, %v1230_v25 }
 0x20a   :  { %v2016_v29 = vadd.f32 %v9702_v13, %v1623_v9  ;;  %1918 = vmatmul.bf16.gmra.mxu0 %v1758_v16  ;;  %v138_v13 = vld [vmem:[%s12827_s0 + $0xf0] sm:$0xff] }
 0x20b   :  { %v2262_v10 = vpop.f32.mrf.mxu1  ;;  %202 = vst [vmem:[#allocation2 + $0x208] sm:$0xff] %v138_v13  ;;  %v2101_v9 = vld [vmem:[#allocation2 + $0x1e9] sm:$0xff] }
 0x20c   :  { %1515 = vmatmul.bf16.gmra.mxu3 %v1363_v59  ;;  %v9740_v14 = vadd.f32 %v2259_v37, %v2016_v29  ;;  %v1093_v25 = vpop.f32.mrf.mxu2  ;;  %v139_v37 = vld [vmem:[%s12827_s0 + $0xf8] sm:$0xff]  ;;  %v9754_v15 = vpop.f32.mrf.mxu0 }
 0x20d   :  { %v1235_v7 = vadd.f32 %v1093_v25, %v9540_v39  ;;  %203 = vst [vmem:[#allocation2 + $0x210] sm:$0xff] %v139_v37  ;;  %v2102_v59 = vld [vmem:[#allocation2 + $0x1f1] sm:$0xff] }
 0x20e   :  { %12997 = vst [vmem:[#allocation30_spill] sm:$0xff] %v9740_v14  ;;  %2301 = vmatmul.bf16.gmra.mxu1 %v2149_v52 }
 0x20f   :  { %v1476_v41 = vpop.f32.mrf.mxu3 }
 0x210   :  { %v1624_v54 = vadd.f32 %v1476_v41, %v1231_v18  ;;  %v1313_v18 = vld [vmem:[#allocation2 + $0x1c7] sm:$0xff] }
 0x211   :  { %v1364_v22 = vpack.c.bf16 %v1314_v62, %v1313_v18 }
 0x212   :  { %v2017_v45 = vadd.f32 %v9708_v61, %v1624_v54  ;;  %v2151_v61 = vpack.c.bf16 %v2102_v59, %v2101_v9  ;;  %v1759_v54 = vpack.c.bf16 %v139_v37, %v138_v13  ;;  %v927_v37 = vld [vmem:[#allocation2 + $0x251] sm:$0xff] }
 0x213   :  { %v2264_v19 = vpop.f32.mrf.mxu1  ;;  %v1713_v59 = vld [vmem:[#allocation2 + $0x270] sm:$0xff] }
 0x214   :  { %v9752_v52 = vadd.f32 %v2262_v10, %v2017_v45  ;;  %v1095_v3 = vpop.f32.mrf.mxu2  ;;  %v9760_v10 = vpop.f32.mrf.mxu0 }
 0x215   :  { %v1236_v44 = vadd.f32 %v1095_v3, %v9560_v56 }
 0x216   :  { %12998 = vst [vmem:[#allocation31_spill] sm:$0xff] %v9752_v52 }
 0x217   :  { %v1478_v39 = vpop.f32.mrf.mxu3  ;;  %1137 = vmatmul.bf16.gmra.mxu2 %v2151_v61 }
 0x218   :  { %v1625_v29 = vadd.f32 %v1478_v39, %v1232_v34 }
 0x21a   :  { %v2018_v16 = vadd.f32 %v9720_v1, %v1625_v29  ;;  %1923 = vmatmul.bf16.gmra.mxu0 %v1759_v54  ;;  %v8868_v29 = vld [vmem:[%s12826_s1 + $0x1d8] sm:$0xff] }
 0x21b   :  { %v2267_v41 = vpop.f32.mrf.mxu1  ;;  %3024 = vmatpush.bf16.msra.mxu3 %v8868_v29  ;;  %v1715_v29 = vld [vmem:[#allocation2 + $0x290] sm:$0xff] }
 0x21c   :  { %1520 = vmatmul.bf16.gmra.mxu3 %v1364_v22  ;;  %v9758_v25 = vadd.f32 %v2264_v19, %v2018_v16  ;;  %v1098_v52 = vpop.f32.mrf.mxu2  ;;  %v9768_v62 = vpop.f32.mrf.mxu0 }
 0x21d   :  { %v9763_v34 = vadd.f32 %v1098_v52, %v9571_v21  ;;  %v1712_v52 = vld [vmem:[#allocation2 + $0x268] sm:$0xff] }
 0x21e   :  { %2306 = vmatmul.bf16.gmra.mxu1 %v2150_v55  ;;  %v926_v55 = vld [vmem:[#allocation2 + $0x249] sm:$0xff] }
 0x21f   :  { %v1481_v45 = vpop.f32.mrf.mxu3  ;;  %v974_v9 = vpack.c.bf16 %v927_v37, %v926_v55  ;;  %v2104_v55 = vld [vmem:[#allocation2 + $0x211] sm:$0xff]  ;;  %v2105_v37 = vld [vmem:[#allocation2 + $0x269] sm:$0xff] }
 0x220   :  { %v1626_v14 = vadd.f32 %v1481_v45, %v1233_v28 }
 0x222   :  { %v2019_v56 = vadd.f32 %v9729_v26, %v1626_v14 }
 0x223   :  { %v2269_v1 = vpop.f32.mrf.mxu1 }
 0x224   :  { %v9766_v18 = vadd.f32 %v2267_v41, %v2019_v56  ;;  %v1100_v39 = vpop.f32.mrf.mxu2  ;;  %v9777_v14 = vpop.f32.mrf.mxu0 }
 0x225   :  { %v9771_v13 = vadd.f32 %v1100_v39, %v9578_v30  ;;  %v8860_v30 = vld [vmem:[%s12826_s1 + $0x198] sm:$0xff]  ;;  %v2103_v39 = vld [vmem:[#allocation2 + $0x209] sm:$0xff] }
 0x226   :  { %2631 = vmatpush.bf16.msra.mxu2 %v8860_v30 }
 0x227   :  { %v1483_v19 = vpop.f32.mrf.mxu3  ;;  %1142 = vmatmul.bf16.gmra.mxu2 %v974_v9 }
 0x228   :  { %v1627_v3 = vadd.f32 %v1483_v19, %v1234_v43  ;;  %v1760_v43 = vpack.c.bf16 %v1713_v59, %v1712_v52  ;;  %v1318_v19 = vld [vmem:[#allocation2 + $0x20f] sm:$0xff]  ;;  %v2152_v52 = vpack.c.bf16 %v2104_v55, %v2103_v39 }
 0x22a   :  { %v2020_v28 = vadd.f32 %v9736_v46, %v1627_v3  ;;  %1928 = vmatmul.bf16.gmra.mxu0 %v1760_v43  ;;  %v1714_v43 = vld [vmem:[#allocation2 + $0x288] sm:$0xff] }
 0x22b   :  { %v2272_v21 = vpop.f32.mrf.mxu1 }
 0x22c   :  { %1525 = vmatmul.bf16.gmra.mxu3 %v9568_v24  ;;  %v9775_v26 = vadd.f32 %v2269_v1, %v2020_v28  ;;  %v1103_v24 = vpop.f32.mrf.mxu2  ;;  %v9789_v56 = vpop.f32.mrf.mxu0  ;;  %v8876_v1 = vld [vmem:[%s12826_s1 + $0x218] sm:$0xff] }
 0x22d   :  { %v1239_v16 = vadd.f32 %v1103_v24, %v9583_v50  ;;  %3417 = vmatpush.bf16.msra.mxu0 %v8876_v1  ;;  %v2106_v50 = vld [vmem:[#allocation2 + $0x271] sm:$0xff] }
 0x22e   :  { %2311 = vmatmul.bf16.gmra.mxu1 %v2151_v61  ;;  %v1317_v61 = vld [vmem:[#allocation2 + $0x207] sm:$0xff]  ;;  %v2153_v59 = vpack.c.bf16 %v2106_v50, %v2105_v37  ;;  %v2108_v50 = vld [vmem:[#allocation2 + $0x291] sm:$0xff] }
 0x22f   :  { %v1486_v46 = vpop.f32.mrf.mxu3  ;;  %v2107_v37 = vld [vmem:[#allocation2 + $0x289] sm:$0xff] }
 0x230   :  { %v1628_v22 = vadd.f32 %v1486_v46, %v1235_v7 }
 0x232   :  { %v2021_v41 = vadd.f32 %v9742_v35, %v1628_v22  ;;  %v1366_v35 = vpack.c.bf16 %v1318_v19, %v1317_v61  ;;  %v1761_v22 = vpack.c.bf16 %v1715_v29, %v1714_v43 }
 0x233   :  { %v2274_v54 = vpop.f32.mrf.mxu1 }
 0x234   :  { %v9787_v45 = vadd.f32 %v2272_v21, %v2021_v41  ;;  %v1105_v7 = vpop.f32.mrf.mxu2  ;;  %v9798_v24 = vpop.f32.mrf.mxu0 }
 0x235   :  { %v1240_v28 = vadd.f32 %v1105_v7, %v9588_v33 }
 0x237   :  { %v1488_v3 = vpop.f32.mrf.mxu3  ;;  %1147 = vmatmul.bf16.gmra.mxu2 %v2153_v59 }
 0x238   :  { %v1629_v9 = vadd.f32 %v1488_v3, %v1236_v44  ;;  %v1320_v3 = vld [vmem:[#allocation2 + $0x26f] sm:$0xff] }
 0x23a   :  { %v2022_v21 = vadd.f32 %v9754_v15, %v1629_v9  ;;  %1933 = vmatmul.bf16.gmra.mxu0 %v1761_v22 }
 0x23b   :  { %v2277_v30 = vpop.f32.mrf.mxu1 }
 0x23c   :  { %1530 = vmatmul.bf16.gmra.mxu3 %v1366_v35  ;;  %v9796_v46 = vadd.f32 %v2274_v54, %v2022_v21  ;;  %v1108_v44 = vpop.f32.mrf.mxu2  ;;  %v9805_v39 = vpop.f32.mrf.mxu0  ;;  %v1319_v54 = vld [vmem:[#allocation2 + $0x267] sm:$0xff]  ;;  %v2154_v21 = vpack.c.bf16 %v2108_v50, %v2107_v37  ;;  %v2110_v50 = vld [vmem:[#allocation2 + $0x2b1] sm:$0xff] }
 0x23d   :  { %v1241_v15 = vadd.f32 %v1108_v44, %v9592_v31  ;;  %v1367_v35 = vpack.c.bf16 %v1320_v3, %v1319_v54  ;;  %v1322_v3 = vld [vmem:[#allocation2 + $0x28f] sm:$0xff] }
 0x23e   :  { %2316 = vmatmul.bf16.gmra.mxu1 %v2152_v52  ;;  %v1716_v52 = vld [vmem:[#allocation2 + $0x2a8] sm:$0xff] }
 0x23f   :  { %v1491_v41 = vpop.f32.mrf.mxu3  ;;  %v2109_v37 = vld [vmem:[#allocation2 + $0x2a9] sm:$0xff] }
 0x240   :  { %v1630_v33 = vadd.f32 %v1491_v41, %v9763_v34 }
 0x242   :  { %v2023_v1 = vadd.f32 %v9760_v10, %v1630_v33 }
 0x243   :  { %v2279_v61 = vpop.f32.mrf.mxu1 }
 0x244   :  { %v9803_v19 = vadd.f32 %v2277_v30, %v2023_v1  ;;  %v1110_v7 = vpop.f32.mrf.mxu2  ;;  %v1717_v30 = vld [vmem:[#allocation2 + $0x2b0] sm:$0xff]  ;;  %v9812_v29 = vpop.f32.mrf.mxu0 }
 0x245   :  { %v1242_v34 = vadd.f32 %v1110_v7, %v9596_v20  ;;  %v1762_v22 = vpack.c.bf16 %v1717_v30, %v1716_v52  ;;  %v1719_v52 = vld [vmem:[#allocation2 + $0x2d0] sm:$0xff] }
 0x247   :  { %v1493_v55 = vpop.f32.mrf.mxu3  ;;  %1152 = vmatmul.bf16.gmra.mxu2 %v2154_v21 }
 0x248   :  { %v1631_v9 = vadd.f32 %v1493_v55, %v9771_v13 }
 0x24a   :  { %v2024_v31 = vadd.f32 %v9768_v62, %v1631_v9  ;;  %1938 = vmatmul.bf16.gmra.mxu0 %v1762_v22 }
 0x24b   :  { %v2282_v10 = vpop.f32.mrf.mxu1 }
 0x24c   :  { %1535 = vmatmul.bf16.gmra.mxu3 %v1367_v35  ;;  %v9810_v43 = vadd.f32 %v2279_v61, %v2024_v31  ;;  %v1113_v13 = vpop.f32.mrf.mxu2  ;;  %v9818_v54 = vpop.f32.mrf.mxu0  ;;  %v1321_v61 = vld [vmem:[#allocation2 + $0x287] sm:$0xff] }
 0x24d   :  { %v1243_v20 = vadd.f32 %v1113_v13, %v9600_v2  ;;  %v1368_v9 = vpack.c.bf16 %v1322_v3, %v1321_v61  ;;  %v2155_v2 = vpack.c.bf16 %v2110_v50, %v2109_v37  ;;  %v1324_v3 = vld [vmem:[#allocation2 + $0x2af] sm:$0xff] }
 0x24e   :  { %2321 = vmatmul.bf16.gmra.mxu1 %v2153_v59  ;;  %v2111_v37 = vld [vmem:[#allocation2 + $0x2c9] sm:$0xff] }
 0x24f   :  { %v1496_v41 = vpop.f32.mrf.mxu3 }
 0x250   :  { %v1632_v44 = vadd.f32 %v1496_v41, %v1239_v16 }
 0x252   :  { %v2025_v62 = vadd.f32 %v9777_v14, %v1632_v44  ;;  %v1718_v14 = vld [vmem:[#allocation2 + $0x2c8] sm:$0xff] }
 0x253   :  { %v2284_v33 = vpop.f32.mrf.mxu1  ;;  %v1763_v22 = vpack.c.bf16 %v1719_v52, %v1718_v14  ;;  %v1721_v14 = vld [vmem:[#allocation2 + $0x2f0] sm:$0xff] }
 0x254   :  { %v9816_v1 = vadd.f32 %v2282_v10, %v2025_v62  ;;  %v1115_v7 = vpop.f32.mrf.mxu2  ;;  %v9824_v30 = vpop.f32.mrf.mxu0 }
 0x255   :  { %v1244_v35 = vadd.f32 %v1115_v7, %v9610_v57 }
 0x257   :  { %v1498_v55 = vpop.f32.mrf.mxu3  ;;  %1157 = vmatmul.bf16.gmra.mxu2 %v2155_v2 }
 0x258   :  { %v1633_v59 = vadd.f32 %v1498_v55, %v1240_v28 }
 0x25a   :  { %v2026_v16 = vadd.f32 %v9789_v56, %v1633_v59  ;;  %1943 = vmatmul.bf16.gmra.mxu0 %v1763_v22  ;;  %v8859_v22 = vld [vmem:[%s12826_s1 + $0x190] sm:$0xff] }
 0x25b   :  { %v2287_v31 = vpop.f32.mrf.mxu1  ;;  %2632 = vmatpush.bf16.msra.mxu2 %v8859_v22  ;;  %v1723_v22 = vld [vmem:[#allocation2 + $0x310] sm:$0xff] }
 0x25c   :  { %1540 = vmatmul.bf16.gmra.mxu3 %v1368_v9  ;;  %v9822_v10 = vadd.f32 %v2284_v33, %v2026_v16  ;;  %v1118_v28 = vpop.f32.mrf.mxu2  ;;  %v9832_v61 = vpop.f32.mrf.mxu0  ;;  %v1323_v33 = vld [vmem:[#allocation2 + $0x2a7] sm:$0xff] }
 0x25d   :  { %v9827_v57 = vadd.f32 %v1118_v28, %v9617_v47  ;;  %v1369_v59 = vpack.c.bf16 %v1324_v3, %v1323_v33 }
 0x25e   :  { %2326 = vmatmul.bf16.gmra.mxu1 %v2154_v21  ;;  %v2112_v21 = vld [vmem:[#allocation2 + $0x2d1] sm:$0xff] }
 0x25f   :  { %v1501_v41 = vpop.f32.mrf.mxu3  ;;  %v2156_v9 = vpack.c.bf16 %v2112_v21, %v2111_v37 }
 0x260   :  { %v1634_v13 = vadd.f32 %v1501_v41, %v1241_v15 }
 0x262   :  { %v2027_v56 = vadd.f32 %v9798_v24, %v1634_v13  ;;  %v1720_v24 = vld [vmem:[#allocation2 + $0x2e8] sm:$0xff] }
 0x263   :  { %v2289_v44 = vpop.f32.mrf.mxu1 }
 0x264   :  { %v9830_v62 = vadd.f32 %v2287_v31, %v2027_v56  ;;  %v1120_v7 = vpop.f32.mrf.mxu2 }
 0x265   :  { %v1246_v15 = vadd.f32 %v1120_v7, %v9621_v38  ;;  %v8867_v38 = vld [vmem:[%s12826_s1 + $0x1d0] sm:$0xff] }
 0x266   :  { %3025 = vmatpush.bf16.msra.mxu3 %v8867_v38  ;;  %v1326_v7 = vld [vmem:[#allocation2 + $0x2cf] sm:$0xff] }
 0x267   :  { %v1503_v55 = vpop.f32.mrf.mxu3  ;;  %v9838_v52 = vpop.f32.mrf.mxu0  ;;  %1162 = vmatmul.bf16.gmra.mxu2 %v2156_v9 }
 0x268   :  { %v1635_v50 = vadd.f32 %v1503_v55, %v1242_v34  ;;  %v1764_v34 = vpack.c.bf16 %v1721_v14, %v1720_v24  ;;  %v8875_v55 = vld [vmem:[%s12826_s1 + $0x210] sm:$0xff]  ;;  %v1722_v14 = vld [vmem:[#allocation2 + $0x308] sm:$0xff] }
 0x269   :  { %3418 = vmatpush.bf16.msra.mxu0 %v8875_v55 }
 0x26a   :  { %v2028_v47 = vadd.f32 %v9805_v39, %v1635_v50  ;;  %1948 = vmatmul.bf16.gmra.mxu0 %v1764_v34  ;;  %v2113_v50 = vld [vmem:[#allocation2 + $0x2e9] sm:$0xff] }
 0x26b   :  { %v2292_v16 = vpop.f32.mrf.mxu1 }
 0x26c   :  { %1545 = vmatmul.bf16.gmra.mxu3 %v1369_v59  ;;  %v9836_v31 = vadd.f32 %v2289_v44, %v2028_v47  ;;  %v1123_v41 = vpop.f32.mrf.mxu2 }
 0x26d   :  { %v1247_v13 = vadd.f32 %v1123_v41, %v9625_v4 }
 0x26e   :  { %2331 = vmatmul.bf16.gmra.mxu1 %v2155_v2  ;;  %v1325_v2 = vld [vmem:[#allocation2 + $0x2c7] sm:$0xff] }
 0x26f   :  { %v1506_v39 = vpop.f32.mrf.mxu3  ;;  %v9850_v3 = vpop.f32.mrf.mxu0  ;;  %v1370_v4 = vpack.c.bf16 %v1326_v7, %v1325_v2  ;;  %v1328_v7 = vld [vmem:[#allocation2 + $0x2ef] sm:$0xff] }
 0x270   :  { %v1636_v28 = vadd.f32 %v1506_v39, %v1243_v20  ;;  %v2114_v20 = vld [vmem:[#allocation2 + $0x2f1] sm:$0xff]  ;;  %v1765_v39 = vpack.c.bf16 %v1723_v22, %v1722_v14 }
 0x271   :  { %v1725_v14 = vld [vmem:[#allocation2 + $0x330] sm:$0xff] }
 0x272   :  { %v2029_v56 = vadd.f32 %v9812_v29, %v1636_v28 }
 0x273   :  { %v2294_v44 = vpop.f32.mrf.mxu1 }
 0x274   :  { %v9848_v33 = vadd.f32 %v2292_v16, %v2029_v56  ;;  %v1125_v21 = vpop.f32.mrf.mxu2  ;;  %v2157_v16 = vpack.c.bf16 %v2114_v20, %v2113_v50  ;;  %v2115_v50 = vld [vmem:[#allocation2 + $0x309] sm:$0xff] }
 0x275   :  { %v1248_v29 = vadd.f32 %v1125_v21, %v9629_v63 }
 0x277   :  { %v1508_v37 = vpop.f32.mrf.mxu3  ;;  %v9859_v38 = vpop.f32.mrf.mxu0  ;;  %1167 = vmatmul.bf16.gmra.mxu2 %v2157_v16 }
 0x278   :  { %v1637_v59 = vadd.f32 %v1508_v37, %v1244_v35 }
 0x27a   :  { %v2030_v47 = vadd.f32 %v9818_v54, %v1637_v59  ;;  %1953 = vmatmul.bf16.gmra.mxu0 %v1765_v39 }
 0x27b   :  { %v2297_v24 = vpop.f32.mrf.mxu1 }
 0x27c   :  { %1550 = vmatmul.bf16.gmra.mxu3 %v1370_v4  ;;  %v9857_v34 = vadd.f32 %v2294_v44, %v2030_v47  ;;  %v1128_v35 = vpop.f32.mrf.mxu2  ;;  %v1327_v44 = vld [vmem:[#allocation2 + $0x2e7] sm:$0xff] }
 0x27d   :  { %v1249_v63 = vadd.f32 %v1128_v35, %v9633_v17  ;;  %v1371_v59 = vpack.c.bf16 %v1328_v7, %v1327_v44  ;;  %v1330_v7 = vld [vmem:[#allocation2 + $0x30f] sm:$0xff] }
 0x27e   :  { %2336 = vmatmul.bf16.gmra.mxu1 %v2156_v9  ;;  %v2116_v9 = vld [vmem:[#allocation2 + $0x311] sm:$0xff] }
 0x27f   :  { %v1511_v41 = vpop.f32.mrf.mxu3  ;;  %v9866_v2 = vpop.f32.mrf.mxu0  ;;  %v2158_v17 = vpack.c.bf16 %v2116_v9, %v2115_v50  ;;  %v2117_v50 = vld [vmem:[#allocation2 + $0x329] sm:$0xff]  ;;  %v2118_v9 = vld [vmem:[#allocation2 + $0x331] sm:$0xff] }
 0x280   :  { %v1638_v28 = vadd.f32 %v1511_v41, %v9827_v57 }
 0x282   :  { %v2031_v54 = vadd.f32 %v9824_v30, %v1638_v28  ;;  %v1724_v30 = vld [vmem:[#allocation2 + $0x328] sm:$0xff] }
 0x283   :  { %v2299_v56 = vpop.f32.mrf.mxu1  ;;  %v1766_v39 = vpack.c.bf16 %v1725_v14, %v1724_v30 }
 0x284   :  { %v9864_v55 = vadd.f32 %v2297_v24, %v2031_v54  ;;  %v1130_v21 = vpop.f32.mrf.mxu2 }
 0x285   :  { %v1250_v4 = vadd.f32 %v1130_v21, %v9637_v60 }
 0x287   :  { %v1513_v37 = vpop.f32.mrf.mxu3  ;;  %v9872_v22 = vpop.f32.mrf.mxu0  ;;  %1172 = vmatmul.bf16.gmra.mxu2 %v2158_v17 }
 0x288   :  { %v1639_v20 = vadd.f32 %v1513_v37, %v1246_v15 }
 0x28a   :  { %v2032_v57 = vadd.f32 %v9832_v61, %v1639_v20  ;;  %1958 = vmatmul.bf16.gmra.mxu0 %v1766_v39 }
 0x28b   :  { %v2302_v47 = vpop.f32.mrf.mxu1 }
 0x28c   :  { %1555 = vmatmul.bf16.gmra.mxu3 %v1371_v59  ;;  %v9870_v24 = vadd.f32 %v2299_v56, %v2032_v57  ;;  %v1133_v15 = vpop.f32.mrf.mxu2  ;;  %v1329_v56 = vld [vmem:[#allocation2 + $0x307] sm:$0xff] }
 0x28d   :  { %v1251_v60 = vadd.f32 %v1133_v15, %v9643_v32  ;;  %v1372_v20 = vpack.c.bf16 %v1330_v7, %v1329_v56  ;;  %v1726_v57 = vld [vmem:[#allocation2 + $0x348] sm:$0xff] }
 0x28e   :  { %2341 = vmatmul.bf16.gmra.mxu1 %v2157_v16  ;;  %v1332_v7 = vld [vmem:[#allocation2 + $0x32f] sm:$0xff] }
 0x28f   :  { %v1516_v41 = vpop.f32.mrf.mxu3  ;;  %v9878_v44 = vpop.f32.mrf.mxu0 }
 0x290   :  { %v1640_v35 = vadd.f32 %v1516_v41, %v1247_v13  ;;  %v2159_v13 = vpack.c.bf16 %v2118_v9, %v2117_v50  ;;  %v2119_v50 = vld [vmem:[#allocation2 + $0x349] sm:$0xff] }
 0x292   :  { %v2033_v61 = vadd.f32 %v9838_v52, %v1640_v35 }
 0x293   :  { %v2304_v28 = vpop.f32.mrf.mxu1 }
 0x294   :  { %v9876_v54 = vadd.f32 %v2302_v47, %v2033_v61  ;;  %v1135_v21 = vpop.f32.mrf.mxu2  ;;  %v1727_v47 = vld [vmem:[#allocation2 + $0x350] sm:$0xff] }
 0x295   :  { %v9881_v59 = vadd.f32 %v1135_v21, %v9656_v53  ;;  %v1767_v39 = vpack.c.bf16 %v1727_v47, %v1726_v57 }
 0x297   :  { %v1518_v37 = vpop.f32.mrf.mxu3  ;;  %v9886_v14 = vpop.f32.mrf.mxu0  ;;  %1177 = vmatmul.bf16.gmra.mxu2 %v2159_v13 }
 0x298   :  { %v1641_v16 = vadd.f32 %v1518_v37, %v1248_v29 }
 0x29a   :  { %v2034_v32 = vadd.f32 %v9850_v3, %v1641_v16  ;;  %1963 = vmatmul.bf16.gmra.mxu0 %v1767_v39 }
 0x29b   :  { %v2307_v52 = vpop.f32.mrf.mxu1 }
 0x29c   :  { %1560 = vmatmul.bf16.gmra.mxu3 %v1372_v20  ;;  %v9884_v30 = vadd.f32 %v2304_v28, %v2034_v32  ;;  %v1138_v29 = vpop.f32.mrf.mxu2  ;;  %v1331_v28 = vld [vmem:[#allocation2 + $0x327] sm:$0xff] }
 0x29d   :  { %v9889_v53 = vadd.f32 %v1138_v29, %v9667_v51  ;;  %v1373_v16 = vpack.c.bf16 %v1332_v7, %v1331_v28  ;;  %v1728_v32 = vld [vmem:[#allocation2 + $0x368] sm:$0xff] }
 0x29e   :  { %2346 = vmatmul.bf16.gmra.mxu1 %v2158_v17  ;;  %v2120_v17 = vld [vmem:[#allocation2 + $0x351] sm:$0xff] }
 0x29f   :  { %v1521_v41 = vpop.f32.mrf.mxu3  ;;  %v9894_v56 = vpop.f32.mrf.mxu0  ;;  %v2160_v20 = vpack.c.bf16 %v2120_v17, %v2119_v50  ;;  %v817_v50 = vadd.f32 %v9353_v42, %v9306_v8 }
 0x2a0   :  { %v1642_v15 = vadd.f32 %v1521_v41, %v1249_v63 }
 0x2a2   :  { %v2035_v3 = vadd.f32 %v9859_v38, %v1642_v15 }
 0x2a3   :  { %v2309_v35 = vpop.f32.mrf.mxu1 }
 0x2a4   :  { %v9892_v61 = vadd.f32 %v2307_v52, %v2035_v3  ;;  %v1140_v21 = vpop.f32.mrf.mxu2  ;;  %v1729_v52 = vld [vmem:[#allocation2 + $0x370] sm:$0xff] }
 0x2a5   :  { %v9897_v63 = vadd.f32 %v1140_v21, %v9674_v36  ;;  %v1768_v39 = vpack.c.bf16 %v1729_v52, %v1728_v32  ;;  %v8866_v36 = vld [vmem:[%s12826_s1 + $0x1c8] sm:$0xff] }
 0x2a6   :  { %3026 = vmatpush.bf16.msra.mxu3 %v8866_v36  ;;  %v1334_v21 = vld [vmem:[#allocation2 + $0x34f] sm:$0xff] }
 0x2a7   :  { %v1523_v37 = vpop.f32.mrf.mxu3  ;;  %v9902_v47 = vpop.f32.mrf.mxu0  ;;  %1182 = vmatmul.bf16.gmra.mxu2 %v2160_v20 }
 0x2a8   :  { %v1643_v9 = vadd.f32 %v1523_v37, %v1250_v4  ;;  %v8858_v4 = vld [vmem:[%s12826_s1 + $0x188] sm:$0xff] }
 0x2a9   :  { %2633 = vmatpush.bf16.msra.mxu2 %v8858_v4  ;;  %v8874_v37 = vld [vmem:[%s12826_s1 + $0x208] sm:$0xff] }
 0x2aa   :  { %v2036_v51 = vadd.f32 %v9866_v2, %v1643_v9  ;;  %1968 = vmatmul.bf16.gmra.mxu0 %v1768_v39  ;;  %v2122_v9 = vld [vmem:[#allocation2 + $0x371] sm:$0xff]  ;;  %v1730_v4 = vld [vmem:[#allocation2 + $0x388] sm:$0xff] }
 0x2ab   :  { %v2312_v38 = vpop.f32.mrf.mxu1  ;;  %3419 = vmatpush.bf16.msra.mxu0 %v8874_v37  ;;  %v1731_v39 = vld [vmem:[#allocation2 + $0x390] sm:$0xff] }
 0x2ac   :  { %1565 = vmatmul.bf16.gmra.mxu3 %v1373_v16  ;;  %v9900_v57 = vadd.f32 %v2309_v35, %v2036_v51  ;;  %v1143_v41 = vpop.f32.mrf.mxu2  ;;  %v1769_v8 = vpack.c.bf16 %v1731_v39, %v1730_v4 }
 0x2ad   :  { %v1255_v15 = vadd.f32 %v1143_v41, %v9290_v0  ;;  %v2121_v0 = vld [vmem:[#allocation2 + $0x369] sm:$0xff] }
 0x2ae   :  { %2351 = vmatmul.bf16.gmra.mxu1 %v2159_v13  ;;  %v1333_v13 = vld [vmem:[#allocation2 + $0x347] sm:$0xff]  ;;  %v2161_v32 = vpack.c.bf16 %v2122_v9, %v2121_v0 }
 0x2af   :  { %v1526_v2 = vpop.f32.mrf.mxu3  ;;  %v9914_v7 = vpop.f32.mrf.mxu0  ;;  %v1374_v16 = vpack.c.bf16 %v1334_v21, %v1333_v13  ;;  %v1336_v21 = vld [vmem:[#allocation2 + $0x36f] sm:$0xff] }
 0x2b0   :  { %v1644_v29 = vadd.f32 %v1526_v2, %v1251_v60 }
 0x2b2   :  { %v2037_v3 = vadd.f32 %v9872_v22, %v1644_v29 }
 0x2b3   :  { %v2314_v35 = vpop.f32.mrf.mxu1 }
 0x2b4   :  { %v9912_v28 = vadd.f32 %v2312_v38, %v2037_v3  ;;  %v1145_v17 = vpop.f32.mrf.mxu2 }
 0x2b5   :  { %v1256_v51 = vadd.f32 %v1145_v17, %v817_v50  ;;  %v2123_v17 = vld [vmem:[#allocation2 + $0x389] sm:$0xff] }
 0x2b7   :  { %v1528_v60 = vpop.f32.mrf.mxu3  ;;  %v9925_v2 = vpop.f32.mrf.mxu0  ;;  %1187 = vmatmul.bf16.gmra.mxu2 %v2161_v32 }
 0x2b8   :  { %v1645_v22 = vadd.f32 %v1528_v60, %v9881_v59 }
 0x2ba   :  { %v2038_v38 = vadd.f32 %v9878_v44, %v1645_v22  ;;  %1973 = vmatmul.bf16.gmra.mxu0 %v1769_v8 }
 0x2bb   :  { %v2317_v52 = vpop.f32.mrf.mxu1 }
 0x2bc   :  { %1570 = vmatmul.bf16.gmra.mxu3 %v1374_v16  ;;  %v9923_v36 = vadd.f32 %v2314_v35, %v2038_v38  ;;  %v1148_v41 = vpop.f32.mrf.mxu2  ;;  %v1335_v35 = vld [vmem:[#allocation2 + $0x367] sm:$0xff]  ;;  %v1733_v38 = vld [vmem:[#allocation2 + $0x3b0] sm:$0xff] }
 0x2bd   :  { %v1257_v29 = vadd.f32 %v1148_v41, %v9363_v58  ;;  %v1375_v9 = vpack.c.bf16 %v1336_v21, %v1335_v35  ;;  %v1732_v16 = vld [vmem:[#allocation2 + $0x3a8] sm:$0xff] }
 0x2be   :  { %2356 = vmatmul.bf16.gmra.mxu1 %v2160_v20  ;;  %v2124_v20 = vld [vmem:[#allocation2 + $0x391] sm:$0xff]  ;;  %v1770_v39 = vpack.c.bf16 %v1733_v38, %v1732_v16 }
 0x2bf   :  { %v1531_v42 = vpop.f32.mrf.mxu3  ;;  %v9932_v13 = vpop.f32.mrf.mxu0  ;;  %v2162_v22 = vpack.c.bf16 %v2124_v20, %v2123_v17  ;;  %v1338_v35 = vld [vmem:[#allocation2 + $0x38f] sm:$0xff] }
 0x2c0   :  { %v1646_v59 = vadd.f32 %v1531_v42, %v9889_v53  ;;  %v2126_v17 = vld [vmem:[#allocation2 + $0x3b1] sm:$0xff] }
 0x2c1   :  { %v1735_v16 = vld [vmem:[#allocation2 + $0x3d0] sm:$0xff] }
 0x2c2   :  { %v2039_v44 = vadd.f32 %v9886_v14, %v1646_v59 }
 0x2c3   :  { %v2319_v3 = vpop.f32.mrf.mxu1 }
 0x2c4   :  { %v9930_v37 = vadd.f32 %v2317_v52, %v2039_v44  ;;  %v1150_v60 = vpop.f32.mrf.mxu2 }
 0x2c5   :  { %v1258_v53 = vadd.f32 %v1150_v60, %v9385_v11  ;;  %v2125_v60 = vld [vmem:[#allocation2 + $0x3a9] sm:$0xff] }
 0x2c7   :  { %v1533_v50 = vpop.f32.mrf.mxu3  ;;  %v9939_v4 = vpop.f32.mrf.mxu0  ;;  %1192 = vmatmul.bf16.gmra.mxu2 %v2162_v22 }
 0x2c8   :  { %v1647_v0 = vadd.f32 %v1533_v50, %v9897_v63 }
 0x2ca   :  { %v2040_v58 = vadd.f32 %v9894_v56, %v1647_v0  ;;  %1978 = vmatmul.bf16.gmra.mxu0 %v1770_v39  ;;  %v12999_v0 = vld [vmem:[#allocation3_spill] sm:$0xff] }
 0x2cb   :  { %v2322_v14 = vpop.f32.mrf.mxu1 }
 0x2cc   :  { %1575 = vmatmul.bf16.gmra.mxu3 %v1375_v9  ;;  %v9937_v52 = vadd.f32 %v2319_v3, %v2040_v58  ;;  %v1153_v63 = vpop.f32.mrf.mxu2  ;;  %v1337_v3 = vld [vmem:[#allocation2 + $0x387] sm:$0xff] }
 0x2cd   :  { %v1259_v11 = vadd.f32 %v1153_v63, %v9401_v23  ;;  %v1376_v20 = vpack.c.bf16 %v1338_v35, %v1337_v3  ;;  %v2163_v23 = vpack.c.bf16 %v2126_v17, %v2125_v60 }
 0x2ce   :  { %2361 = vmatmul.bf16.gmra.mxu1 %v2161_v32 }
 0x2cf   :  { %v1536_v8 = vpop.f32.mrf.mxu3  ;;  %v9945_v44 = vpop.f32.mrf.mxu0 }
 0x2d0   :  { %v1648_v42 = vadd.f32 %v1536_v8, %v1255_v15 }
 0x2d2   :  { %v2041_v56 = vadd.f32 %v9902_v47, %v1648_v42  ;;  %v1734_v47 = vld [vmem:[#allocation2 + $0x3c8] sm:$0xff] }
 0x2d3   :  { %v2324_v41 = vpop.f32.mrf.mxu1  ;;  %v1771_v39 = vpack.c.bf16 %v1735_v16, %v1734_v47  ;;  %v13000_v42 = vld [vmem:[#allocation4_spill] sm:$0xff] }
 0x2d4   :  { %v9943_v59 = vadd.f32 %v2322_v14, %v2041_v56  ;;  %v1155_v50 = vpop.f32.mrf.mxu2 }
 0x2d5   :  { %v1260_v9 = vadd.f32 %v1155_v50, %v12999_v0  ;;  %v1340_v50 = vld [vmem:[#allocation2 + $0x3af] sm:$0xff] }
 0x2d7   :  { %v1538_v21 = vpop.f32.mrf.mxu3  ;;  %v9951_v38 = vpop.f32.mrf.mxu0  ;;  %1197 = vmatmul.bf16.gmra.mxu2 %v2163_v23 }
 0x2d8   :  { %v1649_v32 = vadd.f32 %v1538_v21, %v1256_v51 }
 0x2da   :  { %v2042_v15 = vadd.f32 %v9914_v7, %v1649_v32  ;;  %1983 = vmatmul.bf16.gmra.mxu0 %v1771_v39  ;;  %v2127_v32 = vld [vmem:[#allocation2 + $0x3c9] sm:$0xff] }
 0x2db   :  { %v2327_v58 = vpop.f32.mrf.mxu1 }
 0x2dc   :  { %1580 = vmatmul.bf16.gmra.mxu3 %v1376_v20  ;;  %v9949_v14 = vadd.f32 %v2324_v41, %v2042_v15  ;;  %v1158_v51 = vpop.f32.mrf.mxu2  ;;  %v1339_v41 = vld [vmem:[#allocation2 + $0x3a7] sm:$0xff]  ;;  %v13001_v15 = vld [vmem:[#allocation5_spill] sm:$0xff] }
 0x2dd   :  { %v9954_v56 = vadd.f32 %v1158_v51, %v13000_v42  ;;  %v1377_v0 = vpack.c.bf16 %v1340_v50, %v1339_v41  ;;  %v8865_v42 = vld [vmem:[%s12826_s1 + $0x1c0] sm:$0xff]  ;;  %v13003_v41 = vld [vmem:[#allocation6_spill] sm:$0xff] }
 0x2de   :  { %2366 = vmatmul.bf16.gmra.mxu1 %v2162_v22  ;;  %v2128_v22 = vld [vmem:[#allocation2 + $0x3d1] sm:$0xff]  ;;  %3027 = vmatpush.bf16.msra.mxu3 %v8865_v42 }
 0x2df   :  { %v1541_v8 = vpop.f32.mrf.mxu3  ;;  %v9959_v21 = vpop.f32.mrf.mxu0  ;;  %v2164_v16 = vpack.c.bf16 %v2128_v22, %v2127_v32 }
 0x2e0   :  { %v1650_v63 = vadd.f32 %v1541_v8, %v1257_v29  ;;  %v1737_v8 = vld [vmem:[#allocation2 + $0x3f0] sm:$0xff] }
 0x2e2   :  { %v2043_v7 = vadd.f32 %v9925_v2, %v1650_v63  ;;  %v1736_v2 = vld [vmem:[#allocation2 + $0x3e8] sm:$0xff]  ;;  %v8857_v63 = vld [vmem:[%s12826_s1 + $0x180] sm:$0xff] }
 0x2e3   :  { %v2329_v3 = vpop.f32.mrf.mxu1  ;;  %2634 = vmatpush.bf16.msra.mxu2 %v8857_v63 }
 0x2e4   :  { %v9957_v35 = vadd.f32 %v2327_v58, %v2043_v7  ;;  %v1160_v17 = vpop.f32.mrf.mxu2 }
 0x2e5   :  { %v1262_v29 = vadd.f32 %v1160_v17, %v13001_v15 }
 0x2e7   :  { %v1543_v60 = vpop.f32.mrf.mxu3  ;;  %v9965_v51 = vpop.f32.mrf.mxu0  ;;  %1202 = vmatmul.bf16.gmra.mxu2 %v2164_v16 }
 0x2e8   :  { %v1651_v20 = vadd.f32 %v1543_v60, %v1258_v53  ;;  %v1772_v53 = vpack.c.bf16 %v1737_v8, %v1736_v2  ;;  %v2129_v2 = vld [vmem:[#allocation2 + $0x3e9] sm:$0xff] }
 0x2ea   :  { %v2044_v47 = vadd.f32 %v9932_v13, %v1651_v20  ;;  %1988 = vmatmul.bf16.gmra.mxu0 %v1772_v53  ;;  %v8873_v20 = vld [vmem:[%s12826_s1 + $0x200] sm:$0xff] }
 0x2eb   :  { %v2332_v39 = vpop.f32.mrf.mxu1  ;;  %3420 = vmatpush.bf16.msra.mxu0 %v8873_v20  ;;  %v13005_v53 = vld [vmem:[#allocation7_spill] sm:$0xff] }
 0x2ec   :  { %1585 = vmatmul.bf16.gmra.mxu3 %v1377_v0  ;;  %v9963_v58 = vadd.f32 %v2329_v3, %v2044_v47  ;;  %v1163_v7 = vpop.f32.mrf.mxu2  ;;  %v1342_v0 = vld [vmem:[#allocation2 + $0x3cf] sm:$0xff] }
 0x2ed   :  { %v1263_v50 = vadd.f32 %v1163_v7, %v13003_v41  ;;  %v1738_v7 = vld [vmem:[#allocation2 + $0x408] sm:$0xff] }
 0x2ee   :  { %13002 = vst [vmem:[#allocation3_spill] sm:$0xff] %v9963_v58  ;;  %2371 = vmatmul.bf16.gmra.mxu1 %v2163_v23  ;;  %v1341_v23 = vld [vmem:[#allocation2 + $0x3c7] sm:$0xff] }
 0x2ef   :  { %v1546_v13 = vpop.f32.mrf.mxu3  ;;  %v9977_v22 = vpop.f32.mrf.mxu0  ;;  %v1378_v63 = vpack.c.bf16 %v1342_v0, %v1341_v23  ;;  %v13007_v0 = vld [vmem:[#allocation8_spill] sm:$0xff] }
 0x2f0   :  { %v1652_v3 = vadd.f32 %v1546_v13, %v1259_v11  ;;  %v2130_v11 = vld [vmem:[#allocation2 + $0x3f1] sm:$0xff]  ;;  %v13016_v58 = vld [vmem:[#allocation12_spill] sm:$0xff] }
 0x2f1   :  { %v2165_v42 = vpack.c.bf16 %v2130_v11, %v2129_v2 }
 0x2f2   :  { %v2045_v60 = vadd.f32 %v9939_v4, %v1652_v3  ;;  %v1739_v3 = vld [vmem:[#allocation2 + $0x410] sm:$0xff] }
 0x2f3   :  { %v2334_v17 = vpop.f32.mrf.mxu1  ;;  %v1773_v20 = vpack.c.bf16 %v1739_v3, %v1738_v7 }
 0x2f4   :  { %v9975_v32 = vadd.f32 %v2332_v39, %v2045_v60  ;;  %v1165_v47 = vpop.f32.mrf.mxu2 }
 0x2f5   :  { %v1264_v4 = vadd.f32 %v1165_v47, %v13005_v53 }
 0x2f6   :  { %13004 = vst [vmem:[#allocation4_spill] sm:$0xff] %v9975_v32 }
 0x2f7   :  { %v1548_v15 = vpop.f32.mrf.mxu3  ;;  %v9986_v60 = vpop.f32.mrf.mxu0  ;;  %1207 = vmatmul.bf16.gmra.mxu2 %v2165_v42 }
 0x2f8   :  { %v1653_v8 = vadd.f32 %v1548_v15, %v1260_v9 }
 0x2fa   :  { %v2046_v39 = vadd.f32 %v9945_v44, %v1653_v8  ;;  %1993 = vmatmul.bf16.gmra.mxu0 %v1773_v20  ;;  %v1344_v8 = vld [vmem:[#allocation2 + $0x3ef] sm:$0xff] }
 0x2fb   :  { %v2337_v13 = vpop.f32.mrf.mxu1  ;;  %v13009_v20 = vld [vmem:[#allocation9_spill] sm:$0xff] }
 0x2fc   :  { %1590 = vmatmul.bf16.gmra.mxu3 %v1378_v63  ;;  %v9984_v41 = vadd.f32 %v2334_v17, %v2046_v39  ;;  %v1168_v9 = vpop.f32.mrf.mxu2  ;;  %v1343_v17 = vld [vmem:[#allocation2 + $0x3e7] sm:$0xff] }
 0x2fd   :  { %v1265_v15 = vadd.f32 %v1168_v9, %v13007_v0  ;;  %v2131_v39 = vld [vmem:[#allocation2 + $0x409] sm:$0xff]  ;;  %v1379_v3 = vpack.c.bf16 %v1344_v8, %v1343_v17  ;;  %v13011_v8 = vld [vmem:[#allocation10_spill] sm:$0xff] }
 0x2fe   :  { %13006 = vst [vmem:[#allocation5_spill] sm:$0xff] %v9984_v41  ;;  %2376 = vmatmul.bf16.gmra.mxu1 %v2164_v16  ;;  %v2132_v16 = vld [vmem:[#allocation2 + $0x411] sm:$0xff] }
 0x2ff   :  { %v1551_v32 = vpop.f32.mrf.mxu3  ;;  %v9993_v11 = vpop.f32.mrf.mxu0 }
 0x300   :  { %v1654_v23 = vadd.f32 %v1551_v32, %v9954_v56  ;;  %v2166_v32 = vpack.c.bf16 %v2132_v16, %v2131_v39 }
 0x302   :  { %v2047_v44 = vadd.f32 %v9951_v38, %v1654_v23  ;;  %v1740_v38 = vld [vmem:[#allocation2 + $0x428] sm:$0xff]  ;;  %v1741_v23 = vld [vmem:[#allocation2 + $0x430] sm:$0xff] }
 0x303   :  { %v2339_v47 = vpop.f32.mrf.mxu1 }
 0x304   :  { %v9991_v2 = vadd.f32 %v2337_v13, %v2047_v44  ;;  %v1170_v53 = vpop.f32.mrf.mxu2  ;;  %v1774_v44 = vpack.c.bf16 %v1741_v23, %v1740_v38 }
 0x305   :  { %v1266_v41 = vadd.f32 %v1170_v53, %v13009_v20  ;;  %v2133_v20 = vld [vmem:[#allocation2 + $0x429] sm:$0xff] }
 0x306   :  { %13008 = vst [vmem:[#allocation6_spill] sm:$0xff] %v9991_v2 }
 0x307   :  { %v1553_v63 = vpop.f32.mrf.mxu3  ;;  %v9999_v0 = vpop.f32.mrf.mxu0  ;;  %1212 = vmatmul.bf16.gmra.mxu2 %v2166_v32 }
 0x308   :  { %v1655_v7 = vadd.f32 %v1553_v63, %v1262_v29 }
 0x30a   :  { %v2048_v56 = vadd.f32 %v9959_v21, %v1655_v7  ;;  %1998 = vmatmul.bf16.gmra.mxu0 %v1774_v44  ;;  %v170_v21 = vld [vmem:[%s12827_s0 + $0x1f0] sm:$0xff]  ;;  %v13014_v44 = vld [vmem:[#allocation11_spill] sm:$0xff] }
 0x30b   :  { %v2342_v9 = vpop.f32.mrf.mxu1  ;;  %234 = vst [vmem:[#allocation2 + $0x448] sm:$0xff] %v170_v21 }
 0x30c   :  { %1595 = vmatmul.bf16.gmra.mxu3 %v1379_v3  ;;  %v9997_v13 = vadd.f32 %v2339_v47, %v2048_v56  ;;  %v1173_v29 = vpop.f32.mrf.mxu2  ;;  %v171_v47 = vld [vmem:[%s12827_s0 + $0x1f8] sm:$0xff] }
 0x30d   :  { %v1267_v63 = vadd.f32 %v1173_v29, %v13011_v8  ;;  %235 = vst [vmem:[#allocation2 + $0x450] sm:$0xff] %v171_v47  ;;  %v2134_v56 = vld [vmem:[#allocation2 + $0x431] sm:$0xff] }
 0x30e   :  { %13010 = vst [vmem:[#allocation7_spill] sm:$0xff] %v9997_v13  ;;  %2381 = vmatmul.bf16.gmra.mxu1 %v2165_v42 }
 0x30f   :  { %v1556_v2 = vpop.f32.mrf.mxu3  ;;  %v10013_v16 = vpop.f32.mrf.mxu0 }
 0x310   :  { %v1656_v17 = vadd.f32 %v1556_v2, %v1263_v50  ;;  %v1345_v50 = vld [vmem:[#allocation2 + $0x407] sm:$0xff]  ;;  %v1346_v2 = vld [vmem:[#allocation2 + $0x40f] sm:$0xff] }
 0x311   :  { %v1380_v23 = vpack.c.bf16 %v1346_v2, %v1345_v50 }
 0x312   :  { %v2049_v53 = vadd.f32 %v9965_v51, %v1656_v17  ;;  %v2167_v17 = vpack.c.bf16 %v2134_v56, %v2133_v20  ;;  %v1348_v20 = vld [vmem:[#allocation2 + $0x42f] sm:$0xff] }
 0x313   :  { %v10009_v39 = vpop.f32.mrf.mxu1 }
 0x314   :  { %13012 = vst [vmem:[#allocation8_spill] sm:$0xff] %v10009_v39  ;;  %v10011_v42 = vadd.f32 %v2342_v9, %v2049_v53  ;;  %v1175_v3 = vpop.f32.mrf.mxu2  ;;  %v1775_v53 = vpack.c.bf16 %v171_v47, %v170_v21  ;;  %v13018_v47 = vld [vmem:[#allocation13_spill] sm:$0xff] }
 0x315   :  { %v1268_v29 = vadd.f32 %v1175_v3, %v13014_v44  ;;  %v1347_v3 = vld [vmem:[#allocation2 + $0x427] sm:$0xff] }
 0x316   :  { %13013 = vst [vmem:[#allocation9_spill] sm:$0xff] %v10011_v42  ;;  %v2467_v44 = vld [vmem:[#allocation2 + $0x47] sm:$0xff] }
 0x317   :  { %v1558_v7 = vpop.f32.mrf.mxu3  ;;  %v10019_v9 = vpop.f32.mrf.mxu0  ;;  %1217 = vmatmul.bf16.gmra.mxu2 %v2167_v17 }
 0x318   :  { %v1657_v38 = vadd.f32 %v1558_v7, %v1264_v4 }
 0x31a   :  { %v10017_v51 = vadd.f32 %v9977_v22, %v1657_v38  ;;  %2003 = vmatmul.bf16.gmra.mxu0 %v1775_v53 }
 0x31b   :  { %v2347_v8 = vpop.f32.mrf.mxu1 }
 0x31c   :  { %13015 = vst [vmem:[#allocation10_spill] sm:$0xff] %v10017_v51  ;;  %1600 = vmatmul.bf16.gmra.mxu3 %v1380_v23  ;;  %v1178_v42 = vpop.f32.mrf.mxu2 }
 0x31d   :  { %v1269_v4 = vadd.f32 %v1178_v42, %v13016_v58  ;;  %v3254_v42 = vld [vmem:[#allocation2 + $0x51] sm:$0xff] }
 0x31e   :  { %2386 = vmatmul.bf16.gmra.mxu1 %v2166_v32  ;;  %v1381_v32 = vpack.c.bf16 %v1348_v20, %v1347_v3  ;;  %v13020_v20 = vld [vmem:[#allocation14_spill] sm:$0xff] }
 0x31f   :  { %v1561_v39 = vpop.f32.mrf.mxu3  ;;  %v10027_v7 = vpop.f32.mrf.mxu0 }
 0x320   :  { %v1658_v13 = vadd.f32 %v1561_v39, %v1265_v15  ;;  %v2468_v15 = vld [vmem:[#allocation2 + $0x4f] sm:$0xff] }
 0x321   :  { %v2531_v39 = vpack.c.bf16 %v2468_v15, %v2467_v44  ;;  %v1350_v44 = vld [vmem:[#allocation2 + $0x44f] sm:$0xff] }
 0x322   :  { %v2051_v50 = vadd.f32 %v9986_v60, %v1658_v13  ;;  %v3253_v13 = vld [vmem:[#allocation2 + $0x49] sm:$0xff] }
 0x323   :  { %v10023_v2 = vpop.f32.mrf.mxu1  ;;  %v3317_v53 = vpack.c.bf16 %v3254_v42, %v3253_v13  ;;  %v2136_v13 = vld [vmem:[#allocation2 + $0x451] sm:$0xff] }
 0x324   :  { %13017 = vst [vmem:[#allocation11_spill] sm:$0xff] %v10023_v2  ;;  %v10025_v22 = vadd.f32 %v2347_v8, %v2051_v50  ;;  %v1180_v38 = vpop.f32.mrf.mxu2  ;;  %v13022_v2 = vld [vmem:[#allocation15_spill] sm:$0xff] }
 0x325   :  { %v1270_v23 = vadd.f32 %v1180_v38, %v13018_v47 }
 0x327   :  { %v1563_v56 = vpop.f32.mrf.mxu3  ;;  %v10033_v8 = vpop.f32.mrf.mxu0  ;;  %2635 = vmatmul.bf16.vlgmr.msra.gmra.mxu2 %v2531_v39  ;;  %v2135_v39 = vld [vmem:[#allocation2 + $0x449] sm:$0xff] }
 0x328   :  { %v1659_v21 = vadd.f32 %v1563_v56, %v1266_v41 }
 0x32a   :  { %v10031_v58 = vadd.f32 %v9993_v11, %v1659_v21  ;;  %3421 = vmatmul.bf16.vlgmr.msra.gmra.mxu0 %v3317_v53 }
 0x32b   :  { %v2352_v60 = vpop.f32.mrf.mxu1 }
 0x32c   :  { %13019 = vst [vmem:[#allocation12_spill] sm:$0xff] %v10031_v58  ;;  %1605 = vmatmul.bf16.gmra.mxu3 %v1381_v32  ;;  %v1183_v41 = vpop.f32.mrf.mxu2  ;;  %v1349_v32 = vld [vmem:[#allocation2 + $0x447] sm:$0xff] }
 0x32d   :  { %v1271_v56 = vadd.f32 %v1183_v41, %v13020_v20  ;;  %v1382_v53 = vpack.c.bf16 %v1350_v44, %v1349_v32  ;;  %v2470_v41 = vld [vmem:[#allocation2 + $0x6f] sm:$0xff] }
 0x32e   :  { %2391 = vmatmul.bf16.gmra.mxu1 %v2167_v17  ;;  %v13024_v44 = vld [vmem:[#allocation16_spill] sm:$0xff] }
 0x32f   :  { %v1566_v50 = vpop.f32.mrf.mxu3  ;;  %v10041_v21 = vpop.f32.mrf.mxu0 }
 0x330   :  { %v1660_v3 = vadd.f32 %v1566_v50, %v1267_v63  ;;  %v2469_v50 = vld [vmem:[#allocation2 + $0x67] sm:$0xff] }
 0x331   :  { %v2532_v20 = vpack.c.bf16 %v2470_v41, %v2469_v50 }
 0x332   :  { %v2053_v38 = vadd.f32 %v9999_v0, %v1660_v3 }
 0x333   :  { %v10037_v47 = vpop.f32.mrf.mxu1 }
 0x334   :  { %13021 = vst [vmem:[#allocation13_spill] sm:$0xff] %v10037_v47  ;;  %v10039_v11 = vadd.f32 %v2352_v60, %v2053_v38  ;;  %v1185_v17 = vpop.f32.mrf.mxu2  ;;  %v2168_v60 = vpack.c.bf16 %v2136_v13, %v2135_v39  ;;  %v3255_v38 = vld [vmem:[#allocation2 + $0x69] sm:$0xff]  ;;  %v3256_v47 = vld [vmem:[#allocation2 + $0x71] sm:$0xff] }
 0x335   :  { %v1272_v63 = vadd.f32 %v1185_v17, %v13022_v2  ;;  %v3318_v51 = vpack.c.bf16 %v3256_v47, %v3255_v38  ;;  %v2471_v38 = vld [vmem:[#allocation2 + $0x87] sm:$0xff] }
 0x337   :  { %v1568_v15 = vpop.f32.mrf.mxu3  ;;  %v10047_v58 = vpop.f32.mrf.mxu0  ;;  %2640 = vmatmul.bf16.gmra.mxu2 %v2532_v20 }
 0x338   :  { %v1661_v42 = vadd.f32 %v1568_v15, %v1268_v29 }
 0x33a   :  { %v10045_v0 = vadd.f32 %v10013_v16, %v1661_v42  ;;  %3426 = vmatmul.bf16.gmra.mxu0 %v3318_v51  ;;  %v2860_v42 = vld [vmem:[#allocation2 + $0x48] sm:$0xff] }
 0x33b   :  { %v2357_v3 = vpop.f32.mrf.mxu1 }
 0x33c   :  { %13023 = vst [vmem:[#allocation14_spill] sm:$0xff] %v10045_v0  ;;  %1610 = vmatmul.bf16.gmra.mxu3 %v1382_v53  ;;  %v1188_v32 = vpop.f32.mrf.mxu2  ;;  %v2861_v53 = vld [vmem:[#allocation2 + $0x50] sm:$0xff] }
 0x33d   :  { %v1273_v15 = vadd.f32 %v1188_v32, %v13024_v44  ;;  %v2924_v20 = vpack.c.bf16 %v2861_v53, %v2860_v42  ;;  %v13029_v42 = vld [vmem:[#allocation18_spill] sm:$0xff] }
 0x33e   :  { %2396 = vmatmul.bf16.gmra.mxu1 %v2168_v60  ;;  %v13027_v60 = vld [vmem:[#allocation17_spill] sm:$0xff] }
 0x33f   :  { %v1571_v29 = vpop.f32.mrf.mxu3  ;;  %v10055_v13 = vpop.f32.mrf.mxu0 }
 0x340   :  { %v1662_v2 = vadd.f32 %v1571_v29, %v1269_v4  ;;  %v2472_v4 = vld [vmem:[#allocation2 + $0x8f] sm:$0xff] }
 0x341   :  { %v2533_v29 = vpack.c.bf16 %v2472_v4, %v2471_v38  ;;  %v2863_v38 = vld [vmem:[#allocation2 + $0x70] sm:$0xff] }
 0x342   :  { %v2055_v17 = vadd.f32 %v10019_v9, %v1662_v2  ;;  %v3257_v2 = vld [vmem:[#allocation2 + $0x89] sm:$0xff] }
 0x343   :  { %v10051_v16 = vpop.f32.mrf.mxu1 }
 0x344   :  { %13025 = vst [vmem:[#allocation15_spill] sm:$0xff] %v10051_v16  ;;  %v10053_v39 = vadd.f32 %v2357_v3, %v2055_v17  ;;  %v1190_v41 = vpop.f32.mrf.mxu2  ;;  %v3258_v3 = vld [vmem:[#allocation2 + $0x91] sm:$0xff] }
 0x345   :  { %v1274_v51 = vadd.f32 %v1190_v41, %v13027_v60  ;;  %v3319_v17 = vpack.c.bf16 %v3258_v3, %v3257_v2  ;;  %v13032_v3 = vld [vmem:[#allocation19_spill] sm:$0xff] }
 0x346   :  { %13026 = vst [vmem:[#allocation16_spill] sm:$0xff] %v10053_v39  ;;  %v2476_v39 = vld [vmem:[#allocation2 + $0xcf] sm:$0xff] }
 0x347   :  { %v1573_v50 = vpop.f32.mrf.mxu3  ;;  %v1979_v44 = vpop.f32.mrf.mxu0  ;;  %2645 = vmatmul.bf16.gmra.mxu2 %v2533_v29 }
 0x348   :  { %v1663_v47 = vadd.f32 %v1573_v50, %v1270_v23 }
 0x34a   :  { %v10059_v32 = vadd.f32 %v10027_v7, %v1663_v47  ;;  %3431 = vmatmul.bf16.gmra.mxu0 %v3319_v17  ;;  %v2862_v47 = vld [vmem:[#allocation2 + $0x68] sm:$0xff] }
 0x34b   :  { %v2362_v9 = vpop.f32.mrf.mxu1  ;;  %v2925_v2 = vpack.c.bf16 %v2863_v38, %v2862_v47  ;;  %v13034_v47 = vld [vmem:[#allocation20_spill] sm:$0xff] }
 0x34c   :  { %13028 = vst [vmem:[#allocation17_spill] sm:$0xff] %v10059_v32  ;;  %3028 = vmatmul.bf16.vlgmr.msra.gmra.mxu3 %v2924_v20  ;;  %v1193_v0 = vpop.f32.mrf.mxu2  ;;  %v2473_v32 = vld [vmem:[#allocation2 + $0xa7] sm:$0xff] }
 0x34d   :  { %v1275_v53 = vadd.f32 %v1193_v0, %v13029_v42 }
 0x34f   :  { %v1576_v16 = vpop.f32.mrf.mxu3  ;;  %v10067_v7 = vpop.f32.mrf.mxu0 }
 0x350   :  { %v1664_v23 = vadd.f32 %v1576_v16, %v1271_v56  ;;  %v2474_v56 = vld [vmem:[#allocation2 + $0xaf] sm:$0xff] }
 0x351   :  { %v2534_v16 = vpack.c.bf16 %v2474_v56, %v2473_v32 }
 0x352   :  { %v2057_v50 = vadd.f32 %v10033_v8, %v1664_v23  ;;  %v3259_v8 = vld [vmem:[#allocation2 + $0xa9] sm:$0xff]  ;;  %v3260_v23 = vld [vmem:[#allocation2 + $0xb1] sm:$0xff] }
 0x353   :  { %v10063_v41 = vpop.f32.mrf.mxu1 }
 0x354   :  { %13030 = vst [vmem:[#allocation18_spill] sm:$0xff] %v10063_v41  ;;  %v10065_v60 = vadd.f32 %v2362_v9, %v2057_v50  ;;  %v1195_v4 = vpop.f32.mrf.mxu2  ;;  %v3320_v50 = vpack.c.bf16 %v3260_v23, %v3259_v8  ;;  %v13037_v8 = vld [vmem:[#allocation21_spill] sm:$0xff] }
 0x355   :  { %v1276_v17 = vadd.f32 %v1195_v4, %v13032_v3 }
 0x356   :  { %13031 = vst [vmem:[#allocation32_spill] sm:$0xff] %v10065_v60 }
 0x357   :  { %v1578_v20 = vpop.f32.mrf.mxu3  ;;  %v1984_v42 = vpop.f32.mrf.mxu0  ;;  %2650 = vmatmul.bf16.gmra.mxu2 %v2534_v16 }
 0x358   :  { %v1665_v29 = vadd.f32 %v1578_v20, %v1272_v63 }
 0x35a   :  { %v10071_v0 = vadd.f32 %v10041_v21, %v1665_v29  ;;  %3436 = vmatmul.bf16.gmra.mxu0 %v3320_v50  ;;  %v2864_v21 = vld [vmem:[#allocation2 + $0x88] sm:$0xff]  ;;  %v2865_v29 = vld [vmem:[#allocation2 + $0x90] sm:$0xff] }
 0x35b   :  { %v2367_v9 = vpop.f32.mrf.mxu1  ;;  %v2926_v16 = vpack.c.bf16 %v2865_v29, %v2864_v21  ;;  %v2475_v50 = vld [vmem:[#allocation2 + $0xc7] sm:$0xff] }
 0x35c   :  { %13033 = vst [vmem:[#allocation19_spill] sm:$0xff] %v10071_v0  ;;  %3033 = vmatmul.bf16.gmra.mxu3 %v2925_v2  ;;  %v1198_v60 = vpop.f32.mrf.mxu2 }
 0x35d   :  { %v1277_v38 = vadd.f32 %v1198_v60, %v13034_v47  ;;  %v3262_v60 = vld [vmem:[#allocation2 + $0xd1] sm:$0xff] }
 0x35f   :  { %v1581_v41 = vpop.f32.mrf.mxu3  ;;  %v1986_v32 = vpop.f32.mrf.mxu0 }
 0x360   :  { %v1666_v63 = vadd.f32 %v1581_v41, %v1273_v15  ;;  %v2535_v15 = vpack.c.bf16 %v2476_v39, %v2475_v50 }
 0x362   :  { %v2059_v20 = vadd.f32 %v10047_v58, %v1666_v63  ;;  %v3261_v58 = vld [vmem:[#allocation2 + $0xc9] sm:$0xff] }
 0x363   :  { %v10077_v3 = vpop.f32.mrf.mxu1  ;;  %v3321_v63 = vpack.c.bf16 %v3262_v60, %v3261_v58  ;;  %v2477_v58 = vld [vmem:[#allocation2 + $0xe7] sm:$0xff]  ;;  %v2478_v60 = vld [vmem:[#allocation2 + $0xef] sm:$0xff] }
 0x364   :  { %v10075_v4 = vadd.f32 %v2367_v9, %v2059_v20  ;;  %13036 = vst [vmem:[#allocation33_spill] sm:$0xff] %v10077_v3  ;;  %v1200_v56 = vpop.f32.mrf.mxu2 }
 0x365   :  { %v1278_v23 = vadd.f32 %v1200_v56, %v13037_v8  ;;  %v2866_v8 = vld [vmem:[#allocation2 + $0xa8] sm:$0xff] }
 0x366   :  { %13035 = vst [vmem:[#allocation20_spill] sm:$0xff] %v10075_v4  ;;  %v13041_v4 = vld [vmem:[#allocation23_spill] sm:$0xff] }
 0x367   :  { %v1583_v2 = vpop.f32.mrf.mxu3  ;;  %v1989_v9 = vpop.f32.mrf.mxu0  ;;  %2655 = vmatmul.bf16.gmra.mxu2 %v2535_v15 }
 0x368   :  { %v1667_v0 = vadd.f32 %v1583_v2, %v1274_v51  ;;  %v13039_v51 = vld [vmem:[#allocation22_spill] sm:$0xff] }
 0x36a   :  { %v10081_v41 = vadd.f32 %v10055_v13, %v1667_v0  ;;  %3441 = vmatmul.bf16.gmra.mxu0 %v3321_v63  ;;  %v2867_v13 = vld [vmem:[#allocation2 + $0xb0] sm:$0xff]  ;;  %v2536_v63 = vpack.c.bf16 %v2478_v60, %v2477_v58 }
 0x36b   :  { %v2372_v29 = vpop.f32.mrf.mxu1 }
 0x36c   :  { %13038 = vst [vmem:[#allocation21_spill] sm:$0xff] %v10081_v41  ;;  %3038 = vmatmul.bf16.gmra.mxu3 %v2926_v16  ;;  %v1203_v20 = vpop.f32.mrf.mxu2  ;;  %v2927_v16 = vpack.c.bf16 %v2867_v13, %v2866_v8 }
 0x36d   :  { %v1279_v21 = vadd.f32 %v1203_v20, %v13039_v51  ;;  %v3264_v20 = vld [vmem:[#allocation2 + $0xf1] sm:$0xff] }
 0x36f   :  { %v1586_v47 = vpop.f32.mrf.mxu3  ;;  %v1991_v39 = vpop.f32.mrf.mxu0 }
 0x370   :  { %v1668_v3 = vadd.f32 %v1586_v47, %v1275_v53  ;;  %v3263_v47 = vld [vmem:[#allocation2 + $0xe9] sm:$0xff] }
 0x372   :  { %v2061_v2 = vadd.f32 %v1979_v44, %v1668_v3  ;;  %v3322_v3 = vpack.c.bf16 %v3264_v20, %v3263_v47 }
 0x374   :  { %v10084_v56 = vadd.f32 %v2372_v29, %v2061_v2  ;;  %v1205_v50 = vpop.f32.mrf.mxu2 }
 0x375   :  { %v1280_v15 = vadd.f32 %v1205_v50, %v13041_v4  ;;  %v2869_v50 = vld [vmem:[#allocation2 + $0xd0] sm:$0xff] }
 0x376   :  { %13040 = vst [vmem:[#allocation22_spill] sm:$0xff] %v10084_v56  ;;  %v2479_v56 = vld [vmem:[#allocation2 + $0x107] sm:$0xff] }
 0x377   :  { %v1588_v0 = vpop.f32.mrf.mxu3  ;;  %v1994_v44 = vpop.f32.mrf.mxu0  ;;  %2660 = vmatmul.bf16.gmra.mxu2 %v2536_v63  ;;  %v2480_v63 = vld [vmem:[#allocation2 + $0x10f] sm:$0xff] }
 0x378   :  { %v1669_v41 = vadd.f32 %v1588_v0, %v1276_v17  ;;  %v13043_v17 = vld [vmem:[#allocation24_spill] sm:$0xff]  ;;  %v2537_v47 = vpack.c.bf16 %v2480_v63, %v2479_v56 }
 0x379   :  { %v2868_v0 = vld [vmem:[#allocation2 + $0xc8] sm:$0xff] }
 0x37a   :  { %v10088_v53 = vadd.f32 %v10067_v7, %v1669_v41  ;;  %3446 = vmatmul.bf16.gmra.mxu0 %v3322_v3  ;;  %v2928_v60 = vpack.c.bf16 %v2869_v50, %v2868_v0  ;;  %v3265_v3 = vld [vmem:[#allocation2 + $0x109] sm:$0xff] }
 0x37b   :  { %v2870_v50 = vld [vmem:[#allocation2 + $0xe8] sm:$0xff] }
 0x37c   :  { %13042 = vst [vmem:[#allocation23_spill] sm:$0xff] %v10088_v53  ;;  %3043 = vmatmul.bf16.gmra.mxu3 %v2927_v16  ;;  %v1208_v29 = vpop.f32.mrf.mxu2  ;;  %v13045_v53 = vld [vmem:[#allocation25_spill] sm:$0xff]  ;;  %v2481_v63 = vld [vmem:[#allocation2 + $0x127] sm:$0xff] }
 0x37d   :  { %v1281_v8 = vadd.f32 %v1208_v29, %v13043_v17 }
 0x37f   :  { %v1591_v51 = vpop.f32.mrf.mxu3  ;;  %v1996_v4 = vpop.f32.mrf.mxu0 }
 0x380   :  { %v1670_v2 = vadd.f32 %v1591_v51, %v1277_v38  ;;  %v3266_v38 = vld [vmem:[#allocation2 + $0x111] sm:$0xff] }
 0x382   :  { %v10091_v13 = vadd.f32 %v1984_v42, %v1670_v2  ;;  %v3323_v42 = vpack.c.bf16 %v3266_v38, %v3265_v3 }
 0x384   :  { %13044 = vst [vmem:[#allocation24_spill] sm:$0xff] %v10091_v13  ;;  %v1210_v7 = vpop.f32.mrf.mxu2  ;;  %v13046_v13 = vld [vmem:[#allocation26_spill] sm:$0xff] }
 0x385   :  { %v1282_v16 = vadd.f32 %v1210_v7, %v13045_v53 }
 0x387   :  { %v1593_v58 = vpop.f32.mrf.mxu3  ;;  %v1999_v51 = vpop.f32.mrf.mxu0  ;;  %2665 = vmatmul.bf16.gmra.mxu2 %v2537_v47  ;;  %v2482_v47 = vld [vmem:[#allocation2 + $0x12f] sm:$0xff] }
 0x388   :  { %v1671_v41 = vadd.f32 %v1593_v58, %v1278_v23  ;;  %v2871_v58 = vld [vmem:[#allocation2 + $0xf0] sm:$0xff]  ;;  %v2538_v3 = vpack.c.bf16 %v2482_v47, %v2481_v63  ;;  %v13051_v47 = vld [vmem:[#allocation28_spill] sm:$0xff] }
 0x38a   :  { %v10094_v20 = vadd.f32 %v1986_v32, %v1671_v41  ;;  %3451 = vmatmul.bf16.gmra.mxu0 %v3323_v42  ;;  %v2929_v41 = vpack.c.bf16 %v2871_v58, %v2870_v50  ;;  %v3267_v42 = vld [vmem:[#allocation2 + $0x129] sm:$0xff] }
 0x38b   :  { %v2872_v58 = vld [vmem:[#allocation2 + $0x108] sm:$0xff] }
 0x38c   :  { %3048 = vmatmul.bf16.gmra.mxu3 %v2928_v60  ;;  %v1213_v2 = vpop.f32.mrf.mxu2 }
 0x38d   :  { %v1283_v23 = vadd.f32 %v1213_v2, %v13046_v13 }
 0x38f   :  { %v1596_v29 = vpop.f32.mrf.mxu3  ;;  %v2001_v53 = vpop.f32.mrf.mxu0 }
 0x390   :  { %v1672_v17 = vadd.f32 %v1596_v29, %v1279_v21  ;;  %v3268_v21 = vld [vmem:[#allocation2 + $0x131] sm:$0xff] }
 0x392   :  { %v10097_v0 = vadd.f32 %v1989_v9, %v1672_v17  ;;  %v3324_v9 = vpack.c.bf16 %v3268_v21, %v3267_v42 }
 0x394   :  { %13047 = vst [vmem:[#allocation25_spill] sm:$0xff] %v10097_v0  ;;  %v1215_v32 = vpop.f32.mrf.mxu2  ;;  %v13049_v0 = vld [vmem:[#allocation27_spill] sm:$0xff] }
 0x395   :  { %v1284_v60 = vadd.f32 %v1215_v32, %v9665_v49 }
 0x397   :  { %v1598_v56 = vpop.f32.mrf.mxu3  ;;  %v2004_v13 = vpop.f32.mrf.mxu0  ;;  %2670 = vmatmul.bf16.gmra.mxu2 %v2538_v3  ;;  %v2484_v3 = vld [vmem:[#allocation2 + $0x14f] sm:$0xff] }
 0x398   :  { %v1673_v7 = vadd.f32 %v1598_v56, %v1280_v15  ;;  %v2873_v56 = vld [vmem:[#allocation2 + $0x110] sm:$0xff] }
 0x399   :  { %v2930_v63 = vpack.c.bf16 %v2873_v56, %v2872_v58 }
 0x39a   :  { %v10100_v38 = vadd.f32 %v1991_v39, %v1673_v7  ;;  %3456 = vmatmul.bf16.gmra.mxu0 %v3324_v9  ;;  %v3269_v9 = vld [vmem:[#allocation2 + $0x149] sm:$0xff] }
 0x39c   :  { %13048 = vst [vmem:[#allocation26_spill] sm:$0xff] %v10100_v38  ;;  %3053 = vmatmul.bf16.gmra.mxu3 %v2929_v41  ;;  %v1218_v2 = vpop.f32.mrf.mxu2  ;;  %v2483_v38 = vld [vmem:[#allocation2 + $0x147] sm:$0xff] }
 0x39d   :  { %v1285_v15 = vadd.f32 %v1218_v2, %v13049_v0  ;;  %v2539_v42 = vpack.c.bf16 %v2484_v3, %v2483_v38  ;;  %v2485_v3 = vld [vmem:[#allocation2 + $0x167] sm:$0xff] }
 0x39f   :  { %v1601_v29 = vpop.f32.mrf.mxu3  ;;  %v2006_v49 = vpop.f32.mrf.mxu0 }
 0x3a0   :  { %v1674_v17 = vadd.f32 %v1601_v29, %v1281_v8  ;;  %v3270_v8 = vld [vmem:[#allocation2 + $0x151] sm:$0xff] }
 0x3a2   :  { %v10103_v50 = vadd.f32 %v1994_v44, %v1674_v17  ;;  %v3325_v44 = vpack.c.bf16 %v3270_v8, %v3269_v9 }
 0x3a4   :  { %13050 = vst [vmem:[#allocation27_spill] sm:$0xff] %v10103_v50  ;;  %v1220_v39 = vpop.f32.mrf.mxu2  ;;  %v13052_v50 = vld [vmem:[#allocation29_spill] sm:$0xff] }
 0x3a5   :  { %v1286_v41 = vadd.f32 %v1220_v39, %v13051_v47  ;;  %v2875_v39 = vld [vmem:[#allocation2 + $0x130] sm:$0xff] }
 0x3a7   :  { %v1603_v32 = vpop.f32.mrf.mxu3  ;;  %v3422_v0 = vpop.f32.mrf.mxu0  ;;  %2675 = vmatmul.bf16.gmra.mxu2 %v2539_v42  ;;  %v2486_v42 = vld [vmem:[#allocation2 + $0x16f] sm:$0xff] }
 0x3a8   :  { %v1675_v7 = vadd.f32 %v1603_v32, %v1282_v16  ;;  %v2874_v32 = vld [vmem:[#allocation2 + $0x128] sm:$0xff]  ;;  %v2540_v8 = vpack.c.bf16 %v2486_v42, %v2485_v3 }
 0x3a9   :  { %v2931_v47 = vpack.c.bf16 %v2875_v39, %v2874_v32  ;;  %v2876_v39 = vld [vmem:[#allocation2 + $0x148] sm:$0xff] }
 0x3aa   :  { %v10106_v21 = vadd.f32 %v1996_v4, %v1675_v7  ;;  %3461 = vmatmul.bf16.gmra.mxu0 %v3325_v44  ;;  %v3271_v44 = vld [vmem:[#allocation2 + $0x169] sm:$0xff] }
 0x3ab   :  { %v2487_v42 = vld [vmem:[#allocation2 + $0x187] sm:$0xff] }
 0x3ac   :  { %3058 = vmatmul.bf16.gmra.mxu3 %v2930_v63  ;;  %v2636_v2 = vpop.f32.mrf.mxu2 }
 0x3ad   :  { %v2796_v16 = vadd.f32 %v2636_v2, %v13052_v50 }
 0x3af   :  { %v1606_v29 = vpop.f32.mrf.mxu3  ;;  %v3424_v56 = vpop.f32.mrf.mxu0 }
 0x3b0   :  { %v1676_v17 = vadd.f32 %v1606_v29, %v1283_v23  ;;  %v3272_v23 = vld [vmem:[#allocation2 + $0x171] sm:$0xff] }
 0x3b2   :  { %v10109_v58 = vadd.f32 %v1999_v51, %v1676_v17  ;;  %v3326_v51 = vpack.c.bf16 %v3272_v23, %v3271_v44 }
 0x3b4   :  { %v2638_v4 = vpop.f32.mrf.mxu2 }
 0x3b5   :  { %v2797_v63 = vadd.f32 %v2638_v4, %v9692_v12 }
 0x3b7   :  { %v1608_v38 = vpop.f32.mrf.mxu3  ;;  %v3427_v50 = vpop.f32.mrf.mxu0  ;;  %2680 = vmatmul.bf16.gmra.mxu2 %v2540_v8  ;;  %v2488_v8 = vld [vmem:[#allocation2 + $0x18f] sm:$0xff] }
 0x3b8   :  { %v1677_v7 = vadd.f32 %v1608_v38, %v1284_v60  ;;  %v2877_v38 = vld [vmem:[#allocation2 + $0x150] sm:$0xff]  ;;  %v2541_v23 = vpack.c.bf16 %v2488_v8, %v2487_v42  ;;  %v2489_v8 = vld [vmem:[#allocation2 + $0x1a7] sm:$0xff] }
 0x3b9   :  { %v2932_v3 = vpack.c.bf16 %v2877_v38, %v2876_v39  ;;  %v2878_v38 = vld [vmem:[#allocation2 + $0x168] sm:$0xff] }
 0x3ba   :  { %v10112_v9 = vadd.f32 %v2001_v53, %v1677_v7  ;;  %3466 = vmatmul.bf16.gmra.mxu0 %v3326_v51  ;;  %v3273_v51 = vld [vmem:[#allocation2 + $0x189] sm:$0xff] }
 0x3bc   :  { %13053 = vst [vmem:[#allocation28_spill] sm:$0xff] %v10112_v9  ;;  %3063 = vmatmul.bf16.gmra.mxu3 %v2931_v47  ;;  %v2641_v2 = vpop.f32.mrf.mxu2 }
 0x3bd   :  { %v2798_v60 = vadd.f32 %v2641_v2, %v9700_v48 }
 0x3bf   :  { %v1611_v29 = vpop.f32.mrf.mxu3  ;;  %v3429_v12 = vpop.f32.mrf.mxu0 }
 0x3c0   :  { %v1678_v17 = vadd.f32 %v1611_v29, %v1285_v15  ;;  %v3274_v15 = vld [vmem:[#allocation2 + $0x191] sm:$0xff] }
 0x3c2   :  { %v10115_v32 = vadd.f32 %v2004_v13, %v1678_v17  ;;  %v3327_v13 = vpack.c.bf16 %v3274_v15, %v3273_v51 }
 0x3c4   :  { %13054 = vst [vmem:[#allocation29_spill] sm:$0xff] %v10115_v32  ;;  %v2643_v4 = vpop.f32.mrf.mxu2 }
 0x3c5   :  { %v2799_v47 = vadd.f32 %v2643_v4, %v9706_v5 }
 0x3c7   :  { %v1613_v53 = vpop.f32.mrf.mxu3  ;;  %v3432_v48 = vpop.f32.mrf.mxu0  ;;  %2685 = vmatmul.bf16.gmra.mxu2 %v2541_v23  ;;  %v2490_v23 = vld [vmem:[#allocation2 + $0x1af] sm:$0xff] }
 0x3c8   :  { %v1679_v7 = vadd.f32 %v1613_v53, %v1286_v41  ;;  %v2879_v53 = vld [vmem:[#allocation2 + $0x170] sm:$0xff]  ;;  %v2542_v15 = vpack.c.bf16 %v2490_v23, %v2489_v8  ;;  %v13059_v23 = vld [vmem:[#allocation30_spill] sm:$0xff] }
 0x3c9   :  { %v2933_v42 = vpack.c.bf16 %v2879_v53, %v2878_v38  ;;  %v2880_v53 = vld [vmem:[#allocation2 + $0x188] sm:$0xff] }
 0x3ca   :  { %v10118_v44 = vadd.f32 %v2006_v49, %v1679_v7  ;;  %3471 = vmatmul.bf16.gmra.mxu0 %v3327_v13  ;;  %v3275_v13 = vld [vmem:[#allocation2 + $0x1a9] sm:$0xff] }
 0x3cc   :  { %13055 = vst [vmem:[#allocation34_spill] sm:$0xff] %v10118_v44  ;;  %3068 = vmatmul.bf16.gmra.mxu3 %v2932_v3  ;;  %v2646_v2 = vpop.f32.mrf.mxu2 }
 0x3cd   :  { %v2800_v41 = vadd.f32 %v2646_v2, %v9718_v6 }
 0x3cf   :  { %v3029_v29 = vpop.f32.mrf.mxu3  ;;  %v3434_v5 = vpop.f32.mrf.mxu0 }
 0x3d0   :  { %v3189_v17 = vadd.f32 %v3029_v29, %v2796_v16  ;;  %v3276_v16 = vld [vmem:[#allocation2 + $0x1b1] sm:$0xff] }
 0x3d2   :  { %v10121_v39 = vadd.f32 %v3422_v0, %v3189_v17  ;;  %v3328_v0 = vpack.c.bf16 %v3276_v16, %v3275_v13  ;;  %v2491_v13 = vld [vmem:[#allocation2 + $0x1c7] sm:$0xff] }
 0x3d4   :  { %13056 = vst [vmem:[#allocation35_spill] sm:$0xff] %v10121_v39  ;;  %v2648_v4 = vpop.f32.mrf.mxu2 }
 0x3d5   :  { %v2801_v3 = vadd.f32 %v2648_v4, %v9727_v27 }
 0x3d7   :  { %v3031_v49 = vpop.f32.mrf.mxu3  ;;  %v3437_v6 = vpop.f32.mrf.mxu0  ;;  %2690 = vmatmul.bf16.gmra.mxu2 %v2542_v15 }
 0x3d8   :  { %v3190_v7 = vadd.f32 %v3031_v49, %v2797_v63  ;;  %v2881_v49 = vld [vmem:[#allocation2 + $0x190] sm:$0xff] }
 0x3d9   :  { %v2934_v8 = vpack.c.bf16 %v2881_v49, %v2880_v53 }
 0x3da   :  { %v10124_v51 = vadd.f32 %v3424_v56, %v3190_v7  ;;  %3476 = vmatmul.bf16.gmra.mxu0 %v3328_v0  ;;  %v8896_v56 = vld [vmem:[%s12828_s4 + $0x78] sm:$0xff] }
 0x3db   :  { %4441 = vmatpush.bf16.msra.mxu1 %v8896_v56  ;;  %v3278_v0 = vld [vmem:[#allocation2 + $0x1d1] sm:$0xff] }
 0x3dc   :  { %13057 = vst [vmem:[#allocation36_spill] sm:$0xff] %v10124_v51  ;;  %3073 = vmatmul.bf16.gmra.mxu3 %v2933_v42  ;;  %v2651_v2 = vpop.f32.mrf.mxu2 }
 0x3dd   :  { %v2802_v63 = vadd.f32 %v2651_v2, %v9734_v40 }
 0x3df   :  { %v3034_v29 = vpop.f32.mrf.mxu3  ;;  %v3439_v27 = vpop.f32.mrf.mxu0 }
 0x3e0   :  { %v3191_v17 = vadd.f32 %v3034_v29, %v2798_v60  ;;  %v2492_v60 = vld [vmem:[#allocation2 + $0x1cf] sm:$0xff] }
 0x3e1   :  { %v2543_v40 = vpack.c.bf16 %v2492_v60, %v2491_v13  ;;  %v2493_v60 = vld [vmem:[#allocation2 + $0x1e7] sm:$0xff] }
 0x3e2   :  { %v10127_v38 = vadd.f32 %v3427_v50, %v3191_v17  ;;  %v3277_v50 = vld [vmem:[#allocation2 + $0x1c9] sm:$0xff] }
 0x3e3   :  { %v3329_v2 = vpack.c.bf16 %v3278_v0, %v3277_v50 }
 0x3e4   :  { %13058 = vst [vmem:[#allocation37_spill] sm:$0xff] %v10127_v38  ;;  %v2653_v7 = vpop.f32.mrf.mxu2 }
 0x3e5   :  { %v2803_v15 = vadd.f32 %v2653_v7, %v13059_v23  ;;  %v2883_v7 = vld [vmem:[#allocation2 + $0x1b0] sm:$0xff] }
 0x3e7   :  { %v3036_v4 = vpop.f32.mrf.mxu3  ;;  %v3442_v29 = vpop.f32.mrf.mxu0  ;;  %2695 = vmatmul.bf16.gmra.mxu2 %v2543_v40  ;;  %v2494_v40 = vld [vmem:[#allocation2 + $0x1ef] sm:$0xff] }
 0x3e8   :  { %v3192_v42 = vadd.f32 %v3036_v4, %v2799_v47  ;;  %v13061_v47 = vld [vmem:[#allocation31_spill] sm:$0xff]  ;;  %v2882_v4 = vld [vmem:[#allocation2 + $0x1a8] sm:$0xff]  ;;  %v2544_v0 = vpack.c.bf16 %v2494_v40, %v2493_v60 }
 0x3e9   :  { %v2935_v13 = vpack.c.bf16 %v2883_v7, %v2882_v4  ;;  %v2884_v7 = vld [vmem:[#allocation2 + $0x1c8] sm:$0xff] }
 0x3ea   :  { %v10133_v16 = vadd.f32 %v3429_v12, %v3192_v42  ;;  %3481 = vmatmul.bf16.gmra.mxu0 %v3329_v2  ;;  %v3279_v2 = vld [vmem:[#allocation2 + $0x1e9] sm:$0xff] }
 0x3eb   :  { %v2495_v40 = vld [vmem:[#allocation2 + $0x207] sm:$0xff] }
 0x3ec   :  { %13060 = vst [vmem:[#allocation30_spill] sm:$0xff] %v10133_v16  ;;  %3078 = vmatmul.bf16.gmra.mxu3 %v2934_v8  ;;  %v2656_v44 = vpop.f32.mrf.mxu2 }
 0x3ed   :  { %v2804_v53 = vadd.f32 %v2656_v44, %v13061_v47 }
 0x3ef   :  { %v3039_v17 = vpop.f32.mrf.mxu3  ;;  %v3444_v56 = vpop.f32.mrf.mxu0 }
 0x3f0   :  { %v3193_v32 = vadd.f32 %v3039_v17, %v2800_v41  ;;  %v3280_v41 = vld [vmem:[#allocation2 + $0x1f1] sm:$0xff] }
 0x3f2   :  { %v10136_v49 = vadd.f32 %v3432_v48, %v3193_v32  ;;  %v3330_v32 = vpack.c.bf16 %v3280_v41, %v3279_v2 }
 0x3f4   :  { %13062 = vst [vmem:[#allocation31_spill] sm:$0xff] %v10136_v49  ;;  %v2658_v42 = vpop.f32.mrf.mxu2 }
 0x3f5   :  { %v2805_v8 = vadd.f32 %v2658_v42, %v9758_v25 }
 0x3f7   :  { %v3041_v12 = vpop.f32.mrf.mxu3  ;;  %v3447_v44 = vpop.f32.mrf.mxu0  ;;  %2700 = vmatmul.bf16.gmra.mxu2 %v2544_v0  ;;  %v2496_v0 = vld [vmem:[#allocation2 + $0x20f] sm:$0xff] }
 0x3f8   :  { %v3194_v23 = vadd.f32 %v3041_v12, %v2801_v3  ;;  %v2885_v12 = vld [vmem:[#allocation2 + $0x1d0] sm:$0xff]  ;;  %v2545_v41 = vpack.c.bf16 %v2496_v0, %v2495_v40  ;;  %v2497_v0 = vld [vmem:[#allocation2 + $0x227] sm:$0xff] }
 0x3f9   :  { %v2936_v60 = vpack.c.bf16 %v2885_v12, %v2884_v7  ;;  %v2886_v12 = vld [vmem:[#allocation2 + $0x1e8] sm:$0xff] }
 0x3fa   :  { %v10139_v50 = vadd.f32 %v3434_v5, %v3194_v23  ;;  %3486 = vmatmul.bf16.gmra.mxu0 %v3330_v32  ;;  %v3281_v32 = vld [vmem:[#allocation2 + $0x209] sm:$0xff] }
 0x3fc   :  { %13063 = vst [vmem:[#allocation38_spill] sm:$0xff] %v10139_v50  ;;  %3083 = vmatmul.bf16.gmra.mxu3 %v2935_v13  ;;  %v2661_v17 = vpop.f32.mrf.mxu2 }
 0x3fd   :  { %v2806_v3 = vadd.f32 %v2661_v17, %v9766_v18 }
 0x3ff   :  { %v3044_v48 = vpop.f32.mrf.mxu3  ;;  %v3449_v25 = vpop.f32.mrf.mxu0 }
 0x400   :  { %v3195_v47 = vadd.f32 %v3044_v48, %v2802_v63  ;;  %v3282_v63 = vld [vmem:[#allocation2 + $0x211] sm:$0xff] }
 0x402   :  { %v10142_v4 = vadd.f32 %v3437_v6, %v3195_v47  ;;  %v3331_v6 = vpack.c.bf16 %v3282_v63, %v3281_v32 }
 0x404   :  { %13064 = vst [vmem:[#allocation39_spill] sm:$0xff] %v10142_v4  ;;  %v2663_v42 = vpop.f32.mrf.mxu2 }
 0x405   :  { %v2807_v13 = vadd.f32 %v2663_v42, %v9775_v26 }
 0x407   :  { %v3046_v5 = vpop.f32.mrf.mxu3  ;;  %v3452_v18 = vpop.f32.mrf.mxu0  ;;  %2705 = vmatmul.bf16.gmra.mxu2 %v2545_v41  ;;  %v2498_v41 = vld [vmem:[#allocation2 + $0x22f] sm:$0xff] }
 0x408   :  { %v3196_v23 = vadd.f32 %v3046_v5, %v2803_v15  ;;  %v2887_v5 = vld [vmem:[#allocation2 + $0x1f0] sm:$0xff]  ;;  %v2546_v63 = vpack.c.bf16 %v2498_v41, %v2497_v0 }
 0x409   :  { %v2937_v40 = vpack.c.bf16 %v2887_v5, %v2886_v12  ;;  %v2888_v5 = vld [vmem:[#allocation2 + $0x208] sm:$0xff] }
 0x40a   :  { %v10145_v2 = vadd.f32 %v3439_v27, %v3196_v23  ;;  %3491 = vmatmul.bf16.gmra.mxu0 %v3331_v6  ;;  %v3283_v6 = vld [vmem:[#allocation2 + $0x229] sm:$0xff] }
 0x40c   :  { %13065 = vst [vmem:[#allocation40_spill] sm:$0xff] %v10145_v2  ;;  %3088 = vmatmul.bf16.gmra.mxu3 %v2936_v60  ;;  %v2666_v17 = vpop.f32.mrf.mxu2 }
 0x40d   :  { %v2808_v15 = vadd.f32 %v2666_v17, %v9787_v45 }
 0x40f   :  { %v3049_v48 = vpop.f32.mrf.mxu3  ;;  %v3454_v26 = vpop.f32.mrf.mxu0 }
 0x410   :  { %v3197_v47 = vadd.f32 %v3049_v48, %v2804_v53  ;;  %v3284_v53 = vld [vmem:[#allocation2 + $0x231] sm:$0xff] }
 0x412   :  { %v10148_v7 = vadd.f32 %v3442_v29, %v3197_v47  ;;  %v3332_v29 = vpack.c.bf16 %v3284_v53, %v3283_v6  ;;  %v3286_v53 = vld [vmem:[#allocation2 + $0x291] sm:$0xff] }
 0x414   :  { %v2668_v42 = vpop.f32.mrf.mxu2 }
 0x415   :  { %v2809_v60 = vadd.f32 %v2668_v42, %v9796_v46 }
 0x417   :  { %v3051_v27 = vpop.f32.mrf.mxu3  ;;  %v3457_v45 = vpop.f32.mrf.mxu0  ;;  %2710 = vmatmul.bf16.gmra.mxu2 %v2546_v63  ;;  %v2499_v63 = vld [vmem:[#allocation2 + $0x287] sm:$0xff] }
 0x418   :  { %v3198_v23 = vadd.f32 %v3051_v27, %v2805_v8  ;;  %v2889_v27 = vld [vmem:[#allocation2 + $0x210] sm:$0xff] }
 0x419   :  { %v2938_v0 = vpack.c.bf16 %v2889_v27, %v2888_v5 }
 0x41a   :  { %v10151_v32 = vadd.f32 %v3444_v56, %v3198_v23  ;;  %3496 = vmatmul.bf16.gmra.mxu0 %v3332_v29  ;;  %v8895_v56 = vld [vmem:[%s12828_s4 + $0x70] sm:$0xff] }
 0x41b   :  { %4442 = vmatpush.bf16.msra.mxu1 %v8895_v56 }
 0x41c   :  { %3093 = vmatmul.bf16.gmra.mxu3 %v2937_v40  ;;  %v2671_v17 = vpop.f32.mrf.mxu2 }
 0x41d   :  { %v2810_v8 = vadd.f32 %v2671_v17, %v9803_v19 }
 0x41f   :  { %v3054_v48 = vpop.f32.mrf.mxu3  ;;  %v3459_v46 = vpop.f32.mrf.mxu0 }
 0x420   :  { %v3199_v47 = vadd.f32 %v3054_v48, %v2806_v3  ;;  %v2500_v3 = vld [vmem:[#allocation2 + $0x28f] sm:$0xff] }
 0x421   :  { %v2547_v19 = vpack.c.bf16 %v2500_v3, %v2499_v63  ;;  %v2502_v63 = vld [vmem:[#allocation2 + $0x2af] sm:$0xff] }
 0x422   :  { %v10154_v12 = vadd.f32 %v3447_v44, %v3199_v47  ;;  %v3285_v44 = vld [vmem:[#allocation2 + $0x289] sm:$0xff] }
 0x423   :  { %v3333_v48 = vpack.c.bf16 %v3286_v53, %v3285_v44  ;;  %v3287_v44 = vld [vmem:[#allocation2 + $0x2a9] sm:$0xff] }
 0x424   :  { %13066 = vst [vmem:[#allocation41_spill] sm:$0xff] %v10154_v12  ;;  %v2673_v23 = vpop.f32.mrf.mxu2 }
 0x425   :  { %v2811_v41 = vadd.f32 %v2673_v23, %v9810_v43 }
 0x427   :  { %v3056_v42 = vpop.f32.mrf.mxu3  ;;  %v3462_v29 = vpop.f32.mrf.mxu0  ;;  %2715 = vmatmul.bf16.gmra.mxu2 %v2547_v19 }
 0x428   :  { %v3200_v40 = vadd.f32 %v3056_v42, %v2807_v13  ;;  %v8974_v42 = vld [vmem:[#allocation2 + $0x248] sm:$0xff] }
 0x429   :  { %v10165_v23 = vpack.c.bf16 %v8974_v42, %v8974_v42 }
 0x42a   :  { %v10160_v6 = vadd.f32 %v3449_v25, %v3200_v40  ;;  %3501 = vmatmul.bf16.gmra.mxu0 %v3333_v48 }
 0x42c   :  { %13067 = vst [vmem:[#allocation42_spill] sm:$0xff] %v10160_v6  ;;  %3098 = vmatmul.bf16.gmra.mxu3 %v2938_v0  ;;  %v2676_v47 = vpop.f32.mrf.mxu2  ;;  %v2501_v0 = vld [vmem:[#allocation2 + $0x2a7] sm:$0xff] }
 0x42d   :  { %v2812_v13 = vadd.f32 %v2676_v47, %v9816_v1  ;;  %v2548_v19 = vpack.c.bf16 %v2502_v63, %v2501_v0  ;;  %v2892_v47 = vld [vmem:[#allocation2 + $0x288] sm:$0xff] }
 0x42e   :  { %v2503_v63 = vld [vmem:[#allocation2 + $0x2c7] sm:$0xff] }
 0x42f   :  { %v3059_v17 = vpop.f32.mrf.mxu3  ;;  %v3464_v43 = vpop.f32.mrf.mxu0 }
 0x430   :  { %v3201_v9 = vadd.f32 %v3059_v17, %v2808_v15  ;;  %v3288_v15 = vld [vmem:[#allocation2 + $0x2b1] sm:$0xff] }
 0x432   :  { %v10163_v5 = vadd.f32 %v3452_v18, %v3201_v9  ;;  %v3334_v9 = vpack.c.bf16 %v3288_v15, %v3287_v44 }
 0x434   :  { %13068 = vst [vmem:[#allocation43_spill] sm:$0xff] %v10163_v5  ;;  %v2678_v56 = vpop.f32.mrf.mxu2 }
 0x435   :  { %v2813_v40 = vadd.f32 %v2678_v56, %v9822_v10 }
 0x437   :  { %v3061_v27 = vpop.f32.mrf.mxu3  ;;  %v3467_v1 = vpop.f32.mrf.mxu0  ;;  %2720 = vmatmul.bf16.gmra.mxu2 %v2548_v19  ;;  %v2504_v19 = vld [vmem:[#allocation2 + $0x2cf] sm:$0xff] }
 0x438   :  { %v3202_v25 = vadd.f32 %v3061_v27, %v2809_v60  ;;  %v2549_v15 = vpack.c.bf16 %v2504_v19, %v2503_v63  ;;  %v2505_v19 = vld [vmem:[#allocation2 + $0x2e7] sm:$0xff] }
 0x43a   :  { %v10168_v3 = vadd.f32 %v3454_v26, %v3202_v25  ;;  %3506 = vmatmul.bf16.gmra.mxu0 %v3334_v9  ;;  %v2893_v26 = vld [vmem:[#allocation2 + $0x290] sm:$0xff] }
 0x43b   :  { %v2940_v42 = vpack.c.bf16 %v2893_v26, %v2892_v47  ;;  %v3289_v9 = vld [vmem:[#allocation2 + $0x2c9] sm:$0xff] }
 0x43c   :  { %13069 = vst [vmem:[#allocation44_spill] sm:$0xff] %v10168_v3  ;;  %3103 = vmatmul.bf16.gmra.mxu3 %v10165_v23  ;;  %v2681_v60 = vpop.f32.mrf.mxu2  ;;  %v2894_v26 = vld [vmem:[#allocation2 + $0x2a8] sm:$0xff] }
 0x43d   :  { %v2814_v48 = vadd.f32 %v2681_v60, %v9830_v62 }
 0x43f   :  { %v3064_v18 = vpop.f32.mrf.mxu3  ;;  %v3469_v10 = vpop.f32.mrf.mxu0 }
 0x440   :  { %v3203_v53 = vadd.f32 %v3064_v18, %v2810_v8  ;;  %v3290_v8 = vld [vmem:[#allocation2 + $0x2d1] sm:$0xff] }
 0x442   :  { %v10172_v17 = vadd.f32 %v3457_v45, %v3203_v53  ;;  %v3335_v45 = vpack.c.bf16 %v3290_v8, %v3289_v9 }
 0x444   :  { %13070 = vst [vmem:[#allocation45_spill] sm:$0xff] %v10172_v17  ;;  %v2683_v56 = vpop.f32.mrf.mxu2 }
 0x445   :  { %v2815_v0 = vadd.f32 %v2683_v56, %v9836_v31 }
 0x447   :  { %v3066_v27 = vpop.f32.mrf.mxu3  ;;  %v3472_v62 = vpop.f32.mrf.mxu0  ;;  %2725 = vmatmul.bf16.gmra.mxu2 %v2549_v15  ;;  %v2506_v15 = vld [vmem:[#allocation2 + $0x2ef] sm:$0xff] }
 0x448   :  { %v3204_v25 = vadd.f32 %v3066_v27, %v2811_v41  ;;  %v2895_v27 = vld [vmem:[#allocation2 + $0x2b0] sm:$0xff]  ;;  %v2550_v8 = vpack.c.bf16 %v2506_v15, %v2505_v19 }
 0x449   :  { %v2941_v63 = vpack.c.bf16 %v2895_v27, %v2894_v26  ;;  %v2896_v27 = vld [vmem:[#allocation2 + $0x2c8] sm:$0xff] }
 0x44a   :  { %v10175_v44 = vadd.f32 %v3459_v46, %v3204_v25  ;;  %3511 = vmatmul.bf16.gmra.mxu0 %v3335_v45  ;;  %v3291_v45 = vld [vmem:[#allocation2 + $0x2e9] sm:$0xff] }
 0x44c   :  { %13071 = vst [vmem:[#allocation46_spill] sm:$0xff] %v10175_v44  ;;  %3108 = vmatmul.bf16.gmra.mxu3 %v2940_v42  ;;  %v2686_v60 = vpop.f32.mrf.mxu2 }
 0x44d   :  { %v2816_v41 = vadd.f32 %v2686_v60, %v9848_v33 }
 0x44f   :  { %v3069_v18 = vpop.f32.mrf.mxu3  ;;  %v3474_v31 = vpop.f32.mrf.mxu0 }
 0x450   :  { %v3205_v53 = vadd.f32 %v3069_v18, %v2812_v13  ;;  %v3292_v13 = vld [vmem:[#allocation2 + $0x2f1] sm:$0xff] }
 0x452   :  { %v10178_v47 = vadd.f32 %v3462_v29, %v3205_v53  ;;  %v3336_v29 = vpack.c.bf16 %v3292_v13, %v3291_v45  ;;  %v3294_v13 = vld [vmem:[#allocation2 + $0x311] sm:$0xff] }
 0x454   :  { %13072 = vst [vmem:[#allocation47_spill] sm:$0xff] %v10178_v47  ;;  %v2688_v56 = vpop.f32.mrf.mxu2 }
 0x455   :  { %v2817_v42 = vadd.f32 %v2688_v56, %v9857_v34 }
 0x457   :  { %v3071_v46 = vpop.f32.mrf.mxu3  ;;  %v3477_v33 = vpop.f32.mrf.mxu0  ;;  %2730 = vmatmul.bf16.gmra.mxu2 %v2550_v8  ;;  %v2507_v8 = vld [vmem:[#allocation2 + $0x307] sm:$0xff] }
 0x458   :  { %v3206_v25 = vadd.f32 %v3071_v46, %v2813_v40  ;;  %v2897_v46 = vld [vmem:[#allocation2 + $0x2d0] sm:$0xff] }
 0x459   :  { %v2942_v19 = vpack.c.bf16 %v2897_v46, %v2896_v27  ;;  %v2898_v46 = vld [vmem:[#allocation2 + $0x2e8] sm:$0xff] }
 0x45a   :  { %v10181_v9 = vadd.f32 %v3464_v43, %v3206_v25  ;;  %3516 = vmatmul.bf16.gmra.mxu0 %v3336_v29  ;;  %v8894_v43 = vld [vmem:[%s12828_s4 + $0x68] sm:$0xff] }
 0x45b   :  { %4443 = vmatpush.bf16.msra.mxu1 %v8894_v43  ;;  %v2899_v43 = vld [vmem:[#allocation2 + $0x2f0] sm:$0xff] }
 0x45c   :  { %13073 = vst [vmem:[#allocation48_spill] sm:$0xff] %v10181_v9  ;;  %3113 = vmatmul.bf16.gmra.mxu3 %v2941_v63  ;;  %v2691_v60 = vpop.f32.mrf.mxu2 }
 0x45d   :  { %v2818_v40 = vadd.f32 %v2691_v60, %v9864_v55 }
 0x45f   :  { %v3074_v18 = vpop.f32.mrf.mxu3  ;;  %v3479_v34 = vpop.f32.mrf.mxu0 }
 0x460   :  { %v3207_v53 = vadd.f32 %v3074_v18, %v2814_v48  ;;  %v2508_v48 = vld [vmem:[#allocation2 + $0x30f] sm:$0xff] }
 0x461   :  { %v2551_v55 = vpack.c.bf16 %v2508_v48, %v2507_v8  ;;  %v2509_v8 = vld [vmem:[#allocation2 + $0x327] sm:$0xff]  ;;  %v2510_v48 = vld [vmem:[#allocation2 + $0x32f] sm:$0xff] }
 0x462   :  { %v10184_v26 = vadd.f32 %v3467_v1, %v3207_v53  ;;  %v3293_v1 = vld [vmem:[#allocation2 + $0x309] sm:$0xff] }
 0x463   :  { %v3337_v18 = vpack.c.bf16 %v3294_v13, %v3293_v1  ;;  %v2552_v1 = vpack.c.bf16 %v2510_v48, %v2509_v8  ;;  %v3295_v13 = vld [vmem:[#allocation2 + $0x329] sm:$0xff] }
 0x464   :  { %13074 = vst [vmem:[#allocation49_spill] sm:$0xff] %v10184_v26  ;;  %v2693_v25 = vpop.f32.mrf.mxu2  ;;  %v2511_v8 = vld [vmem:[#allocation2 + $0x347] sm:$0xff]  ;;  %v2512_v48 = vld [vmem:[#allocation2 + $0x34f] sm:$0xff] }
 0x465   :  { %v2819_v15 = vadd.f32 %v2693_v25, %v9870_v24 }
 0x467   :  { %v3076_v56 = vpop.f32.mrf.mxu3  ;;  %v3482_v29 = vpop.f32.mrf.mxu0  ;;  %2735 = vmatmul.bf16.gmra.mxu2 %v2551_v55 }
 0x468   :  { %v3208_v63 = vadd.f32 %v3076_v56, %v2815_v0 }
 0x46a   :  { %v10190_v45 = vadd.f32 %v3469_v10, %v3208_v63  ;;  %3521 = vmatmul.bf16.gmra.mxu0 %v3337_v18  ;;  %v2943_v63 = vpack.c.bf16 %v2899_v43, %v2898_v46  ;;  %v2900_v46 = vld [vmem:[#allocation2 + $0x308] sm:$0xff]  ;;  %v2901_v43 = vld [vmem:[#allocation2 + $0x310] sm:$0xff] }
 0x46c   :  { %13075 = vst [vmem:[#allocation50_spill] sm:$0xff] %v10190_v45  ;;  %3118 = vmatmul.bf16.gmra.mxu3 %v2942_v19  ;;  %v2696_v53 = vpop.f32.mrf.mxu2 }
 0x46d   :  { %v2820_v0 = vadd.f32 %v2696_v53, %v9876_v54 }
 0x46f   :  { %v3079_v60 = vpop.f32.mrf.mxu3  ;;  %v3484_v24 = vpop.f32.mrf.mxu0 }
 0x470   :  { %v3209_v44 = vadd.f32 %v3079_v60, %v2816_v41  ;;  %v3296_v41 = vld [vmem:[#allocation2 + $0x331] sm:$0xff] }
 0x472   :  { %v10193_v27 = vadd.f32 %v3472_v62, %v3209_v44  ;;  %v3338_v44 = vpack.c.bf16 %v3296_v41, %v3295_v13  ;;  %v2553_v13 = vpack.c.bf16 %v2512_v48, %v2511_v8  ;;  %v3297_v41 = vld [vmem:[#allocation2 + $0x349] sm:$0xff] }
 0x473   :  { %v2513_v8 = vld [vmem:[#allocation2 + $0x367] sm:$0xff]  ;;  %v2514_v48 = vld [vmem:[#allocation2 + $0x36f] sm:$0xff] }
 0x474   :  { %13076 = vst [vmem:[#allocation51_spill] sm:$0xff] %v10193_v27  ;;  %v2698_v56 = vpop.f32.mrf.mxu2 }
 0x475   :  { %v2821_v19 = vadd.f32 %v2698_v56, %v9884_v30 }
 0x477   :  { %v3081_v10 = vpop.f32.mrf.mxu3  ;;  %v3487_v54 = vpop.f32.mrf.mxu0  ;;  %2740 = vmatmul.bf16.gmra.mxu2 %v2552_v1 }
 0x478   :  { %v3210_v25 = vadd.f32 %v3081_v10, %v2817_v42 }
 0x47a   :  { %v10196_v55 = vadd.f32 %v3474_v31, %v3210_v25  ;;  %3526 = vmatmul.bf16.gmra.mxu0 %v3338_v44  ;;  %v2944_v25 = vpack.c.bf16 %v2901_v43, %v2900_v46  ;;  %v2902_v46 = vld [vmem:[#allocation2 + $0x328] sm:$0xff]  ;;  %v2903_v43 = vld [vmem:[#allocation2 + $0x330] sm:$0xff] }
 0x47c   :  { %13077 = vst [vmem:[#allocation52_spill] sm:$0xff] %v10196_v55  ;;  %3123 = vmatmul.bf16.gmra.mxu3 %v2943_v63  ;;  %v2701_v18 = vpop.f32.mrf.mxu2 }
 0x47d   :  { %v2822_v42 = vadd.f32 %v2701_v18, %v9892_v61 }
 0x47f   :  { %v3084_v62 = vpop.f32.mrf.mxu3  ;;  %v3489_v30 = vpop.f32.mrf.mxu0 }
 0x480   :  { %v3211_v60 = vadd.f32 %v3084_v62, %v2818_v40  ;;  %v3298_v40 = vld [vmem:[#allocation2 + $0x351] sm:$0xff] }
 0x482   :  { %v10199_v53 = vadd.f32 %v3477_v33, %v3211_v60  ;;  %v3339_v33 = vpack.c.bf16 %v3298_v40, %v3297_v41  ;;  %v2554_v41 = vpack.c.bf16 %v2514_v48, %v2513_v8  ;;  %v3299_v40 = vld [vmem:[#allocation2 + $0x369] sm:$0xff] }
 0x483   :  { %v2515_v48 = vld [vmem:[#allocation2 + $0x387] sm:$0xff] }
 0x484   :  { %13078 = vst [vmem:[#allocation53_spill] sm:$0xff] %v10199_v53  ;;  %v2703_v10 = vpop.f32.mrf.mxu2 }
 0x485   :  { %v2823_v63 = vadd.f32 %v2703_v10, %v9900_v57 }
 0x487   :  { %v3086_v31 = vpop.f32.mrf.mxu3  ;;  %v3492_v61 = vpop.f32.mrf.mxu0  ;;  %2745 = vmatmul.bf16.gmra.mxu2 %v2553_v13 }
 0x488   :  { %v3212_v56 = vadd.f32 %v3086_v31, %v2819_v15 }
 0x48a   :  { %v10202_v1 = vadd.f32 %v3479_v34, %v3212_v56  ;;  %3531 = vmatmul.bf16.gmra.mxu0 %v3339_v33  ;;  %v2945_v56 = vpack.c.bf16 %v2903_v43, %v2902_v46  ;;  %v2904_v46 = vld [vmem:[#allocation2 + $0x348] sm:$0xff]  ;;  %v2905_v43 = vld [vmem:[#allocation2 + $0x350] sm:$0xff] }
 0x48c   :  { %13079 = vst [vmem:[#allocation54_spill] sm:$0xff] %v10202_v1  ;;  %3128 = vmatmul.bf16.gmra.mxu3 %v2944_v25  ;;  %v2706_v62 = vpop.f32.mrf.mxu2 }
 0x48d   :  { %v2824_v15 = vadd.f32 %v2706_v62, %v9912_v28 }
 0x48f   :  { %v3089_v44 = vpop.f32.mrf.mxu3  ;;  %v3494_v57 = vpop.f32.mrf.mxu0 }
 0x490   :  { %v3213_v18 = vadd.f32 %v3089_v44, %v2820_v0  ;;  %v3300_v0 = vld [vmem:[#allocation2 + $0x371] sm:$0xff] }
 0x492   :  { %v10205_v60 = vadd.f32 %v3482_v29, %v3213_v18  ;;  %v3340_v29 = vpack.c.bf16 %v3300_v0, %v3299_v40  ;;  %v3302_v40 = vld [vmem:[#allocation2 + $0x391] sm:$0xff] }
 0x494   :  { %13080 = vst [vmem:[#allocation55_spill] sm:$0xff] %v10205_v60  ;;  %v2708_v31 = vpop.f32.mrf.mxu2 }
 0x495   :  { %v2825_v25 = vadd.f32 %v2708_v31, %v9923_v36 }
 0x497   :  { %v3091_v34 = vpop.f32.mrf.mxu3  ;;  %v3497_v28 = vpop.f32.mrf.mxu0  ;;  %2750 = vmatmul.bf16.gmra.mxu2 %v2554_v41 }
 0x498   :  { %v3214_v10 = vadd.f32 %v3091_v34, %v2821_v19 }
 0x49a   :  { %v10208_v13 = vadd.f32 %v3484_v24, %v3214_v10  ;;  %3536 = vmatmul.bf16.gmra.mxu0 %v3340_v29  ;;  %v8893_v24 = vld [vmem:[%s12828_s4 + $0x60] sm:$0xff] }
 0x49b   :  { %4444 = vmatpush.bf16.msra.mxu1 %v8893_v24  ;;  %v2907_v24 = vld [vmem:[#allocation2 + $0x370] sm:$0xff] }
 0x49c   :  { %13081 = vst [vmem:[#allocation56_spill] sm:$0xff] %v10208_v13  ;;  %3133 = vmatmul.bf16.gmra.mxu3 %v2945_v56  ;;  %v2711_v44 = vpop.f32.mrf.mxu2  ;;  %v2946_v56 = vpack.c.bf16 %v2905_v43, %v2904_v46  ;;  %v2906_v43 = vld [vmem:[#allocation2 + $0x368] sm:$0xff] }
 0x49d   :  { %v2826_v19 = vadd.f32 %v2711_v44, %v9930_v37 }
 0x49f   :  { %v3094_v33 = vpop.f32.mrf.mxu3  ;;  %v3499_v36 = vpop.f32.mrf.mxu0 }
 0x4a0   :  { %v3215_v62 = vadd.f32 %v3094_v33, %v2822_v42  ;;  %v2516_v42 = vld [vmem:[#allocation2 + $0x38f] sm:$0xff] }
 0x4a1   :  { %v2555_v37 = vpack.c.bf16 %v2516_v42, %v2515_v48  ;;  %v2517_v48 = vld [vmem:[#allocation2 + $0x3a7] sm:$0xff]  ;;  %v2518_v42 = vld [vmem:[#allocation2 + $0x3af] sm:$0xff] }
 0x4a2   :  { %v10211_v18 = vadd.f32 %v3487_v54, %v3215_v62  ;;  %v3301_v54 = vld [vmem:[#allocation2 + $0x389] sm:$0xff] }
 0x4a3   :  { %v3341_v29 = vpack.c.bf16 %v3302_v40, %v3301_v54  ;;  %v2556_v54 = vpack.c.bf16 %v2518_v42, %v2517_v48  ;;  %v3303_v40 = vld [vmem:[#allocation2 + $0x3a9] sm:$0xff]  ;;  %v13087_v48 = vld [vmem:[#allocation3_spill] sm:$0xff] }
 0x4a4   :  { %13082 = vst [vmem:[#allocation57_spill] sm:$0xff] %v10211_v18  ;;  %v2713_v31 = vpop.f32.mrf.mxu2  ;;  %v2519_v42 = vld [vmem:[#allocation2 + $0x3c7] sm:$0xff] }
 0x4a5   :  { %v2827_v8 = vadd.f32 %v2713_v31, %v9937_v52 }
 0x4a7   :  { %v3096_v34 = vpop.f32.mrf.mxu3  ;;  %v3502_v0 = vpop.f32.mrf.mxu0  ;;  %2755 = vmatmul.bf16.gmra.mxu2 %v2555_v37 }
 0x4a8   :  { %v3216_v10 = vadd.f32 %v3096_v34, %v2823_v63 }
 0x4aa   :  { %v10217_v41 = vadd.f32 %v3489_v30, %v3216_v10  ;;  %3541 = vmatmul.bf16.gmra.mxu0 %v3341_v29  ;;  %v2947_v10 = vpack.c.bf16 %v2907_v24, %v2906_v43  ;;  %v2908_v43 = vld [vmem:[#allocation2 + $0x388] sm:$0xff]  ;;  %v2909_v24 = vld [vmem:[#allocation2 + $0x390] sm:$0xff] }
 0x4ac   :  { %13083 = vst [vmem:[#allocation58_spill] sm:$0xff] %v10217_v41  ;;  %3138 = vmatmul.bf16.gmra.mxu3 %v2946_v56  ;;  %v2716_v44 = vpop.f32.mrf.mxu2 }
 0x4ad   :  { %v2828_v63 = vadd.f32 %v2716_v44, %v9943_v59 }
 0x4af   :  { %v3099_v33 = vpop.f32.mrf.mxu3  ;;  %v3504_v52 = vpop.f32.mrf.mxu0 }
 0x4b0   :  { %v3217_v62 = vadd.f32 %v3099_v33, %v2824_v15  ;;  %v3304_v15 = vld [vmem:[#allocation2 + $0x3b1] sm:$0xff] }
 0x4b2   :  { %v10220_v46 = vadd.f32 %v3492_v61, %v3217_v62  ;;  %v3342_v61 = vpack.c.bf16 %v3304_v15, %v3303_v40 }
 0x4b4   :  { %13084 = vst [vmem:[#allocation59_spill] sm:$0xff] %v10220_v46  ;;  %v2718_v34 = vpop.f32.mrf.mxu2 }
 0x4b5   :  { %v2829_v56 = vadd.f32 %v2718_v34, %v9949_v14 }
 0x4b7   :  { %v3101_v30 = vpop.f32.mrf.mxu3  ;;  %v3507_v59 = vpop.f32.mrf.mxu0  ;;  %2760 = vmatmul.bf16.gmra.mxu2 %v2556_v54  ;;  %v2520_v54 = vld [vmem:[#allocation2 + $0x3cf] sm:$0xff] }
 0x4b8   :  { %v3218_v31 = vadd.f32 %v3101_v30, %v2825_v25  ;;  %v2557_v15 = vpack.c.bf16 %v2520_v54, %v2519_v42  ;;  %v13091_v54 = vld [vmem:[#allocation5_spill] sm:$0xff] }
 0x4ba   :  { %v10223_v37 = vadd.f32 %v3494_v57, %v3218_v31  ;;  %3546 = vmatmul.bf16.gmra.mxu0 %v3342_v61  ;;  %v2948_v31 = vpack.c.bf16 %v2909_v24, %v2908_v43  ;;  %v3305_v61 = vld [vmem:[#allocation2 + $0x3c9] sm:$0xff] }
 0x4bc   :  { %13085 = vst [vmem:[#allocation60_spill] sm:$0xff] %v10223_v37  ;;  %3143 = vmatmul.bf16.gmra.mxu3 %v2947_v10  ;;  %v2721_v33 = vpop.f32.mrf.mxu2  ;;  %v13093_v37 = vld [vmem:[#allocation6_spill] sm:$0xff] }
 0x4bd   :  { %v2830_v25 = vadd.f32 %v2721_v33, %v9957_v35 }
 0x4bf   :  { %v3104_v29 = vpop.f32.mrf.mxu3  ;;  %v3509_v14 = vpop.f32.mrf.mxu0 }
 0x4c0   :  { %v3219_v44 = vadd.f32 %v3104_v29, %v2826_v19  ;;  %v3306_v19 = vld [vmem:[#allocation2 + $0x3d1] sm:$0xff] }
 0x4c2   :  { %v10226_v62 = vadd.f32 %v3497_v28, %v3219_v44  ;;  %v3343_v28 = vpack.c.bf16 %v3306_v19, %v3305_v61 }
 0x4c4   :  { %13086 = vst [vmem:[#allocation61_spill] sm:$0xff] %v10226_v62  ;;  %v2723_v30 = vpop.f32.mrf.mxu2  ;;  %v13089_v62 = vld [vmem:[#allocation4_spill] sm:$0xff] }
 0x4c5   :  { %v2831_v10 = vadd.f32 %v2723_v30, %v13087_v48  ;;  %v2911_v30 = vld [vmem:[#allocation2 + $0x3b0] sm:$0xff] }
 0x4c7   :  { %v3106_v57 = vpop.f32.mrf.mxu3  ;;  %v3512_v35 = vpop.f32.mrf.mxu0  ;;  %2765 = vmatmul.bf16.gmra.mxu2 %v2557_v15  ;;  %v2522_v15 = vld [vmem:[#allocation2 + $0x3ef] sm:$0xff] }
 0x4c8   :  { %v3220_v34 = vadd.f32 %v3106_v57, %v2827_v8  ;;  %v2910_v57 = vld [vmem:[#allocation2 + $0x3a8] sm:$0xff] }
 0x4c9   :  { %v2949_v42 = vpack.c.bf16 %v2911_v30, %v2910_v57 }
 0x4ca   :  { %v10229_v40 = vadd.f32 %v3499_v36, %v3220_v34  ;;  %3551 = vmatmul.bf16.gmra.mxu0 %v3343_v28  ;;  %v3307_v28 = vld [vmem:[#allocation2 + $0x3e9] sm:$0xff] }
 0x4cc   :  { %13088 = vst [vmem:[#allocation3_spill] sm:$0xff] %v10229_v40  ;;  %3148 = vmatmul.bf16.gmra.mxu3 %v2948_v31  ;;  %v2726_v33 = vpop.f32.mrf.mxu2  ;;  %v2521_v40 = vld [vmem:[#allocation2 + $0x3e7] sm:$0xff] }
 0x4cd   :  { %v2832_v8 = vadd.f32 %v2726_v33, %v13089_v62  ;;  %v2558_v19 = vpack.c.bf16 %v2522_v15, %v2521_v40  ;;  %v13095_v15 = vld [vmem:[#allocation7_spill] sm:$0xff] }
 0x4cf   :  { %v3109_v29 = vpop.f32.mrf.mxu3  ;;  %v3514_v24 = vpop.f32.mrf.mxu0 }
 0x4d0   :  { %v3221_v44 = vadd.f32 %v3109_v29, %v2828_v63  ;;  %v3308_v63 = vld [vmem:[#allocation2 + $0x3f1] sm:$0xff] }
 0x4d2   :  { %v10232_v43 = vadd.f32 %v3502_v0, %v3221_v44  ;;  %v3344_v0 = vpack.c.bf16 %v3308_v63, %v3307_v28  ;;  %v2523_v28 = vld [vmem:[#allocation2 + $0x407] sm:$0xff] }
 0x4d4   :  { %13090 = vst [vmem:[#allocation4_spill] sm:$0xff] %v10232_v43  ;;  %v2728_v34 = vpop.f32.mrf.mxu2 }
 0x4d5   :  { %v2833_v31 = vadd.f32 %v2728_v34, %v13091_v54  ;;  %v2913_v34 = vld [vmem:[#allocation2 + $0x3d0] sm:$0xff] }
 0x4d7   :  { %v3111_v36 = vpop.f32.mrf.mxu3  ;;  %v3517_v62 = vpop.f32.mrf.mxu0  ;;  %2770 = vmatmul.bf16.gmra.mxu2 %v2558_v19 }
 0x4d8   :  { %v3222_v48 = vadd.f32 %v3111_v36, %v2829_v56  ;;  %v2912_v36 = vld [vmem:[#allocation2 + $0x3c8] sm:$0xff] }
 0x4d9   :  { %v2950_v54 = vpack.c.bf16 %v2913_v34, %v2912_v36 }
 0x4da   :  { %v10235_v61 = vadd.f32 %v3504_v52, %v3222_v48  ;;  %3556 = vmatmul.bf16.gmra.mxu0 %v3344_v0  ;;  %v8892_v52 = vld [vmem:[%s12828_s4 + $0x58] sm:$0xff] }
 0x4db   :  { %4445 = vmatpush.bf16.msra.mxu1 %v8892_v52  ;;  %v3310_v0 = vld [vmem:[#allocation2 + $0x411] sm:$0xff] }
 0x4dc   :  { %13092 = vst [vmem:[#allocation5_spill] sm:$0xff] %v10235_v61  ;;  %3153 = vmatmul.bf16.gmra.mxu3 %v2949_v42  ;;  %v2731_v33 = vpop.f32.mrf.mxu2 }
 0x4dd   :  { %v2834_v56 = vadd.f32 %v2731_v33, %v13093_v37 }
 0x4df   :  { %v3114_v29 = vpop.f32.mrf.mxu3  ;;  %v3519_v30 = vpop.f32.mrf.mxu0 }
 0x4e0   :  { %v3223_v44 = vadd.f32 %v3114_v29, %v2830_v25  ;;  %v2524_v25 = vld [vmem:[#allocation2 + $0x40f] sm:$0xff] }
 0x4e1   :  { %v2559_v37 = vpack.c.bf16 %v2524_v25, %v2523_v28  ;;  %v2525_v28 = vld [vmem:[#allocation2 + $0x427] sm:$0xff]  ;;  %v2526_v25 = vld [vmem:[#allocation2 + $0x42f] sm:$0xff] }
 0x4e2   :  { %v10238_v57 = vadd.f32 %v3507_v59, %v3223_v44  ;;  %v3309_v59 = vld [vmem:[#allocation2 + $0x409] sm:$0xff] }
 0x4e3   :  { %v3345_v33 = vpack.c.bf16 %v3310_v0, %v3309_v59  ;;  %v2560_v59 = vpack.c.bf16 %v2526_v25, %v2525_v28  ;;  %v3311_v0 = vld [vmem:[#allocation2 + $0x429] sm:$0xff] }
 0x4e4   :  { %13094 = vst [vmem:[#allocation6_spill] sm:$0xff] %v10238_v57  ;;  %v2733_v48 = vpop.f32.mrf.mxu2  ;;  %v2527_v28 = vld [vmem:[#allocation2 + $0x447] sm:$0xff]  ;;  %v2528_v25 = vld [vmem:[#allocation2 + $0x44f] sm:$0xff] }
 0x4e5   :  { %v2835_v19 = vadd.f32 %v2733_v48, %v13095_v15 }
 0x4e7   :  { %v3116_v40 = vpop.f32.mrf.mxu3  ;;  %v3522_v29 = vpop.f32.mrf.mxu0  ;;  %2775 = vmatmul.bf16.gmra.mxu2 %v2559_v37 }
 0x4e8   :  { %v3224_v42 = vadd.f32 %v3116_v40, %v2831_v10  ;;  %v13097_v10 = vld [vmem:[#allocation9_spill] sm:$0xff]  ;;  %v2914_v40 = vld [vmem:[#allocation2 + $0x3e8] sm:$0xff] }
 0x4ea   :  { %v10244_v63 = vadd.f32 %v3509_v14, %v3224_v42  ;;  %3561 = vmatmul.bf16.gmra.mxu0 %v3345_v33  ;;  %v2915_v14 = vld [vmem:[#allocation2 + $0x3f0] sm:$0xff] }
 0x4ec   :  { %13096 = vst [vmem:[#allocation7_spill] sm:$0xff] %v10244_v63  ;;  %3158 = vmatmul.bf16.gmra.mxu3 %v2950_v54  ;;  %v2736_v46 = vpop.f32.mrf.mxu2  ;;  %v2951_v54 = vpack.c.bf16 %v2915_v14, %v2914_v40  ;;  %v2916_v40 = vld [vmem:[#allocation2 + $0x408] sm:$0xff] }
 0x4ed   :  { %v2836_v36 = vadd.f32 %v2736_v46, %v13097_v10 }
 0x4ef   :  { %v3119_v44 = vpop.f32.mrf.mxu3  ;;  %v10249_v52 = vpop.f32.mrf.mxu0 }
 0x4f0   :  { %v3225_v41 = vadd.f32 %v3119_v44, %v2832_v8  ;;  %13099 = vst [vmem:[#allocation62_spill] sm:$0xff] %v10249_v52  ;;  %v3312_v8 = vld [vmem:[#allocation2 + $0x431] sm:$0xff] }
 0x4f2   :  { %v10247_v34 = vadd.f32 %v3512_v35, %v3225_v41  ;;  %v3346_v41 = vpack.c.bf16 %v3312_v8, %v3311_v0  ;;  %v2561_v0 = vpack.c.bf16 %v2528_v25, %v2527_v28  ;;  %v3313_v8 = vld [vmem:[#allocation2 + $0x449] sm:$0xff] }
 0x4f3   :  { %v2530_v28 = vld [vmem:[#allocation2 + $0x46f] sm:$0xff] }
 0x4f4   :  { %13098 = vst [vmem:[#allocation9_spill] sm:$0xff] %v10247_v34  ;;  %v10251_v42 = vpop.f32.mrf.mxu2 }
 0x4f7   :  { %v3121_v48 = vpop.f32.mrf.mxu3  ;;  %v3527_v46 = vpop.f32.mrf.mxu0  ;;  %2780 = vmatmul.bf16.gmra.mxu2 %v2560_v59 }
 0x4f8   :  { %v3226_v15 = vadd.f32 %v3121_v48, %v2833_v31 }
 0x4fa   :  { %v10253_v37 = vadd.f32 %v3514_v24, %v3226_v15  ;;  %3566 = vmatmul.bf16.gmra.mxu0 %v3346_v41  ;;  %v2917_v24 = vld [vmem:[#allocation2 + $0x410] sm:$0xff] }
 0x4fc   :  { %3163 = vmatmul.bf16.gmra.mxu3 %v2951_v54  ;;  %v2741_v33 = vpop.f32.mrf.mxu2  ;;  %v2952_v54 = vpack.c.bf16 %v2917_v24, %v2916_v40  ;;  %v2918_v40 = vld [vmem:[#allocation2 + $0x428] sm:$0xff] }
 0x4fd   :  { %v2838_v10 = vadd.f32 %v2741_v33, %v10025_v22 }
 0x4ff   :  { %v3124_v35 = vpop.f32.mrf.mxu3  ;;  %v10258_v31 = vpop.f32.mrf.mxu0 }
 0x500   :  { %v3227_v44 = vadd.f32 %v3124_v35, %v2834_v56  ;;  %13100 = vst [vmem:[#allocation63_spill] sm:$0xff] %v10258_v31  ;;  %v3314_v56 = vld [vmem:[#allocation2 + $0x451] sm:$0xff] }
 0x502   :  { %v10256_v52 = vadd.f32 %v3517_v62, %v3227_v44  ;;  %v3347_v62 = vpack.c.bf16 %v3314_v56, %v3313_v8  ;;  %v3316_v8 = vld [vmem:[#allocation2 + $0x471] sm:$0xff] }
 0x504   :  { %v10260_v48 = vpop.f32.mrf.mxu2 }
 0x507   :  { %v3126_v14 = vpop.f32.mrf.mxu3  ;;  %v3532_v22 = vpop.f32.mrf.mxu0  ;;  %2785 = vmatmul.bf16.gmra.mxu2 %v2561_v0  ;;  %v3315_v0 = vld [vmem:[#allocation2 + $0x469] sm:$0xff] }
 0x508   :  { %v3228_v15 = vadd.f32 %v3126_v14, %v2835_v19 }
 0x50a   :  { %v10262_v59 = vadd.f32 %v3519_v30, %v3228_v15  ;;  %3571 = vmatmul.bf16.gmra.mxu0 %v3347_v62  ;;  %v2919_v30 = vld [vmem:[#allocation2 + $0x430] sm:$0xff] }
 0x50b   :  { %v2953_v15 = vpack.c.bf16 %v2919_v30, %v2918_v40  ;;  %v8891_v40 = vld [vmem:[%s12828_s4 + $0x50] sm:$0xff] }
 0x50c   :  { %3168 = vmatmul.bf16.gmra.mxu3 %v2952_v54  ;;  %v2746_v35 = vpop.f32.mrf.mxu2  ;;  %v2529_v54 = vld [vmem:[#allocation2 + $0x467] sm:$0xff]  ;;  %4446 = vmatpush.bf16.msra.mxu1 %v8891_v40 }
 0x50d   :  { %v2840_v44 = vadd.f32 %v2746_v35, %v10039_v11  ;;  %v2562_v25 = vpack.c.bf16 %v2530_v28, %v2529_v54 }
 0x50f   :  { %v3129_v41 = vpop.f32.mrf.mxu3  ;;  %v10267_v19 = vpop.f32.mrf.mxu0 }
 0x510   :  { %v3229_v33 = vadd.f32 %v3129_v41, %v2836_v36  ;;  %13102 = vst [vmem:[#allocation65_spill] sm:$0xff] %v10267_v19  ;;  %v3348_v36 = vpack.c.bf16 %v3316_v8, %v3315_v0  ;;  %v13104_v41 = vld [vmem:[#allocation16_spill] sm:$0xff] }
 0x511   :  { %v2920_v19 = vld [vmem:[#allocation2 + $0x448] sm:$0xff] }
 0x512   :  { %v10265_v31 = vadd.f32 %v3522_v29, %v3229_v33 }
 0x514   :  { %13101 = vst [vmem:[#allocation64_spill] sm:$0xff] %v10265_v31  ;;  %v10271_v14 = vpop.f32.mrf.mxu2 }
 0x515   :  { %13103 = vst [vmem:[#allocation66_spill] sm:$0xff] %v10271_v14  ;;  %v2921_v14 = vld [vmem:[#allocation2 + $0x450] sm:$0xff] }
 0x516   :  { %v2954_v54 = vpack.c.bf16 %v2921_v14, %v2920_v19 }
 0x517   :  { %v10269_v24 = vpop.f32.mrf.mxu3  ;;  %2790 = vmatmul.bf16.gmra.mxu2 %v2562_v25  ;;  %v3537_v11 = vpop.f32.mrf.mxu0 }
 0x51a   :  { %3576 = vmatmul.bf16.gmra.mxu0 %v3348_v36 }
 0x51c   :  { %3173 = vmatmul.bf16.gmra.mxu3 %v2953_v15  ;;  %v2751_v56 = vpop.f32.mrf.mxu2 }
 0x51d   :  { %v2842_v35 = vadd.f32 %v2751_v56, %v13104_v41  ;;  %v10292_v41 = vpop.f32.mrf.mxu1 }
 0x51f   :  { %v3134_v29 = vpop.f32.mrf.mxu3  ;;  %v10283_v28 = vpop.f32.mrf.mxu0 }
 0x520   :  { %v3231_v62 = vadd.f32 %v3134_v29, %v2838_v10  ;;  %13108 = vst [vmem:[#allocation69_spill] sm:$0xff] %v10283_v28  ;;  %v13113_v28 = vld [vmem:[#allocation20_spill] sm:$0xff] }
 0x522   :  { %v10274_v33 = vadd.f32 %v3527_v46, %v3231_v62  ;;  %v13109_v46 = vld [vmem:[#allocation32_spill] sm:$0xff] }
 0x524   :  { %13105 = vst [vmem:[#allocation16_spill] sm:$0xff] %v10274_v33  ;;  %v10281_v15 = vpop.f32.mrf.mxu2  ;;  %v13117_v33 = vld [vmem:[#allocation22_spill] sm:$0xff] }
 0x525   :  { %13107 = vst [vmem:[#allocation68_spill] sm:$0xff] %v10281_v15 }
 0x527   :  { %v10279_v30 = vpop.f32.mrf.mxu3  ;;  %v3542_v29 = vpop.f32.mrf.mxu0 }
 0x528   :  { %13106 = vst [vmem:[#allocation67_spill] sm:$0xff] %v10279_v30 }
 0x52c   :  { %3178 = vmatmul.bf16.gmra.mxu3 %v2954_v54  ;;  %v2756_v25 = vpop.f32.mrf.mxu2 }
 0x52d   :  { %v2844_v8 = vadd.f32 %v2756_v25, %v13109_v46 }
 0x52f   :  { %v3139_v10 = vpop.f32.mrf.mxu3  ;;  %v10295_v19 = vpop.f32.mrf.mxu0 }
 0x530   :  { %v3233_v0 = vadd.f32 %v3139_v10, %v2840_v44  ;;  %13112 = vst [vmem:[#allocation71_spill] sm:$0xff] %v10295_v19 }
 0x532   :  { %v10286_v36 = vadd.f32 %v3532_v22, %v3233_v0  ;;  %v10300_v22 = vpop.f32.mrf.mxu1 }
 0x534   :  { %13110 = vst [vmem:[#allocation32_spill] sm:$0xff] %v10286_v36  ;;  %v10290_v62 = vpop.f32.mrf.mxu2 }
 0x537   :  { %v10288_v56 = vpop.f32.mrf.mxu3  ;;  %v3547_v25 = vpop.f32.mrf.mxu0 }
 0x538   :  { %13111 = vst [vmem:[#allocation70_spill] sm:$0xff] %v10288_v56 }
 0x53a   :  { %v10306_v36 = vpop.f32.mrf.mxu1 }
 0x53c   :  { %3183 = vmatmul.bf16.gmra.mxu3 %v10165_v23  ;;  %v2761_v40 = vpop.f32.mrf.mxu2 }
 0x53d   :  { %v2846_v44 = vadd.f32 %v2761_v40, %v13113_v28 }
 0x53f   :  { %v3144_v14 = vpop.f32.mrf.mxu3  ;;  %v10309_v30 = vpop.f32.mrf.mxu0 }
 0x540   :  { %v3235_v54 = vadd.f32 %v3144_v14, %v2842_v35  ;;  %13118 = vst [vmem:[#allocation22_spill] sm:$0xff] %v10309_v30 }
 0x542   :  { %v10298_v10 = vadd.f32 %v3537_v11, %v3235_v54  ;;  %v10315_v28 = vpop.f32.mrf.mxu1 }
 0x544   :  { %13114 = vst [vmem:[#allocation20_spill] sm:$0xff] %v10298_v10  ;;  %v10304_v46 = vpop.f32.mrf.mxu2 }
 0x545   :  { %13116 = vst [vmem:[#allocation73_spill] sm:$0xff] %v10304_v46 }
 0x547   :  { %v10302_v0 = vpop.f32.mrf.mxu3  ;;  %v3552_v14 = vpop.f32.mrf.mxu0 }
 0x548   :  { %13115 = vst [vmem:[#allocation72_spill] sm:$0xff] %v10302_v0 }
 0x54a   :  { %v10321_v31 = vpop.f32.mrf.mxu1 }
 0x54c   :  { %v2766_v23 = vpop.f32.mrf.mxu2 }
 0x54d   :  { %v2848_v19 = vadd.f32 %v2766_v23, %v13117_v33  ;;  %v8890_v33 = vld [vmem:[%s12828_s4 + $0x48] sm:$0xff] }
 0x54e   :  { %4447 = vmatpush.bf16.msra.mxu1 %v8890_v33  ;;  %v3671_v33 = vmul.f32 %v10124_v51, %v10124_v51 }
 0x54f   :  { %v3149_v15 = vpop.f32.mrf.mxu3 }
 0x550   :  { %v3237_v56 = vadd.f32 %v3149_v15, %v2844_v8  ;;  %v10323_v15 = vpop.f32.mrf.mxu0 }
 0x551   :  { %13123 = vst [vmem:[#allocation78_spill] sm:$0xff] %v10323_v15 }
 0x552   :  { %v10311_v35 = vadd.f32 %v3542_v29, %v3237_v56  ;;  %v10332_v56 = vpop.f32.mrf.mxu1 }
 0x554   :  { %13119 = vst [vmem:[#allocation74_spill] sm:$0xff] %v10311_v35  ;;  %v10317_v40 = vpop.f32.mrf.mxu2 }
 0x555   :  { %13121 = vst [vmem:[#allocation76_spill] sm:$0xff] %v10317_v40 }
 0x557   :  { %v10313_v11 = vpop.f32.mrf.mxu3 }
 0x558   :  { %13120 = vst [vmem:[#allocation75_spill] sm:$0xff] %v10313_v11  ;;  %v10334_v35 = vpop.f32.mrf.mxu0 }
 0x559   :  { %13126 = vst [vmem:[#allocation81_spill] sm:$0xff] %v10334_v35 }
 0x55c   :  { %v10330_v29 = vpop.f32.mrf.mxu2 }
 0x55d   :  { %13125 = vst [vmem:[#allocation80_spill] sm:$0xff] %v10330_v29 }
 0x55f   :  { %v3154_v54 = vpop.f32.mrf.mxu3 }
 0x560   :  { %v3239_v10 = vadd.f32 %v3154_v54, %v2846_v44  ;;  %v10340_v54 = vpop.f32.mrf.mxu1 }
 0x562   :  { %v10319_v0 = vadd.f32 %v3547_v25, %v3239_v10 }
 0x564   :  { %13122 = vst [vmem:[#allocation77_spill] sm:$0xff] %v10319_v0  ;;  %v10336_v10 = vpop.f32.mrf.mxu2  ;;  %v10344_v0 = vpop.f32.mrf.mxu0 }
 0x565   :  { %13127 = vst [vmem:[#allocation82_spill] sm:$0xff] %v10336_v10  ;;  %v3674_v10 = vmul.f32 %v10136_v49, %v10136_v49 }
 0x566   :  { %13130 = vst [vmem:[#allocation85_spill] sm:$0xff] %v10344_v0  ;;  %v3673_v0 = vmul.f32 %v10133_v16, %v10133_v16 }
 0x567   :  { %v10328_v8 = vpop.f32.mrf.mxu3 }
 0x568   :  { %13124 = vst [vmem:[#allocation79_spill] sm:$0xff] %v10328_v8 }
 0x56c   :  { %v10346_v30 = vpop.f32.mrf.mxu2 }
 0x56d   :  { %13131 = vst [vmem:[#allocation86_spill] sm:$0xff] %v10346_v30  ;;  %v10363_v30 = vpop.f32.mrf.mxu0 }
 0x56e   :  { %13133 = vst [vmem:[#allocation88_spill] sm:$0xff] %v10363_v30 }
 0x56f   :  { %v3159_v23 = vpop.f32.mrf.mxu3 }
 0x570   :  { %v3241_v44 = vadd.f32 %v3159_v23, %v2848_v19  ;;  %v3670_v19 = vmul.f32 %v10121_v39, %v10121_v39  ;;  %v10356_v23 = vpop.f32.mrf.mxu1 }
 0x572   :  { %v10338_v25 = vadd.f32 %v3552_v14, %v3241_v44  ;;  %v3672_v14 = vmul.f32 %v10127_v38, %v10127_v38  ;;  %v3648_v44 = vadd.f32 %v10124_v51, %v10121_v39  ;;  %v3686_v35 = vadd.f32 %v3671_v33, %v3670_v19 }
 0x573   :  { %v3675_v51 = vmul.f32 %v10139_v50, %v10139_v50 }
 0x574   :  { %13128 = vst [vmem:[#allocation83_spill] sm:$0xff] %v10338_v25  ;;  %v3649_v25 = vadd.f32 %v3648_v44, %v10127_v38  ;;  %v10368_v40 = vpop.f32.mrf.mxu2  ;;  %v3676_v44 = vmul.f32 %v10142_v4, %v10142_v4  ;;  %v13137_v38 = vld [vmem:[#allocation8_spill] sm:$0xff] }
 0x575   :  { %13134 = vst [vmem:[#allocation89_spill] sm:$0xff] %v10368_v40  ;;  %v13140_v40 = vld [vmem:[#allocation14_spill] sm:$0xff] }
 0x577   :  { %v10342_v15 = vpop.f32.mrf.mxu3 }
 0x578   :  { %13129 = vst [vmem:[#allocation84_spill] sm:$0xff] %v10342_v15  ;;  %v3650_v15 = vadd.f32 %v3649_v25, %v10133_v16  ;;  %v3677_v25 = vmul.f32 %v10145_v2, %v10145_v2  ;;  %v13136_v16 = vld [vmem:[#allocation10_spill] sm:$0xff] }
 0x57a   :  { %v3651_v33 = vadd.f32 %v3650_v15, %v10136_v49  ;;  %v3731_v15 = vmul.f32 %v10181_v9, %v10181_v9 }
 0x57f   :  { %v10350_v29 = vpop.f32.mrf.mxu3 }
 0x580   :  { %13132 = vst [vmem:[#allocation87_spill] sm:$0xff] %v10350_v29  ;;  %v3687_v29 = vadd.f32 %v3686_v35, %v3672_v14  ;;  %v3652_v35 = vadd.f32 %v3651_v33, %v10139_v50  ;;  %v13141_v33 = vld [vmem:[#allocation13_spill] sm:$0xff]  ;;  %v3678_v50 = vmul.f32 %v10148_v7, %v10148_v7 }
 0x582   :  { %v3688_v8 = vadd.f32 %v3687_v29, %v3673_v0  ;;  %v10382_v0 = vadd.f32 %v13137_v38, %v13136_v16  ;;  %v2394_v29 = vpop.f32.mrf.mxu1  ;;  %v3653_v30 = vadd.f32 %v3652_v35, %v10142_v4  ;;  %v13143_v38 = vld [vmem:[#allocation17_spill] sm:$0xff]  ;;  %v13144_v16 = vld [vmem:[#allocation15_spill] sm:$0xff]  ;;  %v3730_v4 = vmul.f32 %v10178_v47, %v10178_v47 }
 0x584   :  { %v3689_v39 = vadd.f32 %v3688_v8, %v3674_v10  ;;  %v13138_v8 = vld [vmem:[#allocation12_spill] sm:$0xff]  ;;  %v13139_v10 = vld [vmem:[#allocation11_spill] sm:$0xff]  ;;  %v3654_v35 = vadd.f32 %v3653_v30, %v10145_v2  ;;  %v3679_v30 = vmul.f32 %v10151_v32, %v10151_v32  ;;  %v3708_v2 = vadd.f32 %v10181_v9, %v10178_v47 }
 0x585   :  { %v10389_v49 = vadd.f32 %v13139_v10, %v13138_v8  ;;  %v3732_v8 = vmul.f32 %v10184_v26, %v10184_v26  ;;  %v10406_v10 = vpop.f32.mrf.mxu0  ;;  %v3734_v47 = vmul.f32 %v10193_v27, %v10193_v27 }
 0x586   :  { %v3690_v14 = vadd.f32 %v3689_v39, %v3675_v51  ;;  %v10393_v39 = vadd.f32 %v13141_v33, %v13140_v40  ;;  %13146 = vst [vmem:[#allocation12_spill] sm:$0xff] %v10406_v10  ;;  %v13147_v40 = vld [vmem:[#allocation19_spill] sm:$0xff]  ;;  %v13148_v33 = vld [vmem:[#allocation18_spill] sm:$0xff]  ;;  %v3733_v10 = vmul.f32 %v10190_v45, %v10190_v45 }
 0x587   :  { %v10373_v19 = vpop.f32.mrf.mxu3 }
 0x588   :  { %13135 = vst [vmem:[#allocation90_spill] sm:$0xff] %v10373_v19  ;;  %v3691_v51 = vadd.f32 %v3690_v14, %v3676_v44  ;;  %v10399_v19 = vadd.f32 %v13144_v16, %v13143_v38  ;;  %v10410_v44 = vadd.f32 %v13148_v33, %v13147_v40  ;;  %v13149_v14 = vld [vmem:[#allocation21_spill] sm:$0xff]  ;;  %v3655_v16 = vadd.f32 %v3654_v35, %v10148_v7  ;;  %v10425_v40 = vpop.f32.mrf.mxu2  ;;  %v13151_v33 = vld [vmem:[#allocation23_spill] sm:$0xff] }
 0x589   :  { %13142 = vst [vmem:[#allocation10_spill] sm:$0xff] %v10393_v39  ;;  %v13150_v39 = vld [vmem:[#allocation33_spill] sm:$0xff] }
 0x58a   :  { %13145 = vst [vmem:[#allocation8_spill] sm:$0xff] %v10399_v19  ;;  %v10414_v46 = vadd.f32 %v13150_v39, %v13149_v14  ;;  %v3692_v38 = vadd.f32 %v3691_v51, %v3677_v25  ;;  %v3746_v19 = vadd.f32 %v3731_v15, %v3730_v4  ;;  %v10429_v39 = vadd.f32 %v10292_v41, %v13151_v33  ;;  %v13152_v25 = vld [vmem:[#allocation24_spill] sm:$0xff]  ;;  %v13153_v33 = vld [vmem:[#allocation25_spill] sm:$0xff] }
 0x58b   :  { %v10433_v51 = vadd.f32 %v10300_v22, %v13152_v25  ;;  %v3680_v14 = vmul.f32 %v10154_v12, %v10154_v12  ;;  %v3656_v4 = vadd.f32 %v3655_v16, %v10151_v32  ;;  %v3709_v15 = vadd.f32 %v3708_v2, %v10184_v26  ;;  %v13154_v25 = vld [vmem:[#allocation26_spill] sm:$0xff]  ;;  %v13175_v26 = vld [vmem:[#allocation63_spill] sm:$0xff] }
 0x58c   :  { %v3693_v35 = vadd.f32 %v3692_v38, %v3678_v50  ;;  %v3747_v9 = vadd.f32 %v3746_v19, %v3732_v8  ;;  %v10443_v41 = vadd.f32 %v10306_v36, %v10094_v20  ;;  %v10447_v22 = vadd.f32 %v10315_v28, %v13153_v33  ;;  %v13155_v36 = vld [vmem:[#allocation27_spill] sm:$0xff]  ;;  %v2397_v33 = vpop.f32.mrf.mxu1 }
 0x58d   :  { %v3681_v38 = vmul.f32 %v10160_v6, %v10160_v6  ;;  %v3657_v16 = vadd.f32 %v3656_v4, %v10154_v12  ;;  %v3710_v2 = vadd.f32 %v3709_v15, %v10190_v45  ;;  %v3735_v8 = vmul.f32 %v10196_v55, %v10196_v55 }
 0x58e   :  { %v3694_v50 = vadd.f32 %v3693_v35, %v3679_v30  ;;  %v3748_v19 = vadd.f32 %v3747_v9, %v3733_v10  ;;  %v10457_v20 = vadd.f32 %v10321_v31, %v13154_v25  ;;  %v10461_v28 = vadd.f32 %v10332_v56, %v13155_v36 }
 0x58f   :  { %v10423_v11 = vpop.f32.mrf.mxu3  ;;  %v3682_v35 = vmul.f32 %v10163_v5, %v10163_v5  ;;  %v3658_v4 = vadd.f32 %v3657_v16, %v10160_v6  ;;  %v3711_v9 = vadd.f32 %v3710_v2, %v10193_v27  ;;  %v3736_v15 = vmul.f32 %v10199_v53, %v10199_v53  ;;  %v13194_v6 = vld [vmem:[#allocation72_spill] sm:$0xff] }
 0x590   :  { %v3695_v30 = vadd.f32 %v3694_v50, %v3680_v14  ;;  %v3749_v10 = vadd.f32 %v3748_v19, %v3734_v47  ;;  %v10471_v31 = vadd.f32 %v10340_v54, %v10106_v21  ;;  %v10475_v56 = vadd.f32 %v10356_v23, %v10109_v58  ;;  %v10485_v21 = vpop.f32.mrf.mxu0  ;;  %v13156_v54 = vld [vmem:[#allocation28_spill] sm:$0xff]  ;;  %v13157_v58 = vld [vmem:[#allocation29_spill] sm:$0xff] }
 0x591   :  { %v3683_v50 = vmul.f32 %v10168_v3, %v10168_v3  ;;  %v3659_v16 = vadd.f32 %v3658_v4, %v10163_v5  ;;  %v3712_v2 = vadd.f32 %v3711_v9, %v10196_v55  ;;  %v3737_v19 = vmul.f32 %v10202_v1, %v10202_v1  ;;  %v10499_v55 = vpop.f32.mrf.mxu2 }
 0x592   :  { %v3696_v14 = vadd.f32 %v3695_v30, %v3681_v38  ;;  %v3750_v47 = vadd.f32 %v3749_v10, %v3735_v8  ;;  %v10488_v36 = vadd.f32 %v2394_v29, %v13156_v54  ;;  %v10491_v23 = vadd.f32 %v2397_v33, %v13157_v58 }
 0x593   :  { %v3791_v30 = vmul.f32 %v10235_v61, %v10235_v61  ;;  %v3660_v4 = vadd.f32 %v3659_v16, %v10168_v3  ;;  %v3713_v8 = vadd.f32 %v3712_v2, %v10199_v53  ;;  %v3738_v10 = vmul.f32 %v10205_v60, %v10205_v60 }
 0x594   :  { %v3697_v38 = vadd.f32 %v3696_v14, %v3682_v35  ;;  %v3751_v9 = vadd.f32 %v3750_v47, %v3736_v15  ;;  %v3684_v29 = vmul.f32 %v10172_v17, %v10172_v17  ;;  %v3790_v35 = vmul.f32 %v10232_v43, %v10232_v43 }
 0x595   :  { %v3792_v33 = vmul.f32 %v10238_v57, %v10238_v57  ;;  %v3714_v14 = vadd.f32 %v3713_v8, %v10202_v1  ;;  %v3739_v15 = vmul.f32 %v10208_v13, %v10208_v13  ;;  %v3768_v2 = vadd.f32 %v10235_v61, %v10232_v43  ;;  %v13158_v61 = vld [vmem:[#allocation46_spill] sm:$0xff] }
 0x596   :  { %v3698_v27 = vadd.f32 %v3697_v38, %v3683_v50  ;;  %v3752_v16 = vadd.f32 %v3751_v9, %v3737_v19  ;;  %v3661_v50 = vadd.f32 %v3660_v4, %v10172_v17  ;;  %v3806_v47 = vadd.f32 %v3791_v30, %v3790_v35  ;;  %v13190_v17 = vld [vmem:[#allocation65_spill] sm:$0xff] }
 0x597   :  { %v10483_v25 = vpop.f32.mrf.mxu3  ;;  %v3793_v54 = vmul.f32 %v10244_v63, %v10244_v63  ;;  %v2837_v58 = vadd.f32 %v10251_v42, %v10382_v0  ;;  %v3715_v38 = vadd.f32 %v3714_v14, %v10205_v60  ;;  %v3740_v19 = vmul.f32 %v10211_v18, %v10211_v18  ;;  %v13159_v0 = vld [vmem:[#allocation58_spill] sm:$0xff]  ;;  %v13167_v60 = vld [vmem:[#allocation67_spill] sm:$0xff] }
 0x598   :  { %v3753_v53 = vadd.f32 %v3752_v16, %v3738_v10  ;;  %v3769_v8 = vadd.f32 %v3768_v2, %v10238_v57  ;;  %v10521_v9 = vadd.f32 %v3698_v27, %v3684_v29  ;;  %v10524_v43 = vadd.f32 %v3661_v50, %v13158_v61  ;;  %v13163_v57 = vld [vmem:[#allocation75_spill] sm:$0xff] }
 0x599   :  { %v3807_v30 = vadd.f32 %v3806_v47, %v3792_v33  ;;  %v3794_v4 = vmul.f32 %v10247_v34, %v10247_v34  ;;  %v3716_v35 = vadd.f32 %v3715_v38, %v10208_v13  ;;  %v3741_v10 = vmul.f32 %v13159_v0, %v13159_v0 }
 0x59a   :  { %v3754_v42 = vadd.f32 %v3753_v53, %v3739_v15  ;;  %v3770_v14 = vadd.f32 %v3769_v8, %v10244_v63  ;;  %v3795_v27 = vmul.f32 %v10253_v37, %v10253_v37  ;;  %v3230_v29 = vadd.f32 %v10269_v24, %v2837_v58  ;;  %v13160_v53 = vld [vmem:[#allocation59_spill] sm:$0xff]  ;;  %v10543_v8 = vpop.f32.mrf.mxu0 }
 0x59b   :  { %v3808_v2 = vadd.f32 %v3807_v30, %v3793_v54  ;;  %v2845_v33 = vadd.f32 %v10290_v62, %v10410_v44  ;;  %v3717_v50 = vadd.f32 %v3716_v35, %v10211_v18  ;;  %v3742_v15 = vmul.f32 %v13160_v53, %v13160_v53 }
 0x59c   :  { %v3755_v47 = vadd.f32 %v3754_v42, %v3740_v19  ;;  %v3771_v38 = vadd.f32 %v3770_v14, %v10247_v34  ;;  %v10547_v54 = vmul.f32 %v13158_v61, %v13158_v61  ;;  %v3796_v24 = vmul.f32 %v10256_v52, %v10256_v52  ;;  %v13161_v19 = vld [vmem:[#allocation60_spill] sm:$0xff]  ;;  %v10557_v14 = vpop.f32.mrf.mxu2 }
 0x59d   :  { %v3809_v30 = vadd.f32 %v3808_v2, %v3794_v4  ;;  %v2839_v62 = vadd.f32 %v10260_v48, %v10389_v49  ;;  %v3718_v44 = vadd.f32 %v3717_v50, %v13159_v0  ;;  %v3743_v35 = vmul.f32 %v13161_v19, %v13161_v19  ;;  %v13162_v2 = vld [vmem:[#allocation62_spill] sm:$0xff]  ;;  %v13164_v50 = vld [vmem:[#allocation73_spill] sm:$0xff] }
 0x59e   :  { %v3756_v58 = vadd.f32 %v3755_v47, %v3741_v10  ;;  %v3772_v42 = vadd.f32 %v3771_v38, %v10253_v37  ;;  %v3797_v4 = vmul.f32 %v10262_v59, %v10262_v59  ;;  %v10562_v63 = vadd.f32 %v13162_v2, %v3230_v29  ;;  %v13165_v38 = vld [vmem:[#allocation61_spill] sm:$0xff]  ;;  %v13169_v2 = vld [vmem:[#allocation10_spill] sm:$0xff] }
 0x59f   :  { %v10532_v16 = vpop.f32.mrf.mxu3  ;;  %v3810_v34 = vadd.f32 %v3809_v30, %v3795_v27  ;;  %v3238_v18 = vadd.f32 %v13163_v57, %v2845_v33  ;;  %v3719_v49 = vadd.f32 %v3718_v44, %v13160_v53  ;;  %v2847_v47 = vadd.f32 %v13164_v50, %v10414_v46  ;;  %v13166_v30 = vld [vmem:[#allocation64_spill] sm:$0xff]  ;;  %v8889_v57 = vld [vmem:[%s12828_s4 + $0x40] sm:$0xff] }
 0x5a0   :  { %v3757_v48 = vadd.f32 %v3756_v58, %v3742_v15  ;;  %v3773_v10 = vadd.f32 %v3772_v42, %v10256_v52  ;;  %v3744_v0 = vmul.f32 %v13165_v38, %v13165_v38  ;;  %v3798_v13 = vmul.f32 %v13166_v30, %v13166_v30  ;;  %v13168_v44 = vld [vmem:[#allocation3_spill] sm:$0xff]  ;;  %4448 = vmatpush.bf16.msra.mxu1 %v8889_v57 }
 0x5a1   :  { %v3811_v27 = vadd.f32 %v3810_v34, %v3796_v24  ;;  %v3232_v29 = vadd.f32 %v13167_v60, %v2839_v62  ;;  %v3720_v33 = vadd.f32 %v3719_v49, %v13161_v19  ;;  %v3745_v58 = vmul.f32 %v13168_v44, %v13168_v44  ;;  %v13170_v60 = vld [vmem:[#allocation66_spill] sm:$0xff]  ;;  %v13171_v50 = vld [vmem:[#allocation71_spill] sm:$0xff] }
 0x5a2   :  { %v3758_v15 = vadd.f32 %v3757_v48, %v3743_v35  ;;  %v3774_v46 = vadd.f32 %v3773_v10, %v10262_v59  ;;  %v3799_v24 = vmul.f32 %v10562_v63, %v10562_v63  ;;  %v2841_v62 = vadd.f32 %v13170_v60, %v13169_v2  ;;  %v13173_v48 = vld [vmem:[#allocation79_spill] sm:$0xff]  ;;  %v13174_v10 = vld [vmem:[#allocation76_spill] sm:$0xff]  ;;  %v10607_v60 = vpop.f32.mrf.mxu0 }
 0x5a3   :  { %v3812_v34 = vadd.f32 %v3811_v27, %v3797_v4  ;;  %v10588_v53 = vadd.f32 %v13171_v50, %v3238_v18  ;;  %v3721_v35 = vadd.f32 %v3720_v33, %v13165_v38  ;;  %v3240_v19 = vadd.f32 %v13173_v48, %v2847_v47  ;;  %v13177_v33 = vld [vmem:[#allocation16_spill] sm:$0xff]  ;;  %v13182_v48 = vld [vmem:[#allocation82_spill] sm:$0xff] }
 0x5a4   :  { %v3775_v49 = vadd.f32 %v3774_v46, %v13166_v30  ;;  %v2849_v1 = vadd.f32 %v13174_v10, %v10429_v39  ;;  %v3759_v27 = vadd.f32 %v3758_v15, %v3744_v0  ;;  %v10597_v61 = vadd.f32 %v13175_v26, %v3232_v29  ;;  %v13178_v47 = vld [vmem:[#allocation80_spill] sm:$0xff]  ;;  %v2788_v10 = vpop.f32.mrf.mxu2 }
 0x5a5   :  { %13172 = vst [vmem:[#allocation11_spill] sm:$0xff] %v10588_v53  ;;  %v3813_v45 = vadd.f32 %v3812_v34, %v3798_v13  ;;  %v10600_v18 = vadd.f32 %v3721_v35, %v13168_v44  ;;  %v3800_v46 = vmul.f32 %v13177_v33, %v13177_v33  ;;  %v2850_v2 = vadd.f32 %v13178_v47, %v10433_v51  ;;  %v13179_v13 = vld [vmem:[#allocation70_spill] sm:$0xff]  ;;  %v13181_v35 = vld [vmem:[#allocation84_spill] sm:$0xff] }
 0x5a6   :  { %13176 = vst [vmem:[#allocation14_spill] sm:$0xff] %v10597_v61  ;;  %v3776_v57 = vadd.f32 %v3775_v49, %v10562_v63  ;;  %v10609_v39 = vadd.f32 %v3759_v27, %v3745_v58  ;;  %v3234_v15 = vadd.f32 %v13179_v13, %v2841_v62  ;;  %v3851_v26 = vmul.f32 %v10588_v53, %v10588_v53  ;;  %v13180_v34 = vld [vmem:[#allocation22_spill] sm:$0xff]  ;;  %v13186_v13 = vld [vmem:[#allocation77_spill] sm:$0xff]  ;;  %v13189_v44 = vld [vmem:[#allocation32_spill] sm:$0xff] }
 0x5a7   :  { %v10581_v42 = vpop.f32.mrf.mxu3  ;;  %v3814_v0 = vadd.f32 %v3813_v45, %v3799_v24  ;;  %v10616_v50 = vadd.f32 %v13180_v34, %v3240_v19  ;;  %v3242_v49 = vadd.f32 %v13181_v35, %v2849_v1  ;;  %v2851_v51 = vadd.f32 %v13182_v48, %v10443_v41  ;;  %v13183_v45 = vld [vmem:[#allocation8_spill] sm:$0xff]  ;;  %v13185_v27 = vld [vmem:[#allocation74_spill] sm:$0xff]  ;;  %v13187_v1 = vld [vmem:[#allocation87_spill] sm:$0xff] }
 0x5a8   :  { %v3777_v29 = vadd.f32 %v3776_v57, %v13177_v33  ;;  %v3801_v58 = vmul.f32 %v10597_v61, %v10597_v61  ;;  %v13184_v24 = vld [vmem:[#allocation68_spill] sm:$0xff]  ;;  %v3850_v47 = vmul.f32 %v13185_v27, %v13185_v27  ;;  %v3852_v57 = vmul.f32 %v13186_v13, %v13186_v13  ;;  %v13188_v41 = vld [vmem:[#allocation86_spill] sm:$0xff] }
 0x5a9   :  { %v2843_v62 = vadd.f32 %v13184_v24, %v13183_v45  ;;  %v3815_v19 = vadd.f32 %v3814_v0, %v3800_v46  ;;  %v3243_v35 = vadd.f32 %v13187_v1, %v2850_v2  ;;  %v2852_v48 = vadd.f32 %v13188_v41, %v10447_v22  ;;  %v13191_v0 = vld [vmem:[#allocation78_spill] sm:$0xff]  ;;  %v13193_v22 = vld [vmem:[#allocation89_spill] sm:$0xff] }
 0x5aa   :  { %v3778_v34 = vadd.f32 %v3777_v29, %v10597_v61  ;;  %v3802_v38 = vmul.f32 %v13189_v44, %v13189_v44  ;;  %v10636_v45 = vadd.f32 %v13190_v17, %v3234_v15  ;;  %v3828_v24 = vadd.f32 %v10588_v53, %v13185_v27  ;;  %v13192_v2 = vld [vmem:[#allocation90_spill] sm:$0xff]  ;;  %v13195_v61 = vld [vmem:[#allocation83_spill] sm:$0xff] }
 0x5ab   :  { %v3866_v3 = vadd.f32 %v3851_v26, %v3850_v47  ;;  %v3853_v46 = vmul.f32 %v10616_v50, %v10616_v50  ;;  %v10643_v29 = vadd.f32 %v13191_v0, %v3242_v49  ;;  %v3244_v1 = vadd.f32 %v13192_v2, %v2851_v51  ;;  %v13196_v47 = vld [vmem:[#allocation81_spill] sm:$0xff] }
 0x5ac   :  { %v2853_v41 = vadd.f32 %v13193_v22, %v10457_v20  ;;  %v3816_v5 = vadd.f32 %v3815_v19, %v3801_v58  ;;  %v3236_v12 = vadd.f32 %v13194_v6, %v2843_v62  ;;  %v3829_v17 = vadd.f32 %v3828_v24, %v13186_v13  ;;  %v2791_v22 = vpop.f32.mrf.mxu2 }
 0x5ad   :  { %v3867_v15 = vadd.f32 %v3866_v3, %v3852_v57  ;;  %v3854_v26 = vmul.f32 %v13195_v61, %v13195_v61  ;;  %v10653_v53 = vadd.f32 %v13196_v47, %v3243_v35  ;;  %v3245_v49 = vadd.f32 %v10423_v11, %v2852_v48  ;;  %v13197_v57 = vld [vmem:[#allocation85_spill] sm:$0xff]  ;;  %v3574_v35 = vpop.f32.mrf.mxu0 }
 0x5ae   :  { %v2854_v51 = vadd.f32 %v10425_v40, %v10461_v28  ;;  %v3779_v0 = vadd.f32 %v3778_v34, %v13189_v44  ;;  %v3817_v20 = vadd.f32 %v3816_v5, %v3802_v38  ;;  %v3803_v6 = vmul.f32 %v10636_v45, %v10636_v45  ;;  %v13198_v28 = vld [vmem:[#allocation69_spill] sm:$0xff] }
 0x5af   :  { %v3179_v4 = vpop.f32.mrf.mxu3  ;;  %v3830_v58 = vadd.f32 %v3829_v17, %v10616_v50  ;;  %v3868_v3 = vadd.f32 %v3867_v15, %v3853_v46  ;;  %v3855_v62 = vmul.f32 %v10643_v29, %v10643_v29  ;;  %v10665_v19 = vadd.f32 %v13197_v57, %v3244_v1  ;;  %v13199_v46 = vld [vmem:[#allocation88_spill] sm:$0xff] }
 0x5b0   :  { %v3246_v11 = vadd.f32 %v10483_v25, %v2853_v41  ;;  %v3780_v40 = vadd.f32 %v3779_v0, %v10636_v45  ;;  %v10670_v34 = vadd.f32 %v13198_v28, %v3236_v12  ;;  %v2855_v38 = vadd.f32 %v10499_v55, %v10471_v31  ;;  %v8888_v12 = vld [vmem:[%s12828_s4 + $0x38] sm:$0xff]  ;;  %v13200_v17 = vld [vmem:[#allocation20_spill] sm:$0xff] }
 0x5b1   :  { %v3831_v5 = vadd.f32 %v3830_v58, %v13195_v61  ;;  %v3869_v48 = vadd.f32 %v3868_v3, %v3854_v26  ;;  %v3856_v24 = vmul.f32 %v10653_v53, %v10653_v53  ;;  %v10678_v2 = vadd.f32 %v13199_v46, %v3245_v49  ;;  %v13201_v49 = vld [vmem:[#allocation12_spill] sm:$0xff]  ;;  %4658 = vmatpush.bf16.msrb.mxu2 %v8888_v12 }
 0x5b2   :  { %v3247_v25 = vadd.f32 %v10532_v16, %v2854_v51  ;;  %v3818_v41 = vadd.f32 %v3817_v20, %v3803_v6  ;;  %v3804_v15 = vmul.f32 %v13200_v17, %v13200_v17  ;;  %v2856_v31 = vadd.f32 %v10557_v14, %v10475_v56 }
 0x5b3   :  { %v3832_v55 = vadd.f32 %v3831_v5, %v10643_v29  ;;  %v3781_v26 = vadd.f32 %v3780_v40, %v13200_v17  ;;  %v3870_v47 = vadd.f32 %v3869_v48, %v3855_v62  ;;  %v3857_v16 = vmul.f32 %v10665_v19, %v10665_v19 }
 0x5b4   :  { %v10693_v51 = vadd.f32 %v13201_v49, %v3246_v11  ;;  %v3805_v0 = vmul.f32 %v10670_v34, %v10670_v34  ;;  %v3248_v6 = vadd.f32 %v10581_v42, %v2855_v38  ;;  %v2857_v58 = vadd.f32 %v2788_v10, %v10488_v36  ;;  %v2399_v38 = vpop.f32.mrf.mxu1 }
 0x5b5   :  { %v3833_v20 = vadd.f32 %v3832_v55, %v10653_v53  ;;  %v3782_v56 = vadd.f32 %v3781_v26, %v10670_v34  ;;  %v3871_v14 = vadd.f32 %v3870_v47, %v3856_v24  ;;  %v3858_v3 = vmul.f32 %v10678_v2, %v10678_v2  ;;  %v13202_v55 = vld [vmem:[#allocation34_spill] sm:$0xff]  ;;  %v2793_v47 = vpop.f32.mrf.mxu2 }
 0x5b6   :  { %v10704_v62 = vadd.f32 %v10485_v21, %v3247_v25  ;;  %v3819_v57 = vadd.f32 %v3818_v41, %v3804_v15  ;;  %v3249_v40 = vadd.f32 %v3179_v4, %v2856_v31  ;;  %v2858_v28 = vadd.f32 %v2791_v22, %v10491_v23 }
 0x5b7   :  { %v3181_v1 = vpop.f32.mrf.mxu3  ;;  %v3834_v11 = vadd.f32 %v3833_v20, %v10665_v19  ;;  %v3700_v42 = vadd.f32 %v10521_v9, %v10547_v54  ;;  %v3723_v36 = vrot.slane %v10600_v18, 4  ;;  %v3872_v10 = vadd.f32 %v3871_v14, %v3857_v16  ;;  %v3577_v54 = vpop.f32.mrf.mxu0 }
 0x5b8   :  { %v3859_v5 = vmul.f32 %v10693_v51, %v10693_v51  ;;  %v3820_v48 = vadd.f32 %v3819_v57, %v3805_v0  ;;  %v10715_v24 = vadd.f32 %v10543_v8, %v3248_v6  ;;  %v3250_v46 = vadd.f32 %v3181_v1, %v2857_v58 }
 0x5b9   :  { %v3835_v21 = vadd.f32 %v3834_v11, %v10678_v2  ;;  %v3761_v4 = vrot.slane %v10609_v39, 4  ;;  %v3783_v23 = vrot.slane %v3782_v56, 4  ;;  %v3873_v25 = vadd.f32 %v3872_v10, %v3858_v3 }
 0x5ba   :  { %v3860_v9 = vmul.f32 %v10704_v62, %v10704_v62  ;;  %v10722_v41 = vadd.f32 %v10607_v60, %v3249_v40  ;;  %v2465_v31 = vadd.f32 %v2399_v38, %v13202_v55  ;;  %v3701_v8 = vrot.slane %v3700_v42, 4 }
 0x5bb   :  { %v3836_v12 = vadd.f32 %v3835_v21, %v10693_v51  ;;  %v3724_v1 = vadd.f32 %v3723_v36, %v10600_v18  ;;  %v3874_v26 = vadd.f32 %v3873_v25, %v3859_v5  ;;  %v3821_v16 = vrot.slane %v3820_v48, 4 }
 0x5bc   :  { %v3861_v0 = vmul.f32 %v10715_v24, %v10715_v24  ;;  %v10729_v20 = vadd.f32 %v3574_v35, %v3250_v46  ;;  %v13203_v60 = vrot.slane %v10524_v43, 4  ;;  %v3762_v58 = vadd.f32 %v3761_v4, %v10609_v39  ;;  %v8904_v35 = vld [vmem:[%s12828_s4 + $0xb8] sm:$0xff] }
 0x5bd   :  { %v3837_v49 = vadd.f32 %v3836_v12, %v10704_v62  ;;  %v3784_v14 = vadd.f32 %v3783_v23, %v3782_v56  ;;  %v3875_v3 = vadd.f32 %v3874_v26, %v3860_v9  ;;  %v3862_v57 = vmul.f32 %v10722_v41, %v10722_v41  ;;  %4987 = vmatpush.bf16.msrb.mxu3 %v8904_v35 }
 0x5be   :  { %v3664_v6 = vadd.f32 %v13203_v60, %v10524_v43  ;;  %v2859_v40 = vadd.f32 %v2793_v47, %v2465_v31  ;;  %v3725_v36 = vrot.slane %v3724_v1, 2  ;;  %v3822_v10 = vadd.f32 %v3821_v16, %v3820_v48 }
 0x5bf   :  { %v3184_v22 = vpop.f32.mrf.mxu3  ;;  %v3838_v18 = vadd.f32 %v3837_v49, %v10715_v24  ;;  %v3876_v43 = vadd.f32 %v3875_v3, %v3861_v0  ;;  %v3863_v56 = vmul.f32 %v10729_v20, %v10729_v20  ;;  %v3763_v38 = vrot.slane %v3762_v58, 2 }
 0x5c0   :  { %v3251_v15 = vadd.f32 %v3184_v22, %v2858_v28  ;;  %v3702_v28 = vadd.f32 %v3701_v8, %v3700_v42  ;;  %v3665_v5 = vrot.slane %v3664_v6, 2  ;;  %v3785_v21 = vrot.slane %v3784_v14, 2 }
 0x5c1   :  { %v3839_v39 = vadd.f32 %v3838_v18, %v10722_v41  ;;  %v3877_v4 = vadd.f32 %v3876_v43, %v3862_v57  ;;  %v3726_v48 = vadd.f32 %v3725_v36, %v3724_v1  ;;  %v3823_v22 = vrot.slane %v3822_v10, 2 }
 0x5c2   :  { %v10738_v11 = vadd.f32 %v3577_v54, %v3251_v15  ;;  %v3703_v9 = vrot.slane %v3702_v28, 2  ;;  %v3579_v54 = vpop.f32.mrf.mxu0  ;;  %v3666_v31 = vadd.f32 %v3665_v5, %v3664_v6  ;;  %v3764_v8 = vadd.f32 %v3763_v38, %v3762_v58 }
 0x5c3   :  { %v3840_v42 = vadd.f32 %v3839_v39, %v10729_v20  ;;  %v3878_v12 = vadd.f32 %v3877_v4, %v3863_v56  ;;  %v3786_v26 = vadd.f32 %v3785_v21, %v3784_v14  ;;  %v3727_v60 = vrot.slane %v3726_v48, 1 }
 0x5c4   :  { %v3864_v23 = vmul.f32 %v10738_v11, %v10738_v11  ;;  %v3704_v0 = vadd.f32 %v3703_v9, %v3702_v28  ;;  %v3824_v3 = vadd.f32 %v3823_v22, %v3822_v10  ;;  %v3667_v57 = vrot.slane %v3666_v31, 1  ;;  %v8887_v10 = vld [vmem:[%s12828_s4 + $0x30] sm:$0xff] }
 0x5c5   :  { %v3841_v15 = vadd.f32 %v3840_v42, %v10738_v11  ;;  %v3787_v36 = vrot.slane %v3786_v26, 1  ;;  %v3728_v6 = vadd.f32 %v3727_v60, %v3726_v48  ;;  %4659 = vmatpush.bf16.msrb.mxu2 %v8887_v10  ;;  %v8886_v10 = vld [vmem:[%s12828_s4 + $0x28] sm:$0xff] }
 0x5c6   :  { %v3879_v47 = vadd.f32 %v3878_v12, %v3864_v23  ;;  %v3705_v39 = vrot.slane %v3704_v0, 1  ;;  %v3825_v58 = vrot.slane %v3824_v3, 1  ;;  %v3668_v5 = vadd.f32 %v3667_v57, %v3666_v31 }
 0x5c7   :  { %v3186_v46 = vpop.f32.mrf.mxu3  ;;  %v3788_v21 = vadd.f32 %v3787_v36, %v3786_v26 }
 0x5c8   :  { %v3252_v25 = vadd.f32 %v3186_v46, %v2859_v40  ;;  %v3765_v40 = vrot.slane %v3764_v8, 1  ;;  %v3706_v28 = vadd.f32 %v3705_v39, %v3704_v0  ;;  %v3729_v42 = vadd.f32 %v3728_v6, %v3668_v5 }
 0x5c9   :  { %v3826_v23 = vadd.f32 %v3825_v58, %v3824_v3  ;;  %v3647_v58 = vld [vmem:[%s12830_s3] sm:$0x1]  ;;  %4660 = vmatpush.bf16.msrb.mxu2 %v8886_v10 }
 0x5ca   :  { %v10750_v55 = vadd.f32 %v3579_v54, %v3252_v25  ;;  %v3766_v38 = vadd.f32 %v3765_v40, %v3764_v8  ;;  %v3789_v48 = vadd.f32 %v3788_v21, %v3729_v42  ;;  %v13204_v42 = vld [vmem:[#allocation35_spill] sm:$0xff] }
 0x5cc   :  { %v3842_v16 = vadd.f32 %v3841_v15, %v10750_v55  ;;  %v3865_v49 = vmul.f32 %v10750_v55, %v10750_v55  ;;  %v3767_v54 = vadd.f32 %v3766_v38, %v3706_v28  ;;  %v8903_v28 = vld [vmem:[%s12828_s4 + $0xb0] sm:$0xff] }
 0x5cd   :  { %4988 = vmatpush.bf16.msrb.mxu3 %v8903_v28 }
 0x5ce   :  { %v3843_v1 = vrot.slane %v3842_v16, 4  ;;  %v3880_v18 = vadd.f32 %v3879_v47, %v3865_v49  ;;  %v3827_v15 = vadd.f32 %v3826_v23, %v3767_v54  ;;  %v8885_v54 = vld [vmem:[%s12828_s4 + $0x20] sm:$0xff] }
 0x5cf   :  { %4661 = vmatpush.bf16.msrb.mxu2 %v8885_v54  ;;  %v8882_v54 = vld [vmem:[%s12828_s4 + $0x8] sm:$0xff] }
 0x5d0   :  { %v3844_v35 = vadd.f32 %v3843_v1, %v3842_v16  ;;  %v3881_v43 = vrot.slane %v3880_v18, 4 }
 0x5d2   :  { %v3845_v14 = vrot.slane %v3844_v35, 2  ;;  %v3882_v56 = vadd.f32 %v3881_v43, %v3880_v18 }
 0x5d4   :  { %v3846_v46 = vadd.f32 %v3845_v14, %v3844_v35  ;;  %v3883_v4 = vrot.slane %v3882_v56, 2  ;;  %v3646_v35 = vld [vmem:[%s12829_s2] sm:$0x1] }
 0x5d6   :  { %v3847_v25 = vrot.slane %v3846_v46, 1  ;;  %v3884_v9 = vadd.f32 %v3883_v4, %v3882_v56 }
 0x5d8   :  { %v3848_v22 = vadd.f32 %v3847_v25, %v3846_v46  ;;  %v3885_v12 = vrot.slane %v3884_v9, 1  ;;  %v13205_v25 = vld [vmem:[#allocation36_spill] sm:$0xff] }
 0x5da   :  { %v3849_v31 = vadd.f32 %v3848_v22, %v3789_v48  ;;  %v3886_v8 = vadd.f32 %v3885_v12, %v3884_v9  ;;  %v13206_v48 = vld [vmem:[#allocation37_spill] sm:$0xff]  ;;  %v13207_v12 = vld [vmem:[#allocation30_spill] sm:$0xff] }
 0x5dc   :  { %v3887_v26 = vadd.f32 %v3886_v8, %v3827_v15  ;;  %v3888_v47 = vmul.f32 0.001953125, %v3849_v31  ;;  %v13208_v31 = vld [vmem:[#allocation31_spill] sm:$0xff] }
 0x5de   :  { %v3889_v16 = vmul.f32 0.001953125, %v3887_v26  ;;  %v3890_v49 = vmul.f32 %v3888_v47, %v3888_v47  ;;  %v13209_v26 = vld [vmem:[#allocation38_spill] sm:$0xff] }
 0x5e0   :  { %v3891_v0 = vsub.f32 %v3889_v16, %v3890_v49  ;;  %v13210_v16 = vld [vmem:[#allocation39_spill] sm:$0xff] }
 0x5e2   :  { %v3892_v60 = vmax.f32 %v3891_v0, 0.0  ;;  %v13211_v0 = vld [vmem:[#allocation40_spill] sm:$0xff] }
 0x5e4   :  { %v3893_v1 = vadd.f32 1e-05, %v3892_v60 }
 0x5e6   :  { %8970 = vrsqrt.f32 %v3893_v1  ;;  %vm3900_vm1 = vweird.f32 %v3893_v1 }
 0x5ec   :  { %v8971_v18 = vpop.eup %8970 }
 0x5ed   :  { %v3895_v3 = vmul.f32 %v8971_v18, %v3893_v1  ;;  %vm3901_vm0 = vweird.f32 %v8971_v18 }
 0x5ee   :  { %vm3902_vm2 = vmor %vm3900_vm1, %vm3901_vm0 }
 0x5ef   :  { %v3896_v57 = vmul.f32 %v8971_v18, %v3895_v3  ;;  %v8901_v3 = vld [vmem:[%s12828_s4 + $0xa0] sm:$0xff] }
 0x5f1   :  { %v3897_v40 = vmul.f32 0.5, %v3896_v57 }
 0x5f3   :  { %v3898_v36 = vsub.f32 1.5, %v3897_v40 }
 0x5f5   :  { %v3899_v43 = vmul.f32 %v8971_v18, %v3898_v36 }
 0x5f7   :  { %v3903_v39 = vsel %vm3902_vm2, %v8971_v18, %v3899_v43  ;;  %v13212_v43 = vld [vmem:[#allocation14_spill] sm:$0xff] }
 0x5f8   :  { %v3904_v6 = vmul.f32 %v3903_v39, %v3646_v35 }
 0x5fa   :  { %v3905_v14 = vmul.f32 %v3904_v6, %v3888_v47  ;;  %v10764_v56 = vperm.slane %v3904_v6, 0  ;;  %v13213_v6 = vld [vmem:[#allocation11_spill] sm:$0xff] }
 0x5fc   :  { %v3906_v5 = vsub.f32 %v3647_v58, %v3905_v14  ;;  %v3973_v38 = vmul.f32 %v10764_v56, %v10750_v55  ;;  %v8902_v55 = vld [vmem:[%s12828_s4 + $0xa8] sm:$0xff]  ;;  %v3910_v23 = vmul.f32 %v10764_v56, %v13204_v42  ;;  %v3911_v9 = vmul.f32 %v10764_v56, %v13205_v25 }
 0x5fd   :  { %4989 = vmatpush.bf16.msrb.mxu3 %v8902_v55  ;;  %v3912_v22 = vmul.f32 %v10764_v56, %v13206_v48  ;;  %v3913_v15 = vmul.f32 %v10764_v56, %v13207_v12  ;;  %v3914_v8 = vmul.f32 %v10764_v56, %v13208_v31  ;;  %v3915_v47 = vmul.f32 %v10764_v56, %v13209_v26 }
 0x5fe   :  { %v10768_v21 = vperm.slane %v3906_v5, 0  ;;  %v3916_v49 = vmul.f32 %v10764_v56, %v13210_v16  ;;  %v10799_v60 = vmul.f32 %v10764_v56, %v13211_v0  ;;  %v10803_v1 = vmul.f32 %v10764_v56, %v10148_v7  ;;  %v8898_v16 = vld [vmem:[%s12828_s4 + $0x88] sm:$0xff] }
 0x5ff   :  { %v10807_v18 = vmul.f32 %v10764_v56, %v10151_v32  ;;  %v3947_v57 = vmul.f32 %v10764_v56, %v10253_v37  ;;  %v3948_v40 = vmul.f32 %v10764_v56, %v10256_v52  ;;  %v3949_v36 = vmul.f32 %v10764_v56, %v10262_v59  ;;  %v8884_v52 = vld [vmem:[%s12828_s4 + $0x18] sm:$0xff] }
 0x600   :  { %v4040_v46 = vadd.f32 %v10768_v21, %v3973_v38  ;;  %v3950_v7 = vmul.f32 %v10764_v56, %v13166_v30  ;;  %v3951_v32 = vmul.f32 %v10764_v56, %v10562_v63  ;;  %v3952_v35 = vmul.f32 %v10764_v56, %v13177_v33  ;;  %4662 = vmatpush.bf16.msrb.mxu2 %v8884_v52 }
 0x601   :  { %v3953_v39 = vmul.f32 %v10764_v56, %v13212_v43  ;;  %v3954_v37 = vmul.f32 %v10764_v56, %v13189_v44  ;;  %4990 = vmatpush.bf16.msrb.mxu3 %v8901_v3  ;;  %v3955_v59 = vmul.f32 %v10764_v56, %v10636_v45  ;;  %v3956_v63 = vmul.f32 %v10764_v56, %v13200_v17 }
 0x602   :  { %v4104_v4 = vmax.f32 %v4040_v46, 0.0  ;;  %v3957_v30 = vmul.f32 %v10764_v56, %v10670_v34  ;;  %v3958_v33 = vmul.f32 %v10764_v56, %v13185_v27  ;;  %v3959_v44 = vmul.f32 %v10764_v56, %v13213_v6  ;;  %v8900_v34 = vld [vmem:[%s12828_s4 + $0x98] sm:$0xff]  ;;  %v8897_v6 = vld [vmem:[%s12828_s4 + $0x80] sm:$0xff] }
 0x603   :  { %v3960_v58 = vmul.f32 %v10764_v56, %v13186_v13  ;;  %v3961_v14 = vmul.f32 %v10764_v56, %v10616_v50  ;;  %v3962_v45 = vmul.f32 %v10764_v56, %v13195_v61  ;;  %v3963_v27 = vmul.f32 %v10764_v56, %v10643_v29 }
 0x604   :  { %4168 = vst [vmem:[#allocation2 + $0x450] sm:$0xff] %v4104_v4  ;;  %v3964_v17 = vmul.f32 %v10764_v56, %v10653_v53  ;;  %v3965_v13 = vmul.f32 %v10764_v56, %v10665_v19  ;;  %v3966_v50 = vmul.f32 %v10764_v56, %v10678_v2  ;;  %v3967_v61 = vmul.f32 %v10764_v56, %v10693_v51  ;;  %v8883_v53 = vld [vmem:[%s12828_s4 + $0x10] sm:$0xff] }
 0x605   :  { %v3968_v5 = vmul.f32 %v10764_v56, %v10704_v62  ;;  %v3969_v38 = vmul.f32 %v10764_v56, %v10715_v24  ;;  %v3970_v29 = vmul.f32 %v10764_v56, %v10722_v41  ;;  %4991 = vmatpush.bf16.msrb.mxu3 %v8900_v34  ;;  %v3971_v19 = vmul.f32 %v10764_v56, %v10729_v20 }
 0x606   :  { %v3972_v2 = vmul.f32 %v10764_v56, %v10738_v11  ;;  %v10874_v51 = vadd.f32 %v10768_v21, %v3910_v23  ;;  %v10877_v62 = vadd.f32 %v10768_v21, %v3911_v9  ;;  %v10880_v24 = vadd.f32 %v10768_v21, %v3912_v22  ;;  %4663 = vmatpush.bf16.msrb.mxu2 %v8883_v53  ;;  %v8899_v11 = vld [vmem:[%s12828_s4 + $0x90] sm:$0xff] }
 0x607   :  { %v10883_v41 = vadd.f32 %v10768_v21, %v3913_v15  ;;  %v10886_v46 = vadd.f32 %v10768_v21, %v3914_v8  ;;  %v10889_v20 = vadd.f32 %v10768_v21, %v3915_v47  ;;  %v10895_v4 = vadd.f32 %v10768_v21, %v3916_v49  ;;  %v13230_v53 = vld [vmem:[#allocation45_spill] sm:$0xff] }
 0x608   :  { %v10898_v28 = vadd.f32 %v10768_v21, %v3947_v57  ;;  %v10901_v10 = vadd.f32 %v10768_v21, %v3948_v40  ;;  %v10904_v55 = vadd.f32 %v10768_v21, %v3949_v36  ;;  %v10907_v42 = vadd.f32 %v10768_v21, %v3950_v7 }
 0x609   :  { %13214 = vst [vmem:[#allocation13_spill] sm:$0xff] %v10886_v46  ;;  %v10910_v23 = vadd.f32 %v10768_v21, %v3951_v32  ;;  %v10913_v25 = vadd.f32 %v10768_v21, %v3952_v35  ;;  %v10916_v9 = vadd.f32 %v10768_v21, %v3953_v39  ;;  %4992 = vmatpush.bf16.msrb.mxu3 %v8899_v11  ;;  %v8881_v35 = vld [vmem:[%s12828_s4] sm:$0xff]  ;;  %v12894_v52 = vmax.f32 %v10874_v51, 0.0 }
 0x60a   :  { %13215 = vst [vmem:[#allocation17_spill] sm:$0xff] %v10889_v20  ;;  %v10922_v48 = vadd.f32 %v10768_v21, %v3954_v37  ;;  %v10925_v22 = vadd.f32 %v10768_v21, %v3955_v59  ;;  %v10928_v12 = vadd.f32 %v10768_v21, %v3956_v63  ;;  %v10931_v15 = vadd.f32 %v10768_v21, %v3957_v30 }
 0x60b   :  { %v10934_v31 = vadd.f32 %v10768_v21, %v3958_v33  ;;  %v10937_v8 = vadd.f32 %v10768_v21, %v3959_v44  ;;  %v10940_v26 = vadd.f32 %v10768_v21, %v3960_v58  ;;  %v10943_v47 = vadd.f32 %v10768_v21, %v3961_v14  ;;  %4664 = vmatpush.bf16.msrb.mxu2 %v8882_v54  ;;  %v13226_v44 = vld [vmem:[#allocation41_spill] sm:$0xff]  ;;  %v13231_v54 = vld [vmem:[#allocation46_spill] sm:$0xff] }
 0x60c   :  { %v10949_v49 = vadd.f32 %v10768_v21, %v3962_v45  ;;  %v10952_v0 = vadd.f32 %v10768_v21, %v3963_v27  ;;  %v10955_v3 = vadd.f32 %v10768_v21, %v3964_v17  ;;  %v10958_v57 = vadd.f32 %v10768_v21, %v3965_v13  ;;  %4105 = vst [vmem:[#allocation2 + $0x28] sm:$0xff] %v12894_v52  ;;  %v13227_v45 = vld [vmem:[#allocation42_spill] sm:$0xff] }
 0x60d   :  { %v10961_v40 = vadd.f32 %v10768_v21, %v3966_v50  ;;  %v10964_v36 = vadd.f32 %v10768_v21, %v3967_v61  ;;  %v10967_v7 = vadd.f32 %v10768_v21, %v3968_v5  ;;  %v10970_v32 = vadd.f32 %v10768_v21, %v3969_v38  ;;  %4993 = vmatpush.bf16.msrb.mxu3 %v8898_v16  ;;  %v13229_v5 = vld [vmem:[#allocation44_spill] sm:$0xff] }
 0x60e   :  { %13216 = vst [vmem:[#allocation15_spill] sm:$0xff] %v10952_v0  ;;  %v10976_v43 = vadd.f32 %v10768_v21, %v3970_v29  ;;  %v10979_v39 = vadd.f32 %v10768_v21, %v3971_v19  ;;  %v10982_v37 = vadd.f32 %v10768_v21, %v3972_v2  ;;  %v10987_v59 = vadd.f32 %v10768_v21, %v10799_v60 }
 0x60f   :  { %13217 = vst [vmem:[#allocation19_spill] sm:$0xff] %v10955_v3  ;;  %v12891_v63 = vmax.f32 %v10877_v62, 0.0  ;;  %v12887_v30 = vmax.f32 %v10880_v24, 0.0  ;;  %v12886_v33 = vmax.f32 %v10883_v41, 0.0  ;;  %4665 = vmatpush.bf16.msrb.mxu2 %v8881_v35  ;;  %v3920_v58 = vmul.f32 %v10764_v56, %v13226_v44  ;;  %v13232_v44 = vld [vmem:[#allocation47_spill] sm:$0xff] }
 0x610   :  { %13218 = vst [vmem:[#allocation18_spill] sm:$0xff] %v10958_v57  ;;  %v10999_v14 = vadd.f32 %v10768_v21, %v10803_v1  ;;  %v12885_v60 = vmax.f32 %v10886_v46, 0.0  ;;  %v3921_v34 = vmul.f32 %v10764_v56, %v13227_v45  ;;  %v11008_v27 = vadd.f32 %v10768_v21, %v10807_v18  ;;  %v13228_v1 = vld [vmem:[#allocation43_spill] sm:$0xff]  ;;  %v13265_v57 = vld [vmem:[#allocation9_spill] sm:$0xff] }
 0x611   :  { %13219 = vst [vmem:[#allocation21_spill] sm:$0xff] %v10961_v40  ;;  %v12884_v17 = vmax.f32 %v10889_v20, 0.0  ;;  %4994 = vmatpush.bf16.msrb.mxu3 %v8897_v6  ;;  %v3922_v13 = vmul.f32 %v10764_v56, %v13228_v1  ;;  %v11016_v50 = vadd.f32 %v10768_v21, %v3920_v58  ;;  %v12890_v61 = vmax.f32 %v10895_v4, 0.0  ;;  %v13233_v1 = vld [vmem:[#allocation48_spill] sm:$0xff]  ;;  %v13255_v46 = vld [vmem:[#allocation3_spill] sm:$0xff] }
 0x612   :  { %13220 = vst [vmem:[#allocation33_spill] sm:$0xff] %v10964_v36  ;;  %v3923_v18 = vmul.f32 %v10764_v56, %v13229_v5  ;;  %v11024_v38 = vadd.f32 %v10768_v21, %v3921_v34  ;;  %v12889_v29 = vmax.f32 %v10987_v59, 0.0  ;;  %v3924_v19 = vmul.f32 %v10764_v56, %v13230_v53  ;;  %v8912_v53 = vld [vmem:[%s12828_s4 + $0xf8] sm:$0xff] }
 0x613   :  { %13221 = vst [vmem:[#allocation23_spill] sm:$0xff] %v10967_v7  ;;  %v11032_v2 = vadd.f32 %v10768_v21, %v3922_v13  ;;  %v12888_v11 = vmax.f32 %v10999_v14, 0.0  ;;  %v3925_v16 = vmul.f32 %v10764_v56, %v13231_v54  ;;  %v12892_v6 = vmax.f32 %v11008_v27, 0.0  ;;  %5380 = vmatpush.bf16.msrb.mxu0 %v8912_v53  ;;  %v13240_v53 = vld [vmem:[#allocation55_spill] sm:$0xff] }
 0x614   :  { %13222 = vst [vmem:[#allocation24_spill] sm:$0xff] %v10970_v32  ;;  %v11040_v35 = vadd.f32 %v10768_v21, %v3923_v18  ;;  %v3926_v58 = vmul.f32 %v10764_v56, %v13232_v44  ;;  %v11048_v45 = vadd.f32 %v10768_v21, %v3924_v19  ;;  %v12893_v34 = vmax.f32 %v11016_v50, 0.0  ;;  %v13234_v19 = vld [vmem:[#allocation49_spill] sm:$0xff]  ;;  %v13262_v32 = vld [vmem:[#allocation7_spill] sm:$0xff] }
 0x615   :  { %13223 = vst [vmem:[#allocation25_spill] sm:$0xff] %v10976_v43  ;;  %v3927_v13 = vmul.f32 %v10764_v56, %v13233_v1  ;;  %v11056_v5 = vadd.f32 %v10768_v21, %v3925_v16  ;;  %v12895_v18 = vmax.f32 %v11024_v38, 0.0  ;;  %v3928_v54 = vmul.f32 %v10764_v56, %v13234_v19  ;;  %v13235_v16 = vld [vmem:[#allocation50_spill] sm:$0xff]  ;;  %v13236_v19 = vld [vmem:[#allocation51_spill] sm:$0xff] }
 0x616   :  { %13224 = vst [vmem:[#allocation26_spill] sm:$0xff] %v10979_v39  ;;  %v11067_v44 = vadd.f32 %v10768_v21, %v3926_v58  ;;  %v12898_v1 = vmax.f32 %v11032_v2, 0.0  ;;  %v3930_v58 = vmul.f32 %v10764_v56, %v13236_v19  ;;  %v4828_v19 = vld [vmem:[#allocation2 + $0x11] sm:$0xff] }
 0x617   :  { %13225 = vst [vmem:[#allocation27_spill] sm:$0xff] %v10982_v37 }
 0x618   :  { %4106 = vst [vmem:[#allocation2 + $0x30] sm:$0xff] %v12891_v63 }
 0x619   :  { %4107 = vst [vmem:[#allocation2 + $0x48] sm:$0xff] %v12887_v30  ;;  %v11083_v30 = vadd.f32 %v10768_v21, %v3928_v54  ;;  %v4827_v54 = vld [vmem:[#allocation2 + $0x9] sm:$0xff] }
 0x61a   :  { %4108 = vst [vmem:[#allocation2 + $0x50] sm:$0xff] %v12886_v33  ;;  %v3934_v33 = vmul.f32 %v10764_v56, %v13240_v53  ;;  %v4891_v37 = vpack.c.bf16 %v4828_v19, %v4827_v54  ;;  %v13243_v53 = vld [vmem:[#allocation56_spill] sm:$0xff]  ;;  %v13247_v19 = vmax.f32 %v11067_v44, 0.0 }
 0x61b   :  { %4109 = vst [vmem:[#allocation2 + $0x68] sm:$0xff] %v12885_v60  ;;  %v11075_v60 = vadd.f32 %v10768_v21, %v3927_v13  ;;  %v4170_v13 = vld [vmem:[#allocation2 + $0xf] sm:$0xff] }
 0x61c   :  { %4110 = vst [vmem:[#allocation2 + $0x70] sm:$0xff] %v12884_v17  ;;  %v3929_v17 = vmul.f32 %v10764_v56, %v13235_v16  ;;  %v4169_v16 = vld [vmem:[#allocation2 + $0x7] sm:$0xff]  ;;  %v11139_v54 = vadd.f32 %v10768_v21, %v3934_v33  ;;  %4995 = vmatmul.bf16.vlgmr.msrb.gmra.mxu3 %v4891_v37 }
 0x61d   :  { %4111 = vst [vmem:[#allocation2 + $0x88] sm:$0xff] %v12890_v61  ;;  %v13250_v33 = vld [vmem:[#allocation59_spill] sm:$0xff] }
 0x61e   :  { %4112 = vst [vmem:[#allocation2 + $0x90] sm:$0xff] %v12889_v29  ;;  %v13237_v29 = vld [vmem:[#allocation52_spill] sm:$0xff]  ;;  %v11091_v63 = vadd.f32 %v10768_v21, %v3929_v17  ;;  %v13242_v17 = vmax.f32 %v11048_v45, 0.0 }
 0x61f   :  { %4113 = vst [vmem:[#allocation2 + $0xa8] sm:$0xff] %v12888_v11  ;;  %v3931_v61 = vmul.f32 %v10764_v56, %v13237_v29  ;;  %v11102_v11 = vadd.f32 %v10768_v21, %v3930_v58  ;;  %v13239_v29 = vld [vmem:[#allocation54_spill] sm:$0xff] }
 0x620   :  { %4114 = vst [vmem:[#allocation2 + $0xb0] sm:$0xff] %v12892_v6  ;;  %v8911_v6 = vld [vmem:[%s12828_s4 + $0xf0] sm:$0xff] }
 0x621   :  { %4115 = vst [vmem:[#allocation2 + $0xc8] sm:$0xff] %v12893_v34  ;;  %v13238_v34 = vld [vmem:[#allocation53_spill] sm:$0xff]  ;;  %v11112_v20 = vadd.f32 %v10768_v21, %v3931_v61  ;;  %5381 = vmatpush.bf16.msrb.mxu0 %v8911_v6  ;;  %v3935_v61 = vmul.f32 %v10764_v56, %v13243_v53  ;;  %v13244_v6 = vmax.f32 %v11056_v5, 0.0  ;;  %v13248_v53 = vld [vmem:[#allocation58_spill] sm:$0xff] }
 0x622   :  { %4116 = vst [vmem:[#allocation2 + $0xd0] sm:$0xff] %v12895_v18  ;;  %v3932_v52 = vmul.f32 %v10764_v56, %v13238_v34  ;;  %v3933_v18 = vmul.f32 %v10764_v56, %v13239_v29  ;;  %v13241_v34 = vmax.f32 %v11040_v35, 0.0  ;;  %v4233_v29 = vpack.c.bf16 %v4170_v13, %v4169_v16  ;;  %v13246_v16 = vld [vmem:[#allocation57_spill] sm:$0xff] }
 0x623   :  { %4117 = vst [vmem:[#allocation2 + $0xe8] sm:$0xff] %v12898_v1  ;;  %v12899_v1 = vmax.f32 %v11083_v30, 0.0  ;;  %v3936_v13 = vmul.f32 %v10764_v56, %v13246_v16  ;;  %v13249_v16 = vmax.f32 %v11075_v60, 0.0  ;;  %v13256_v43 = vmax.f32 %v11112_v20, 0.0 }
 0x624   :  { %4118 = vst [vmem:[#allocation2 + $0xf0] sm:$0xff] %v13241_v34  ;;  %v11118_v58 = vadd.f32 %v10768_v21, %v3932_v52  ;;  %v11126_v39 = vadd.f32 %v10768_v21, %v3933_v18  ;;  %v8975_v52 = vld [vmem:[#allocation2 + $0x248] sm:$0xff]  ;;  %4666 = vmatmul.bf16.vlgmr.msrb.gmra.mxu2 %v4233_v29  ;;  %v3938_v18 = vmul.f32 %v10764_v56, %v13250_v33  ;;  %v13253_v33 = vld [vmem:[#allocation61_spill] sm:$0xff] }
 0x625   :  { %4119 = vst [vmem:[#allocation2 + $0x108] sm:$0xff] %v13242_v17  ;;  %v11131_v34 = vpack.c.bf16 %v8975_v52, %v8975_v52  ;;  %v8910_v17 = vld [vmem:[%s12828_s4 + $0xe8] sm:$0xff]  ;;  %v11147_v52 = vadd.f32 %v10768_v21, %v3935_v61  ;;  %v11156_v29 = vadd.f32 %v10768_v21, %v3936_v13  ;;  %v8909_v13 = vld [vmem:[%s12828_s4 + $0xe0] sm:$0xff]  ;;  %v3940_v37 = vmul.f32 %v10764_v56, %v13253_v33 }
 0x626   :  { %4120 = vst [vmem:[#allocation2 + $0x110] sm:$0xff] %v13244_v6  ;;  %v3937_v6 = vmul.f32 %v10764_v56, %v13248_v53  ;;  %5382 = vmatpush.bf16.msrb.mxu0 %v8910_v17  ;;  %v13251_v61 = vld [vmem:[#allocation60_spill] sm:$0xff]  ;;  %v13252_v17 = vmax.f32 %v11091_v63, 0.0 }
 0x627   :  { %13245 = vst [vmem:[#allocation28_spill] sm:$0xff] %v11131_v34  ;;  %4449 = vmatmul.bf16.vlgmr.msra.gmra.mxu1 %v11131_v34  ;;  %v13257_v33 = vld [vmem:[#allocation4_spill] sm:$0xff]  ;;  %v13264_v40 = vmax.f32 %v11147_v52, 0.0 }
 0x628   :  { %4121 = vst [vmem:[#allocation2 + $0x128] sm:$0xff] %v13247_v19  ;;  %v3939_v19 = vmul.f32 %v10764_v56, %v13251_v61  ;;  %v11164_v53 = vadd.f32 %v10768_v21, %v3937_v6  ;;  %v13254_v6 = vmax.f32 %v11102_v11, 0.0  ;;  %v4007_v61 = vadd.f32 %v10768_v21, %v3940_v37  ;;  %v13261_v37 = vld [vmem:[#allocation6_spill] sm:$0xff] }
 0x629   :  { %4122 = vst [vmem:[#allocation2 + $0x130] sm:$0xff] %v13249_v16  ;;  %v3941_v16 = vmul.f32 %v10764_v56, %v13255_v46  ;;  %v13259_v46 = vld [vmem:[#allocation5_spill] sm:$0xff] }
 0x62a   :  { %4123 = vst [vmem:[#allocation2 + $0x148] sm:$0xff] %v12899_v1  ;;  %v11175_v1 = vadd.f32 %v10768_v21, %v3938_v18  ;;  %5383 = vmatpush.bf16.msrb.mxu0 %v8909_v13  ;;  %v3942_v18 = vmul.f32 %v10764_v56, %v13257_v33  ;;  %v8908_v13 = vld [vmem:[%s12828_s4 + $0xd8] sm:$0xff]  ;;  %v3944_v33 = vmul.f32 %v10764_v56, %v13261_v37  ;;  %v4071_v3 = vmax.f32 %v4007_v61, 0.0 }
 0x62b   :  { %4124 = vst [vmem:[#allocation2 + $0x150] sm:$0xff] %v13252_v17  ;;  %v11183_v17 = vadd.f32 %v10768_v21, %v3939_v19  ;;  %v3943_v19 = vmul.f32 %v10764_v56, %v13259_v46  ;;  %v4008_v7 = vadd.f32 %v10768_v21, %v3941_v16  ;;  %v13263_v16 = vmax.f32 %v11139_v54, 0.0 }
 0x62c   :  { %4125 = vst [vmem:[#allocation2 + $0x168] sm:$0xff] %v13254_v6  ;;  %v13258_v6 = vmax.f32 %v11118_v58, 0.0  ;;  %v4009_v36 = vadd.f32 %v10768_v21, %v3942_v18  ;;  %v4069_v46 = vmax.f32 %v11175_v1, 0.0  ;;  %v3946_v37 = vmul.f32 %v10764_v56, %v13265_v57 }
 0x62d   :  { %4126 = vst [vmem:[#allocation2 + $0x170] sm:$0xff] %v13256_v43  ;;  %v13260_v43 = vmax.f32 %v11126_v39, 0.0  ;;  %v4010_v34 = vadd.f32 %v10768_v21, %v3943_v19  ;;  %v13266_v1 = vmax.f32 %v11156_v29, 0.0  ;;  %v13267_v19 = vmax.f32 %v11164_v53, 0.0 }
 0x62e   :  { %4127 = vst [vmem:[#allocation2 + $0x188] sm:$0xff] %v13258_v6  ;;  %v3945_v6 = vmul.f32 %v10764_v56, %v13262_v32  ;;  %5384 = vmatpush.bf16.msrb.mxu0 %v8908_v13  ;;  %v4011_v32 = vadd.f32 %v10768_v21, %v3944_v33  ;;  %v4073_v13 = vmax.f32 %v4009_v36, 0.0  ;;  %v8906_v33 = vld [vmem:[%s12828_s4 + $0xc8] sm:$0xff] }
 0x62f   :  { %4128 = vst [vmem:[#allocation2 + $0x190] sm:$0xff] %v13260_v43  ;;  %v4070_v43 = vmax.f32 %v11183_v17, 0.0  ;;  %v4013_v17 = vadd.f32 %v10768_v21, %v3946_v37  ;;  %v4074_v56 = vmax.f32 %v4010_v34, 0.0  ;;  %v13270_v34 = vmax.f32 %v10895_v4, 0.0 }
 0x630   :  { %4129 = vst [vmem:[#allocation2 + $0x1a8] sm:$0xff] %v13263_v16  ;;  %v4012_v18 = vadd.f32 %v10768_v21, %v3945_v6  ;;  %v4072_v16 = vmax.f32 %v4008_v7, 0.0  ;;  %v4075_v57 = vmax.f32 %v4011_v32, 0.0  ;;  %v8920_v7 = vld [vmem:[%s12828_s4 + $0x138] sm:$0xff]  ;;  %v13268_v6 = vmax.f32 %v10874_v51, 0.0 }
 0x631   :  { %4130 = vst [vmem:[#allocation2 + $0x1b0] sm:$0xff] %v13264_v40  ;;  %v8907_v40 = vld [vmem:[%s12828_s4 + $0xd0] sm:$0xff]  ;;  %v13269_v21 = vmax.f32 %v10877_v62, 0.0  ;;  %v13271_v37 = vmax.f32 %v10987_v59, 0.0  ;;  %v13274_v51 = vmax.f32 %v11016_v50, 0.0  ;;  %v13275_v62 = vmax.f32 %v11024_v38, 0.0  ;;  %5773 = vmatpush.bf16.msrb.mxu1 %v8920_v7 }
 0x632   :  { %4131 = vst [vmem:[#allocation2 + $0x1c8] sm:$0xff] %v13266_v1  ;;  %5385 = vmatpush.bf16.msrb.mxu0 %v8907_v40  ;;  %v4076_v61 = vmax.f32 %v4012_v18, 0.0  ;;  %v4172_v18 = vld [vmem:[#allocation2 + $0x2f] sm:$0xff]  ;;  %v13273_v40 = vmax.f32 %v11008_v27, 0.0  ;;  %v13276_v4 = vmax.f32 %v11032_v2, 0.0  ;;  %v13277_v59 = vmax.f32 %v11040_v35, 0.0 }
 0x633   :  { %4132 = vst [vmem:[#allocation2 + $0x1d0] sm:$0xff] %v13267_v19  ;;  %v4346_v36 = vpack.c.bf16 %v13269_v21, %v13268_v6  ;;  %v11241_v32 = vpack.c.bf16 %v13271_v37, %v13270_v34  ;;  %v4829_v1 = vld [vmem:[#allocation2 + $0x29] sm:$0xff]  ;;  %v13272_v19 = vmax.f32 %v10999_v14, 0.0  ;;  %v11253_v6 = vpack.c.bf16 %v13275_v62, %v13274_v51  ;;  %v4830_v37 = vld [vmem:[#allocation2 + $0x31] sm:$0xff]  ;;  %v13294_v51 = vld [vmem:[#allocation15_spill] sm:$0xff] }
 0x634   :  { %4133 = vst [vmem:[#allocation2 + $0x1e8] sm:$0xff] %v4069_v46  ;;  %v13278_v21 = vmax.f32 %v11048_v45, 0.0  ;;  %v13279_v14 = vmax.f32 %v11056_v5, 0.0  ;;  %v4077_v27 = vmax.f32 %v4013_v17, 0.0  ;;  %v13280_v38 = vmax.f32 %v11067_v44, 0.0  ;;  %v8905_v17 = vld [vmem:[%s12828_s4 + $0xc0] sm:$0xff] }
 0x635   :  { %4134 = vst [vmem:[#allocation2 + $0x1f0] sm:$0xff] %v4070_v43  ;;  %v11247_v0 = vpack.c.bf16 %v13273_v40, %v13272_v19  ;;  %v13281_v19 = vmax.f32 %v11075_v60, 0.0  ;;  %v13282_v35 = vmax.f32 %v11083_v30, 0.0  ;;  %v13283_v40 = vmax.f32 %v11091_v63, 0.0 }
 0x636   :  { %4135 = vst [vmem:[#allocation2 + $0x208] sm:$0xff] %v4071_v3  ;;  %v4171_v3 = vld [vmem:[#allocation2 + $0x27] sm:$0xff]  ;;  %v11265_v34 = vpack.c.bf16 %v13279_v14, %v13278_v21  ;;  %v4078_v5 = vmax.f32 %v10898_v28, 0.0  ;;  %5386 = vmatpush.bf16.msrb.mxu0 %v8906_v33  ;;  %v4892_v44 = vpack.c.bf16 %v4830_v37, %v4829_v1  ;;  %v13284_v60 = vmax.f32 %v11102_v11, 0.0  ;;  %v13298_v14 = vld [vmem:[#allocation33_spill] sm:$0xff] }
 0x637   :  { %4136 = vst [vmem:[#allocation2 + $0x210] sm:$0xff] %v4072_v16  ;;  %v11259_v16 = vpack.c.bf16 %v13277_v59, %v13276_v4  ;;  %v4234_v50 = vpack.c.bf16 %v4172_v18, %v4171_v3  ;;  %v11271_v2 = vpack.c.bf16 %v13281_v19, %v13280_v38  ;;  %v11277_v45 = vpack.c.bf16 %v13283_v40, %v13282_v35  ;;  %v13295_v4 = vld [vmem:[#allocation19_spill] sm:$0xff]  ;;  %v13300_v37 = vld [vmem:[#allocation24_spill] sm:$0xff]  ;;  %v13301_v19 = vld [vmem:[#allocation25_spill] sm:$0xff] }
 0x638   :  { %4137 = vst [vmem:[#allocation2 + $0x268] sm:$0xff] %v4073_v13  ;;  %4454 = vmatmul.bf16.gmra.mxu1 %v4346_v36  ;;  %v13285_v13 = vmax.f32 %v11112_v20, 0.0  ;;  %v4079_v63 = vmax.f32 %v10901_v10, 0.0  ;;  %v13286_v28 = vmax.f32 %v11118_v58, 0.0  ;;  %v13287_v30 = vmax.f32 %v11126_v39, 0.0  ;;  %5000 = vmatmul.bf16.gmra.mxu3 %v4892_v44  ;;  %v8919_v40 = vld [vmem:[%s12828_s4 + $0x130] sm:$0xff] }
 0x639   :  { %4138 = vst [vmem:[#allocation2 + $0x270] sm:$0xff] %v4074_v56  ;;  %4671 = vmatmul.bf16.gmra.mxu2 %v4234_v50  ;;  %v13288_v33 = vmax.f32 %v11139_v54, 0.0  ;;  %v13289_v36 = vmax.f32 %v11147_v52, 0.0  ;;  %v4080_v20 = vmax.f32 %v10904_v55, 0.0  ;;  %v13290_v10 = vmax.f32 %v11156_v29, 0.0  ;;  %v13303_v44 = vld [vmem:[#allocation27_spill] sm:$0xff]  ;;  %5774 = vmatpush.bf16.msrb.mxu1 %v8919_v40 }
 0x63a   :  { %v11287_v7 = vpack.c.bf16 %v13285_v13, %v13284_v60  ;;  %4139 = vst [vmem:[#allocation2 + $0x288] sm:$0xff] %v4075_v57  ;;  %v11294_v56 = vpack.c.bf16 %v13287_v30, %v13286_v28  ;;  %v13291_v11 = vmax.f32 %v11164_v53, 0.0  ;;  %v4081_v39 = vmax.f32 %v10907_v42, 0.0  ;;  %5387 = vmatpush.bf16.msrb.mxu0 %v8905_v17  ;;  %v4175_v13 = vld [vmem:[#allocation2 + $0x67] sm:$0xff]  ;;  %v4834_v30 = vld [vmem:[#allocation2 + $0x71] sm:$0xff] }
 0x63b   :  { %v11300_v3 = vpack.c.bf16 %v13289_v36, %v13288_v33  ;;  %4140 = vst [vmem:[#allocation2 + $0x290] sm:$0xff] %v4076_v61  ;;  %v11310_v58 = vpack.c.bf16 %v4070_v43, %v4069_v46  ;;  %v4082_v54 = vmax.f32 %v10910_v23, 0.0  ;;  %v4083_v52 = vmax.f32 %v10913_v25, 0.0  ;;  %v4174_v43 = vld [vmem:[#allocation2 + $0x4f] sm:$0xff]  ;;  %v4187_v40 = vld [vmem:[#allocation2 + $0x127] sm:$0xff] }
 0x63c   :  { %v11307_v57 = vpack.c.bf16 %v13291_v11, %v13290_v10  ;;  %4141 = vst [vmem:[#allocation2 + $0x2a8] sm:$0xff] %v4077_v27  ;;  %v4084_v55 = vmax.f32 %v10916_v9, 0.0  ;;  %v4085_v29 = vmax.f32 %v10922_v48, 0.0  ;;  %v4086_v53 = vmax.f32 %v10925_v22, 0.0  ;;  %v4173_v9 = vld [vmem:[#allocation2 + $0x47] sm:$0xff]  ;;  %v4832_v22 = vld [vmem:[#allocation2 + $0x51] sm:$0xff] }
 0x63d   :  { %4142 = vst [vmem:[#allocation2 + $0x2b0] sm:$0xff] %v4078_v5  ;;  %5388 = vmatmul.bf16.vlgmr.msrb.gmra.mxu0 %v4234_v50  ;;  %v4087_v42 = vmax.f32 %v10928_v12, 0.0  ;;  %v4088_v23 = vmax.f32 %v10931_v15, 0.0  ;;  %v4089_v46 = vmax.f32 %v10934_v31, 0.0  ;;  %v4090_v25 = vmax.f32 %v10937_v8, 0.0  ;;  %v4831_v61 = vld [vmem:[#allocation2 + $0x49] sm:$0xff] }
 0x63e   :  { %4143 = vst [vmem:[#allocation2 + $0x2c8] sm:$0xff] %v4079_v63  ;;  %v4091_v48 = vmax.f32 %v10940_v26, 0.0  ;;  %v4092_v18 = vmax.f32 %v10943_v47, 0.0  ;;  %v13292_v12 = vmax.f32 %v10880_v24, 0.0  ;;  %v13293_v15 = vmax.f32 %v10883_v41, 0.0  ;;  %v13296_v47 = vld [vmem:[#allocation18_spill] sm:$0xff] }
 0x63f   :  { %4144 = vst [vmem:[#allocation2 + $0x2d0] sm:$0xff] %v4080_v20  ;;  %v4093_v31 = vmax.f32 %v10949_v49, 0.0  ;;  %v4235_v8 = vpack.c.bf16 %v4174_v43, %v4173_v9  ;;  %v4094_v62 = vmax.f32 %v13294_v51, 0.0  ;;  %v4893_v26 = vpack.c.bf16 %v4832_v22, %v4831_v61  ;;  %v13297_v24 = vld [vmem:[#allocation21_spill] sm:$0xff]  ;;  %v13299_v27 = vld [vmem:[#allocation23_spill] sm:$0xff]  ;;  %v13302_v5 = vld [vmem:[#allocation26_spill] sm:$0xff] }
 0x640   :  { %4145 = vst [vmem:[#allocation2 + $0x2e8] sm:$0xff] %v4081_v39  ;;  %v4347_v1 = vpack.c.bf16 %v13293_v15, %v13292_v12  ;;  %v4095_v59 = vmax.f32 %v13295_v4, 0.0  ;;  %v4096_v21 = vmax.f32 %v13296_v47, 0.0  ;;  %v4097_v41 = vmax.f32 %v13297_v24, 0.0  ;;  %v4176_v63 = vld [vmem:[#allocation2 + $0x6f] sm:$0xff]  ;;  %v4181_v22 = vld [vmem:[#allocation2 + $0xc7] sm:$0xff] }
 0x641   :  { %4146 = vst [vmem:[#allocation2 + $0x2f0] sm:$0xff] %v4082_v54  ;;  %v4098_v49 = vmax.f32 %v13298_v14, 0.0  ;;  %v4099_v50 = vmax.f32 %v13299_v27, 0.0  ;;  %v4100_v38 = vmax.f32 %v13300_v37, 0.0  ;;  %v4101_v35 = vmax.f32 %v13301_v19, 0.0  ;;  %v4833_v28 = vld [vmem:[#allocation2 + $0x69] sm:$0xff] }
 0x642   :  { %4147 = vst [vmem:[#allocation2 + $0x308] sm:$0xff] %v4083_v52  ;;  %v4102_v17 = vmax.f32 %v13302_v5, 0.0  ;;  %v4103_v60 = vmax.f32 %v13303_v44, 0.0  ;;  %v13304_v33 = vld [vmem:[#allocation13_spill] sm:$0xff]  ;;  %v4236_v39 = vpack.c.bf16 %v4176_v63, %v4175_v13  ;;  %v4894_v54 = vpack.c.bf16 %v4834_v30, %v4833_v28  ;;  %v4177_v52 = vld [vmem:[#allocation2 + $0x87] sm:$0xff] }
 0x643   :  { %4148 = vst [vmem:[#allocation2 + $0x310] sm:$0xff] %v4084_v55  ;;  %v13305_v36 = vmax.f32 %v13304_v33, 0.0  ;;  %v13306_v20 = vld [vmem:[#allocation17_spill] sm:$0xff] }
 0x644   :  { %4149 = vst [vmem:[#allocation2 + $0x328] sm:$0xff] %v4085_v29  ;;  %v13307_v10 = vmax.f32 %v13306_v20, 0.0  ;;  %v4178_v55 = vld [vmem:[#allocation2 + $0x8f] sm:$0xff] }
 0x645   :  { %4150 = vst [vmem:[#allocation2 + $0x330] sm:$0xff] %v4086_v53  ;;  %v4835_v29 = vld [vmem:[#allocation2 + $0x89] sm:$0xff]  ;;  %v4836_v53 = vld [vmem:[#allocation2 + $0x91] sm:$0xff] }
 0x646   :  { %4151 = vst [vmem:[#allocation2 + $0x348] sm:$0xff] %v4087_v42  ;;  %v4348_v11 = vpack.c.bf16 %v13307_v10, %v13305_v36  ;;  %v4237_v42 = vpack.c.bf16 %v4178_v55, %v4177_v52  ;;  %v4837_v9 = vld [vmem:[#allocation2 + $0xa9] sm:$0xff]  ;;  %v4838_v43 = vld [vmem:[#allocation2 + $0xb1] sm:$0xff] }
 0x647   :  { %4152 = vst [vmem:[#allocation2 + $0x350] sm:$0xff] %v4088_v23  ;;  %v4895_v23 = vpack.c.bf16 %v4836_v53, %v4835_v29  ;;  %v4896_v61 = vpack.c.bf16 %v4838_v43, %v4837_v9  ;;  %v4839_v12 = vld [vmem:[#allocation2 + $0xc9] sm:$0xff]  ;;  %v4840_v15 = vld [vmem:[#allocation2 + $0xd1] sm:$0xff] }
 0x648   :  { %4153 = vst [vmem:[#allocation2 + $0x368] sm:$0xff] %v4089_v46  ;;  %4459 = vmatmul.bf16.gmra.mxu1 %v4347_v1  ;;  %5005 = vmatmul.bf16.gmra.mxu3 %v4893_v26  ;;  %v4179_v46 = vld [vmem:[#allocation2 + $0xa7] sm:$0xff]  ;;  %v4897_v1 = vpack.c.bf16 %v4840_v15, %v4839_v12  ;;  %v4844_v24 = vld [vmem:[#allocation2 + $0x111] sm:$0xff] }
 0x649   :  { %4154 = vst [vmem:[#allocation2 + $0x370] sm:$0xff] %v4090_v25  ;;  %4676 = vmatmul.bf16.gmra.mxu2 %v4235_v8  ;;  %v4180_v25 = vld [vmem:[#allocation2 + $0xaf] sm:$0xff]  ;;  %v4189_v52 = vld [vmem:[#allocation2 + $0x147] sm:$0xff] }
 0x64a   :  { %4155 = vst [vmem:[#allocation2 + $0x388] sm:$0xff] %v4091_v48  ;;  %v4238_v48 = vpack.c.bf16 %v4180_v25, %v4179_v46  ;;  %v4841_v51 = vld [vmem:[#allocation2 + $0xe9] sm:$0xff]  ;;  %v4846_v13 = vld [vmem:[#allocation2 + $0x131] sm:$0xff] }
 0x64b   :  { %4156 = vst [vmem:[#allocation2 + $0x390] sm:$0xff] %v4092_v18  ;;  %v4182_v18 = vld [vmem:[#allocation2 + $0xcf] sm:$0xff] }
 0x64c   :  { %4157 = vst [vmem:[#allocation2 + $0x3a8] sm:$0xff] %v4093_v31  ;;  %v4183_v31 = vld [vmem:[#allocation2 + $0xe7] sm:$0xff]  ;;  %v4188_v5 = vld [vmem:[#allocation2 + $0x12f] sm:$0xff] }
 0x64d   :  { %4158 = vst [vmem:[#allocation2 + $0x3b0] sm:$0xff] %v4094_v62  ;;  %5393 = vmatmul.bf16.gmra.mxu0 %v4235_v8  ;;  %v4184_v8 = vld [vmem:[#allocation2 + $0xef] sm:$0xff]  ;;  %v4242_v63 = vpack.c.bf16 %v4188_v5, %v4187_v40 }
 0x64e   :  { %4159 = vst [vmem:[#allocation2 + $0x3c8] sm:$0xff] %v4095_v59  ;;  %v4842_v62 = vld [vmem:[#allocation2 + $0xf1] sm:$0xff]  ;;  %v4240_v26 = vpack.c.bf16 %v4184_v8, %v4183_v31 }
 0x64f   :  { %4160 = vst [vmem:[#allocation2 + $0x3d0] sm:$0xff] %v4096_v21  ;;  %v4898_v4 = vpack.c.bf16 %v4842_v62, %v4841_v51  ;;  %v4186_v59 = vld [vmem:[#allocation2 + $0x10f] sm:$0xff] }
 0x650   :  { %4161 = vst [vmem:[#allocation2 + $0x3e8] sm:$0xff] %v4097_v41  ;;  %v4843_v21 = vld [vmem:[#allocation2 + $0x109] sm:$0xff]  ;;  %v4848_v46 = vld [vmem:[#allocation2 + $0x151] sm:$0xff] }
 0x651   :  { %4162 = vst [vmem:[#allocation2 + $0x3f0] sm:$0xff] %v4098_v49  ;;  %v4899_v14 = vpack.c.bf16 %v4844_v24, %v4843_v21  ;;  %v4190_v55 = vld [vmem:[#allocation2 + $0x14f] sm:$0xff] }
 0x652   :  { %4163 = vst [vmem:[#allocation2 + $0x408] sm:$0xff] %v4099_v50  ;;  %v4243_v9 = vpack.c.bf16 %v4190_v55, %v4189_v52  ;;  %v4192_v51 = vld [vmem:[#allocation2 + $0x16f] sm:$0xff] }
 0x653   :  { %4164 = vst [vmem:[#allocation2 + $0x410] sm:$0xff] %v4100_v38  ;;  %v4194_v40 = vld [vmem:[#allocation2 + $0x18f] sm:$0xff] }
 0x654   :  { %4165 = vst [vmem:[#allocation2 + $0x428] sm:$0xff] %v4101_v35 }
 0x655   :  { %4166 = vst [vmem:[#allocation2 + $0x430] sm:$0xff] %v4102_v17 }
 0x656   :  { %4167 = vst [vmem:[#allocation2 + $0x448] sm:$0xff] %v4103_v60  ;;  %v4845_v60 = vld [vmem:[#allocation2 + $0x129] sm:$0xff] }
 0x658   :  { %4464 = vmatmul.bf16.gmra.mxu1 %v4348_v11  ;;  %5010 = vmatmul.bf16.gmra.mxu3 %v4894_v54 }
 0x659   :  { %4681 = vmatmul.bf16.gmra.mxu2 %v4236_v39 }
 0x65d   :  { %5398 = vmatmul.bf16.gmra.mxu0 %v4236_v39 }
 0x668   :  { %4469 = vmatmul.bf16.gmra.mxu1 %v11241_v32  ;;  %5015 = vmatmul.bf16.gmra.mxu3 %v4895_v23  ;;  %v4239_v32 = vpack.c.bf16 %v4182_v18, %v4181_v22  ;;  %v4847_v23 = vld [vmem:[#allocation2 + $0x149] sm:$0xff] }
 0x669   :  { %4686 = vmatmul.bf16.gmra.mxu2 %v4237_v42  ;;  %v4901_v43 = vpack.c.bf16 %v4848_v46, %v4847_v23 }
 0x66d   :  { %5403 = vmatmul.bf16.gmra.mxu0 %v4237_v42 }
 0x678   :  { %4474 = vmatmul.bf16.gmra.mxu1 %v11247_v0  ;;  %5020 = vmatmul.bf16.gmra.mxu3 %v4896_v61  ;;  %v8918_v0 = vld [vmem:[%s12828_s4 + $0x128] sm:$0xff] }
 0x679   :  { %4691 = vmatmul.bf16.gmra.mxu2 %v4238_v48  ;;  %5775 = vmatpush.bf16.msrb.mxu1 %v8918_v0 }
 0x67d   :  { %5408 = vmatmul.bf16.gmra.mxu0 %v4238_v48 }
 0x688   :  { %4479 = vmatmul.bf16.gmra.mxu1 %v11253_v6  ;;  %5025 = vmatmul.bf16.gmra.mxu3 %v4897_v1  ;;  %v4185_v6 = vld [vmem:[#allocation2 + $0x107] sm:$0xff] }
 0x689   :  { %4696 = vmatmul.bf16.gmra.mxu2 %v4239_v32  ;;  %v4241_v41 = vpack.c.bf16 %v4186_v59, %v4185_v6  ;;  %v8917_v1 = vld [vmem:[%s12828_s4 + $0x120] sm:$0xff]  ;;  %v4849_v6 = vld [vmem:[#allocation2 + $0x169] sm:$0xff]  ;;  %v4850_v59 = vld [vmem:[#allocation2 + $0x171] sm:$0xff] }
 0x68a   :  { %5776 = vmatpush.bf16.msrb.mxu1 %v8917_v1  ;;  %v4902_v24 = vpack.c.bf16 %v4850_v59, %v4849_v6 }
 0x68d   :  { %5413 = vmatmul.bf16.gmra.mxu0 %v4239_v32 }
 0x698   :  { %4484 = vmatmul.bf16.gmra.mxu1 %v11259_v16  ;;  %5030 = vmatmul.bf16.gmra.mxu3 %v4898_v4 }
 0x699   :  { %4701 = vmatmul.bf16.gmra.mxu2 %v4240_v26 }
 0x69d   :  { %5418 = vmatmul.bf16.gmra.mxu0 %v4240_v26 }
 0x69f   :  { %v4996_v27 = vpop.f32.mrf.mxu3 }
 0x6a4   :  { %v4450_v47 = vpop.f32.mrf.mxu1 }
 0x6a7   :  { %v4667_v49 = vpop.f32.mrf.mxu2  ;;  %v4998_v19 = vpop.f32.mrf.mxu3 }
 0x6a8   :  { %4489 = vmatmul.bf16.gmra.mxu1 %v11265_v34  ;;  %5035 = vmatmul.bf16.gmra.mxu3 %v4899_v14  ;;  %v4668_v50 = vadd.f32 %v4667_v49, %v4450_v47  ;;  %v4900_v34 = vpack.c.bf16 %v4846_v13, %v4845_v60  ;;  %v4851_v60 = vld [vmem:[#allocation2 + $0x189] sm:$0xff]  ;;  %v4852_v13 = vld [vmem:[#allocation2 + $0x191] sm:$0xff] }
 0x6a9   :  { %4706 = vmatmul.bf16.gmra.mxu2 %v4241_v41 }
 0x6aa   :  { %v5156_v37 = vadd.f32 %v4996_v27, %v4668_v50 }
 0x6ac   :  { %v4452_v16 = vpop.f32.mrf.mxu1 }
 0x6ad   :  { %5423 = vmatmul.bf16.gmra.mxu0 %v4241_v41 }
 0x6af   :  { %v4669_v38 = vpop.f32.mrf.mxu2 }
 0x6b0   :  { %v4670_v35 = vadd.f32 %v4669_v38, %v4452_v16 }
 0x6b2   :  { %v5157_v17 = vadd.f32 %v4998_v19, %v4670_v35  ;;  %v4193_v35 = vld [vmem:[#allocation2 + $0x187] sm:$0xff] }
 0x6b5   :  { %v4455_v44 = vpop.f32.mrf.mxu1 }
 0x6b8   :  { %4494 = vmatmul.bf16.gmra.mxu1 %v11271_v2  ;;  %5040 = vmatmul.bf16.gmra.mxu3 %v4900_v34  ;;  %v4245_v34 = vpack.c.bf16 %v4194_v40, %v4193_v35  ;;  %v8916_v40 = vld [vmem:[%s12828_s4 + $0x118] sm:$0xff] }
 0x6b9   :  { %4711 = vmatmul.bf16.gmra.mxu2 %v4242_v63  ;;  %5777 = vmatpush.bf16.msrb.mxu1 %v8916_v40 }
 0x6ba   :  { %v5389_v28 = vpop.f32.mrf.mxu0 }
 0x6bb   :  { %v11354_v33 = vadd.f32 %v5389_v28, %v5156_v37  ;;  %v5001_v20 = vpop.f32.mrf.mxu3  ;;  %v4903_v28 = vpack.c.bf16 %v4852_v13, %v4851_v60 }
 0x6bc   :  { %v4672_v30 = vpop.f32.mrf.mxu2 }
 0x6bd   :  { %v4673_v36 = vadd.f32 %v4672_v30, %v4455_v44  ;;  %v4457_v10 = vpop.f32.mrf.mxu1  ;;  %5428 = vmatmul.bf16.gmra.mxu0 %v4242_v63 }
 0x6bf   :  { %v5158_v11 = vadd.f32 %v5001_v20, %v4673_v36 }
 0x6c2   :  { %v5391_v39 = vpop.f32.mrf.mxu0 }
 0x6c3   :  { %v11356_v29 = vadd.f32 %v5391_v39, %v5157_v17  ;;  %v5003_v2 = vpop.f32.mrf.mxu3 }
 0x6c4   :  { %v4674_v54 = vpop.f32.mrf.mxu2 }
 0x6c5   :  { %v4675_v53 = vadd.f32 %v4674_v54, %v4457_v10  ;;  %v4460_v42 = vpop.f32.mrf.mxu1 }
 0x6c7   :  { %v5159_v25 = vadd.f32 %v5003_v2, %v4675_v53  ;;  %v4195_v53 = vld [vmem:[#allocation2 + $0x1a7] sm:$0xff]  ;;  %v4196_v2 = vld [vmem:[#allocation2 + $0x1af] sm:$0xff] }
 0x6c8   :  { %4499 = vmatmul.bf16.gmra.mxu1 %v11277_v45  ;;  %5045 = vmatmul.bf16.gmra.mxu3 %v4901_v43  ;;  %v4191_v45 = vld [vmem:[#allocation2 + $0x167] sm:$0xff] }
 0x6c9   :  { %4716 = vmatmul.bf16.gmra.mxu2 %v4243_v9  ;;  %v4244_v21 = vpack.c.bf16 %v4192_v51, %v4191_v45 }
 0x6ca   :  { %v5394_v48 = vpop.f32.mrf.mxu0 }
 0x6cb   :  { %v11359_v22 = vadd.f32 %v5394_v48, %v5158_v11  ;;  %v5006_v12 = vpop.f32.mrf.mxu3  ;;  %v4246_v48 = vpack.c.bf16 %v4196_v2, %v4195_v53 }
 0x6cc   :  { %v4677_v61 = vpop.f32.mrf.mxu2 }
 0x6cd   :  { %v4678_v18 = vadd.f32 %v4677_v61, %v4460_v42  ;;  %v4462_v15 = vpop.f32.mrf.mxu1  ;;  %5433 = vmatmul.bf16.gmra.mxu0 %v4243_v9  ;;  %v4854_v9 = vld [vmem:[#allocation2 + $0x1b1] sm:$0xff] }
 0x6cf   :  { %v5160_v32 = vadd.f32 %v5006_v12, %v4678_v18 }
 0x6d2   :  { %v5396_v31 = vpop.f32.mrf.mxu0 }
 0x6d3   :  { %v11364_v62 = vadd.f32 %v5396_v31, %v5159_v25  ;;  %v5008_v26 = vpop.f32.mrf.mxu3  ;;  %v4853_v25 = vld [vmem:[#allocation2 + $0x1a9] sm:$0xff] }
 0x6d4   :  { %v4679_v8 = vpop.f32.mrf.mxu2  ;;  %v4904_v61 = vpack.c.bf16 %v4854_v9, %v4853_v25  ;;  %v4859_v25 = vld [vmem:[#allocation2 + $0x249] sm:$0xff]  ;;  %v4860_v9 = vld [vmem:[#allocation2 + $0x251] sm:$0xff] }
 0x6d5   :  { %v4680_v0 = vadd.f32 %v4679_v8, %v4462_v15  ;;  %v4465_v4 = vpop.f32.mrf.mxu1 }
 0x6d7   :  { %v5161_v47 = vadd.f32 %v5008_v26, %v4680_v0  ;;  %v4197_v0 = vld [vmem:[#allocation2 + $0x1c7] sm:$0xff]  ;;  %v4198_v26 = vld [vmem:[#allocation2 + $0x1cf] sm:$0xff] }
 0x6d8   :  { %4504 = vmatmul.bf16.gmra.mxu1 %v11287_v7  ;;  %5050 = vmatmul.bf16.gmra.mxu3 %v4902_v24 }
 0x6d9   :  { %4721 = vmatmul.bf16.gmra.mxu2 %v4244_v21 }
 0x6da   :  { %v5399_v41 = vpop.f32.mrf.mxu0 }
 0x6db   :  { %v11367_v49 = vadd.f32 %v5399_v41, %v5160_v32  ;;  %v5011_v50 = vpop.f32.mrf.mxu3  ;;  %v4247_v41 = vpack.c.bf16 %v4198_v26, %v4197_v0 }
 0x6dc   :  { %v4682_v14 = vpop.f32.mrf.mxu2 }
 0x6dd   :  { %v4683_v27 = vadd.f32 %v4682_v14, %v4465_v4  ;;  %v4467_v37 = vpop.f32.mrf.mxu1  ;;  %5438 = vmatmul.bf16.gmra.mxu0 %v4244_v21  ;;  %v4856_v21 = vld [vmem:[#allocation2 + $0x1d1] sm:$0xff] }
 0x6df   :  { %v5162_v16 = vadd.f32 %v5011_v50, %v4683_v27 }
 0x6e2   :  { %v5401_v38 = vpop.f32.mrf.mxu0 }
 0x6e3   :  { %v11369_v5 = vadd.f32 %v5401_v38, %v5161_v47  ;;  %v5013_v7 = vpop.f32.mrf.mxu3  ;;  %v4855_v47 = vld [vmem:[#allocation2 + $0x1c9] sm:$0xff] }
 0x6e4   :  { %v4684_v19 = vpop.f32.mrf.mxu2  ;;  %v4905_v14 = vpack.c.bf16 %v4856_v21, %v4855_v47 }
 0x6e5   :  { %v4685_v17 = vadd.f32 %v4684_v19, %v4467_v37  ;;  %v4470_v44 = vpop.f32.mrf.mxu1 }
 0x6e7   :  { %v5163_v63 = vadd.f32 %v5013_v7, %v4685_v17 }
 0x6e8   :  { %4509 = vmatmul.bf16.gmra.mxu1 %v11294_v56  ;;  %5055 = vmatmul.bf16.gmra.mxu3 %v4903_v28  ;;  %v4857_v28 = vld [vmem:[#allocation2 + $0x1e9] sm:$0xff] }
 0x6e9   :  { %4726 = vmatmul.bf16.gmra.mxu2 %v4245_v34 }
 0x6ea   :  { %v5404_v30 = vpop.f32.mrf.mxu0 }
 0x6eb   :  { %v11372_v20 = vadd.f32 %v5404_v30, %v5162_v16  ;;  %v5016_v11 = vpop.f32.mrf.mxu3  ;;  %v4858_v30 = vld [vmem:[#allocation2 + $0x1f1] sm:$0xff] }
 0x6ec   :  { %v4687_v36 = vpop.f32.mrf.mxu2 }
 0x6ed   :  { %v4688_v10 = vadd.f32 %v4687_v36, %v4470_v44  ;;  %v4472_v39 = vpop.f32.mrf.mxu1  ;;  %5443 = vmatmul.bf16.gmra.mxu0 %v4245_v34  ;;  %v4200_v44 = vld [vmem:[#allocation2 + $0x1ef] sm:$0xff] }
 0x6ef   :  { %v5164_v54 = vadd.f32 %v5016_v11, %v4688_v10  ;;  %v4906_v11 = vpack.c.bf16 %v4858_v30, %v4857_v28 }
 0x6f2   :  { %v5406_v52 = vpop.f32.mrf.mxu0 }
 0x6f3   :  { %v11374_v42 = vadd.f32 %v5406_v52, %v5163_v63  ;;  %v5018_v56 = vpop.f32.mrf.mxu3 }
 0x6f4   :  { %v4689_v55 = vpop.f32.mrf.mxu2 }
 0x6f5   :  { %v4690_v23 = vadd.f32 %v4689_v55, %v4472_v39  ;;  %v4475_v46 = vpop.f32.mrf.mxu1 }
 0x6f7   :  { %v5165_v43 = vadd.f32 %v5018_v56, %v4690_v23  ;;  %v4201_v56 = vld [vmem:[#allocation2 + $0x247] sm:$0xff] }
 0x6f8   :  { %4514 = vmatmul.bf16.gmra.mxu1 %v11300_v3  ;;  %5060 = vmatmul.bf16.gmra.mxu3 %v4904_v61 }
 0x6f9   :  { %4731 = vmatmul.bf16.gmra.mxu2 %v4246_v48 }
 0x6fa   :  { %v5409_v18 = vpop.f32.mrf.mxu0 }
 0x6fb   :  { %v11377_v15 = vadd.f32 %v5409_v18, %v5164_v54  ;;  %v5021_v1 = vpop.f32.mrf.mxu3 }
 0x6fc   :  { %v4692_v12 = vpop.f32.mrf.mxu2 }
 0x6fd   :  { %v4693_v32 = vadd.f32 %v4692_v12, %v4475_v46  ;;  %v4477_v31 = vpop.f32.mrf.mxu1  ;;  %5448 = vmatmul.bf16.gmra.mxu0 %v4246_v48  ;;  %v4202_v46 = vld [vmem:[#allocation2 + $0x24f] sm:$0xff] }
 0x6ff   :  { %v5166_v8 = vadd.f32 %v5021_v1, %v4693_v32  ;;  %v4249_v32 = vpack.c.bf16 %v4202_v46, %v4201_v56  ;;  %v4907_v1 = vpack.c.bf16 %v4860_v9, %v4859_v25  ;;  %v4205_v56 = vld [vmem:[#allocation2 + $0x287] sm:$0xff]  ;;  %v4206_v46 = vld [vmem:[#allocation2 + $0x28f] sm:$0xff] }
 0x702   :  { %v5411_v45 = vpop.f32.mrf.mxu0 }
 0x703   :  { %v11379_v4 = vadd.f32 %v5411_v45, %v5165_v43  ;;  %v5023_v3 = vpop.f32.mrf.mxu3  ;;  %v5250_v45 = vld [vmem:[#allocation2 + $0x207] sm:$0xff] }
 0x704   :  { %v4694_v51 = vpop.f32.mrf.mxu2 }
 0x705   :  { %v4695_v6 = vadd.f32 %v4694_v51, %v4477_v31  ;;  %v4480_v59 = vpop.f32.mrf.mxu1  ;;  %v5251_v51 = vld [vmem:[#allocation2 + $0x20f] sm:$0xff] }
 0x707   :  { %v5167_v24 = vadd.f32 %v5023_v3, %v4695_v6  ;;  %v5299_v3 = vpack.c.bf16 %v5251_v51, %v5250_v45 }
 0x708   :  { %4519 = vmatmul.bf16.gmra.mxu1 %v11307_v57  ;;  %5065 = vmatmul.bf16.gmra.mxu3 %v4905_v14  ;;  %v4199_v57 = vld [vmem:[#allocation2 + $0x1e7] sm:$0xff]  ;;  %v4316_v14 = vld [vmem:[#allocation2 + $0x270] sm:$0xff] }
 0x709   :  { %4736 = vmatmul.bf16.gmra.mxu2 %v4247_v41  ;;  %v4248_v10 = vpack.c.bf16 %v4200_v44, %v4199_v57  ;;  %v4862_v57 = vld [vmem:[#allocation2 + $0x271] sm:$0xff] }
 0x70a   :  { %v5414_v27 = vpop.f32.mrf.mxu0 }
 0x70b   :  { %v11382_v37 = vadd.f32 %v5414_v27, %v5166_v8  ;;  %v5026_v38 = vpop.f32.mrf.mxu3  ;;  %v13308_v8 = vld [vmem:[#allocation28_spill] sm:$0xff] }
 0x70c   :  { %v4697_v50 = vpop.f32.mrf.mxu2 }
 0x70d   :  { %v4698_v16 = vadd.f32 %v4697_v50, %v4480_v59  ;;  %v4482_v19 = vpop.f32.mrf.mxu1  ;;  %5453 = vmatmul.bf16.gmra.mxu0 %v4247_v41  ;;  %v4315_v41 = vld [vmem:[#allocation2 + $0x268] sm:$0xff] }
 0x70e   :  { %v4362_v44 = vpack.c.bf16 %v4316_v14, %v4315_v41 }
 0x70f   :  { %v5168_v35 = vadd.f32 %v5026_v38, %v4698_v16  ;;  %v4203_v16 = vld [vmem:[#allocation2 + $0x267] sm:$0xff]  ;;  %v4204_v38 = vld [vmem:[#allocation2 + $0x26f] sm:$0xff] }
 0x712   :  { %v5416_v17 = vpop.f32.mrf.mxu0 }
 0x713   :  { %v11387_v60 = vadd.f32 %v5416_v17, %v5167_v24  ;;  %v5028_v63 = vpop.f32.mrf.mxu3 }
 0x714   :  { %v4699_v7 = vpop.f32.mrf.mxu2 }
 0x715   :  { %v4700_v13 = vadd.f32 %v4699_v7, %v4482_v19  ;;  %v4485_v34 = vpop.f32.mrf.mxu1  ;;  %v4861_v7 = vld [vmem:[#allocation2 + $0x269] sm:$0xff] }
 0x717   :  { %v5169_v36 = vadd.f32 %v5028_v63, %v4700_v13  ;;  %v4250_v63 = vpack.c.bf16 %v4204_v38, %v4203_v16 }
 0x718   :  { %4524 = vmatmul.bf16.gmra.mxu1 %v11310_v58  ;;  %5070 = vmatmul.bf16.gmra.mxu3 %v4906_v11 }
 0x719   :  { %4741 = vmatmul.bf16.gmra.mxu2 %v4248_v10 }
 0x71a   :  { %v5419_v39 = vpop.f32.mrf.mxu0 }
 0x71b   :  { %v11390_v52 = vadd.f32 %v5419_v39, %v5168_v35  ;;  %v5031_v53 = vpop.f32.mrf.mxu3 }
 0x71c   :  { %v4702_v54 = vpop.f32.mrf.mxu2 }
 0x71d   :  { %v4703_v55 = vadd.f32 %v4702_v54, %v4485_v34  ;;  %v4487_v2 = vpop.f32.mrf.mxu1  ;;  %5458 = vmatmul.bf16.gmra.mxu0 %v4248_v10  ;;  %v4908_v34 = vpack.c.bf16 %v4862_v57, %v4861_v7  ;;  %v4866_v7 = vld [vmem:[#allocation2 + $0x2b1] sm:$0xff] }
 0x71f   :  { %v5170_v23 = vadd.f32 %v5031_v53, %v4703_v55  ;;  %v4317_v55 = vld [vmem:[#allocation2 + $0x288] sm:$0xff]  ;;  %v4318_v53 = vld [vmem:[#allocation2 + $0x290] sm:$0xff] }
 0x722   :  { %v5421_v43 = vpop.f32.mrf.mxu0 }
 0x723   :  { %v11392_v61 = vadd.f32 %v5421_v43, %v5169_v36  ;;  %v5033_v18 = vpop.f32.mrf.mxu3 }
 0x724   :  { %v4704_v48 = vpop.f32.mrf.mxu2 }
 0x725   :  { %v4705_v58 = vadd.f32 %v4704_v48, %v4487_v2  ;;  %v4490_v12 = vpop.f32.mrf.mxu1 }
 0x727   :  { %v5171_v31 = vadd.f32 %v5033_v18, %v4705_v58  ;;  %v4863_v58 = vld [vmem:[#allocation2 + $0x289] sm:$0xff]  ;;  %v4864_v18 = vld [vmem:[#allocation2 + $0x291] sm:$0xff] }
 0x728   :  { %4529 = vmatmul.bf16.gmra.mxu1 %v13308_v8  ;;  %5075 = vmatmul.bf16.gmra.mxu3 %v4907_v1  ;;  %v4251_v1 = vpack.c.bf16 %v4206_v46, %v4205_v56  ;;  %v4209_v56 = vld [vmem:[#allocation2 + $0x2c7] sm:$0xff]  ;;  %v4210_v46 = vld [vmem:[#allocation2 + $0x2cf] sm:$0xff] }
 0x729   :  { %4746 = vmatmul.bf16.gmra.mxu2 %v4249_v32 }
 0x72a   :  { %v5424_v0 = vpop.f32.mrf.mxu0 }
 0x72b   :  { %v11395_v6 = vadd.f32 %v5424_v0, %v5170_v23  ;;  %v5036_v47 = vpop.f32.mrf.mxu3 }
 0x72c   :  { %v4707_v26 = vpop.f32.mrf.mxu2 }
 0x72d   :  { %v4708_v59 = vadd.f32 %v4707_v26, %v4490_v12  ;;  %v4492_v21 = vpop.f32.mrf.mxu1  ;;  %5463 = vmatmul.bf16.gmra.mxu0 %v5299_v3  ;;  %v4363_v12 = vpack.c.bf16 %v4318_v53, %v4317_v55  ;;  %v4321_v55 = vld [vmem:[#allocation2 + $0x2c8] sm:$0xff]  ;;  %v4322_v53 = vld [vmem:[#allocation2 + $0x2d0] sm:$0xff] }
 0x72f   :  { %v5172_v24 = vadd.f32 %v5036_v47, %v4708_v59  ;;  %v8915_v47 = vld [vmem:[%s12828_s4 + $0x110] sm:$0xff] }
 0x730   :  { %5778 = vmatpush.bf16.msrb.mxu1 %v8915_v47 }
 0x732   :  { %v5426_v27 = vpop.f32.mrf.mxu0 }
 0x733   :  { %v11397_v19 = vadd.f32 %v5426_v27, %v5171_v31  ;;  %v5038_v40 = vpop.f32.mrf.mxu3  ;;  %v4909_v31 = vpack.c.bf16 %v4864_v18, %v4863_v58  ;;  %v4207_v27 = vld [vmem:[#allocation2 + $0x2a7] sm:$0xff] }
 0x734   :  { %v4709_v50 = vpop.f32.mrf.mxu2  ;;  %v4867_v18 = vld [vmem:[#allocation2 + $0x2c9] sm:$0xff] }
 0x735   :  { %v4710_v35 = vadd.f32 %v4709_v50, %v4492_v21  ;;  %v4495_v17 = vpop.f32.mrf.mxu1  ;;  %v4319_v21 = vld [vmem:[#allocation2 + $0x2a8] sm:$0xff] }
 0x736   :  { %v4208_v50 = vld [vmem:[#allocation2 + $0x2af] sm:$0xff] }
 0x737   :  { %v5173_v13 = vadd.f32 %v5038_v40, %v4710_v35 }
 0x738   :  { %4534 = vmatmul.bf16.gmra.mxu1 %v4362_v44  ;;  %5080 = vmatmul.bf16.gmra.mxu3 %v4908_v34 }
 0x739   :  { %4751 = vmatmul.bf16.gmra.mxu2 %v4250_v63 }
 0x73a   :  { %v5429_v28 = vpop.f32.mrf.mxu0 }
 0x73b   :  { %v11399_v36 = vadd.f32 %v5429_v28, %v5172_v24  ;;  %v5041_v11 = vpop.f32.mrf.mxu3  ;;  %v4320_v24 = vld [vmem:[#allocation2 + $0x2b0] sm:$0xff] }
 0x73c   :  { %v4712_v30 = vpop.f32.mrf.mxu2  ;;  %v4364_v57 = vpack.c.bf16 %v4320_v24, %v4319_v21  ;;  %v4323_v24 = vld [vmem:[#allocation2 + $0x2e8] sm:$0xff] }
 0x73d   :  { %v4713_v10 = vadd.f32 %v4712_v30, %v4495_v17  ;;  %v4497_v39 = vpop.f32.mrf.mxu1  ;;  %5468 = vmatmul.bf16.gmra.mxu0 %v4250_v63  ;;  %v4865_v17 = vld [vmem:[#allocation2 + $0x2a9] sm:$0xff] }
 0x73e   :  { %v4910_v63 = vpack.c.bf16 %v4866_v7, %v4865_v17 }
 0x73f   :  { %v5174_v54 = vadd.f32 %v5041_v11, %v4713_v10 }
 0x742   :  { %v5431_v2 = vpop.f32.mrf.mxu0 }
 0x743   :  { %v11401_v25 = vadd.f32 %v5431_v2, %v5173_v13  ;;  %v5043_v43 = vpop.f32.mrf.mxu3  ;;  %v4252_v13 = vpack.c.bf16 %v4208_v50, %v4207_v27  ;;  %v4211_v50 = vld [vmem:[#allocation2 + $0x2e7] sm:$0xff] }
 0x744   :  { %v4714_v23 = vpop.f32.mrf.mxu2 }
 0x745   :  { %v4715_v9 = vadd.f32 %v4714_v23, %v4497_v39  ;;  %v4500_v48 = vpop.f32.mrf.mxu1 }
 0x747   :  { %v5175_v32 = vadd.f32 %v5043_v43, %v4715_v9 }
 0x748   :  { %4539 = vmatmul.bf16.gmra.mxu1 %v4363_v12  ;;  %5085 = vmatmul.bf16.gmra.mxu3 %v4909_v31  ;;  %v4868_v12 = vld [vmem:[#allocation2 + $0x2d1] sm:$0xff]  ;;  %v4253_v31 = vpack.c.bf16 %v4210_v46, %v4209_v56 }
 0x749   :  { %4756 = vmatmul.bf16.gmra.mxu2 %v4251_v1  ;;  %v4326_v56 = vld [vmem:[#allocation2 + $0x310] sm:$0xff] }
 0x74a   :  { %v5434_v8 = vpop.f32.mrf.mxu0 }
 0x74b   :  { %v11403_v51 = vadd.f32 %v5434_v8, %v5174_v54  ;;  %v5046_v26 = vpop.f32.mrf.mxu3  ;;  %v4911_v8 = vpack.c.bf16 %v4868_v12, %v4867_v18 }
 0x74c   :  { %v4717_v45 = vpop.f32.mrf.mxu2 }
 0x74d   :  { %v4718_v0 = vadd.f32 %v4717_v45, %v4500_v48  ;;  %v4502_v3 = vpop.f32.mrf.mxu1  ;;  %5473 = vmatmul.bf16.gmra.mxu0 %v4251_v1 }
 0x74f   :  { %v5176_v59 = vadd.f32 %v5046_v26, %v4718_v0 }
 0x752   :  { %v5436_v41 = vpop.f32.mrf.mxu0 }
 0x753   :  { %v11408_v16 = vadd.f32 %v5436_v41, %v5175_v32  ;;  %v5048_v35 = vpop.f32.mrf.mxu3  ;;  %v4365_v32 = vpack.c.bf16 %v4322_v53, %v4321_v55  ;;  %v4324_v41 = vld [vmem:[#allocation2 + $0x2f0] sm:$0xff] }
 0x754   :  { %v4719_v14 = vpop.f32.mrf.mxu2 }
 0x755   :  { %v4720_v38 = vadd.f32 %v4719_v14, %v4502_v3  ;;  %v4505_v40 = vpop.f32.mrf.mxu1 }
 0x757   :  { %v5177_v44 = vadd.f32 %v5048_v35, %v4720_v38  ;;  %v4212_v38 = vld [vmem:[#allocation2 + $0x2ef] sm:$0xff] }
 0x758   :  { %4544 = vmatmul.bf16.gmra.mxu1 %v4364_v57  ;;  %5090 = vmatmul.bf16.gmra.mxu3 %v4910_v63  ;;  %v4869_v57 = vld [vmem:[#allocation2 + $0x2e9] sm:$0xff] }
 0x759   :  { %4761 = vmatmul.bf16.gmra.mxu2 %v4252_v13 }
 0x75a   :  { %v5439_v34 = vpop.f32.mrf.mxu0 }
 0x75b   :  { %v11410_v30 = vadd.f32 %v5439_v34, %v5176_v59  ;;  %v5051_v11 = vpop.f32.mrf.mxu3  ;;  %v4254_v34 = vpack.c.bf16 %v4212_v38, %v4211_v50  ;;  %v8914_v38 = vld [vmem:[%s12828_s4 + $0x108] sm:$0xff] }
 0x75c   :  { %v4722_v28 = vpop.f32.mrf.mxu2  ;;  %5779 = vmatpush.bf16.msrb.mxu1 %v8914_v38 }
 0x75d   :  { %v4723_v10 = vadd.f32 %v4722_v28, %v4505_v40  ;;  %v4507_v39 = vpop.f32.mrf.mxu1  ;;  %5478 = vmatmul.bf16.gmra.mxu0 %v4252_v13  ;;  %v4366_v13 = vpack.c.bf16 %v4324_v41, %v4323_v24 }
 0x75f   :  { %v5178_v54 = vadd.f32 %v5051_v11, %v4723_v10 }
 0x762   :  { %v5441_v2 = vpop.f32.mrf.mxu0 }
 0x763   :  { %v11412_v9 = vadd.f32 %v5441_v2, %v5177_v44  ;;  %v5053_v48 = vpop.f32.mrf.mxu3  ;;  %v4870_v44 = vld [vmem:[#allocation2 + $0x2f1] sm:$0xff] }
 0x764   :  { %v4724_v23 = vpop.f32.mrf.mxu2  ;;  %v4912_v28 = vpack.c.bf16 %v4870_v44, %v4869_v57  ;;  %v4215_v44 = vld [vmem:[#allocation2 + $0x327] sm:$0xff] }
 0x765   :  { %v4725_v43 = vadd.f32 %v4724_v23, %v4507_v39  ;;  %v4510_v58 = vpop.f32.mrf.mxu1  ;;  %v4325_v23 = vld [vmem:[#allocation2 + $0x308] sm:$0xff] }
 0x767   :  { %v5179_v1 = vadd.f32 %v5053_v48, %v4725_v43  ;;  %v4213_v48 = vld [vmem:[#allocation2 + $0x307] sm:$0xff] }
 0x768   :  { %4549 = vmatmul.bf16.gmra.mxu1 %v4365_v32  ;;  %5095 = vmatmul.bf16.gmra.mxu3 %v4911_v8  ;;  %v4872_v8 = vld [vmem:[#allocation2 + $0x311] sm:$0xff] }
 0x769   :  { %4766 = vmatmul.bf16.gmra.mxu2 %v4253_v31 }
 0x76a   :  { %v5444_v45 = vpop.f32.mrf.mxu0 }
 0x76b   :  { %v11414_v26 = vadd.f32 %v5444_v45, %v5178_v54  ;;  %v5056_v59 = vpop.f32.mrf.mxu3  ;;  %v4367_v45 = vpack.c.bf16 %v4326_v56, %v4325_v23 }
 0x76c   :  { %v4727_v0 = vpop.f32.mrf.mxu2 }
 0x76d   :  { %v4728_v3 = vadd.f32 %v4727_v0, %v4510_v58  ;;  %v4512_v47 = vpop.f32.mrf.mxu1  ;;  %5483 = vmatmul.bf16.gmra.mxu0 %v4253_v31  ;;  %v4214_v58 = vld [vmem:[#allocation2 + $0x30f] sm:$0xff] }
 0x76e   :  { %v4871_v31 = vld [vmem:[#allocation2 + $0x309] sm:$0xff] }
 0x76f   :  { %v5180_v21 = vadd.f32 %v5056_v59, %v4728_v3  ;;  %v4255_v3 = vpack.c.bf16 %v4214_v58, %v4213_v48  ;;  %v4913_v59 = vpack.c.bf16 %v4872_v8, %v4871_v31  ;;  %v4330_v31 = vld [vmem:[#allocation2 + $0x350] sm:$0xff] }
 0x772   :  { %v5446_v14 = vpop.f32.mrf.mxu0 }
 0x773   :  { %v11416_v35 = vadd.f32 %v5446_v14, %v5179_v1  ;;  %v5058_v17 = vpop.f32.mrf.mxu3 }
 0x774   :  { %v4729_v27 = vpop.f32.mrf.mxu2 }
 0x775   :  { %v4730_v40 = vadd.f32 %v4729_v27, %v4512_v47  ;;  %v4515_v7 = vpop.f32.mrf.mxu1 }
 0x777   :  { %v5181_v63 = vadd.f32 %v5058_v17, %v4730_v40  ;;  %v4327_v40 = vld [vmem:[#allocation2 + $0x328] sm:$0xff]  ;;  %v4328_v17 = vld [vmem:[#allocation2 + $0x330] sm:$0xff] }
 0x778   :  { %4554 = vmatmul.bf16.gmra.mxu1 %v4366_v13  ;;  %5100 = vmatmul.bf16.gmra.mxu3 %v4912_v28  ;;  %v4216_v13 = vld [vmem:[#allocation2 + $0x32f] sm:$0xff] }
 0x779   :  { %4771 = vmatmul.bf16.gmra.mxu2 %v4254_v34 }
 0x77a   :  { %v5449_v10 = vpop.f32.mrf.mxu0 }
 0x77b   :  { %v11418_v39 = vadd.f32 %v5449_v10, %v5180_v21  ;;  %v5061_v55 = vpop.f32.mrf.mxu3 }
 0x77c   :  { %v4732_v11 = vpop.f32.mrf.mxu2 }
 0x77d   :  { %v4733_v54 = vadd.f32 %v4732_v11, %v4515_v7  ;;  %v4517_v53 = vpop.f32.mrf.mxu1  ;;  %5488 = vmatmul.bf16.gmra.mxu0 %v4254_v34  ;;  %v4873_v11 = vld [vmem:[#allocation2 + $0x329] sm:$0xff] }
 0x77f   :  { %v5182_v2 = vadd.f32 %v5061_v55, %v4733_v54  ;;  %v4874_v54 = vld [vmem:[#allocation2 + $0x331] sm:$0xff]  ;;  %v4368_v55 = vpack.c.bf16 %v4328_v17, %v4327_v40 }
 0x780   :  { %v4914_v23 = vpack.c.bf16 %v4874_v54, %v4873_v11  ;;  %v4331_v11 = vld [vmem:[#allocation2 + $0x368] sm:$0xff]  ;;  %v4332_v54 = vld [vmem:[#allocation2 + $0x370] sm:$0xff] }
 0x782   :  { %v5451_v46 = vpop.f32.mrf.mxu0 }
 0x783   :  { %v11420_v18 = vadd.f32 %v5451_v46, %v5181_v63  ;;  %v5063_v32 = vpop.f32.mrf.mxu3 }
 0x784   :  { %v4734_v43 = vpop.f32.mrf.mxu2 }
 0x785   :  { %v4735_v12 = vadd.f32 %v4734_v43, %v4517_v53  ;;  %v4520_v1 = vpop.f32.mrf.mxu1 }
 0x787   :  { %v5183_v0 = vadd.f32 %v5063_v32, %v4735_v12 }
 0x788   :  { %4559 = vmatmul.bf16.gmra.mxu1 %v4367_v45  ;;  %5105 = vmatmul.bf16.gmra.mxu3 %v4913_v59 }
 0x789   :  { %4776 = vmatmul.bf16.gmra.mxu2 %v4255_v3 }
 0x78a   :  { %v5454_v47 = vpop.f32.mrf.mxu0 }
 0x78b   :  { %v11422_v24 = vadd.f32 %v5454_v47, %v5182_v2  ;;  %v5066_v14 = vpop.f32.mrf.mxu3  ;;  %v4256_v2 = vpack.c.bf16 %v4216_v13, %v4215_v44 }
 0x78c   :  { %v4737_v21 = vpop.f32.mrf.mxu2 }
 0x78d   :  { %v4738_v41 = vadd.f32 %v4737_v21, %v4520_v1  ;;  %v4522_v27 = vpop.f32.mrf.mxu1  ;;  %5493 = vmatmul.bf16.gmra.mxu0 %v4255_v3  ;;  %v4329_v1 = vld [vmem:[#allocation2 + $0x348] sm:$0xff] }
 0x78e   :  { %v4218_v3 = vld [vmem:[#allocation2 + $0x34f] sm:$0xff] }
 0x78f   :  { %v5184_v50 = vadd.f32 %v5066_v14, %v4738_v41  ;;  %v4875_v14 = vld [vmem:[#allocation2 + $0x349] sm:$0xff] }
 0x792   :  { %v5456_v7 = vpop.f32.mrf.mxu0 }
 0x793   :  { %v11427_v63 = vadd.f32 %v5456_v7, %v5183_v0  ;;  %v5068_v28 = vpop.f32.mrf.mxu3  ;;  %v4217_v0 = vld [vmem:[#allocation2 + $0x347] sm:$0xff] }
 0x794   :  { %v4739_v57 = vpop.f32.mrf.mxu2  ;;  %v4257_v40 = vpack.c.bf16 %v4218_v3, %v4217_v0 }
 0x795   :  { %v4740_v34 = vadd.f32 %v4739_v57, %v4522_v27  ;;  %v4525_v10 = vpop.f32.mrf.mxu1  ;;  %v4876_v27 = vld [vmem:[#allocation2 + $0x351] sm:$0xff] }
 0x796   :  { %v4915_v17 = vpack.c.bf16 %v4876_v27, %v4875_v14 }
 0x797   :  { %v5185_v53 = vadd.f32 %v5068_v28, %v4740_v34 }
 0x798   :  { %4564 = vmatmul.bf16.gmra.mxu1 %v4368_v55  ;;  %5110 = vmatmul.bf16.gmra.mxu3 %v4914_v23  ;;  %v4220_v23 = vld [vmem:[#allocation2 + $0x36f] sm:$0xff] }
 0x799   :  { %4781 = vmatmul.bf16.gmra.mxu2 %v4256_v2 }
 0x79a   :  { %v5459_v56 = vpop.f32.mrf.mxu0 }
 0x79b   :  { %v11429_v43 = vadd.f32 %v5459_v56, %v5184_v50  ;;  %v5071_v58 = vpop.f32.mrf.mxu3  ;;  %v4369_v50 = vpack.c.bf16 %v4330_v31, %v4329_v1  ;;  %v4878_v1 = vld [vmem:[#allocation2 + $0x371] sm:$0xff] }
 0x79c   :  { %v4742_v46 = vpop.f32.mrf.mxu2 }
 0x79d   :  { %v4743_v48 = vadd.f32 %v4742_v46, %v4525_v10  ;;  %v4527_v12 = vpop.f32.mrf.mxu1  ;;  %5498 = vmatmul.bf16.gmra.mxu0 %v4256_v2  ;;  %v4219_v2 = vld [vmem:[#allocation2 + $0x367] sm:$0xff] }
 0x79f   :  { %v5186_v32 = vadd.f32 %v5071_v58, %v4743_v48 }
 0x7a2   :  { %v5461_v8 = vpop.f32.mrf.mxu0 }
 0x7a3   :  { %v11431_v59 = vadd.f32 %v5461_v8, %v5185_v53  ;;  %v5073_v21 = vpop.f32.mrf.mxu3  ;;  %v4258_v8 = vpack.c.bf16 %v4220_v23, %v4219_v2 }
 0x7a4   :  { %v4744_v45 = vpop.f32.mrf.mxu2 }
 0x7a5   :  { %v4745_v47 = vadd.f32 %v4744_v45, %v4527_v12  ;;  %v4530_v41 = vpop.f32.mrf.mxu1  ;;  %v4877_v12 = vld [vmem:[#allocation2 + $0x369] sm:$0xff] }
 0x7a6   :  { %v4916_v45 = vpack.c.bf16 %v4878_v1, %v4877_v12 }
 0x7a7   :  { %v5187_v38 = vadd.f32 %v5073_v21, %v4745_v47 }
 0x7a8   :  { %4569 = vmatmul.bf16.gmra.mxu1 %v4369_v50  ;;  %5115 = vmatmul.bf16.gmra.mxu3 %v4915_v17  ;;  %v4333_v50 = vld [vmem:[#allocation2 + $0x388] sm:$0xff] }
 0x7a9   :  { %4786 = vmatmul.bf16.gmra.mxu2 %v4257_v40 }
 0x7aa   :  { %v5464_v7 = vpop.f32.mrf.mxu0 }
 0x7ab   :  { %v11433_v44 = vadd.f32 %v5464_v7, %v5186_v32  ;;  %v5076_v34 = vpop.f32.mrf.mxu3  ;;  %v4370_v32 = vpack.c.bf16 %v4332_v54, %v4331_v11  ;;  %v4221_v7 = vld [vmem:[#allocation2 + $0x387] sm:$0xff] }
 0x7ac   :  { %v4747_v57 = vpop.f32.mrf.mxu2  ;;  %v4879_v54 = vld [vmem:[#allocation2 + $0x389] sm:$0xff] }
 0x7ad   :  { %v4748_v13 = vadd.f32 %v4747_v57, %v4530_v41  ;;  %v4532_v28 = vpop.f32.mrf.mxu1  ;;  %5503 = vmatmul.bf16.gmra.mxu0 %v4257_v40  ;;  %v4222_v57 = vld [vmem:[#allocation2 + $0x38f] sm:$0xff] }
 0x7ae   :  { %v4259_v2 = vpack.c.bf16 %v4222_v57, %v4221_v7  ;;  %v4882_v7 = vld [vmem:[#allocation2 + $0x3b1] sm:$0xff] }
 0x7af   :  { %v5188_v10 = vadd.f32 %v5076_v34, %v4748_v13 }
 0x7b2   :  { %v5466_v55 = vpop.f32.mrf.mxu0 }
 0x7b3   :  { %v11435_v56 = vadd.f32 %v5466_v55, %v5187_v38  ;;  %v5078_v48 = vpop.f32.mrf.mxu3  ;;  %v4334_v38 = vld [vmem:[#allocation2 + $0x390] sm:$0xff] }
 0x7b4   :  { %v4749_v53 = vpop.f32.mrf.mxu2  ;;  %v4880_v55 = vld [vmem:[#allocation2 + $0x391] sm:$0xff] }
 0x7b5   :  { %v4750_v46 = vadd.f32 %v4749_v53, %v4532_v28  ;;  %v4535_v58 = vpop.f32.mrf.mxu1  ;;  %v4917_v23 = vpack.c.bf16 %v4880_v55, %v4879_v54 }
 0x7b7   :  { %v5189_v31 = vadd.f32 %v5078_v48, %v4750_v46 }
 0x7b8   :  { %4574 = vmatmul.bf16.gmra.mxu1 %v4370_v32  ;;  %5120 = vmatmul.bf16.gmra.mxu3 %v4916_v45  ;;  %v4335_v45 = vld [vmem:[#allocation2 + $0x3a8] sm:$0xff] }
 0x7b9   :  { %4791 = vmatmul.bf16.gmra.mxu2 %v4258_v8 }
 0x7ba   :  { %v5469_v0 = vpop.f32.mrf.mxu0 }
 0x7bb   :  { %v11437_v47 = vadd.f32 %v5469_v0, %v5188_v10  ;;  %v5081_v41 = vpop.f32.mrf.mxu3  ;;  %v4371_v10 = vpack.c.bf16 %v4334_v38, %v4333_v50  ;;  %v4336_v0 = vld [vmem:[#allocation2 + $0x3b0] sm:$0xff] }
 0x7bc   :  { %v4752_v3 = vpop.f32.mrf.mxu2  ;;  %v4372_v57 = vpack.c.bf16 %v4336_v0, %v4335_v45  ;;  %v4226_v45 = vld [vmem:[#allocation2 + $0x3cf] sm:$0xff] }
 0x7bd   :  { %v4753_v21 = vadd.f32 %v4752_v3, %v4535_v58  ;;  %v4537_v14 = vpop.f32.mrf.mxu1  ;;  %5508 = vmatmul.bf16.gmra.mxu0 %v4258_v8  ;;  %v8913_v8 = vld [vmem:[%s12828_s4 + $0x100] sm:$0xff] }
 0x7be   :  { %5780 = vmatpush.bf16.msrb.mxu1 %v8913_v8  ;;  %v4225_v8 = vld [vmem:[#allocation2 + $0x3c7] sm:$0xff] }
 0x7bf   :  { %v5190_v27 = vadd.f32 %v5081_v41, %v4753_v21  ;;  %v4223_v41 = vld [vmem:[#allocation2 + $0x3a7] sm:$0xff] }
 0x7c2   :  { %v5471_v40 = vpop.f32.mrf.mxu0 }
 0x7c3   :  { %v11439_v13 = vadd.f32 %v5471_v40, %v5189_v31  ;;  %v5083_v28 = vpop.f32.mrf.mxu3 }
 0x7c4   :  { %v4754_v17 = vpop.f32.mrf.mxu2 }
 0x7c5   :  { %v4755_v34 = vadd.f32 %v4754_v17, %v4537_v14  ;;  %v4540_v11 = vpop.f32.mrf.mxu1  ;;  %v4224_v14 = vld [vmem:[#allocation2 + $0x3af] sm:$0xff] }
 0x7c6   :  { %v4881_v17 = vld [vmem:[#allocation2 + $0x3a9] sm:$0xff] }
 0x7c7   :  { %v5191_v53 = vadd.f32 %v5083_v28, %v4755_v34  ;;  %v4260_v28 = vpack.c.bf16 %v4224_v14, %v4223_v41  ;;  %v4883_v14 = vld [vmem:[#allocation2 + $0x3c9] sm:$0xff] }
 0x7c8   :  { %4579 = vmatmul.bf16.gmra.mxu1 %v4371_v10  ;;  %5125 = vmatmul.bf16.gmra.mxu3 %v4917_v23 }
 0x7c9   :  { %4796 = vmatmul.bf16.gmra.mxu2 %v4259_v2 }
 0x7ca   :  { %v5474_v46 = vpop.f32.mrf.mxu0 }
 0x7cb   :  { %v11441_v58 = vadd.f32 %v5474_v46, %v5190_v27  ;;  %v5086_v1 = vpop.f32.mrf.mxu3 }
 0x7cc   :  { %v4757_v48 = vpop.f32.mrf.mxu2 }
 0x7cd   :  { %v4758_v12 = vadd.f32 %v4757_v48, %v4540_v11  ;;  %v4542_v32 = vpop.f32.mrf.mxu1  ;;  %5513 = vmatmul.bf16.gmra.mxu0 %v4259_v2  ;;  %v4918_v11 = vpack.c.bf16 %v4882_v7, %v4881_v17  ;;  %v4337_v48 = vld [vmem:[#allocation2 + $0x3c8] sm:$0xff] }
 0x7cf   :  { %v5192_v31 = vadd.f32 %v5086_v1, %v4758_v12  ;;  %v4338_v12 = vld [vmem:[#allocation2 + $0x3d0] sm:$0xff] }
 0x7d2   :  { %v5476_v3 = vpop.f32.mrf.mxu0 }
 0x7d3   :  { %v11446_v50 = vadd.f32 %v5476_v3, %v5191_v53  ;;  %v5088_v38 = vpop.f32.mrf.mxu3 }
 0x7d4   :  { %v4759_v21 = vpop.f32.mrf.mxu2 }
 0x7d5   :  { %v4760_v27 = vadd.f32 %v4759_v21, %v4542_v32  ;;  %v4545_v40 = vpop.f32.mrf.mxu1 }
 0x7d7   :  { %v5193_v34 = vadd.f32 %v5088_v38, %v4760_v27  ;;  %v4884_v27 = vld [vmem:[#allocation2 + $0x3d1] sm:$0xff] }
 0x7d8   :  { %4584 = vmatmul.bf16.gmra.mxu1 %v4372_v57  ;;  %5130 = vmatmul.bf16.gmra.mxu3 %v4918_v11  ;;  %v4919_v17 = vpack.c.bf16 %v4884_v27, %v4883_v14  ;;  %v4886_v14 = vld [vmem:[#allocation2 + $0x3f1] sm:$0xff] }
 0x7d9   :  { %4801 = vmatmul.bf16.gmra.mxu2 %v4260_v28  ;;  %v8927_v27 = vld [vmem:[%s12828_s4 + $0x170] sm:$0xff] }
 0x7da   :  { %v5479_v54 = vpop.f32.mrf.mxu0 }
 0x7db   :  { %v11448_v10 = vadd.f32 %v5479_v54, %v5192_v31  ;;  %v5091_v23 = vpop.f32.mrf.mxu3  ;;  %v4373_v31 = vpack.c.bf16 %v4338_v12, %v4337_v48  ;;  %v4340_v48 = vld [vmem:[#allocation2 + $0x3f0] sm:$0xff] }
 0x7dc   :  { %v4762_v55 = vpop.f32.mrf.mxu2 }
 0x7dd   :  { %v4763_v2 = vadd.f32 %v4762_v55, %v4545_v40  ;;  %v4547_v53 = vpop.f32.mrf.mxu1  ;;  %5518 = vmatmul.bf16.gmra.mxu0 %v4260_v28  ;;  %v4261_v40 = vpack.c.bf16 %v4226_v45, %v4225_v8  ;;  %v4885_v8 = vld [vmem:[#allocation2 + $0x3e9] sm:$0xff] }
 0x7df   :  { %v5194_v46 = vadd.f32 %v5091_v23, %v4763_v2  ;;  %v8928_v2 = vld [vmem:[%s12828_s4 + $0x178] sm:$0xff] }
 0x7e0   :  { %v8936_v23 = vld [vmem:[%s12828_s4 + $0x1b8] sm:$0xff]  ;;  %6166 = vmatpush.bf16.msra.mxu2 %v8928_v2 }
 0x7e1   :  { %6559 = vmatpush.bf16.msra.mxu3 %v8936_v23 }
 0x7e2   :  { %v5481_v1 = vpop.f32.mrf.mxu0 }
 0x7e3   :  { %v11450_v0 = vadd.f32 %v5481_v1, %v5193_v34  ;;  %v5093_v21 = vpop.f32.mrf.mxu3  ;;  %v4227_v1 = vld [vmem:[#allocation2 + $0x3e7] sm:$0xff] }
 0x7e4   :  { %v4764_v32 = vpop.f32.mrf.mxu2  ;;  %6167 = vmatpush.bf16.msra.mxu2 %v8927_v27 }
 0x7e5   :  { %v4765_v3 = vadd.f32 %v4764_v32, %v4547_v53  ;;  %v4550_v41 = vpop.f32.mrf.mxu1  ;;  %v4339_v53 = vld [vmem:[#allocation2 + $0x3e8] sm:$0xff] }
 0x7e6   :  { %v4228_v32 = vld [vmem:[#allocation2 + $0x3ef] sm:$0xff] }
 0x7e7   :  { %v5195_v38 = vadd.f32 %v5093_v21, %v4765_v3 }
 0x7e8   :  { %4589 = vmatmul.bf16.gmra.mxu1 %v4373_v31  ;;  %5135 = vmatmul.bf16.gmra.mxu3 %v4919_v17  ;;  %v8935_v31 = vld [vmem:[%s12828_s4 + $0x1b0] sm:$0xff] }
 0x7e9   :  { %4806 = vmatmul.bf16.gmra.mxu2 %v4261_v40  ;;  %6560 = vmatpush.bf16.msra.mxu3 %v8935_v31  ;;  %v4230_v31 = vld [vmem:[#allocation2 + $0x40f] sm:$0xff] }
 0x7ea   :  { %v5484_v7 = vpop.f32.mrf.mxu0 }
 0x7eb   :  { %v11452_v28 = vadd.f32 %v5484_v7, %v5194_v46  ;;  %v5096_v54 = vpop.f32.mrf.mxu3  ;;  %v4262_v7 = vpack.c.bf16 %v4228_v32, %v4227_v1  ;;  %v8924_v32 = vld [vmem:[%s12828_s4 + $0x158] sm:$0xff] }
 0x7ec   :  { %v4767_v57 = vpop.f32.mrf.mxu2 }
 0x7ed   :  { %v4768_v11 = vadd.f32 %v4767_v57, %v4550_v41  ;;  %v4552_v34 = vpop.f32.mrf.mxu1  ;;  %5523 = vmatmul.bf16.gmra.mxu0 %v4261_v40  ;;  %v4374_v40 = vpack.c.bf16 %v4340_v48, %v4339_v53  ;;  %v8934_v57 = vld [vmem:[%s12828_s4 + $0x1a8] sm:$0xff] }
 0x7ee   :  { %6561 = vmatpush.bf16.msra.mxu3 %v8934_v57 }
 0x7ef   :  { %v5196_v55 = vadd.f32 %v5096_v54, %v4768_v11  ;;  %v4920_v11 = vpack.c.bf16 %v4886_v14, %v4885_v8  ;;  %v8932_v8 = vld [vmem:[%s12828_s4 + $0x198] sm:$0xff] }
 0x7f2   :  { %v5486_v12 = vpop.f32.mrf.mxu0 }
 0x7f3   :  { %v11460_v45 = vadd.f32 %v5486_v12, %v5195_v38  ;;  %v5098_v21 = vpop.f32.mrf.mxu3  ;;  %v8926_v38 = vld [vmem:[%s12828_s4 + $0x168] sm:$0xff]  ;;  %v8925_v12 = vld [vmem:[%s12828_s4 + $0x160] sm:$0xff] }
 0x7f4   :  { %v4769_v46 = vpop.f32.mrf.mxu2  ;;  %6168 = vmatpush.bf16.msra.mxu2 %v8926_v38 }
 0x7f5   :  { %13309 = vst [vmem:[#allocation29_spill] sm:$0xff] %v11460_v45  ;;  %v4770_v3 = vadd.f32 %v4769_v46, %v4552_v34  ;;  %v4555_v41 = vpop.f32.mrf.mxu1  ;;  %v8933_v46 = vld [vmem:[%s12828_s4 + $0x1a0] sm:$0xff]  ;;  %v5615_v45 = vld [vmem:[#allocation2 + $0x48] sm:$0xff] }
 0x7f6   :  { %6562 = vmatpush.bf16.msra.mxu3 %v8933_v46 }
 0x7f7   :  { %v5197_v17 = vadd.f32 %v5098_v21, %v4770_v3  ;;  %v4341_v3 = vld [vmem:[#allocation2 + $0x408] sm:$0xff]  ;;  %v4342_v21 = vld [vmem:[#allocation2 + $0x410] sm:$0xff] }
 0x7f8   :  { %4594 = vmatmul.bf16.gmra.mxu1 %v4374_v40  ;;  %5140 = vmatmul.bf16.gmra.mxu3 %v4920_v11  ;;  %v4887_v40 = vld [vmem:[#allocation2 + $0x409] sm:$0xff] }
 0x7f9   :  { %4811 = vmatmul.bf16.gmra.mxu2 %v4262_v7 }
 0x7fa   :  { %v5489_v54 = vpop.f32.mrf.mxu0  ;;  %6169 = vmatpush.bf16.msra.mxu2 %v8925_v12  ;;  %6563 = vmatpush.bf16.msra.mxu3 %v8932_v8  ;;  %v4375_v12 = vpack.c.bf16 %v4342_v21, %v4341_v3  ;;  %v8930_v8 = vld [vmem:[%s12828_s4 + $0x188] sm:$0xff] }
 0x7fb   :  { %v11474_v2 = vadd.f32 %v5489_v54, %v5196_v55  ;;  %v5101_v53 = vpop.f32.mrf.mxu3  ;;  %v8944_v55 = vld [vmem:[%s12828_s4 + $0x1f8] sm:$0xff] }
 0x7fc   :  { %v4772_v34 = vpop.f32.mrf.mxu2  ;;  %6952 = vmatpush.bf16.msra.mxu0 %v8944_v55 }
 0x7fd   :  { %13310 = vst [vmem:[#allocation62_spill] sm:$0xff] %v11474_v2  ;;  %v4773_v23 = vadd.f32 %v4772_v34, %v4555_v41  ;;  %v4557_v48 = vpop.f32.mrf.mxu1  ;;  %5528 = vmatmul.bf16.gmra.mxu0 %v4262_v7  ;;  %v4229_v41 = vld [vmem:[#allocation2 + $0x407] sm:$0xff]  ;;  %v4888_v7 = vld [vmem:[#allocation2 + $0x411] sm:$0xff] }
 0x7fe   :  { %6170 = vmatpush.bf16.msra.mxu2 %v8924_v32  ;;  %v8923_v34 = vld [vmem:[%s12828_s4 + $0x150] sm:$0xff]  ;;  %v4263_v32 = vpack.c.bf16 %v4230_v31, %v4229_v41  ;;  %v4921_v55 = vpack.c.bf16 %v4888_v7, %v4887_v40  ;;  %v8921_v40 = vld [vmem:[%s12828_s4 + $0x140] sm:$0xff] }
 0x7ff   :  { %v5198_v1 = vadd.f32 %v5101_v53, %v4773_v23  ;;  %v8931_v23 = vld [vmem:[%s12828_s4 + $0x190] sm:$0xff]  ;;  %v8929_v7 = vld [vmem:[%s12828_s4 + $0x180] sm:$0xff] }
 0x800   :  { %v8943_v53 = vld [vmem:[%s12828_s4 + $0x1f0] sm:$0xff]  ;;  %6564 = vmatpush.bf16.msra.mxu3 %v8931_v23 }
 0x801   :  { %6953 = vmatpush.bf16.msra.mxu0 %v8943_v53  ;;  %v4344_v23 = vld [vmem:[#allocation2 + $0x430] sm:$0xff] }
 0x802   :  { %v5491_v14 = vpop.f32.mrf.mxu0  ;;  %6171 = vmatpush.bf16.msra.mxu2 %v8923_v34  ;;  %v4343_v34 = vld [vmem:[#allocation2 + $0x428] sm:$0xff] }
 0x803   :  { %v11491_v38 = vadd.f32 %v5491_v14, %v5197_v17  ;;  %v5103_v11 = vpop.f32.mrf.mxu3  ;;  %v8922_v17 = vld [vmem:[%s12828_s4 + $0x148] sm:$0xff] }
 0x804   :  { %v4774_v27 = vpop.f32.mrf.mxu2  ;;  %6565 = vmatpush.bf16.msra.mxu3 %v8930_v8 }
 0x805   :  { %13311 = vst [vmem:[#allocation75_spill] sm:$0xff] %v11491_v38  ;;  %v4775_v57 = vadd.f32 %v4774_v27, %v4557_v48  ;;  %v4560_v54 = vpop.f32.mrf.mxu1  ;;  %v8942_v48 = vld [vmem:[%s12828_s4 + $0x1e8] sm:$0xff] }
 0x806   :  { %6172 = vmatpush.bf16.msra.mxu2 %v8922_v17  ;;  %6954 = vmatpush.bf16.msra.mxu0 %v8942_v48  ;;  %v4231_v17 = vld [vmem:[#allocation2 + $0x427] sm:$0xff]  ;;  %v4232_v48 = vld [vmem:[#allocation2 + $0x42f] sm:$0xff] }
 0x807   :  { %v5199_v46 = vadd.f32 %v5103_v11, %v4775_v57  ;;  %v8941_v57 = vld [vmem:[%s12828_s4 + $0x1e0] sm:$0xff] }
 0x808   :  { %4599 = vmatmul.bf16.gmra.mxu1 %v4375_v12  ;;  %5145 = vmatmul.bf16.gmra.mxu3 %v4921_v55 }
 0x809   :  { %4816 = vmatmul.bf16.gmra.mxu2 %v4263_v32  ;;  %6566 = vmatpush.bf16.msra.mxu3 %v8929_v7 }
 0x80a   :  { %v5494_v3 = vpop.f32.mrf.mxu0  ;;  %6173 = vmatpush.bf16.msra.mxu2 %v8921_v40  ;;  %6955 = vmatpush.bf16.msra.mxu0 %v8941_v57  ;;  %v4376_v40 = vpack.c.bf16 %v4344_v23, %v4343_v34  ;;  %v4264_v57 = vpack.c.bf16 %v4232_v48, %v4231_v17  ;;  %v8937_v34 = vld [vmem:[%s12828_s4 + $0x1c0] sm:$0xff]  ;;  %v5613_v17 = vld [vmem:[#allocation2 + $0x28] sm:$0xff]  ;;  %v5614_v48 = vld [vmem:[#allocation2 + $0x30] sm:$0xff] }
 0x80b   :  { %v11511_v41 = vadd.f32 %v5494_v3, %v5198_v1  ;;  %v5106_v27 = vpop.f32.mrf.mxu3  ;;  %v8952_v1 = vld [vmem:[%s12828_s4 + $0x238] sm:$0xff] }
 0x80c   :  { %v4777_v21 = vpop.f32.mrf.mxu2  ;;  %7345 = vmatpush.bf16.msra.mxu1 %v8952_v1 }
 0x80d   :  { %13312 = vst [vmem:[#allocation73_spill] sm:$0xff] %v11511_v41  ;;  %v4778_v14 = vadd.f32 %v4777_v21, %v4560_v54  ;;  %v4562_v31 = vpop.f32.mrf.mxu1  ;;  %5533 = vmatmul.bf16.gmra.mxu0 %v4263_v32  ;;  %v8940_v54 = vld [vmem:[%s12828_s4 + $0x1d8] sm:$0xff]  ;;  %v4889_v21 = vld [vmem:[#allocation2 + $0x429] sm:$0xff] }
 0x80e   :  { %6956 = vmatpush.bf16.msra.mxu0 %v8940_v54 }
 0x80f   :  { %v5200_v11 = vadd.f32 %v5106_v27, %v4778_v14  ;;  %v4890_v14 = vld [vmem:[#allocation2 + $0x431] sm:$0xff] }
 0x810   :  { %v8939_v27 = vld [vmem:[%s12828_s4 + $0x1d0] sm:$0xff]  ;;  %v4922_v1 = vpack.c.bf16 %v4890_v14, %v4889_v21 }
 0x811   :  { %v6006_v21 = vld [vmem:[#allocation2 + $0x29] sm:$0xff]  ;;  %v6007_v14 = vld [vmem:[#allocation2 + $0x31] sm:$0xff] }
 0x812   :  { %v5496_v53 = vpop.f32.mrf.mxu0  ;;  %6957 = vmatpush.bf16.msra.mxu0 %v8939_v27 }
 0x813   :  { %v11528_v32 = vadd.f32 %v5496_v53, %v5199_v46  ;;  %v5108_v8 = vpop.f32.mrf.mxu3  ;;  %v8938_v46 = vld [vmem:[%s12828_s4 + $0x1c8] sm:$0xff] }
 0x814   :  { %v4779_v12 = vpop.f32.mrf.mxu2 }
 0x815   :  { %13313 = vst [vmem:[#allocation64_spill] sm:$0xff] %v11528_v32  ;;  %v4780_v55 = vadd.f32 %v4779_v12, %v4562_v31  ;;  %v4565_v3 = vpop.f32.mrf.mxu1 }
 0x816   :  { %6958 = vmatpush.bf16.msra.mxu0 %v8938_v46  ;;  %v6400_v46 = vld [vmem:[#allocation2 + $0x4f] sm:$0xff] }
 0x817   :  { %v5201_v7 = vadd.f32 %v5108_v8, %v4780_v55 }
 0x818   :  { %4604 = vmatmul.bf16.gmra.mxu1 %v4376_v40  ;;  %5150 = vmatmul.bf16.gmra.mxu3 %v4922_v1  ;;  %v6399_v1 = vld [vmem:[#allocation2 + $0x47] sm:$0xff] }
 0x819   :  { %4821 = vmatmul.bf16.gmra.mxu2 %v4264_v57 }
 0x81a   :  { %v5499_v31 = vpop.f32.mrf.mxu0  ;;  %6959 = vmatpush.bf16.msra.mxu0 %v8937_v34 }
 0x81b   :  { %v11536_v53 = vadd.f32 %v5499_v31, %v5200_v11  ;;  %v5111_v32 = vpop.f32.mrf.mxu3  ;;  %v5677_v31 = vpack.c.bf16 %v5614_v48, %v5613_v17  ;;  %v5616_v17 = vld [vmem:[#allocation2 + $0x50] sm:$0xff] }
 0x81c   :  { %v4782_v54 = vpop.f32.mrf.mxu2 }
 0x81d   :  { %13314 = vst [vmem:[#allocation67_spill] sm:$0xff] %v11536_v53  ;;  %v4783_v12 = vadd.f32 %v4782_v54, %v4565_v3  ;;  %v4567_v41 = vpop.f32.mrf.mxu1  ;;  %5538 = vmatmul.bf16.gmra.mxu0 %v4264_v57  ;;  %v6070_v53 = vpack.c.bf16 %v6007_v14, %v6006_v21  ;;  %v6463_v57 = vpack.c.bf16 %v6400_v46, %v6399_v1  ;;  %v6008_v14 = vld [vmem:[#allocation2 + $0x49] sm:$0xff] }
 0x81f   :  { %v5202_v23 = vadd.f32 %v5111_v32, %v4783_v12  ;;  %v5282_v32 = vld [vmem:[#allocation2 + $0x447] sm:$0xff]  ;;  %v5283_v12 = vld [vmem:[#allocation2 + $0x44f] sm:$0xff] }
 0x822   :  { %v5501_v55 = vpop.f32.mrf.mxu0 }
 0x823   :  { %v11541_v27 = vadd.f32 %v5501_v55, %v5201_v7  ;;  %v5113_v40 = vpop.f32.mrf.mxu3  ;;  %v5315_v7 = vpack.c.bf16 %v5283_v12, %v5282_v32 }
 0x824   :  { %v4784_v8 = vpop.f32.mrf.mxu2 }
 0x825   :  { %13315 = vst [vmem:[#allocation10_spill] sm:$0xff] %v11541_v27  ;;  %v4785_v11 = vadd.f32 %v4784_v8, %v4567_v41  ;;  %v4570_v3 = vpop.f32.mrf.mxu1 }
 0x827   :  { %v5203_v54 = vadd.f32 %v5113_v40, %v4785_v11  ;;  %v6009_v11 = vld [vmem:[#allocation2 + $0x51] sm:$0xff] }
 0x828   :  { %5781 = vmatmul.bf16.vlgmr.msrb.gmra.mxu1 %v5677_v31  ;;  %6567 = vmatmul.bf16.vlgmr.msra.gmra.mxu3 %v6463_v57  ;;  %v6401_v31 = vld [vmem:[#allocation2 + $0x67] sm:$0xff]  ;;  %v5678_v57 = vpack.c.bf16 %v5616_v17, %v5615_v45  ;;  %v6011_v17 = vld [vmem:[#allocation2 + $0x71] sm:$0xff] }
 0x829   :  { %6174 = vmatmul.bf16.vlgmr.msra.gmra.mxu2 %v6070_v53  ;;  %v6010_v45 = vld [vmem:[#allocation2 + $0x69] sm:$0xff] }
 0x82a   :  { %v5504_v34 = vpop.f32.mrf.mxu0 }
 0x82b   :  { %v11543_v2 = vadd.f32 %v5504_v34, %v5202_v23  ;;  %v5116_v41 = vpop.f32.mrf.mxu3  ;;  %v6402_v23 = vld [vmem:[#allocation2 + $0x6f] sm:$0xff] }
 0x82c   :  { %v4787_v38 = vpop.f32.mrf.mxu2 }
 0x82d   :  { %13316 = vst [vmem:[#allocation66_spill] sm:$0xff] %v11543_v2  ;;  %v4788_v55 = vadd.f32 %v4787_v38, %v4570_v3  ;;  %v4572_v8 = vpop.f32.mrf.mxu1  ;;  %5543 = vmatmul.bf16.gmra.mxu0 %v5315_v7  ;;  %v6071_v38 = vpack.c.bf16 %v6009_v11, %v6008_v14  ;;  %v6464_v3 = vpack.c.bf16 %v6402_v23, %v6401_v31  ;;  %v6403_v31 = vld [vmem:[#allocation2 + $0x87] sm:$0xff]  ;;  %v6404_v23 = vld [vmem:[#allocation2 + $0x8f] sm:$0xff] }
 0x82f   :  { %v5204_v27 = vadd.f32 %v5116_v41, %v4788_v55 }
 0x832   :  { %v5506_v48 = vpop.f32.mrf.mxu0 }
 0x833   :  { %v11545_v53 = vadd.f32 %v5506_v48, %v5203_v54  ;;  %v5118_v1 = vpop.f32.mrf.mxu3  ;;  %v5617_v48 = vld [vmem:[#allocation2 + $0x68] sm:$0xff] }
 0x834   :  { %v4789_v21 = vpop.f32.mrf.mxu2 }
 0x835   :  { %13317 = vst [vmem:[#allocation71_spill] sm:$0xff] %v11545_v53  ;;  %v4790_v40 = vadd.f32 %v4789_v21, %v4572_v8  ;;  %v4575_v46 = vpop.f32.mrf.mxu1  ;;  %v5618_v21 = vld [vmem:[#allocation2 + $0x70] sm:$0xff] }
 0x837   :  { %v5205_v32 = vadd.f32 %v5118_v1, %v4790_v40 }
 0x838   :  { %5786 = vmatmul.bf16.gmra.mxu1 %v5678_v57  ;;  %6572 = vmatmul.bf16.gmra.mxu3 %v6464_v3  ;;  %v6465_v3 = vpack.c.bf16 %v6404_v23, %v6403_v31  ;;  %v6405_v23 = vld [vmem:[#allocation2 + $0xa7] sm:$0xff] }
 0x839   :  { %6179 = vmatmul.bf16.gmra.mxu2 %v6071_v38 }
 0x83a   :  { %v5509_v12 = vpop.f32.mrf.mxu0 }
 0x83b   :  { %v11547_v7 = vadd.f32 %v5509_v12, %v5204_v27  ;;  %v5121_v41 = vpop.f32.mrf.mxu3  ;;  %v5679_v27 = vpack.c.bf16 %v5618_v21, %v5617_v48  ;;  %v5620_v48 = vld [vmem:[#allocation2 + $0x90] sm:$0xff] }
 0x83c   :  { %v4792_v34 = vpop.f32.mrf.mxu2 }
 0x83d   :  { %13318 = vst [vmem:[#allocation79_spill] sm:$0xff] %v11547_v7  ;;  %v4793_v55 = vadd.f32 %v4792_v34, %v4575_v46  ;;  %v4577_v54 = vpop.f32.mrf.mxu1  ;;  %6960 = vmatmul.bf16.vlgmr.msra.gmra.mxu0 %v5678_v57  ;;  %v6072_v46 = vpack.c.bf16 %v6011_v17, %v6010_v45  ;;  %v6012_v17 = vld [vmem:[#allocation2 + $0x89] sm:$0xff] }
 0x83f   :  { %v5206_v8 = vadd.f32 %v5121_v41, %v4793_v55 }
 0x842   :  { %v5511_v53 = vpop.f32.mrf.mxu0 }
 0x843   :  { %v11549_v14 = vadd.f32 %v5511_v53, %v5205_v32  ;;  %v5123_v40 = vpop.f32.mrf.mxu3  ;;  %v8951_v32 = vld [vmem:[%s12828_s4 + $0x230] sm:$0xff] }
 0x844   :  { %v4794_v2 = vpop.f32.mrf.mxu2  ;;  %7346 = vmatpush.bf16.msra.mxu1 %v8951_v32 }
 0x845   :  { %13319 = vst [vmem:[#allocation76_spill] sm:$0xff] %v11549_v14  ;;  %v4795_v11 = vadd.f32 %v4794_v2, %v4577_v54  ;;  %v4580_v1 = vpop.f32.mrf.mxu1  ;;  %v5619_v54 = vld [vmem:[#allocation2 + $0x88] sm:$0xff] }
 0x847   :  { %v5207_v38 = vadd.f32 %v5123_v40, %v4795_v11  ;;  %v6013_v11 = vld [vmem:[#allocation2 + $0x91] sm:$0xff] }
 0x848   :  { %5791 = vmatmul.bf16.gmra.mxu1 %v5679_v27  ;;  %6577 = vmatmul.bf16.gmra.mxu3 %v6465_v3 }
 0x849   :  { %6184 = vmatmul.bf16.gmra.mxu2 %v6072_v46  ;;  %v6406_v46 = vld [vmem:[#allocation2 + $0xaf] sm:$0xff] }
 0x84a   :  { %v5514_v57 = vpop.f32.mrf.mxu0 }
 0x84b   :  { %v11551_v34 = vadd.f32 %v5514_v57, %v5206_v8  ;;  %v5126_v41 = vpop.f32.mrf.mxu3  ;;  %v6073_v57 = vpack.c.bf16 %v6013_v11, %v6012_v17 }
 0x84c   :  { %v4797_v12 = vpop.f32.mrf.mxu2 }
 0x84d   :  { %13320 = vst [vmem:[#allocation63_spill] sm:$0xff] %v11551_v34  ;;  %v4798_v55 = vadd.f32 %v4797_v12, %v4580_v1  ;;  %v4582_v53 = vpop.f32.mrf.mxu1  ;;  %6965 = vmatmul.bf16.gmra.mxu0 %v5679_v27  ;;  %v5680_v27 = vpack.c.bf16 %v5620_v48, %v5619_v54  ;;  %v6466_v12 = vpack.c.bf16 %v6406_v46, %v6405_v23  ;;  %v6014_v54 = vld [vmem:[#allocation2 + $0xa9] sm:$0xff]  ;;  %v6015_v48 = vld [vmem:[#allocation2 + $0xb1] sm:$0xff] }
 0x84e   :  { %v6407_v23 = vld [vmem:[#allocation2 + $0xc7] sm:$0xff]  ;;  %v6408_v46 = vld [vmem:[#allocation2 + $0xcf] sm:$0xff] }
 0x84f   :  { %v5208_v2 = vadd.f32 %v5126_v41, %v4798_v55 }
 0x852   :  { %v5516_v21 = vpop.f32.mrf.mxu0 }
 0x853   :  { %v11556_v40 = vadd.f32 %v5516_v21, %v5207_v38  ;;  %v5128_v31 = vpop.f32.mrf.mxu3  ;;  %v5621_v21 = vld [vmem:[#allocation2 + $0xa8] sm:$0xff] }
 0x854   :  { %v4799_v45 = vpop.f32.mrf.mxu2 }
 0x855   :  { %13321 = vst [vmem:[#allocation16_spill] sm:$0xff] %v11556_v40  ;;  %v4800_v8 = vadd.f32 %v4799_v45, %v4582_v53  ;;  %v4585_v1 = vpop.f32.mrf.mxu1  ;;  %v5622_v45 = vld [vmem:[#allocation2 + $0xb0] sm:$0xff] }
 0x857   :  { %v5209_v3 = vadd.f32 %v5128_v31, %v4800_v8 }
 0x858   :  { %5796 = vmatmul.bf16.gmra.mxu1 %v5680_v27  ;;  %6582 = vmatmul.bf16.gmra.mxu3 %v6466_v12  ;;  %v6467_v12 = vpack.c.bf16 %v6408_v46, %v6407_v23  ;;  %v6409_v23 = vld [vmem:[#allocation2 + $0xe7] sm:$0xff]  ;;  %v6410_v46 = vld [vmem:[#allocation2 + $0xef] sm:$0xff] }
 0x859   :  { %6189 = vmatmul.bf16.gmra.mxu2 %v6073_v57 }
 0x85a   :  { %v5519_v55 = vpop.f32.mrf.mxu0 }
 0x85b   :  { %v11558_v32 = vadd.f32 %v5519_v55, %v5208_v2  ;;  %v5131_v14 = vpop.f32.mrf.mxu3  ;;  %v5681_v2 = vpack.c.bf16 %v5622_v45, %v5621_v21  ;;  %v6016_v21 = vld [vmem:[#allocation2 + $0xc9] sm:$0xff]  ;;  %v6017_v45 = vld [vmem:[#allocation2 + $0xd1] sm:$0xff] }
 0x85c   :  { %v4802_v41 = vpop.f32.mrf.mxu2 }
 0x85d   :  { %13322 = vst [vmem:[#allocation80_spill] sm:$0xff] %v11558_v32  ;;  %v4803_v34 = vadd.f32 %v4802_v41, %v4585_v1  ;;  %v4587_v38 = vpop.f32.mrf.mxu1  ;;  %6970 = vmatmul.bf16.gmra.mxu0 %v5680_v27  ;;  %v6074_v1 = vpack.c.bf16 %v6015_v48, %v6014_v54 }
 0x85f   :  { %v5210_v53 = vadd.f32 %v5131_v14, %v4803_v34 }
 0x862   :  { %v5521_v40 = vpop.f32.mrf.mxu0 }
 0x863   :  { %v11560_v17 = vadd.f32 %v5521_v40, %v5209_v3  ;;  %v5133_v8 = vpop.f32.mrf.mxu3  ;;  %v5623_v3 = vld [vmem:[#allocation2 + $0xc8] sm:$0xff] }
 0x864   :  { %v4804_v7 = vpop.f32.mrf.mxu2 }
 0x865   :  { %13323 = vst [vmem:[#allocation70_spill] sm:$0xff] %v11560_v17  ;;  %v4805_v11 = vadd.f32 %v4804_v7, %v4587_v38  ;;  %v4590_v31 = vpop.f32.mrf.mxu1  ;;  %v5624_v38 = vld [vmem:[#allocation2 + $0xd0] sm:$0xff] }
 0x867   :  { %v5211_v57 = vadd.f32 %v5133_v8, %v4805_v11 }
 0x868   :  { %5801 = vmatmul.bf16.gmra.mxu1 %v5681_v2  ;;  %6587 = vmatmul.bf16.gmra.mxu3 %v6467_v12  ;;  %v6468_v12 = vpack.c.bf16 %v6410_v46, %v6409_v23  ;;  %v6411_v23 = vld [vmem:[#allocation2 + $0x107] sm:$0xff]  ;;  %v6412_v46 = vld [vmem:[#allocation2 + $0x10f] sm:$0xff] }
 0x869   :  { %6194 = vmatmul.bf16.gmra.mxu2 %v6074_v1 }
 0x86a   :  { %v5524_v14 = vpop.f32.mrf.mxu0 }
 0x86b   :  { %v11562_v27 = vadd.f32 %v5524_v14, %v5210_v53  ;;  %v5136_v41 = vpop.f32.mrf.mxu3  ;;  %v5682_v53 = vpack.c.bf16 %v5624_v38, %v5623_v3  ;;  %v6018_v3 = vld [vmem:[#allocation2 + $0xe9] sm:$0xff]  ;;  %v6019_v38 = vld [vmem:[#allocation2 + $0xf1] sm:$0xff] }
 0x86c   :  { %v4807_v34 = vpop.f32.mrf.mxu2 }
 0x86d   :  { %13324 = vst [vmem:[#allocation22_spill] sm:$0xff] %v11562_v27  ;;  %v4808_v55 = vadd.f32 %v4807_v34, %v4590_v31  ;;  %v4592_v40 = vpop.f32.mrf.mxu1  ;;  %6975 = vmatmul.bf16.gmra.mxu0 %v5681_v2  ;;  %v6075_v31 = vpack.c.bf16 %v6017_v45, %v6016_v21 }
 0x86f   :  { %v5212_v7 = vadd.f32 %v5136_v41, %v4808_v55 }
 0x872   :  { %v5526_v17 = vpop.f32.mrf.mxu0 }
 0x873   :  { %v11564_v54 = vadd.f32 %v5526_v17, %v5211_v57  ;;  %v5138_v11 = vpop.f32.mrf.mxu3  ;;  %v5625_v57 = vld [vmem:[#allocation2 + $0xe8] sm:$0xff] }
 0x874   :  { %v4809_v32 = vpop.f32.mrf.mxu2 }
 0x875   :  { %13325 = vst [vmem:[#allocation84_spill] sm:$0xff] %v11564_v54  ;;  %v4810_v48 = vadd.f32 %v4809_v32, %v4592_v40  ;;  %v4595_v8 = vpop.f32.mrf.mxu1  ;;  %v5626_v40 = vld [vmem:[#allocation2 + $0xf0] sm:$0xff] }
 0x877   :  { %v5213_v1 = vadd.f32 %v5138_v11, %v4810_v48 }
 0x878   :  { %5806 = vmatmul.bf16.gmra.mxu1 %v5682_v53  ;;  %6592 = vmatmul.bf16.gmra.mxu3 %v6468_v12  ;;  %v6469_v12 = vpack.c.bf16 %v6412_v46, %v6411_v23  ;;  %v6413_v46 = vld [vmem:[#allocation2 + $0x127] sm:$0xff] }
 0x879   :  { %6199 = vmatmul.bf16.gmra.mxu2 %v6075_v31 }
 0x87a   :  { %v5529_v2 = vpop.f32.mrf.mxu0 }
 0x87b   :  { %v11566_v34 = vadd.f32 %v5529_v2, %v5212_v7  ;;  %v5141_v41 = vpop.f32.mrf.mxu3  ;;  %v5683_v7 = vpack.c.bf16 %v5626_v40, %v5625_v57  ;;  %v5628_v57 = vld [vmem:[#allocation2 + $0x110] sm:$0xff] }
 0x87c   :  { %v4812_v14 = vpop.f32.mrf.mxu2 }
 0x87d   :  { %13326 = vst [vmem:[#allocation82_spill] sm:$0xff] %v11566_v34  ;;  %v4813_v55 = vadd.f32 %v4812_v14, %v4595_v8  ;;  %v4597_v17 = vpop.f32.mrf.mxu1  ;;  %6980 = vmatmul.bf16.gmra.mxu0 %v5682_v53  ;;  %v6076_v8 = vpack.c.bf16 %v6019_v38, %v6018_v3  ;;  %v6020_v38 = vld [vmem:[#allocation2 + $0x109] sm:$0xff] }
 0x87f   :  { %v5214_v32 = vadd.f32 %v5141_v41, %v4813_v55 }
 0x882   :  { %v5531_v54 = vpop.f32.mrf.mxu0 }
 0x883   :  { %v11568_v21 = vadd.f32 %v5531_v54, %v5213_v1  ;;  %v5143_v48 = vpop.f32.mrf.mxu3  ;;  %v8950_v1 = vld [vmem:[%s12828_s4 + $0x228] sm:$0xff] }
 0x884   :  { %v4814_v27 = vpop.f32.mrf.mxu2  ;;  %7347 = vmatpush.bf16.msra.mxu1 %v8950_v1 }
 0x885   :  { %13327 = vst [vmem:[#allocation8_spill] sm:$0xff] %v11568_v21  ;;  %v4815_v45 = vadd.f32 %v4814_v27, %v4597_v17  ;;  %v4600_v11 = vpop.f32.mrf.mxu1  ;;  %v5627_v17 = vld [vmem:[#allocation2 + $0x108] sm:$0xff] }
 0x887   :  { %v5215_v31 = vadd.f32 %v5143_v48, %v4815_v45  ;;  %v6021_v45 = vld [vmem:[#allocation2 + $0x111] sm:$0xff] }
 0x888   :  { %5811 = vmatmul.bf16.gmra.mxu1 %v5683_v7  ;;  %6597 = vmatmul.bf16.gmra.mxu3 %v6469_v12 }
 0x889   :  { %6204 = vmatmul.bf16.gmra.mxu2 %v6076_v8  ;;  %v6414_v8 = vld [vmem:[#allocation2 + $0x12f] sm:$0xff] }
 0x88a   :  { %v5534_v53 = vpop.f32.mrf.mxu0 }
 0x88b   :  { %v11570_v14 = vadd.f32 %v5534_v53, %v5214_v32  ;;  %v5146_v41 = vpop.f32.mrf.mxu3  ;;  %v6077_v53 = vpack.c.bf16 %v6021_v45, %v6020_v38 }
 0x88c   :  { %v4817_v2 = vpop.f32.mrf.mxu2 }
 0x88d   :  { %13328 = vst [vmem:[#allocation68_spill] sm:$0xff] %v11570_v14  ;;  %v4818_v55 = vadd.f32 %v4817_v2, %v4600_v11  ;;  %v4602_v54 = vpop.f32.mrf.mxu1  ;;  %6985 = vmatmul.bf16.gmra.mxu0 %v5683_v7  ;;  %v5684_v7 = vpack.c.bf16 %v5628_v57, %v5627_v17  ;;  %v6470_v2 = vpack.c.bf16 %v6414_v8, %v6413_v46  ;;  %v6022_v17 = vld [vmem:[#allocation2 + $0x129] sm:$0xff]  ;;  %v6023_v57 = vld [vmem:[#allocation2 + $0x131] sm:$0xff] }
 0x88e   :  { %v6415_v46 = vld [vmem:[#allocation2 + $0x147] sm:$0xff]  ;;  %v6416_v8 = vld [vmem:[#allocation2 + $0x14f] sm:$0xff] }
 0x88f   :  { %v5216_v27 = vadd.f32 %v5146_v41, %v4818_v55 }
 0x892   :  { %v5536_v40 = vpop.f32.mrf.mxu0 }
 0x893   :  { %v11575_v48 = vadd.f32 %v5536_v40, %v5215_v31  ;;  %v5148_v23 = vpop.f32.mrf.mxu3  ;;  %v5629_v40 = vld [vmem:[#allocation2 + $0x128] sm:$0xff] }
 0x894   :  { %v4819_v3 = vpop.f32.mrf.mxu2 }
 0x895   :  { %13329 = vst [vmem:[#allocation74_spill] sm:$0xff] %v11575_v48  ;;  %v4820_v32 = vadd.f32 %v4819_v3, %v4602_v54  ;;  %v4605_v11 = vpop.f32.mrf.mxu1  ;;  %v5630_v3 = vld [vmem:[#allocation2 + $0x130] sm:$0xff] }
 0x897   :  { %v5217_v12 = vadd.f32 %v5148_v23, %v4820_v32 }
 0x898   :  { %5816 = vmatmul.bf16.gmra.mxu1 %v5684_v7  ;;  %6602 = vmatmul.bf16.gmra.mxu3 %v6470_v2  ;;  %v6078_v2 = vpack.c.bf16 %v6023_v57, %v6022_v17  ;;  %v6024_v17 = vld [vmem:[#allocation2 + $0x149] sm:$0xff]  ;;  %v6025_v57 = vld [vmem:[#allocation2 + $0x151] sm:$0xff] }
 0x899   :  { %6209 = vmatmul.bf16.gmra.mxu2 %v6077_v53 }
 0x89a   :  { %v5539_v55 = vpop.f32.mrf.mxu0 }
 0x89b   :  { %v11577_v1 = vadd.f32 %v5539_v55, %v5216_v27  ;;  %v5151_v21 = vpop.f32.mrf.mxu3 }
 0x89c   :  { %v4822_v41 = vpop.f32.mrf.mxu2 }
 0x89d   :  { %v4823_v14 = vadd.f32 %v4822_v41, %v4605_v11  ;;  %v4607_v31 = vpop.f32.mrf.mxu1  ;;  %6990 = vmatmul.bf16.gmra.mxu0 %v5684_v7  ;;  %v5685_v11 = vpack.c.bf16 %v5630_v3, %v5629_v40 }
 0x89f   :  { %v5218_v54 = vadd.f32 %v5151_v21, %v4823_v14  ;;  %v6471_v21 = vpack.c.bf16 %v6416_v8, %v6415_v46  ;;  %v6418_v8 = vld [vmem:[#allocation2 + $0x16f] sm:$0xff] }
 0x8a2   :  { %v5541_v48 = vpop.f32.mrf.mxu0 }
 0x8a3   :  { %v11579_v38 = vadd.f32 %v5541_v48, %v5217_v12  ;;  %v5153_v32 = vpop.f32.mrf.mxu3 }
 0x8a4   :  { %v4824_v34 = vpop.f32.mrf.mxu2 }
 0x8a5   :  { %13330 = vst [vmem:[#allocation77_spill] sm:$0xff] %v11579_v38  ;;  %v4825_v45 = vadd.f32 %v4824_v34, %v4607_v31  ;;  %v5782_v23 = vpop.f32.mrf.mxu1  ;;  %v5631_v38 = vld [vmem:[#allocation2 + $0x148] sm:$0xff] }
 0x8a6   :  { %v5942_v27 = vadd.f32 %v5782_v23, %v11354_v33  ;;  %v5632_v33 = vld [vmem:[#allocation2 + $0x150] sm:$0xff] }
 0x8a7   :  { %v5219_v53 = vadd.f32 %v5153_v32, %v4825_v45 }
 0x8a8   :  { %5821 = vmatmul.bf16.gmra.mxu1 %v5685_v11  ;;  %6607 = vmatmul.bf16.gmra.mxu3 %v6471_v21 }
 0x8a9   :  { %6214 = vmatmul.bf16.gmra.mxu2 %v6078_v2  ;;  %v5686_v2 = vpack.c.bf16 %v5632_v33, %v5631_v38 }
 0x8aa   :  { %v5544_v14 = vpop.f32.mrf.mxu0 }
 0x8ab   :  { %v11582_v55 = vadd.f32 %v5544_v14, %v5218_v54  ;;  %v6568_v12 = vpop.f32.mrf.mxu3  ;;  %v6417_v54 = vld [vmem:[#allocation2 + $0x167] sm:$0xff] }
 0x8ac   :  { %v6175_v7 = vpop.f32.mrf.mxu2 }
 0x8ad   :  { %v6335_v48 = vadd.f32 %v6175_v7, %v5942_v27  ;;  %v5784_v34 = vpop.f32.mrf.mxu1  ;;  %6995 = vmatmul.bf16.gmra.mxu0 %v5685_v11  ;;  %v6472_v11 = vpack.c.bf16 %v6418_v8, %v6417_v54  ;;  %v6420_v8 = vld [vmem:[#allocation2 + $0x18f] sm:$0xff] }
 0x8ae   :  { %v5943_v41 = vadd.f32 %v5784_v34, %v11356_v29  ;;  %v6079_v29 = vpack.c.bf16 %v6025_v57, %v6024_v17  ;;  %v6026_v17 = vld [vmem:[#allocation2 + $0x169] sm:$0xff]  ;;  %v6027_v57 = vld [vmem:[#allocation2 + $0x171] sm:$0xff] }
 0x8af   :  { %v6728_v31 = vadd.f32 %v6568_v12, %v6335_v48 }
 0x8b2   :  { %v5546_v40 = vpop.f32.mrf.mxu0 }
 0x8b3   :  { %v11585_v45 = vadd.f32 %v5546_v40, %v5219_v53  ;;  %v6570_v23 = vpop.f32.mrf.mxu3 }
 0x8b4   :  { %v6177_v3 = vpop.f32.mrf.mxu2 }
 0x8b5   :  { %v6336_v32 = vadd.f32 %v6177_v3, %v5943_v41  ;;  %v5787_v46 = vpop.f32.mrf.mxu1  ;;  %v5633_v3 = vld [vmem:[#allocation2 + $0x168] sm:$0xff] }
 0x8b6   :  { %v5944_v27 = vadd.f32 %v5787_v46, %v11359_v22  ;;  %v5634_v22 = vld [vmem:[#allocation2 + $0x170] sm:$0xff] }
 0x8b7   :  { %v6729_v21 = vadd.f32 %v6570_v23, %v6336_v32 }
 0x8b8   :  { %5826 = vmatmul.bf16.gmra.mxu1 %v5686_v2  ;;  %6612 = vmatmul.bf16.gmra.mxu3 %v6472_v11 }
 0x8b9   :  { %6219 = vmatmul.bf16.gmra.mxu2 %v6079_v29  ;;  %v5687_v29 = vpack.c.bf16 %v5634_v22, %v5633_v3  ;;  %v5635_v3 = vld [vmem:[#allocation2 + $0x188] sm:$0xff]  ;;  %v5636_v22 = vld [vmem:[#allocation2 + $0x190] sm:$0xff] }
 0x8ba   :  { %v6961_v14 = vpop.f32.mrf.mxu0 }
 0x8bb   :  { %v11588_v48 = vadd.f32 %v6961_v14, %v6728_v31  ;;  %v6573_v12 = vpop.f32.mrf.mxu3  ;;  %v6419_v31 = vld [vmem:[#allocation2 + $0x187] sm:$0xff] }
 0x8bc   :  { %v6180_v7 = vpop.f32.mrf.mxu2 }
 0x8bd   :  { %v6337_v53 = vadd.f32 %v6180_v7, %v5944_v27  ;;  %v5789_v34 = vpop.f32.mrf.mxu1  ;;  %7000 = vmatmul.bf16.gmra.mxu0 %v5686_v2  ;;  %v6473_v2 = vpack.c.bf16 %v6420_v8, %v6419_v31  ;;  %v6421_v8 = vld [vmem:[#allocation2 + $0x1a7] sm:$0xff] }
 0x8be   :  { %v5945_v41 = vadd.f32 %v5789_v34, %v11364_v62  ;;  %v6080_v62 = vpack.c.bf16 %v6027_v57, %v6026_v17  ;;  %v6028_v57 = vld [vmem:[#allocation2 + $0x189] sm:$0xff] }
 0x8bf   :  { %v6730_v40 = vadd.f32 %v6573_v12, %v6337_v53 }
 0x8c2   :  { %v6963_v38 = vpop.f32.mrf.mxu0 }
 0x8c3   :  { %v11591_v32 = vadd.f32 %v6963_v38, %v6729_v21  ;;  %v6575_v46 = vpop.f32.mrf.mxu3 }
 0x8c4   :  { %v6182_v33 = vpop.f32.mrf.mxu2 }
 0x8c5   :  { %v6338_v23 = vadd.f32 %v6182_v33, %v5945_v41  ;;  %v5792_v54 = vpop.f32.mrf.mxu1 }
 0x8c6   :  { %v5946_v27 = vadd.f32 %v5792_v54, %v11367_v49  ;;  %v8949_v49 = vld [vmem:[%s12828_s4 + $0x220] sm:$0xff] }
 0x8c7   :  { %v6731_v11 = vadd.f32 %v6575_v46, %v6338_v23  ;;  %7348 = vmatpush.bf16.msra.mxu1 %v8949_v49  ;;  %v6029_v23 = vld [vmem:[#allocation2 + $0x191] sm:$0xff] }
 0x8c8   :  { %5831 = vmatmul.bf16.gmra.mxu1 %v5687_v29  ;;  %6617 = vmatmul.bf16.gmra.mxu3 %v6473_v2  ;;  %v6081_v2 = vpack.c.bf16 %v6029_v23, %v6028_v57  ;;  %v6030_v57 = vld [vmem:[#allocation2 + $0x1a9] sm:$0xff]  ;;  %v6031_v23 = vld [vmem:[#allocation2 + $0x1b1] sm:$0xff] }
 0x8c9   :  { %6224 = vmatmul.bf16.gmra.mxu2 %v6080_v62 }
 0x8ca   :  { %v6966_v14 = vpop.f32.mrf.mxu0 }
 0x8cb   :  { %v11594_v53 = vadd.f32 %v6966_v14, %v6730_v40  ;;  %v6578_v12 = vpop.f32.mrf.mxu3 }
 0x8cc   :  { %v6185_v7 = vpop.f32.mrf.mxu2 }
 0x8cd   :  { %v6339_v21 = vadd.f32 %v6185_v7, %v5946_v27  ;;  %v5794_v34 = vpop.f32.mrf.mxu1  ;;  %7005 = vmatmul.bf16.gmra.mxu0 %v5687_v29  ;;  %v5688_v29 = vpack.c.bf16 %v5636_v22, %v5635_v3 }
 0x8ce   :  { %v5947_v41 = vadd.f32 %v5794_v34, %v11369_v5  ;;  %v6422_v5 = vld [vmem:[#allocation2 + $0x1af] sm:$0xff] }
 0x8cf   :  { %v6732_v38 = vadd.f32 %v6578_v12, %v6339_v21  ;;  %v6474_v14 = vpack.c.bf16 %v6422_v5, %v6421_v8  ;;  %v6424_v5 = vld [vmem:[#allocation2 + $0x1cf] sm:$0xff] }
 0x8d2   :  { %v6968_v33 = vpop.f32.mrf.mxu0 }
 0x8d3   :  { %v11600_v40 = vadd.f32 %v6968_v33, %v6731_v11  ;;  %v6580_v54 = vpop.f32.mrf.mxu3 }
 0x8d4   :  { %v6187_v17 = vpop.f32.mrf.mxu2 }
 0x8d5   :  { %v6340_v46 = vadd.f32 %v6187_v17, %v5947_v41  ;;  %v5797_v31 = vpop.f32.mrf.mxu1  ;;  %v5637_v17 = vld [vmem:[#allocation2 + $0x1a8] sm:$0xff] }
 0x8d6   :  { %v5948_v27 = vadd.f32 %v5797_v31, %v11372_v20  ;;  %v5638_v20 = vld [vmem:[#allocation2 + $0x1b0] sm:$0xff] }
 0x8d7   :  { %v6733_v62 = vadd.f32 %v6580_v54, %v6340_v46 }
 0x8d8   :  { %5836 = vmatmul.bf16.gmra.mxu1 %v5688_v29  ;;  %6622 = vmatmul.bf16.gmra.mxu3 %v6474_v14 }
 0x8d9   :  { %6229 = vmatmul.bf16.gmra.mxu2 %v6081_v2  ;;  %v5689_v2 = vpack.c.bf16 %v5638_v20, %v5637_v17 }
 0x8da   :  { %v6971_v7 = vpop.f32.mrf.mxu0 }
 0x8db   :  { %v11603_v12 = vadd.f32 %v6971_v7, %v6732_v38  ;;  %v6583_v34 = vpop.f32.mrf.mxu3  ;;  %v6423_v38 = vld [vmem:[#allocation2 + $0x1c7] sm:$0xff] }
 0x8dc   :  { %v6190_v21 = vpop.f32.mrf.mxu2 }
 0x8dd   :  { %v6341_v11 = vadd.f32 %v6190_v21, %v5948_v27  ;;  %v5799_v41 = vpop.f32.mrf.mxu1  ;;  %7010 = vmatmul.bf16.gmra.mxu0 %v5688_v29  ;;  %v6475_v29 = vpack.c.bf16 %v6424_v5, %v6423_v38  ;;  %v6426_v5 = vld [vmem:[#allocation2 + $0x1ef] sm:$0xff] }
 0x8de   :  { %v5949_v49 = vadd.f32 %v5799_v41, %v11374_v42  ;;  %v6082_v42 = vpack.c.bf16 %v6031_v23, %v6030_v57  ;;  %v6032_v57 = vld [vmem:[#allocation2 + $0x1c9] sm:$0xff]  ;;  %v6033_v23 = vld [vmem:[#allocation2 + $0x1d1] sm:$0xff] }
 0x8df   :  { %v6734_v33 = vadd.f32 %v6583_v34, %v6341_v11 }
 0x8e2   :  { %v6973_v3 = vpop.f32.mrf.mxu0 }
 0x8e3   :  { %v11606_v46 = vadd.f32 %v6973_v3, %v6733_v62  ;;  %v6585_v31 = vpop.f32.mrf.mxu3 }
 0x8e4   :  { %v6192_v22 = vpop.f32.mrf.mxu2 }
 0x8e5   :  { %v6342_v54 = vadd.f32 %v6192_v22, %v5949_v49  ;;  %v5802_v8 = vpop.f32.mrf.mxu1  ;;  %v5639_v22 = vld [vmem:[#allocation2 + $0x1c8] sm:$0xff] }
 0x8e6   :  { %v5950_v27 = vadd.f32 %v5802_v8, %v11377_v15  ;;  %v5640_v15 = vld [vmem:[#allocation2 + $0x1d0] sm:$0xff] }
 0x8e7   :  { %v6735_v14 = vadd.f32 %v6585_v31, %v6342_v54 }
 0x8e8   :  { %5841 = vmatmul.bf16.gmra.mxu1 %v5689_v2  ;;  %6627 = vmatmul.bf16.gmra.mxu3 %v6475_v29 }
 0x8e9   :  { %6234 = vmatmul.bf16.gmra.mxu2 %v6082_v42  ;;  %v5690_v42 = vpack.c.bf16 %v5640_v15, %v5639_v22 }
 0x8ea   :  { %v6976_v7 = vpop.f32.mrf.mxu0 }
 0x8eb   :  { %v11609_v11 = vadd.f32 %v6976_v7, %v6734_v33  ;;  %v6588_v34 = vpop.f32.mrf.mxu3  ;;  %v6425_v33 = vld [vmem:[#allocation2 + $0x1e7] sm:$0xff] }
 0x8ec   :  { %v6195_v21 = vpop.f32.mrf.mxu2 }
 0x8ed   :  { %v6343_v62 = vadd.f32 %v6195_v21, %v5950_v27  ;;  %v5804_v41 = vpop.f32.mrf.mxu1  ;;  %7015 = vmatmul.bf16.gmra.mxu0 %v5689_v2  ;;  %v6476_v2 = vpack.c.bf16 %v6426_v5, %v6425_v33  ;;  %v6428_v5 = vld [vmem:[#allocation2 + $0x20f] sm:$0xff] }
 0x8ee   :  { %v5951_v49 = vadd.f32 %v5804_v41, %v11379_v4  ;;  %v6083_v4 = vpack.c.bf16 %v6033_v23, %v6032_v57  ;;  %v6034_v57 = vld [vmem:[#allocation2 + $0x1e9] sm:$0xff]  ;;  %v6035_v23 = vld [vmem:[#allocation2 + $0x1f1] sm:$0xff] }
 0x8ef   :  { %v6736_v3 = vadd.f32 %v6588_v34, %v6343_v62 }
 0x8f2   :  { %v6978_v17 = vpop.f32.mrf.mxu0 }
 0x8f3   :  { %v11612_v54 = vadd.f32 %v6978_v17, %v6735_v14  ;;  %v6590_v8 = vpop.f32.mrf.mxu3 }
 0x8f4   :  { %v6197_v20 = vpop.f32.mrf.mxu2 }
 0x8f5   :  { %v6344_v31 = vadd.f32 %v6197_v20, %v5951_v49  ;;  %v5807_v38 = vpop.f32.mrf.mxu1  ;;  %v5641_v20 = vld [vmem:[#allocation2 + $0x1e8] sm:$0xff] }
 0x8f6   :  { %v5952_v27 = vadd.f32 %v5807_v38, %v11382_v37  ;;  %v5642_v37 = vld [vmem:[#allocation2 + $0x1f0] sm:$0xff] }
 0x8f7   :  { %v6737_v29 = vadd.f32 %v6590_v8, %v6344_v31 }
 0x8f8   :  { %5846 = vmatmul.bf16.gmra.mxu1 %v5690_v42  ;;  %6632 = vmatmul.bf16.gmra.mxu3 %v6476_v2 }
 0x8f9   :  { %6239 = vmatmul.bf16.gmra.mxu2 %v6083_v4  ;;  %v5691_v4 = vpack.c.bf16 %v5642_v37, %v5641_v20  ;;  %v5643_v20 = vld [vmem:[#allocation2 + $0x208] sm:$0xff]  ;;  %v5644_v37 = vld [vmem:[#allocation2 + $0x210] sm:$0xff] }
 0x8fa   :  { %v6981_v7 = vpop.f32.mrf.mxu0 }
 0x8fb   :  { %v11615_v62 = vadd.f32 %v6981_v7, %v6736_v3  ;;  %v6593_v34 = vpop.f32.mrf.mxu3  ;;  %v6427_v3 = vld [vmem:[#allocation2 + $0x207] sm:$0xff] }
 0x8fc   :  { %v6200_v21 = vpop.f32.mrf.mxu2 }
 0x8fd   :  { %v6345_v14 = vadd.f32 %v6200_v21, %v5952_v27  ;;  %v5809_v41 = vpop.f32.mrf.mxu1  ;;  %7020 = vmatmul.bf16.gmra.mxu0 %v5690_v42  ;;  %v6477_v42 = vpack.c.bf16 %v6428_v5, %v6427_v3 }
 0x8fe   :  { %v5953_v49 = vadd.f32 %v5809_v41, %v11387_v60  ;;  %v6084_v60 = vpack.c.bf16 %v6035_v23, %v6034_v57  ;;  %v6430_v57 = vld [vmem:[#allocation2 + $0x22f] sm:$0xff] }
 0x8ff   :  { %v6738_v17 = vadd.f32 %v6593_v34, %v6345_v14 }
 0x902   :  { %v6983_v22 = vpop.f32.mrf.mxu0 }
 0x903   :  { %v11618_v31 = vadd.f32 %v6983_v22, %v6737_v29  ;;  %v6595_v38 = vpop.f32.mrf.mxu3 }
 0x904   :  { %v6202_v15 = vpop.f32.mrf.mxu2 }
 0x905   :  { %v6346_v8 = vadd.f32 %v6202_v15, %v5953_v49  ;;  %v5812_v33 = vpop.f32.mrf.mxu1  ;;  %v6429_v15 = vld [vmem:[#allocation2 + $0x227] sm:$0xff] }
 0x906   :  { %v5954_v27 = vadd.f32 %v5812_v33, %v11390_v52  ;;  %v8948_v52 = vld [vmem:[%s12828_s4 + $0x218] sm:$0xff] }
 0x907   :  { %v6739_v2 = vadd.f32 %v6595_v38, %v6346_v8  ;;  %7349 = vmatpush.bf16.msra.mxu1 %v8948_v52  ;;  %v6037_v38 = vld [vmem:[#allocation2 + $0x211] sm:$0xff] }
 0x908   :  { %5851 = vmatmul.bf16.gmra.mxu1 %v5691_v4  ;;  %6637 = vmatmul.bf16.gmra.mxu3 %v6477_v42 }
 0x909   :  { %6244 = vmatmul.bf16.gmra.mxu2 %v6084_v60  ;;  %v6478_v60 = vpack.c.bf16 %v6430_v57, %v6429_v15  ;;  %v6038_v15 = vld [vmem:[#allocation2 + $0x269] sm:$0xff]  ;;  %v6039_v57 = vld [vmem:[#allocation2 + $0x271] sm:$0xff] }
 0x90a   :  { %v6986_v7 = vpop.f32.mrf.mxu0 }
 0x90b   :  { %v11621_v14 = vadd.f32 %v6986_v7, %v6738_v17  ;;  %v6598_v34 = vpop.f32.mrf.mxu3  ;;  %v6036_v17 = vld [vmem:[#allocation2 + $0x209] sm:$0xff] }
 0x90c   :  { %v6205_v21 = vpop.f32.mrf.mxu2  ;;  %v6085_v7 = vpack.c.bf16 %v6037_v38, %v6036_v17 }
 0x90d   :  { %v6347_v29 = vadd.f32 %v6205_v21, %v5954_v27  ;;  %v5814_v41 = vpop.f32.mrf.mxu1  ;;  %7025 = vmatmul.bf16.gmra.mxu0 %v5691_v4  ;;  %v5692_v4 = vpack.c.bf16 %v5644_v37, %v5643_v20 }
 0x90e   :  { %v5955_v49 = vadd.f32 %v5814_v41, %v11392_v61 }
 0x90f   :  { %v6740_v22 = vadd.f32 %v6598_v34, %v6347_v29 }
 0x912   :  { %v6988_v23 = vpop.f32.mrf.mxu0 }
 0x913   :  { %v11627_v33 = vadd.f32 %v6988_v23, %v6739_v2  ;;  %v6600_v5 = vpop.f32.mrf.mxu3 }
 0x914   :  { %v6207_v8 = vpop.f32.mrf.mxu2 }
 0x915   :  { %v6348_v3 = vadd.f32 %v6207_v8, %v5955_v49  ;;  %v5817_v61 = vpop.f32.mrf.mxu1  ;;  %v5645_v8 = vld [vmem:[#allocation2 + $0x268] sm:$0xff] }
 0x916   :  { %v5956_v27 = vadd.f32 %v5817_v61, %v11395_v6  ;;  %v5646_v6 = vld [vmem:[#allocation2 + $0x270] sm:$0xff] }
 0x917   :  { %v6741_v42 = vadd.f32 %v6600_v5, %v6348_v3  ;;  %v6432_v61 = vld [vmem:[#allocation2 + $0x28f] sm:$0xff] }
 0x918   :  { %5856 = vmatmul.bf16.gmra.mxu1 %v5692_v4  ;;  %6642 = vmatmul.bf16.gmra.mxu3 %v6478_v60  ;;  %v5693_v60 = vpack.c.bf16 %v5646_v6, %v5645_v8  ;;  %v5647_v8 = vld [vmem:[#allocation2 + $0x288] sm:$0xff]  ;;  %v5648_v6 = vld [vmem:[#allocation2 + $0x290] sm:$0xff] }
 0x919   :  { %6249 = vmatmul.bf16.gmra.mxu2 %v6085_v7 }
 0x91a   :  { %v6991_v21 = vpop.f32.mrf.mxu0 }
 0x91b   :  { %v11630_v34 = vadd.f32 %v6991_v21, %v6740_v22  ;;  %v6603_v52 = vpop.f32.mrf.mxu3  ;;  %v6431_v22 = vld [vmem:[#allocation2 + $0x287] sm:$0xff] }
 0x91c   :  { %v6210_v29 = vpop.f32.mrf.mxu2  ;;  %v8976_v21 = vld [vmem:[#allocation2 + $0x248] sm:$0xff] }
 0x91d   :  { %v6349_v41 = vadd.f32 %v6210_v29, %v5956_v27  ;;  %v5819_v2 = vpop.f32.mrf.mxu1  ;;  %7030 = vmatmul.bf16.gmra.mxu0 %v5692_v4  ;;  %v6479_v4 = vpack.c.bf16 %v6432_v61, %v6431_v22  ;;  %v11636_v29 = vpack.c.bf16 %v8976_v21, %v8976_v21 }
 0x91e   :  { %v5957_v49 = vadd.f32 %v5819_v2, %v11397_v19  ;;  %v6086_v19 = vpack.c.bf16 %v6039_v57, %v6038_v15 }
 0x91f   :  { %v6742_v23 = vadd.f32 %v6603_v52, %v6349_v41 }
 0x922   :  { %v6993_v20 = vpop.f32.mrf.mxu0 }
 0x923   :  { %v11633_v17 = vadd.f32 %v6993_v20, %v6741_v42  ;;  %v6605_v3 = vpop.f32.mrf.mxu3 }
 0x924   :  { %v6212_v37 = vpop.f32.mrf.mxu2 }
 0x925   :  { %v6350_v38 = vadd.f32 %v6212_v37, %v5957_v49  ;;  %v5822_v5 = vpop.f32.mrf.mxu1 }
 0x926   :  { %v5958_v27 = vadd.f32 %v5822_v5, %v11399_v36 }
 0x927   :  { %v6743_v7 = vadd.f32 %v6605_v3, %v6350_v38  ;;  %v6040_v38 = vld [vmem:[#allocation2 + $0x289] sm:$0xff]  ;;  %v6041_v3 = vld [vmem:[#allocation2 + $0x291] sm:$0xff] }
 0x928   :  { %5861 = vmatmul.bf16.gmra.mxu1 %v5693_v60  ;;  %6647 = vmatmul.bf16.gmra.mxu3 %v6479_v4  ;;  %v6433_v60 = vld [vmem:[#allocation2 + $0x2a7] sm:$0xff]  ;;  %v5694_v4 = vpack.c.bf16 %v5648_v6, %v5647_v8  ;;  %v6087_v21 = vpack.c.bf16 %v6041_v3, %v6040_v38  ;;  %v6043_v3 = vld [vmem:[#allocation2 + $0x2b1] sm:$0xff] }
 0x929   :  { %6254 = vmatmul.bf16.gmra.mxu2 %v6086_v19  ;;  %v6042_v38 = vld [vmem:[#allocation2 + $0x2a9] sm:$0xff] }
 0x92a   :  { %v6996_v41 = vpop.f32.mrf.mxu0 }
 0x92b   :  { %v11638_v52 = vadd.f32 %v6996_v41, %v6742_v23  ;;  %v6608_v49 = vpop.f32.mrf.mxu3 }
 0x92c   :  { %v6215_v42 = vpop.f32.mrf.mxu2 }
 0x92d   :  { %v6351_v2 = vadd.f32 %v6215_v42, %v5958_v27  ;;  %v5824_v20 = vpop.f32.mrf.mxu1  ;;  %7035 = vmatmul.bf16.gmra.mxu0 %v11636_v29  ;;  %v6434_v27 = vld [vmem:[#allocation2 + $0x2af] sm:$0xff] }
 0x92e   :  { %v5959_v37 = vadd.f32 %v5824_v20, %v11401_v25  ;;  %v6480_v41 = vpack.c.bf16 %v6434_v27, %v6433_v60  ;;  %v6436_v27 = vld [vmem:[#allocation2 + $0x2cf] sm:$0xff] }
 0x92f   :  { %v6744_v36 = vadd.f32 %v6608_v49, %v6351_v2 }
 0x932   :  { %v6998_v15 = vpop.f32.mrf.mxu0 }
 0x933   :  { %v11642_v5 = vadd.f32 %v6998_v15, %v6743_v7  ;;  %v6610_v61 = vpop.f32.mrf.mxu3 }
 0x934   :  { %v6217_v57 = vpop.f32.mrf.mxu2 }
 0x935   :  { %13331 = vst [vmem:[#allocation87_spill] sm:$0xff] %v11642_v5  ;;  %v6352_v22 = vadd.f32 %v6217_v57, %v5959_v37  ;;  %v5827_v23 = vpop.f32.mrf.mxu1  ;;  %v5649_v5 = vld [vmem:[#allocation2 + $0x2a8] sm:$0xff] }
 0x936   :  { %v5960_v19 = vadd.f32 %v5827_v23, %v11403_v51  ;;  %v5650_v51 = vld [vmem:[#allocation2 + $0x2b0] sm:$0xff] }
 0x937   :  { %v6745_v25 = vadd.f32 %v6610_v61, %v6352_v22 }
 0x938   :  { %5866 = vmatmul.bf16.gmra.mxu1 %v5694_v4  ;;  %6652 = vmatmul.bf16.gmra.mxu3 %v6480_v41 }
 0x939   :  { %6259 = vmatmul.bf16.gmra.mxu2 %v6087_v21  ;;  %v5695_v21 = vpack.c.bf16 %v5650_v51, %v5649_v5  ;;  %v5651_v5 = vld [vmem:[#allocation2 + $0x2c8] sm:$0xff]  ;;  %v5652_v51 = vld [vmem:[#allocation2 + $0x2d0] sm:$0xff] }
 0x93a   :  { %v7001_v42 = vpop.f32.mrf.mxu0 }
 0x93b   :  { %v11645_v49 = vadd.f32 %v7001_v42, %v6744_v36  ;;  %v6613_v20 = vpop.f32.mrf.mxu3  ;;  %v6435_v36 = vld [vmem:[#allocation2 + $0x2c7] sm:$0xff] }
 0x93c   :  { %v6220_v2 = vpop.f32.mrf.mxu2 }
 0x93d   :  { %v6353_v7 = vadd.f32 %v6220_v2, %v5960_v19  ;;  %v5829_v37 = vpop.f32.mrf.mxu1  ;;  %7040 = vmatmul.bf16.gmra.mxu0 %v5694_v4  ;;  %v6481_v4 = vpack.c.bf16 %v6436_v27, %v6435_v36  ;;  %v6437_v27 = vld [vmem:[#allocation2 + $0x2e7] sm:$0xff] }
 0x93e   :  { %v5961_v15 = vadd.f32 %v5829_v37, %v11408_v16  ;;  %v6088_v16 = vpack.c.bf16 %v6043_v3, %v6042_v38  ;;  %v6044_v3 = vld [vmem:[#allocation2 + $0x2c9] sm:$0xff] }
 0x93f   :  { %v6746_v57 = vadd.f32 %v6613_v20, %v6353_v7 }
 0x942   :  { %v7003_v8 = vpop.f32.mrf.mxu0 }
 0x943   :  { %v11648_v22 = vadd.f32 %v7003_v8, %v6745_v25  ;;  %v6615_v23 = vpop.f32.mrf.mxu3 }
 0x944   :  { %v6222_v6 = vpop.f32.mrf.mxu2 }
 0x945   :  { %v6354_v61 = vadd.f32 %v6222_v6, %v5961_v15  ;;  %v5832_v60 = vpop.f32.mrf.mxu1 }
 0x946   :  { %v5962_v19 = vadd.f32 %v5832_v60, %v11410_v30  ;;  %v8947_v30 = vld [vmem:[%s12828_s4 + $0x210] sm:$0xff] }
 0x947   :  { %v6747_v41 = vadd.f32 %v6615_v23, %v6354_v61  ;;  %7350 = vmatpush.bf16.msra.mxu1 %v8947_v30  ;;  %v6045_v61 = vld [vmem:[#allocation2 + $0x2d1] sm:$0xff] }
 0x948   :  { %5871 = vmatmul.bf16.gmra.mxu1 %v5695_v21  ;;  %6657 = vmatmul.bf16.gmra.mxu3 %v6481_v4  ;;  %v6089_v4 = vpack.c.bf16 %v6045_v61, %v6044_v3  ;;  %v6046_v3 = vld [vmem:[#allocation2 + $0x2e9] sm:$0xff]  ;;  %v6047_v61 = vld [vmem:[#allocation2 + $0x2f1] sm:$0xff] }
 0x949   :  { %6264 = vmatmul.bf16.gmra.mxu2 %v6088_v16 }
 0x94a   :  { %v7006_v42 = vpop.f32.mrf.mxu0 }
 0x94b   :  { %v11651_v7 = vadd.f32 %v7006_v42, %v6746_v57  ;;  %v6618_v20 = vpop.f32.mrf.mxu3 }
 0x94c   :  { %v6225_v2 = vpop.f32.mrf.mxu2 }
 0x94d   :  { %v6355_v25 = vadd.f32 %v6225_v2, %v5962_v19  ;;  %v5834_v37 = vpop.f32.mrf.mxu1  ;;  %7045 = vmatmul.bf16.gmra.mxu0 %v5695_v21  ;;  %v5696_v21 = vpack.c.bf16 %v5652_v51, %v5651_v5 }
 0x94e   :  { %v5963_v15 = vadd.f32 %v5834_v37, %v11412_v9  ;;  %v6438_v9 = vld [vmem:[#allocation2 + $0x2ef] sm:$0xff] }
 0x94f   :  { %v6748_v8 = vadd.f32 %v6618_v20, %v6355_v25  ;;  %v6482_v42 = vpack.c.bf16 %v6438_v9, %v6437_v27  ;;  %v6440_v9 = vld [vmem:[#allocation2 + $0x30f] sm:$0xff] }
 0x952   :  { %v7008_v6 = vpop.f32.mrf.mxu0 }
 0x953   :  { %v11657_v57 = vadd.f32 %v7008_v6, %v6747_v41  ;;  %v6620_v60 = vpop.f32.mrf.mxu3 }
 0x954   :  { %v6227_v38 = vpop.f32.mrf.mxu2 }
 0x955   :  { %v6356_v23 = vadd.f32 %v6227_v38, %v5963_v15  ;;  %v5837_v36 = vpop.f32.mrf.mxu1  ;;  %v5653_v38 = vld [vmem:[#allocation2 + $0x2e8] sm:$0xff] }
 0x956   :  { %v5964_v19 = vadd.f32 %v5837_v36, %v11414_v26  ;;  %v5654_v26 = vld [vmem:[#allocation2 + $0x2f0] sm:$0xff] }
 0x957   :  { %v6749_v16 = vadd.f32 %v6620_v60, %v6356_v23 }
 0x958   :  { %5876 = vmatmul.bf16.gmra.mxu1 %v5696_v21  ;;  %6662 = vmatmul.bf16.gmra.mxu3 %v6482_v42 }
 0x959   :  { %6269 = vmatmul.bf16.gmra.mxu2 %v6089_v4  ;;  %v5697_v4 = vpack.c.bf16 %v5654_v26, %v5653_v38 }
 0x95a   :  { %v7011_v2 = vpop.f32.mrf.mxu0 }
 0x95b   :  { %v11660_v20 = vadd.f32 %v7011_v2, %v6748_v8  ;;  %v6623_v37 = vpop.f32.mrf.mxu3  ;;  %v6439_v8 = vld [vmem:[#allocation2 + $0x307] sm:$0xff] }
 0x95c   :  { %v6230_v25 = vpop.f32.mrf.mxu2 }
 0x95d   :  { %v6357_v41 = vadd.f32 %v6230_v25, %v5964_v19  ;;  %v5839_v15 = vpop.f32.mrf.mxu1  ;;  %7050 = vmatmul.bf16.gmra.mxu0 %v5696_v21  ;;  %v6483_v21 = vpack.c.bf16 %v6440_v9, %v6439_v8  ;;  %v6442_v9 = vld [vmem:[#allocation2 + $0x32f] sm:$0xff] }
 0x95e   :  { %v5965_v30 = vadd.f32 %v5839_v15, %v11416_v35  ;;  %v6090_v35 = vpack.c.bf16 %v6047_v61, %v6046_v3  ;;  %v6048_v3 = vld [vmem:[#allocation2 + $0x309] sm:$0xff]  ;;  %v6049_v61 = vld [vmem:[#allocation2 + $0x311] sm:$0xff] }
 0x95f   :  { %v6750_v6 = vadd.f32 %v6623_v37, %v6357_v41 }
 0x962   :  { %v7013_v5 = vpop.f32.mrf.mxu0 }
 0x963   :  { %v11663_v23 = vadd.f32 %v7013_v5, %v6749_v16  ;;  %v6625_v36 = vpop.f32.mrf.mxu3 }
 0x964   :  { %v6232_v51 = vpop.f32.mrf.mxu2 }
 0x965   :  { %v6358_v60 = vadd.f32 %v6232_v51, %v5965_v30  ;;  %v5842_v27 = vpop.f32.mrf.mxu1  ;;  %v5655_v51 = vld [vmem:[#allocation2 + $0x308] sm:$0xff] }
 0x966   :  { %v5966_v19 = vadd.f32 %v5842_v27, %v11418_v39  ;;  %v5656_v39 = vld [vmem:[#allocation2 + $0x310] sm:$0xff] }
 0x967   :  { %v6751_v42 = vadd.f32 %v6625_v36, %v6358_v60 }
 0x968   :  { %5881 = vmatmul.bf16.gmra.mxu1 %v5697_v4  ;;  %6667 = vmatmul.bf16.gmra.mxu3 %v6483_v21 }
 0x969   :  { %6274 = vmatmul.bf16.gmra.mxu2 %v6090_v35  ;;  %v5698_v35 = vpack.c.bf16 %v5656_v39, %v5655_v51 }
 0x96a   :  { %v7016_v2 = vpop.f32.mrf.mxu0 }
 0x96b   :  { %v11666_v41 = vadd.f32 %v7016_v2, %v6750_v6  ;;  %v6628_v37 = vpop.f32.mrf.mxu3  ;;  %v6441_v6 = vld [vmem:[#allocation2 + $0x327] sm:$0xff] }
 0x96c   :  { %v6235_v25 = vpop.f32.mrf.mxu2 }
 0x96d   :  { %v6359_v16 = vadd.f32 %v6235_v25, %v5966_v19  ;;  %v5844_v15 = vpop.f32.mrf.mxu1  ;;  %7055 = vmatmul.bf16.gmra.mxu0 %v5697_v4  ;;  %v6484_v4 = vpack.c.bf16 %v6442_v9, %v6441_v6  ;;  %v6444_v9 = vld [vmem:[#allocation2 + $0x34f] sm:$0xff] }
 0x96e   :  { %v5967_v30 = vadd.f32 %v5844_v15, %v11420_v18  ;;  %v6091_v18 = vpack.c.bf16 %v6049_v61, %v6048_v3  ;;  %v6050_v3 = vld [vmem:[#allocation2 + $0x329] sm:$0xff]  ;;  %v6051_v61 = vld [vmem:[#allocation2 + $0x331] sm:$0xff] }
 0x96f   :  { %v6752_v5 = vadd.f32 %v6628_v37, %v6359_v16 }
 0x972   :  { %v7018_v38 = vpop.f32.mrf.mxu0 }
 0x973   :  { %v11669_v60 = vadd.f32 %v7018_v38, %v6751_v42  ;;  %v6630_v27 = vpop.f32.mrf.mxu3 }
 0x974   :  { %v6237_v26 = vpop.f32.mrf.mxu2 }
 0x975   :  { %v6360_v36 = vadd.f32 %v6237_v26, %v5967_v30  ;;  %v5847_v8 = vpop.f32.mrf.mxu1  ;;  %v5657_v26 = vld [vmem:[#allocation2 + $0x328] sm:$0xff] }
 0x976   :  { %v5968_v19 = vadd.f32 %v5847_v8, %v11422_v24  ;;  %v5658_v24 = vld [vmem:[#allocation2 + $0x330] sm:$0xff] }
 0x977   :  { %v6753_v21 = vadd.f32 %v6630_v27, %v6360_v36 }
 0x978   :  { %5886 = vmatmul.bf16.gmra.mxu1 %v5698_v35  ;;  %6672 = vmatmul.bf16.gmra.mxu3 %v6484_v4 }
 0x979   :  { %6279 = vmatmul.bf16.gmra.mxu2 %v6091_v18  ;;  %v5699_v18 = vpack.c.bf16 %v5658_v24, %v5657_v26  ;;  %v5659_v26 = vld [vmem:[#allocation2 + $0x348] sm:$0xff]  ;;  %v5660_v24 = vld [vmem:[#allocation2 + $0x350] sm:$0xff] }
 0x97a   :  { %v7021_v2 = vpop.f32.mrf.mxu0 }
 0x97b   :  { %v11672_v16 = vadd.f32 %v7021_v2, %v6752_v5  ;;  %v6633_v37 = vpop.f32.mrf.mxu3  ;;  %v6443_v5 = vld [vmem:[#allocation2 + $0x347] sm:$0xff] }
 0x97c   :  { %v6240_v25 = vpop.f32.mrf.mxu2 }
 0x97d   :  { %v6361_v42 = vadd.f32 %v6240_v25, %v5968_v19  ;;  %v5849_v15 = vpop.f32.mrf.mxu1  ;;  %7060 = vmatmul.bf16.gmra.mxu0 %v5698_v35  ;;  %v6485_v35 = vpack.c.bf16 %v6444_v9, %v6443_v5  ;;  %v6445_v9 = vld [vmem:[#allocation2 + $0x367] sm:$0xff] }
 0x97e   :  { %v5969_v30 = vadd.f32 %v5849_v15, %v11427_v63  ;;  %v6092_v63 = vpack.c.bf16 %v6051_v61, %v6050_v3  ;;  %v6052_v61 = vld [vmem:[#allocation2 + $0x349] sm:$0xff] }
 0x97f   :  { %v6754_v38 = vadd.f32 %v6633_v37, %v6361_v42 }
 0x982   :  { %v7023_v51 = vpop.f32.mrf.mxu0 }
 0x983   :  { %v11675_v36 = vadd.f32 %v7023_v51, %v6753_v21  ;;  %v6635_v8 = vpop.f32.mrf.mxu3 }
 0x984   :  { %v6242_v39 = vpop.f32.mrf.mxu2 }
 0x985   :  { %v6362_v27 = vadd.f32 %v6242_v39, %v5969_v30  ;;  %v5852_v6 = vpop.f32.mrf.mxu1 }
 0x986   :  { %v5970_v19 = vadd.f32 %v5852_v6, %v11429_v43  ;;  %v8946_v43 = vld [vmem:[%s12828_s4 + $0x208] sm:$0xff] }
 0x987   :  { %v6755_v4 = vadd.f32 %v6635_v8, %v6362_v27  ;;  %7351 = vmatpush.bf16.msra.mxu1 %v8946_v43  ;;  %v6053_v27 = vld [vmem:[#allocation2 + $0x351] sm:$0xff] }
 0x988   :  { %5891 = vmatmul.bf16.gmra.mxu1 %v5699_v18  ;;  %6677 = vmatmul.bf16.gmra.mxu3 %v6485_v35  ;;  %v6093_v35 = vpack.c.bf16 %v6053_v27, %v6052_v61  ;;  %v6054_v61 = vld [vmem:[#allocation2 + $0x369] sm:$0xff]  ;;  %v6055_v27 = vld [vmem:[#allocation2 + $0x371] sm:$0xff] }
 0x989   :  { %6284 = vmatmul.bf16.gmra.mxu2 %v6092_v63 }
 0x98a   :  { %v7026_v2 = vpop.f32.mrf.mxu0 }
 0x98b   :  { %v11678_v42 = vadd.f32 %v7026_v2, %v6754_v38  ;;  %v6638_v37 = vpop.f32.mrf.mxu3 }
 0x98c   :  { %v6245_v25 = vpop.f32.mrf.mxu2 }
 0x98d   :  { %v6363_v21 = vadd.f32 %v6245_v25, %v5970_v19  ;;  %v5854_v15 = vpop.f32.mrf.mxu1  ;;  %7065 = vmatmul.bf16.gmra.mxu0 %v5699_v18  ;;  %v5700_v18 = vpack.c.bf16 %v5660_v24, %v5659_v26 }
 0x98e   :  { %v5971_v30 = vadd.f32 %v5854_v15, %v11431_v59  ;;  %v6446_v59 = vld [vmem:[#allocation2 + $0x36f] sm:$0xff] }
 0x98f   :  { %v6756_v51 = vadd.f32 %v6638_v37, %v6363_v21  ;;  %v6486_v2 = vpack.c.bf16 %v6446_v59, %v6445_v9  ;;  %v6448_v59 = vld [vmem:[#allocation2 + $0x38f] sm:$0xff] }
 0x992   :  { %v7028_v39 = vpop.f32.mrf.mxu0 }
 0x993   :  { %v11684_v38 = vadd.f32 %v7028_v39, %v6755_v4  ;;  %v6640_v6 = vpop.f32.mrf.mxu3 }
 0x994   :  { %v6247_v3 = vpop.f32.mrf.mxu2 }
 0x995   :  { %v6364_v8 = vadd.f32 %v6247_v3, %v5971_v30  ;;  %v5857_v5 = vpop.f32.mrf.mxu1  ;;  %v5661_v3 = vld [vmem:[#allocation2 + $0x368] sm:$0xff] }
 0x996   :  { %v5972_v19 = vadd.f32 %v5857_v5, %v11433_v44  ;;  %v5662_v44 = vld [vmem:[#allocation2 + $0x370] sm:$0xff] }
 0x997   :  { %v6757_v63 = vadd.f32 %v6640_v6, %v6364_v8 }
 0x998   :  { %5896 = vmatmul.bf16.gmra.mxu1 %v5700_v18  ;;  %6682 = vmatmul.bf16.gmra.mxu3 %v6486_v2 }
 0x999   :  { %6289 = vmatmul.bf16.gmra.mxu2 %v6093_v35  ;;  %v5701_v35 = vpack.c.bf16 %v5662_v44, %v5661_v3 }
 0x99a   :  { %v7031_v25 = vpop.f32.mrf.mxu0 }
 0x99b   :  { %v11687_v37 = vadd.f32 %v7031_v25, %v6756_v51  ;;  %v6643_v15 = vpop.f32.mrf.mxu3  ;;  %v6447_v51 = vld [vmem:[#allocation2 + $0x387] sm:$0xff] }
 0x99c   :  { %v6250_v21 = vpop.f32.mrf.mxu2 }
 0x99d   :  { %v6365_v4 = vadd.f32 %v6250_v21, %v5972_v19  ;;  %v5859_v30 = vpop.f32.mrf.mxu1  ;;  %7070 = vmatmul.bf16.gmra.mxu0 %v5700_v18  ;;  %v6487_v18 = vpack.c.bf16 %v6448_v59, %v6447_v51  ;;  %v6450_v59 = vld [vmem:[#allocation2 + $0x3af] sm:$0xff] }
 0x99e   :  { %v5973_v43 = vadd.f32 %v5859_v30, %v11435_v56  ;;  %v6094_v56 = vpack.c.bf16 %v6055_v27, %v6054_v61  ;;  %v6056_v61 = vld [vmem:[#allocation2 + $0x389] sm:$0xff]  ;;  %v6057_v27 = vld [vmem:[#allocation2 + $0x391] sm:$0xff] }
 0x99f   :  { %v6758_v39 = vadd.f32 %v6643_v15, %v6365_v4 }
 0x9a2   :  { %v7033_v26 = vpop.f32.mrf.mxu0 }
 0x9a3   :  { %v11690_v8 = vadd.f32 %v7033_v26, %v6757_v63  ;;  %v6645_v5 = vpop.f32.mrf.mxu3 }
 0x9a4   :  { %v6252_v24 = vpop.f32.mrf.mxu2 }
 0x9a5   :  { %v6366_v6 = vadd.f32 %v6252_v24, %v5973_v43  ;;  %v5862_v9 = vpop.f32.mrf.mxu1  ;;  %v5663_v24 = vld [vmem:[#allocation2 + $0x388] sm:$0xff] }
 0x9a6   :  { %v5974_v19 = vadd.f32 %v5862_v9, %v11437_v47  ;;  %v5664_v47 = vld [vmem:[#allocation2 + $0x390] sm:$0xff] }
 0x9a7   :  { %v6759_v2 = vadd.f32 %v6645_v5, %v6366_v6 }
 0x9a8   :  { %5901 = vmatmul.bf16.gmra.mxu1 %v5701_v35  ;;  %6687 = vmatmul.bf16.gmra.mxu3 %v6487_v18 }
 0x9a9   :  { %6294 = vmatmul.bf16.gmra.mxu2 %v6094_v56  ;;  %v5702_v56 = vpack.c.bf16 %v5664_v47, %v5663_v24 }
 0x9aa   :  { %v7036_v25 = vpop.f32.mrf.mxu0 }
 0x9ab   :  { %v11693_v4 = vadd.f32 %v7036_v25, %v6758_v39  ;;  %v6648_v15 = vpop.f32.mrf.mxu3  ;;  %v6449_v39 = vld [vmem:[#allocation2 + $0x3a7] sm:$0xff] }
 0x9ac   :  { %v6255_v21 = vpop.f32.mrf.mxu2 }
 0x9ad   :  { %v6367_v63 = vadd.f32 %v6255_v21, %v5974_v19  ;;  %v5864_v30 = vpop.f32.mrf.mxu1  ;;  %7075 = vmatmul.bf16.gmra.mxu0 %v5701_v35  ;;  %v6488_v35 = vpack.c.bf16 %v6450_v59, %v6449_v39  ;;  %v6452_v59 = vld [vmem:[#allocation2 + $0x3cf] sm:$0xff] }
 0x9ae   :  { %v5975_v43 = vadd.f32 %v5864_v30, %v11439_v13  ;;  %v6095_v13 = vpack.c.bf16 %v6057_v27, %v6056_v61  ;;  %v6058_v61 = vld [vmem:[#allocation2 + $0x3a9] sm:$0xff]  ;;  %v6059_v27 = vld [vmem:[#allocation2 + $0x3b1] sm:$0xff] }
 0x9af   :  { %v6760_v26 = vadd.f32 %v6648_v15, %v6367_v63 }
 0x9b2   :  { %v7038_v3 = vpop.f32.mrf.mxu0 }
 0x9b3   :  { %v11696_v6 = vadd.f32 %v7038_v3, %v6759_v2  ;;  %v6650_v9 = vpop.f32.mrf.mxu3 }
 0x9b4   :  { %v6257_v44 = vpop.f32.mrf.mxu2 }
 0x9b5   :  { %v6368_v5 = vadd.f32 %v6257_v44, %v5975_v43  ;;  %v5867_v51 = vpop.f32.mrf.mxu1  ;;  %v5665_v44 = vld [vmem:[#allocation2 + $0x3a8] sm:$0xff] }
 0x9b6   :  { %v5976_v19 = vadd.f32 %v5867_v51, %v11441_v58  ;;  %v5666_v58 = vld [vmem:[#allocation2 + $0x3b0] sm:$0xff] }
 0x9b7   :  { %v6761_v18 = vadd.f32 %v6650_v9, %v6368_v5 }
 0x9b8   :  { %5906 = vmatmul.bf16.gmra.mxu1 %v5702_v56  ;;  %6692 = vmatmul.bf16.gmra.mxu3 %v6488_v35 }
 0x9b9   :  { %6299 = vmatmul.bf16.gmra.mxu2 %v6095_v13  ;;  %v5703_v13 = vpack.c.bf16 %v5666_v58, %v5665_v44  ;;  %v5667_v44 = vld [vmem:[#allocation2 + $0x3c8] sm:$0xff]  ;;  %v5668_v58 = vld [vmem:[#allocation2 + $0x3d0] sm:$0xff] }
 0x9ba   :  { %v7041_v25 = vpop.f32.mrf.mxu0 }
 0x9bb   :  { %v11699_v63 = vadd.f32 %v7041_v25, %v6760_v26  ;;  %v6653_v15 = vpop.f32.mrf.mxu3  ;;  %v6451_v26 = vld [vmem:[#allocation2 + $0x3c7] sm:$0xff] }
 0x9bc   :  { %v6260_v21 = vpop.f32.mrf.mxu2 }
 0x9bd   :  { %v6369_v2 = vadd.f32 %v6260_v21, %v5976_v19  ;;  %v5869_v30 = vpop.f32.mrf.mxu1  ;;  %7080 = vmatmul.bf16.gmra.mxu0 %v5702_v56  ;;  %v6489_v56 = vpack.c.bf16 %v6452_v59, %v6451_v26  ;;  %v6453_v59 = vld [vmem:[#allocation2 + $0x3e7] sm:$0xff] }
 0x9be   :  { %v5977_v43 = vadd.f32 %v5869_v30, %v11446_v50  ;;  %v6096_v50 = vpack.c.bf16 %v6059_v27, %v6058_v61  ;;  %v6060_v27 = vld [vmem:[#allocation2 + $0x3c9] sm:$0xff] }
 0x9bf   :  { %v6762_v3 = vadd.f32 %v6653_v15, %v6369_v2 }
 0x9c2   :  { %v7043_v24 = vpop.f32.mrf.mxu0 }
 0x9c3   :  { %v11702_v5 = vadd.f32 %v7043_v24, %v6761_v18  ;;  %v6655_v51 = vpop.f32.mrf.mxu3 }
 0x9c4   :  { %v6262_v47 = vpop.f32.mrf.mxu2 }
 0x9c5   :  { %v6370_v9 = vadd.f32 %v6262_v47, %v5977_v43  ;;  %v5872_v39 = vpop.f32.mrf.mxu1 }
 0x9c6   :  { %v5978_v19 = vadd.f32 %v5872_v39, %v11448_v10  ;;  %v8945_v10 = vld [vmem:[%s12828_s4 + $0x200] sm:$0xff] }
 0x9c7   :  { %v6763_v35 = vadd.f32 %v6655_v51, %v6370_v9  ;;  %7352 = vmatpush.bf16.msra.mxu1 %v8945_v10  ;;  %v6061_v9 = vld [vmem:[#allocation2 + $0x3d1] sm:$0xff] }
 0x9c8   :  { %5911 = vmatmul.bf16.gmra.mxu1 %v5703_v13  ;;  %6697 = vmatmul.bf16.gmra.mxu3 %v6489_v56  ;;  %v6097_v56 = vpack.c.bf16 %v6061_v9, %v6060_v27  ;;  %v13334_v10 = vld [vmem:[#allocation29_spill] sm:$0xff] }
 0x9c9   :  { %6304 = vmatmul.bf16.gmra.mxu2 %v6096_v50  ;;  %v6062_v27 = vld [vmem:[#allocation2 + $0x3e9] sm:$0xff]  ;;  %v6063_v9 = vld [vmem:[#allocation2 + $0x3f1] sm:$0xff] }
 0x9ca   :  { %v7046_v25 = vpop.f32.mrf.mxu0 }
 0x9cb   :  { %v11705_v2 = vadd.f32 %v7046_v25, %v6762_v3  ;;  %v6658_v15 = vpop.f32.mrf.mxu3 }
 0x9cc   :  { %v6265_v21 = vpop.f32.mrf.mxu2 }
 0x9cd   :  { %v6371_v18 = vadd.f32 %v6265_v21, %v5978_v19  ;;  %v5874_v30 = vpop.f32.mrf.mxu1  ;;  %7085 = vmatmul.bf16.gmra.mxu0 %v5703_v13  ;;  %v5704_v13 = vpack.c.bf16 %v5668_v58, %v5667_v44 }
 0x9ce   :  { %v5979_v43 = vadd.f32 %v5874_v30, %v11450_v0  ;;  %v6454_v0 = vld [vmem:[#allocation2 + $0x3ef] sm:$0xff] }
 0x9cf   :  { %v6764_v24 = vadd.f32 %v6658_v15, %v6371_v18  ;;  %v6490_v25 = vpack.c.bf16 %v6454_v0, %v6453_v59  ;;  %v6456_v0 = vld [vmem:[#allocation2 + $0x40f] sm:$0xff] }
 0x9d2   :  { %v7048_v47 = vpop.f32.mrf.mxu0 }
 0x9d3   :  { %v11711_v3 = vadd.f32 %v7048_v47, %v6763_v35  ;;  %v6660_v39 = vpop.f32.mrf.mxu3 }
 0x9d4   :  { %v6267_v61 = vpop.f32.mrf.mxu2 }
 0x9d5   :  { %13332 = vst [vmem:[#allocation86_spill] sm:$0xff] %v11711_v3  ;;  %v6372_v51 = vadd.f32 %v6267_v61, %v5979_v43  ;;  %v5877_v26 = vpop.f32.mrf.mxu1  ;;  %v5669_v3 = vld [vmem:[#allocation2 + $0x3e8] sm:$0xff] }
 0x9d6   :  { %v5980_v19 = vadd.f32 %v5877_v26, %v11452_v28  ;;  %v5670_v28 = vld [vmem:[#allocation2 + $0x3f0] sm:$0xff] }
 0x9d7   :  { %v6765_v50 = vadd.f32 %v6660_v39, %v6372_v51 }
 0x9d8   :  { %5916 = vmatmul.bf16.gmra.mxu1 %v5704_v13  ;;  %6702 = vmatmul.bf16.gmra.mxu3 %v6490_v25  ;;  %v5705_v25 = vpack.c.bf16 %v5670_v28, %v5669_v3 }
 0x9d9   :  { %6309 = vmatmul.bf16.gmra.mxu2 %v6097_v56 }
 0x9da   :  { %v7051_v21 = vpop.f32.mrf.mxu0 }
 0x9db   :  { %v11714_v15 = vadd.f32 %v7051_v21, %v6764_v24  ;;  %v6663_v30 = vpop.f32.mrf.mxu3  ;;  %v6455_v24 = vld [vmem:[#allocation2 + $0x407] sm:$0xff] }
 0x9dc   :  { %v6270_v18 = vpop.f32.mrf.mxu2 }
 0x9dd   :  { %13333 = vst [vmem:[#allocation32_spill] sm:$0xff] %v11714_v15  ;;  %v6373_v35 = vadd.f32 %v6270_v18, %v5980_v19  ;;  %v5879_v43 = vpop.f32.mrf.mxu1  ;;  %7090 = vmatmul.bf16.gmra.mxu0 %v5704_v13  ;;  %v13336_v19 = vld [vmem:[#allocation62_spill] sm:$0xff]  ;;  %v6098_v18 = vpack.c.bf16 %v6063_v9, %v6062_v27  ;;  %v6491_v13 = vpack.c.bf16 %v6456_v0, %v6455_v24  ;;  %v5671_v15 = vld [vmem:[#allocation2 + $0x408] sm:$0xff] }
 0x9de   :  { %v5981_v47 = vadd.f32 %v5879_v43, %v13334_v10  ;;  %v6064_v27 = vld [vmem:[#allocation2 + $0x409] sm:$0xff]  ;;  %v6065_v9 = vld [vmem:[#allocation2 + $0x411] sm:$0xff] }
 0x9df   :  { %v6766_v61 = vadd.f32 %v6663_v30, %v6373_v35 }
 0x9e2   :  { %v7053_v44 = vpop.f32.mrf.mxu0 }
 0x9e3   :  { %v11717_v51 = vadd.f32 %v7053_v44, %v6765_v50  ;;  %v6665_v26 = vpop.f32.mrf.mxu3  ;;  %v13338_v44 = vld [vmem:[#allocation75_spill] sm:$0xff] }
 0x9e4   :  { %v6272_v58 = vpop.f32.mrf.mxu2 }
 0x9e5   :  { %13335 = vst [vmem:[#allocation65_spill] sm:$0xff] %v11717_v51  ;;  %v6374_v39 = vadd.f32 %v6272_v58, %v5981_v47  ;;  %v5882_v59 = vpop.f32.mrf.mxu1 }
 0x9e6   :  { %v5982_v56 = vadd.f32 %v5882_v59, %v13336_v19  ;;  %v5672_v59 = vld [vmem:[#allocation2 + $0x410] sm:$0xff] }
 0x9e7   :  { %v6767_v21 = vadd.f32 %v6665_v26, %v6374_v39  ;;  %v6458_v19 = vld [vmem:[#allocation2 + $0x42f] sm:$0xff] }
 0x9e8   :  { %5921 = vmatmul.bf16.gmra.mxu1 %v5705_v25  ;;  %6707 = vmatmul.bf16.gmra.mxu3 %v6491_v13  ;;  %v5706_v13 = vpack.c.bf16 %v5672_v59, %v5671_v15 }
 0x9e9   :  { %6314 = vmatmul.bf16.gmra.mxu2 %v6098_v18 }
 0x9ea   :  { %v7056_v35 = vpop.f32.mrf.mxu0 }
 0x9eb   :  { %v11720_v43 = vadd.f32 %v7056_v35, %v6766_v61  ;;  %v6668_v10 = vpop.f32.mrf.mxu3  ;;  %v6457_v61 = vld [vmem:[#allocation2 + $0x427] sm:$0xff] }
 0x9ec   :  { %v6275_v30 = vpop.f32.mrf.mxu2 }
 0x9ed   :  { %13337 = vst [vmem:[#allocation78_spill] sm:$0xff] %v11720_v43  ;;  %v6375_v50 = vadd.f32 %v6275_v30, %v5982_v56  ;;  %v5884_v47 = vpop.f32.mrf.mxu1  ;;  %7095 = vmatmul.bf16.gmra.mxu0 %v5705_v25  ;;  %v13340_v56 = vld [vmem:[#allocation73_spill] sm:$0xff]  ;;  %v6099_v30 = vpack.c.bf16 %v6065_v9, %v6064_v27  ;;  %v6492_v25 = vpack.c.bf16 %v6458_v19, %v6457_v61  ;;  %v5673_v43 = vld [vmem:[#allocation2 + $0x428] sm:$0xff] }
 0x9ee   :  { %v5983_v58 = vadd.f32 %v5884_v47, %v13338_v44  ;;  %v6066_v27 = vld [vmem:[#allocation2 + $0x429] sm:$0xff]  ;;  %v6067_v9 = vld [vmem:[#allocation2 + $0x431] sm:$0xff] }
 0x9ef   :  { %v6768_v51 = vadd.f32 %v6668_v10, %v6375_v50 }
 0x9f2   :  { %v7058_v3 = vpop.f32.mrf.mxu0 }
 0x9f3   :  { %v11723_v39 = vadd.f32 %v7058_v3, %v6767_v21  ;;  %v6670_v24 = vpop.f32.mrf.mxu3  ;;  %v13342_v3 = vld [vmem:[#allocation64_spill] sm:$0xff] }
 0x9f4   :  { %v6277_v28 = vpop.f32.mrf.mxu2 }
 0x9f5   :  { %13339 = vst [vmem:[#allocation90_spill] sm:$0xff] %v11723_v39  ;;  %v6376_v26 = vadd.f32 %v6277_v28, %v5983_v58  ;;  %v5887_v0 = vpop.f32.mrf.mxu1 }
 0x9f6   :  { %v5984_v18 = vadd.f32 %v5887_v0, %v13340_v56  ;;  %v5674_v0 = vld [vmem:[#allocation2 + $0x430] sm:$0xff] }
 0x9f7   :  { %v6769_v35 = vadd.f32 %v6670_v24, %v6376_v26  ;;  %v6460_v56 = vld [vmem:[#allocation2 + $0x44f] sm:$0xff] }
 0x9f8   :  { %5926 = vmatmul.bf16.gmra.mxu1 %v5706_v13  ;;  %6712 = vmatmul.bf16.gmra.mxu3 %v6492_v25  ;;  %v5707_v25 = vpack.c.bf16 %v5674_v0, %v5673_v43  ;;  %v6461_v43 = vld [vmem:[#allocation2 + $0x467] sm:$0xff]  ;;  %v6462_v0 = vld [vmem:[#allocation2 + $0x46f] sm:$0xff] }
 0x9f9   :  { %6319 = vmatmul.bf16.gmra.mxu2 %v6099_v30 }
 0x9fa   :  { %v7061_v50 = vpop.f32.mrf.mxu0 }
 0x9fb   :  { %v11726_v47 = vadd.f32 %v7061_v50, %v6768_v51  ;;  %v6673_v44 = vpop.f32.mrf.mxu3  ;;  %v6459_v51 = vld [vmem:[#allocation2 + $0x447] sm:$0xff] }
 0x9fc   :  { %v6280_v10 = vpop.f32.mrf.mxu2 }
 0x9fd   :  { %13341 = vst [vmem:[#allocation89_spill] sm:$0xff] %v11726_v47  ;;  %v6377_v21 = vadd.f32 %v6280_v10, %v5984_v18  ;;  %v5889_v58 = vpop.f32.mrf.mxu1  ;;  %7100 = vmatmul.bf16.gmra.mxu0 %v5706_v13  ;;  %v13344_v18 = vld [vmem:[#allocation67_spill] sm:$0xff]  ;;  %v6100_v10 = vpack.c.bf16 %v6067_v9, %v6066_v27  ;;  %v6493_v13 = vpack.c.bf16 %v6460_v56, %v6459_v51  ;;  %v5675_v47 = vld [vmem:[#allocation2 + $0x448] sm:$0xff] }
 0x9fe   :  { %v5985_v28 = vadd.f32 %v5889_v58, %v13342_v3 }
 0x9ff   :  { %v6770_v39 = vadd.f32 %v6673_v44, %v6377_v21 }
 0xa02   :  { %v7063_v15 = vpop.f32.mrf.mxu0 }
 0xa03   :  { %v11729_v26 = vadd.f32 %v7063_v15, %v6769_v35  ;;  %v6675_v61 = vpop.f32.mrf.mxu3  ;;  %v13346_v15 = vld [vmem:[#allocation10_spill] sm:$0xff] }
 0xa04   :  { %v6282_v59 = vpop.f32.mrf.mxu2 }
 0xa05   :  { %13343 = vst [vmem:[#allocation72_spill] sm:$0xff] %v11729_v26  ;;  %v6378_v24 = vadd.f32 %v6282_v59, %v5985_v28  ;;  %v5892_v19 = vpop.f32.mrf.mxu1 }
 0xa06   :  { %v5986_v30 = vadd.f32 %v5892_v19, %v13344_v18  ;;  %v5676_v19 = vld [vmem:[#allocation2 + $0x450] sm:$0xff] }
 0xa07   :  { %v6771_v50 = vadd.f32 %v6675_v61, %v6378_v24  ;;  %v6068_v24 = vld [vmem:[#allocation2 + $0x449] sm:$0xff]  ;;  %v6069_v61 = vld [vmem:[#allocation2 + $0x451] sm:$0xff] }
 0xa08   :  { %5931 = vmatmul.bf16.gmra.mxu1 %v5707_v25  ;;  %6717 = vmatmul.bf16.gmra.mxu3 %v6493_v13  ;;  %v5708_v13 = vpack.c.bf16 %v5676_v19, %v5675_v47 }
 0xa09   :  { %6324 = vmatmul.bf16.gmra.mxu2 %v6100_v10 }
 0xa0a   :  { %v7066_v21 = vpop.f32.mrf.mxu0 }
 0xa0b   :  { %v11732_v58 = vadd.f32 %v7066_v21, %v6770_v39  ;;  %v6678_v3 = vpop.f32.mrf.mxu3  ;;  %v6494_v21 = vpack.c.bf16 %v6462_v0, %v6461_v43 }
 0xa0c   :  { %v6285_v44 = vpop.f32.mrf.mxu2 }
 0xa0d   :  { %13345 = vst [vmem:[#allocation83_spill] sm:$0xff] %v11732_v58  ;;  %v6379_v35 = vadd.f32 %v6285_v44, %v5986_v30  ;;  %v5894_v28 = vpop.f32.mrf.mxu1  ;;  %7105 = vmatmul.bf16.gmra.mxu0 %v5707_v25  ;;  %v13348_v30 = vld [vmem:[#allocation66_spill] sm:$0xff]  ;;  %v6101_v25 = vpack.c.bf16 %v6069_v61, %v6068_v24 }
 0xa0e   :  { %v5987_v59 = vadd.f32 %v5894_v28, %v13346_v15 }
 0xa0f   :  { %v6772_v26 = vadd.f32 %v6678_v3, %v6379_v35 }
 0xa12   :  { %v7068_v27 = vpop.f32.mrf.mxu0 }
 0xa13   :  { %v11735_v51 = vadd.f32 %v7068_v27, %v6771_v50  ;;  %v6680_v39 = vpop.f32.mrf.mxu3  ;;  %v13349_v27 = vld [vmem:[#allocation71_spill] sm:$0xff] }
 0xa14   :  { %v6287_v9 = vpop.f32.mrf.mxu2 }
 0xa15   :  { %13347 = vst [vmem:[#allocation81_spill] sm:$0xff] %v11735_v51  ;;  %v6380_v56 = vadd.f32 %v6287_v9, %v5987_v59  ;;  %v5897_v18 = vpop.f32.mrf.mxu1  ;;  %v7185_v51 = vld [vmem:[#allocation2 + $0x49] sm:$0xff] }
 0xa16   :  { %v5988_v10 = vadd.f32 %v5897_v18, %v13348_v30  ;;  %v7186_v18 = vld [vmem:[#allocation2 + $0x51] sm:$0xff] }
 0xa17   :  { %v6773_v44 = vadd.f32 %v6680_v39, %v6380_v56  ;;  %v13350_v56 = vld [vmem:[#allocation79_spill] sm:$0xff] }
 0xa18   :  { %5936 = vmatmul.bf16.gmra.mxu1 %v5708_v13  ;;  %6722 = vmatmul.bf16.gmra.mxu3 %v6494_v21 }
 0xa19   :  { %6329 = vmatmul.bf16.gmra.mxu2 %v6101_v25 }
 0xa1a   :  { %v7071_v35 = vpop.f32.mrf.mxu0 }
 0xa1b   :  { %v11738_v28 = vadd.f32 %v7071_v35, %v6772_v26  ;;  %v6683_v58 = vpop.f32.mrf.mxu3  ;;  %v7249_v26 = vpack.c.bf16 %v7186_v18, %v7185_v51 }
 0xa1c   :  { %v6290_v3 = vpop.f32.mrf.mxu2 }
 0xa1d   :  { %v6381_v15 = vadd.f32 %v6290_v3, %v5988_v10  ;;  %v5899_v50 = vpop.f32.mrf.mxu1  ;;  %7110 = vmatmul.bf16.gmra.mxu0 %v5708_v13  ;;  %v13351_v3 = vld [vmem:[#allocation76_spill] sm:$0xff] }
 0xa1e   :  { %v5989_v59 = vadd.f32 %v5899_v50, %v13349_v27  ;;  %v7187_v50 = vld [vmem:[#allocation2 + $0x69] sm:$0xff]  ;;  %v7188_v27 = vld [vmem:[#allocation2 + $0x71] sm:$0xff] }
 0xa1f   :  { %v6774_v9 = vadd.f32 %v6683_v58, %v6381_v15 }
 0xa22   :  { %v7073_v47 = vpop.f32.mrf.mxu0 }
 0xa23   :  { %v11741_v43 = vadd.f32 %v7073_v47, %v6773_v44  ;;  %v6685_v24 = vpop.f32.mrf.mxu3 }
 0xa24   :  { %v6292_v19 = vpop.f32.mrf.mxu2 }
 0xa25   :  { %v6382_v0 = vadd.f32 %v6292_v19, %v5989_v59  ;;  %v5902_v61 = vpop.f32.mrf.mxu1 }
 0xa26   :  { %v5990_v39 = vadd.f32 %v5902_v61, %v13350_v56  ;;  %v7250_v61 = vpack.c.bf16 %v7188_v27, %v7187_v50 }
 0xa27   :  { %v6775_v30 = vadd.f32 %v6685_v24, %v6382_v0  ;;  %v13353_v24 = vld [vmem:[#allocation63_spill] sm:$0xff] }
 0xa28   :  { %7353 = vmatmul.bf16.vlgmr.msra.gmra.mxu1 %v7249_v26 }
 0xa2a   :  { %v7076_v10 = vpop.f32.mrf.mxu0 }
 0xa2b   :  { %v11744_v25 = vadd.f32 %v7076_v10, %v6774_v9  ;;  %v6688_v58 = vpop.f32.mrf.mxu3 }
 0xa2c   :  { %v6295_v21 = vpop.f32.mrf.mxu2 }
 0xa2d   :  { %v6383_v13 = vadd.f32 %v6295_v21, %v5990_v39  ;;  %v5904_v35 = vpop.f32.mrf.mxu1  ;;  %7115 = vmatmul.bf16.gmra.mxu0 %v11636_v29 }
 0xa2e   :  { %v5991_v15 = vadd.f32 %v5904_v35, %v13351_v3 }
 0xa2f   :  { %v6776_v44 = vadd.f32 %v6688_v58, %v6383_v13  ;;  %v13354_v58 = vld [vmem:[#allocation16_spill] sm:$0xff] }
 0xa32   :  { %v7078_v59 = vpop.f32.mrf.mxu0 }
 0xa33   :  { %v11748_v19 = vadd.f32 %v7078_v59, %v6775_v30  ;;  %v6690_v18 = vpop.f32.mrf.mxu3  ;;  %v7189_v30 = vld [vmem:[#allocation2 + $0x89] sm:$0xff]  ;;  %v7190_v59 = vld [vmem:[#allocation2 + $0x91] sm:$0xff] }
 0xa34   :  { %v6297_v47 = vpop.f32.mrf.mxu2 }
 0xa35   :  { %13352 = vst [vmem:[#allocation85_spill] sm:$0xff] %v11748_v19  ;;  %v6384_v51 = vadd.f32 %v6297_v47, %v5991_v15  ;;  %v5907_v0 = vpop.f32.mrf.mxu1 }
 0xa36   :  { %v5992_v9 = vadd.f32 %v5907_v0, %v13353_v24  ;;  %v7251_v24 = vpack.c.bf16 %v7190_v59, %v7189_v30  ;;  %v13358_v30 = vld [vmem:[#allocation22_spill] sm:$0xff] }
 0xa37   :  { %v6777_v56 = vadd.f32 %v6690_v18, %v6384_v51  ;;  %v13356_v51 = vld [vmem:[#allocation80_spill] sm:$0xff] }
 0xa38   :  { %7358 = vmatmul.bf16.gmra.mxu1 %v7250_v61 }
 0xa3a   :  { %v7081_v39 = vpop.f32.mrf.mxu0 }
 0xa3b   :  { %v11751_v10 = vadd.f32 %v7081_v39, %v6776_v44  ;;  %v6693_v21 = vpop.f32.mrf.mxu3 }
 0xa3c   :  { %v6300_v26 = vpop.f32.mrf.mxu2 }
 0xa3d   :  { %v6385_v29 = vadd.f32 %v6300_v26, %v5992_v9  ;;  %v5909_v13 = vpop.f32.mrf.mxu1 }
 0xa3e   :  { %v5993_v35 = vadd.f32 %v5909_v13, %v13354_v58  ;;  %v13357_v13 = vld [vmem:[#allocation70_spill] sm:$0xff] }
 0xa3f   :  { %v6778_v3 = vadd.f32 %v6693_v21, %v6385_v29 }
 0xa42   :  { %v7083_v15 = vpop.f32.mrf.mxu0 }
 0xa43   :  { %v11754_v19 = vadd.f32 %v7083_v15, %v6777_v56  ;;  %v6695_v50 = vpop.f32.mrf.mxu3  ;;  %v7191_v15 = vld [vmem:[#allocation2 + $0xa9] sm:$0xff] }
 0xa44   :  { %v6302_v47 = vpop.f32.mrf.mxu2 }
 0xa45   :  { %13355 = vst [vmem:[#allocation69_spill] sm:$0xff] %v11754_v19  ;;  %v6386_v0 = vadd.f32 %v6302_v47, %v5993_v35  ;;  %v5912_v27 = vpop.f32.mrf.mxu1  ;;  %v7192_v35 = vld [vmem:[#allocation2 + $0xb1] sm:$0xff] }
 0xa46   :  { %v5994_v18 = vadd.f32 %v5912_v27, %v13356_v51 }
 0xa47   :  { %v6779_v44 = vadd.f32 %v6695_v50, %v6386_v0  ;;  %v7252_v0 = vpack.c.bf16 %v7192_v35, %v7191_v15  ;;  %v7195_v15 = vld [vmem:[#allocation2 + $0xe9] sm:$0xff]  ;;  %v7196_v35 = vld [vmem:[#allocation2 + $0xf1] sm:$0xff] }
 0xa48   :  { %7363 = vmatmul.bf16.gmra.mxu1 %v7251_v24 }
 0xa4a   :  { %v7086_v9 = vpop.f32.mrf.mxu0 }
 0xa4b   :  { %v11757_v39 = vadd.f32 %v7086_v9, %v6778_v3  ;;  %v6698_v21 = vpop.f32.mrf.mxu3  ;;  %v7193_v9 = vld [vmem:[#allocation2 + $0xc9] sm:$0xff] }
 0xa4c   :  { %v6305_v61 = vpop.f32.mrf.mxu2 }
 0xa4d   :  { %v6387_v26 = vadd.f32 %v6305_v61, %v5994_v18  ;;  %v5914_v29 = vpop.f32.mrf.mxu1  ;;  %v13359_v18 = vld [vmem:[#allocation84_spill] sm:$0xff]  ;;  %v7194_v61 = vld [vmem:[#allocation2 + $0xd1] sm:$0xff] }
 0xa4e   :  { %v11760_v58 = vadd.f32 %v5914_v29, %v13357_v13  ;;  %v13361_v29 = vld [vmem:[#allocation82_spill] sm:$0xff] }
 0xa4f   :  { %v6780_v56 = vadd.f32 %v6698_v21, %v6387_v26 }
 0xa52   :  { %v7088_v47 = vpop.f32.mrf.mxu0 }
 0xa53   :  { %v11762_v19 = vadd.f32 %v7088_v47, %v6779_v44  ;;  %v7253_v44 = vpack.c.bf16 %v7194_v61, %v7193_v9  ;;  %v13362_v47 = vld [vmem:[#allocation8_spill] sm:$0xff] }
 0xa55   :  { %v5917_v27 = vpop.f32.mrf.mxu1 }
 0xa56   :  { %v11765_v59 = vadd.f32 %v5917_v27, %v13358_v30  ;;  %v13364_v30 = vld [vmem:[#allocation68_spill] sm:$0xff] }
 0xa58   :  { %7368 = vmatmul.bf16.gmra.mxu1 %v7252_v0 }
 0xa5a   :  { %v7091_v3 = vpop.f32.mrf.mxu0 }
 0xa5b   :  { %v11767_v50 = vadd.f32 %v7091_v3, %v6780_v56  ;;  %v7254_v3 = vpack.c.bf16 %v7196_v35, %v7195_v15 }
 0xa5d   :  { %v5919_v51 = vpop.f32.mrf.mxu1 }
 0xa5e   :  { %v11770_v24 = vadd.f32 %v5919_v51, %v13359_v18  ;;  %v13365_v18 = vld [vmem:[#allocation74_spill] sm:$0xff] }
 0xa60   :  { %13360 = vst [vmem:[#allocation88_spill] sm:$0xff] %v11770_v24 }
 0xa65   :  { %v5922_v26 = vpop.f32.mrf.mxu1 }
 0xa66   :  { %v11773_v21 = vadd.f32 %v5922_v26, %v13361_v29  ;;  %v7197_v26 = vld [vmem:[#allocation2 + $0x109] sm:$0xff]  ;;  %v7198_v29 = vld [vmem:[#allocation2 + $0x111] sm:$0xff] }
 0xa68   :  { %7373 = vmatmul.bf16.gmra.mxu1 %v7253_v44  ;;  %v7255_v44 = vpack.c.bf16 %v7198_v29, %v7197_v26 }
 0xa6d   :  { %v5924_v13 = vpop.f32.mrf.mxu1 }
 0xa6e   :  { %v11776_v27 = vadd.f32 %v5924_v13, %v13362_v47  ;;  %v13366_v47 = vld [vmem:[#allocation77_spill] sm:$0xff] }
 0xa70   :  { %13363 = vst [vmem:[#allocation20_spill] sm:$0xff] %v11776_v27 }
 0xa75   :  { %v5927_v56 = vpop.f32.mrf.mxu1 }
 0xa76   :  { %v11779_v0 = vadd.f32 %v5927_v56, %v13364_v30  ;;  %v7199_v56 = vld [vmem:[#allocation2 + $0x129] sm:$0xff]  ;;  %v7200_v30 = vld [vmem:[#allocation2 + $0x131] sm:$0xff] }
 0xa78   :  { %7378 = vmatmul.bf16.gmra.mxu1 %v7254_v3  ;;  %v7256_v3 = vpack.c.bf16 %v7200_v30, %v7199_v56 }
 0xa7d   :  { %v5929_v51 = vpop.f32.mrf.mxu1 }
 0xa7e   :  { %v11782_v24 = vadd.f32 %v5929_v51, %v13365_v18 }
 0xa85   :  { %v5932_v9 = vpop.f32.mrf.mxu1 }
 0xa86   :  { %v11785_v61 = vadd.f32 %v5932_v9, %v11577_v1  ;;  %v7201_v1 = vld [vmem:[#allocation2 + $0x149] sm:$0xff]  ;;  %v7202_v9 = vld [vmem:[#allocation2 + $0x151] sm:$0xff] }
 0xa88   :  { %7383 = vmatmul.bf16.gmra.mxu1 %v7255_v44  ;;  %v7257_v44 = vpack.c.bf16 %v7202_v9, %v7201_v1 }
 0xa8d   :  { %v5934_v13 = vpop.f32.mrf.mxu1 }
 0xa8e   :  { %v11788_v27 = vadd.f32 %v5934_v13, %v13366_v47 }
 0xa95   :  { %v5937_v15 = vpop.f32.mrf.mxu1 }
 0xa96   :  { %v11791_v35 = vadd.f32 %v5937_v15, %v11582_v55  ;;  %v7203_v55 = vld [vmem:[#allocation2 + $0x169] sm:$0xff]  ;;  %v7204_v15 = vld [vmem:[#allocation2 + $0x171] sm:$0xff] }
 0xa98   :  { %7388 = vmatmul.bf16.gmra.mxu1 %v7256_v3 }
 0xa9d   :  { %v5939_v51 = vpop.f32.mrf.mxu1 }
 0xa9e   :  { %v11794_v18 = vadd.f32 %v5939_v51, %v11585_v45  ;;  %v7258_v45 = vpack.c.bf16 %v7204_v15, %v7203_v55 }
 0xaa0   :  { %13367 = vst [vmem:[#allocation12_spill] sm:$0xff] %v11794_v18 }
 0xaa5   :  { %v7354_v26 = vpop.f32.mrf.mxu1 }
 0xaa6   :  { %v11797_v29 = vadd.f32 %v7354_v26, %v11588_v48  ;;  %v7205_v48 = vld [vmem:[#allocation2 + $0x189] sm:$0xff]  ;;  %v7206_v26 = vld [vmem:[#allocation2 + $0x191] sm:$0xff] }
 0xaa8   :  { %7393 = vmatmul.bf16.gmra.mxu1 %v7257_v44 }
 0xaad   :  { %v7356_v13 = vpop.f32.mrf.mxu1 }
 0xaae   :  { %v11800_v47 = vadd.f32 %v7356_v13, %v11591_v32  ;;  %v7259_v32 = vpack.c.bf16 %v7206_v26, %v7205_v48 }
 0xab0   :  { %13368 = vst [vmem:[#allocation34_spill] sm:$0xff] %v11800_v47 }
 0xab5   :  { %v7359_v56 = vpop.f32.mrf.mxu1 }
 0xab6   :  { %v11803_v30 = vadd.f32 %v7359_v56, %v11594_v53  ;;  %v7207_v53 = vld [vmem:[#allocation2 + $0x1a9] sm:$0xff]  ;;  %v7208_v56 = vld [vmem:[#allocation2 + $0x1b1] sm:$0xff] }
 0xab8   :  { %7398 = vmatmul.bf16.gmra.mxu1 %v7258_v45 }
 0xabd   :  { %v7361_v3 = vpop.f32.mrf.mxu1 }
 0xabe   :  { %v11806_v51 = vadd.f32 %v7361_v3, %v11600_v40  ;;  %v7260_v40 = vpack.c.bf16 %v7208_v56, %v7207_v53 }
 0xac5   :  { %v7364_v1 = vpop.f32.mrf.mxu1 }
 0xac6   :  { %v11809_v9 = vadd.f32 %v7364_v1, %v11603_v12  ;;  %v7209_v12 = vld [vmem:[#allocation2 + $0x1c9] sm:$0xff]  ;;  %v7210_v1 = vld [vmem:[#allocation2 + $0x1d1] sm:$0xff] }
 0xac8   :  { %7403 = vmatmul.bf16.gmra.mxu1 %v7259_v32 }
 0xacd   :  { %v7366_v44 = vpop.f32.mrf.mxu1 }
 0xace   :  { %v11812_v13 = vadd.f32 %v7366_v44, %v11606_v46  ;;  %v7261_v46 = vpack.c.bf16 %v7210_v1, %v7209_v12 }
 0xad5   :  { %v7369_v55 = vpop.f32.mrf.mxu1 }
 0xad6   :  { %v11815_v15 = vadd.f32 %v7369_v55, %v11609_v11  ;;  %v7211_v11 = vld [vmem:[#allocation2 + $0x1e9] sm:$0xff]  ;;  %v7212_v55 = vld [vmem:[#allocation2 + $0x1f1] sm:$0xff] }
 0xad8   :  { %7408 = vmatmul.bf16.gmra.mxu1 %v7260_v40 }
 0xadd   :  { %v7371_v45 = vpop.f32.mrf.mxu1 }
 0xade   :  { %v11818_v3 = vadd.f32 %v7371_v45, %v11612_v54  ;;  %v7262_v54 = vpack.c.bf16 %v7212_v55, %v7211_v11 }
 0xae5   :  { %v7374_v48 = vpop.f32.mrf.mxu1 }
 0xae6   :  { %v11821_v26 = vadd.f32 %v7374_v48, %v11615_v62  ;;  %v7213_v62 = vld [vmem:[#allocation2 + $0x209] sm:$0xff]  ;;  %v7214_v48 = vld [vmem:[#allocation2 + $0x211] sm:$0xff] }
 0xae8   :  { %7413 = vmatmul.bf16.gmra.mxu1 %v7261_v46 }
 0xaed   :  { %v7376_v32 = vpop.f32.mrf.mxu1 }
 0xaee   :  { %v11824_v44 = vadd.f32 %v7376_v32, %v11618_v31  ;;  %v7263_v31 = vpack.c.bf16 %v7214_v48, %v7213_v62 }
 0xaf5   :  { %v7379_v53 = vpop.f32.mrf.mxu1 }
 0xaf6   :  { %v11827_v56 = vadd.f32 %v7379_v53, %v11621_v14  ;;  %v7215_v14 = vld [vmem:[#allocation2 + $0x229] sm:$0xff]  ;;  %v7216_v53 = vld [vmem:[#allocation2 + $0x231] sm:$0xff] }
 0xaf7   :  { %v7264_v11 = vpack.c.bf16 %v7216_v53, %v7215_v14  ;;  %v7219_v14 = vld [vmem:[#allocation2 + $0x2a9] sm:$0xff] }
 0xaf8   :  { %7418 = vmatmul.bf16.gmra.mxu1 %v7262_v54 }
 0xafd   :  { %v7381_v40 = vpop.f32.mrf.mxu1 }
 0xafe   :  { %v11830_v45 = vadd.f32 %v7381_v40, %v11627_v33  ;;  %v13373_v40 = vld [vmem:[#allocation87_spill] sm:$0xff] }
 0xb00   :  { %13369 = vst [vmem:[#allocation35_spill] sm:$0xff] %v11830_v45 }
 0xb05   :  { %v7384_v12 = vpop.f32.mrf.mxu1 }
 0xb06   :  { %v11833_v1 = vadd.f32 %v7384_v12, %v11630_v34  ;;  %v7217_v34 = vld [vmem:[#allocation2 + $0x289] sm:$0xff]  ;;  %v7218_v12 = vld [vmem:[#allocation2 + $0x291] sm:$0xff] }
 0xb08   :  { %13370 = vst [vmem:[#allocation36_spill] sm:$0xff] %v11833_v1  ;;  %7423 = vmatmul.bf16.gmra.mxu1 %v7263_v31 }
 0xb0d   :  { %v7386_v46 = vpop.f32.mrf.mxu1 }
 0xb0e   :  { %v11836_v32 = vadd.f32 %v7386_v46, %v11633_v17  ;;  %v7265_v17 = vpack.c.bf16 %v7218_v12, %v7217_v34 }
 0xb10   :  { %13371 = vst [vmem:[#allocation37_spill] sm:$0xff] %v11836_v32 }
 0xb15   :  { %v7389_v55 = vpop.f32.mrf.mxu1 }
 0xb16   :  { %v11839_v54 = vadd.f32 %v7389_v55, %v11638_v52  ;;  %v7220_v52 = vld [vmem:[#allocation2 + $0x2b1] sm:$0xff] }
 0xb17   :  { %v7266_v55 = vpack.c.bf16 %v7220_v52, %v7219_v14 }
 0xb18   :  { %13372 = vst [vmem:[#allocation30_spill] sm:$0xff] %v11839_v54  ;;  %7428 = vmatmul.bf16.gmra.mxu1 %v7264_v11  ;;  %v13403_v54 = vld [vmem:[#allocation72_spill] sm:$0xff] }
 0xb1d   :  { %v7391_v33 = vpop.f32.mrf.mxu1 }
 0xb1e   :  { %v11842_v18 = vadd.f32 %v7391_v33, %v13373_v40 }
 0xb20   :  { %13374 = vst [vmem:[#allocation31_spill] sm:$0xff] %v11842_v18 }
 0xb25   :  { %v7394_v62 = vpop.f32.mrf.mxu1 }
 0xb26   :  { %v11845_v48 = vadd.f32 %v7394_v62, %v11645_v49  ;;  %v7221_v49 = vld [vmem:[#allocation2 + $0x2c9] sm:$0xff]  ;;  %v7222_v62 = vld [vmem:[#allocation2 + $0x2d1] sm:$0xff] }
 0xb28   :  { %7433 = vmatmul.bf16.gmra.mxu1 %v7265_v17 }
 0xb2d   :  { %v7396_v31 = vpop.f32.mrf.mxu1 }
 0xb2e   :  { %v11848_v46 = vadd.f32 %v7396_v31, %v11648_v22  ;;  %v7267_v22 = vpack.c.bf16 %v7222_v62, %v7221_v49 }
 0xb35   :  { %v7399_v53 = vpop.f32.mrf.mxu1 }
 0xb36   :  { %v11851_v11 = vadd.f32 %v7399_v53, %v11651_v7  ;;  %v7223_v7 = vld [vmem:[#allocation2 + $0x2e9] sm:$0xff]  ;;  %v7224_v53 = vld [vmem:[#allocation2 + $0x2f1] sm:$0xff] }
 0xb38   :  { %7438 = vmatmul.bf16.gmra.mxu1 %v7266_v55 }
 0xb3d   :  { %v7401_v33 = vpop.f32.mrf.mxu1 }
 0xb3e   :  { %v11854_v40 = vadd.f32 %v7401_v33, %v11657_v57  ;;  %v7268_v57 = vpack.c.bf16 %v7224_v53, %v7223_v7 }
 0xb40   :  { %13375 = vst [vmem:[#allocation38_spill] sm:$0xff] %v11854_v40 }
 0xb45   :  { %v7404_v34 = vpop.f32.mrf.mxu1 }
 0xb46   :  { %v11857_v12 = vadd.f32 %v7404_v34, %v11660_v20  ;;  %v7225_v20 = vld [vmem:[#allocation2 + $0x309] sm:$0xff]  ;;  %v7226_v34 = vld [vmem:[#allocation2 + $0x311] sm:$0xff] }
 0xb48   :  { %13376 = vst [vmem:[#allocation39_spill] sm:$0xff] %v11857_v12  ;;  %7443 = vmatmul.bf16.gmra.mxu1 %v7267_v22 }
 0xb4d   :  { %v7406_v17 = vpop.f32.mrf.mxu1 }
 0xb4e   :  { %v11860_v31 = vadd.f32 %v7406_v17, %v11663_v23  ;;  %v7269_v23 = vpack.c.bf16 %v7226_v34, %v7225_v20 }
 0xb50   :  { %13377 = vst [vmem:[#allocation40_spill] sm:$0xff] %v11860_v31 }
 0xb55   :  { %v7409_v14 = vpop.f32.mrf.mxu1 }
 0xb56   :  { %v11863_v52 = vadd.f32 %v7409_v14, %v11666_v41  ;;  %v7227_v41 = vld [vmem:[#allocation2 + $0x329] sm:$0xff]  ;;  %v7228_v14 = vld [vmem:[#allocation2 + $0x331] sm:$0xff] }
 0xb58   :  { %13378 = vst [vmem:[#allocation14_spill] sm:$0xff] %v11863_v52  ;;  %7448 = vmatmul.bf16.gmra.mxu1 %v7268_v57 }
 0xb5d   :  { %v7411_v55 = vpop.f32.mrf.mxu1 }
 0xb5e   :  { %v11866_v33 = vadd.f32 %v7411_v55, %v11669_v60  ;;  %v7270_v60 = vpack.c.bf16 %v7228_v14, %v7227_v41 }
 0xb60   :  { %13379 = vst [vmem:[#allocation11_spill] sm:$0xff] %v11866_v33 }
 0xb65   :  { %v7414_v49 = vpop.f32.mrf.mxu1 }
 0xb66   :  { %v11869_v62 = vadd.f32 %v7414_v49, %v11672_v16  ;;  %v7229_v16 = vld [vmem:[#allocation2 + $0x349] sm:$0xff]  ;;  %v7230_v49 = vld [vmem:[#allocation2 + $0x351] sm:$0xff] }
 0xb68   :  { %13380 = vst [vmem:[#allocation41_spill] sm:$0xff] %v11869_v62  ;;  %7453 = vmatmul.bf16.gmra.mxu1 %v7269_v23  ;;  %v7604_v62 = vmul.f32 %v11803_v30, %v11803_v30 }
 0xb6d   :  { %v7416_v22 = vpop.f32.mrf.mxu1 }
 0xb6e   :  { %v11872_v17 = vadd.f32 %v7416_v22, %v11675_v36  ;;  %v7271_v36 = vpack.c.bf16 %v7230_v49, %v7229_v16 }
 0xb70   :  { %13381 = vst [vmem:[#allocation42_spill] sm:$0xff] %v11872_v17 }
 0xb75   :  { %v7419_v7 = vpop.f32.mrf.mxu1 }
 0xb76   :  { %v11875_v53 = vadd.f32 %v7419_v7, %v11678_v42  ;;  %v7231_v42 = vld [vmem:[#allocation2 + $0x369] sm:$0xff]  ;;  %v7232_v7 = vld [vmem:[#allocation2 + $0x371] sm:$0xff] }
 0xb78   :  { %13382 = vst [vmem:[#allocation43_spill] sm:$0xff] %v11875_v53  ;;  %7458 = vmatmul.bf16.gmra.mxu1 %v7270_v60 }
 0xb7d   :  { %v7421_v57 = vpop.f32.mrf.mxu1 }
 0xb7e   :  { %v11878_v55 = vadd.f32 %v7421_v57, %v11684_v38  ;;  %v7272_v38 = vpack.c.bf16 %v7232_v7, %v7231_v42 }
 0xb80   :  { %13383 = vst [vmem:[#allocation44_spill] sm:$0xff] %v11878_v55 }
 0xb85   :  { %v7424_v20 = vpop.f32.mrf.mxu1 }
 0xb86   :  { %v11881_v34 = vadd.f32 %v7424_v20, %v11687_v37  ;;  %v7233_v37 = vld [vmem:[#allocation2 + $0x389] sm:$0xff]  ;;  %v7234_v20 = vld [vmem:[#allocation2 + $0x391] sm:$0xff] }
 0xb88   :  { %13384 = vst [vmem:[#allocation45_spill] sm:$0xff] %v11881_v34  ;;  %7463 = vmatmul.bf16.gmra.mxu1 %v7271_v36 }
 0xb8d   :  { %v7426_v23 = vpop.f32.mrf.mxu1 }
 0xb8e   :  { %v11884_v22 = vadd.f32 %v7426_v23, %v11690_v8  ;;  %v7273_v8 = vpack.c.bf16 %v7234_v20, %v7233_v37  ;;  %v13393_v20 = vld [vmem:[#allocation32_spill] sm:$0xff] }
 0xb90   :  { %13385 = vst [vmem:[#allocation46_spill] sm:$0xff] %v11884_v22  ;;  %v13399_v22 = vld [vmem:[#allocation90_spill] sm:$0xff] }
 0xb95   :  { %v7429_v41 = vpop.f32.mrf.mxu1 }
 0xb96   :  { %v11887_v14 = vadd.f32 %v7429_v41, %v11693_v4  ;;  %v7235_v4 = vld [vmem:[#allocation2 + $0x3a9] sm:$0xff]  ;;  %v7236_v41 = vld [vmem:[#allocation2 + $0x3b1] sm:$0xff] }
 0xb98   :  { %13386 = vst [vmem:[#allocation47_spill] sm:$0xff] %v11887_v14  ;;  %7468 = vmatmul.bf16.gmra.mxu1 %v7272_v38  ;;  %v13395_v14 = vld [vmem:[#allocation65_spill] sm:$0xff] }
 0xb9d   :  { %v7431_v60 = vpop.f32.mrf.mxu1 }
 0xb9e   :  { %v11890_v57 = vadd.f32 %v7431_v60, %v11696_v6  ;;  %v7274_v6 = vpack.c.bf16 %v7236_v41, %v7235_v4  ;;  %v13391_v60 = vld [vmem:[#allocation86_spill] sm:$0xff] }
 0xb9f   :  { %v13397_v41 = vld [vmem:[#allocation78_spill] sm:$0xff] }
 0xba0   :  { %13387 = vst [vmem:[#allocation48_spill] sm:$0xff] %v11890_v57 }
 0xba5   :  { %v7434_v16 = vpop.f32.mrf.mxu1 }
 0xba6   :  { %v11893_v49 = vadd.f32 %v7434_v16, %v11699_v63  ;;  %v7237_v63 = vld [vmem:[#allocation2 + $0x3c9] sm:$0xff]  ;;  %v7238_v16 = vld [vmem:[#allocation2 + $0x3d1] sm:$0xff] }
 0xba8   :  { %13388 = vst [vmem:[#allocation49_spill] sm:$0xff] %v11893_v49  ;;  %7473 = vmatmul.bf16.gmra.mxu1 %v7273_v8 }
 0xbad   :  { %v7436_v36 = vpop.f32.mrf.mxu1 }
 0xbae   :  { %v11896_v23 = vadd.f32 %v7436_v36, %v11702_v5  ;;  %v7275_v5 = vpack.c.bf16 %v7238_v16, %v7237_v63  ;;  %v13401_v16 = vld [vmem:[#allocation89_spill] sm:$0xff] }
 0xbb0   :  { %13389 = vst [vmem:[#allocation50_spill] sm:$0xff] %v11896_v23 }
 0xbb5   :  { %v7439_v42 = vpop.f32.mrf.mxu1 }
 0xbb6   :  { %v11899_v7 = vadd.f32 %v7439_v42, %v11705_v2  ;;  %v7239_v2 = vld [vmem:[#allocation2 + $0x3e9] sm:$0xff]  ;;  %v7240_v42 = vld [vmem:[#allocation2 + $0x3f1] sm:$0xff] }
 0xbb8   :  { %13390 = vst [vmem:[#allocation51_spill] sm:$0xff] %v11899_v7  ;;  %7478 = vmatmul.bf16.gmra.mxu1 %v7274_v6 }
 0xbbd   :  { %v7441_v38 = vpop.f32.mrf.mxu1 }
 0xbbe   :  { %v11902_v57 = vadd.f32 %v7441_v38, %v13391_v60  ;;  %v7276_v38 = vpack.c.bf16 %v7240_v42, %v7239_v2  ;;  %v13405_v42 = vld [vmem:[#allocation83_spill] sm:$0xff] }
 0xbc0   :  { %13392 = vst [vmem:[#allocation52_spill] sm:$0xff] %v11902_v57 }
 0xbc5   :  { %v7444_v37 = vpop.f32.mrf.mxu1 }
 0xbc6   :  { %v11905_v8 = vadd.f32 %v7444_v37, %v13393_v20  ;;  %v7241_v37 = vld [vmem:[#allocation2 + $0x409] sm:$0xff]  ;;  %v7242_v20 = vld [vmem:[#allocation2 + $0x411] sm:$0xff] }
 0xbc8   :  { %13394 = vst [vmem:[#allocation53_spill] sm:$0xff] %v11905_v8  ;;  %7483 = vmatmul.bf16.gmra.mxu1 %v7275_v5 }
 0xbcd   :  { %v7446_v36 = vpop.f32.mrf.mxu1 }
 0xbce   :  { %v11908_v18 = vadd.f32 %v7446_v36, %v13395_v14  ;;  %v7277_v14 = vpack.c.bf16 %v7242_v20, %v7241_v37 }
 0xbd0   :  { %13396 = vst [vmem:[#allocation54_spill] sm:$0xff] %v11908_v18 }
 0xbd5   :  { %v7449_v4 = vpop.f32.mrf.mxu1 }
 0xbd6   :  { %v11911_v6 = vadd.f32 %v7449_v4, %v13397_v41  ;;  %v7243_v4 = vld [vmem:[#allocation2 + $0x429] sm:$0xff]  ;;  %v7244_v41 = vld [vmem:[#allocation2 + $0x431] sm:$0xff] }
 0xbd8   :  { %13398 = vst [vmem:[#allocation55_spill] sm:$0xff] %v11911_v6  ;;  %7488 = vmatmul.bf16.gmra.mxu1 %v7276_v38 }
 0xbdd   :  { %v7451_v60 = vpop.f32.mrf.mxu1 }
 0xbde   :  { %v11914_v34 = vadd.f32 %v7451_v60, %v13399_v22  ;;  %v7278_v22 = vpack.c.bf16 %v7244_v41, %v7243_v4  ;;  %v7248_v4 = vld [vmem:[#allocation2 + $0x471] sm:$0xff] }
 0xbe0   :  { %13400 = vst [vmem:[#allocation56_spill] sm:$0xff] %v11914_v34  ;;  %v13407_v34 = vld [vmem:[#allocation81_spill] sm:$0xff] }
 0xbe5   :  { %v7454_v63 = vpop.f32.mrf.mxu1 }
 0xbe6   :  { %v11917_v5 = vadd.f32 %v7454_v63, %v13401_v16  ;;  %v7245_v63 = vld [vmem:[#allocation2 + $0x449] sm:$0xff]  ;;  %v7246_v16 = vld [vmem:[#allocation2 + $0x451] sm:$0xff] }
 0xbe8   :  { %13402 = vst [vmem:[#allocation57_spill] sm:$0xff] %v11917_v5  ;;  %7493 = vmatmul.bf16.gmra.mxu1 %v7277_v14 }
 0xbed   :  { %v7456_v36 = vpop.f32.mrf.mxu1 }
 0xbee   :  { %v11920_v55 = vadd.f32 %v7456_v36, %v13403_v54  ;;  %v7279_v54 = vpack.c.bf16 %v7246_v16, %v7245_v63 }
 0xbf0   :  { %13404 = vst [vmem:[#allocation58_spill] sm:$0xff] %v11920_v55 }
 0xbf5   :  { %v7459_v2 = vpop.f32.mrf.mxu1 }
 0xbf6   :  { %v11923_v38 = vadd.f32 %v7459_v2, %v13405_v42  ;;  %v6307_v2 = vpop.f32.mrf.mxu2  ;;  %v7247_v42 = vld [vmem:[#allocation2 + $0x469] sm:$0xff] }
 0xbf7   :  { %v7280_v41 = vpack.c.bf16 %v7248_v4, %v7247_v42 }
 0xbf8   :  { %13406 = vst [vmem:[#allocation59_spill] sm:$0xff] %v11923_v38  ;;  %7498 = vmatmul.bf16.gmra.mxu1 %v7278_v22  ;;  %v6700_v38 = vpop.f32.mrf.mxu3 }
 0xbfd   :  { %v7461_v60 = vpop.f32.mrf.mxu1 }
 0xbfe   :  { %v11926_v32 = vadd.f32 %v7461_v60, %v13407_v34  ;;  %v6310_v60 = vpop.f32.mrf.mxu2 }
 0xc00   :  { %13408 = vst [vmem:[#allocation60_spill] sm:$0xff] %v11926_v32  ;;  %v6703_v63 = vpop.f32.mrf.mxu3 }
 0xc05   :  { %v7464_v37 = vpop.f32.mrf.mxu1 }
 0xc06   :  { %v11929_v20 = vadd.f32 %v7464_v37, %v11738_v28  ;;  %v13412_v28 = vld [vmem:[#allocation85_spill] sm:$0xff]  ;;  %v6312_v16 = vpop.f32.mrf.mxu2 }
 0xc08   :  { %13409 = vst [vmem:[#allocation61_spill] sm:$0xff] %v11929_v20  ;;  %7503 = vmatmul.bf16.gmra.mxu1 %v7279_v54  ;;  %v13415_v20 = vld [vmem:[#allocation69_spill] sm:$0xff] }
 0xc0d   :  { %v7466_v14 = vpop.f32.mrf.mxu1 }
 0xc0e   :  { %v11932_v36 = vadd.f32 %v7466_v14, %v11741_v43  ;;  %v7093_v43 = vpop.f32.mrf.mxu0  ;;  %v6315_v4 = vpop.f32.mrf.mxu2 }
 0xc10   :  { %13410 = vst [vmem:[#allocation3_spill] sm:$0xff] %v11932_v36  ;;  %v6705_v36 = vpop.f32.mrf.mxu3 }
 0xc15   :  { %v7469_v22 = vpop.f32.mrf.mxu1 }
 0xc16   :  { %v11935_v34 = vadd.f32 %v7469_v22, %v11744_v25  ;;  %v7096_v25 = vpop.f32.mrf.mxu0 }
 0xc18   :  { %13411 = vst [vmem:[#allocation4_spill] sm:$0xff] %v11935_v34  ;;  %7508 = vmatmul.bf16.gmra.mxu1 %v7280_v41  ;;  %v6708_v41 = vpop.f32.mrf.mxu3 }
 0xc1d   :  { %v7471_v32 = vpop.f32.mrf.mxu1 }
 0xc1e   :  { %v11938_v37 = vadd.f32 %v7471_v32, %v13412_v28  ;;  %v6317_v32 = vpop.f32.mrf.mxu2  ;;  %v7098_v28 = vpop.f32.mrf.mxu0 }
 0xc20   :  { %13413 = vst [vmem:[#allocation5_spill] sm:$0xff] %v11938_v37  ;;  %v6710_v5 = vpop.f32.mrf.mxu3 }
 0xc25   :  { %v7474_v54 = vpop.f32.mrf.mxu1 }
 0xc26   :  { %v11941_v14 = vadd.f32 %v7474_v54, %v11751_v10  ;;  %v6320_v10 = vpop.f32.mrf.mxu2  ;;  %v7101_v54 = vpop.f32.mrf.mxu0 }
 0xc28   :  { %13414 = vst [vmem:[#allocation6_spill] sm:$0xff] %v11941_v14 }
 0xc2d   :  { %v7476_v42 = vpop.f32.mrf.mxu1 }
 0xc2e   :  { %v11944_v55 = vadd.f32 %v7476_v42, %v13415_v20  ;;  %v6713_v20 = vpop.f32.mrf.mxu3  ;;  %v6322_v42 = vpop.f32.mrf.mxu2 }
 0xc2f   :  { %v7103_v18 = vpop.f32.mrf.mxu0  ;;  %v6394_v7 = vadd.f32 %v6322_v42, %v11782_v24  ;;  %v7607_v24 = vmul.f32 %v11812_v13, %v11812_v13 }
 0xc30   :  { %13416 = vst [vmem:[#allocation7_spill] sm:$0xff] %v11944_v55 }
 0xc35   :  { %v7479_v22 = vpop.f32.mrf.mxu1 }
 0xc36   :  { %v11947_v34 = vadd.f32 %v7479_v22, %v11757_v39  ;;  %v6715_v39 = vpop.f32.mrf.mxu3 }
 0xc37   :  { %v7106_v17 = vpop.f32.mrf.mxu0 }
 0xc38   :  { %13417 = vst [vmem:[#allocation9_spill] sm:$0xff] %v11947_v34  ;;  %v6325_v34 = vpop.f32.mrf.mxu2 }
 0xc3d   :  { %v7481_v37 = vpop.f32.mrf.mxu1 }
 0xc3e   :  { %v11950_v6 = vadd.f32 %v7481_v37, %v11762_v19  ;;  %v6718_v1 = vpop.f32.mrf.mxu3  ;;  %v6388_v19 = vadd.f32 %v6307_v2, %v11760_v58  ;;  %v7603_v37 = vmul.f32 %v11800_v47, %v11800_v47  ;;  %v7580_v58 = vadd.f32 %v11800_v47, %v11797_v29 }
 0xc3f   :  { %v7108_v45 = vpop.f32.mrf.mxu0  ;;  %v7606_v47 = vmul.f32 %v11809_v9, %v11809_v9 }
 0xc40   :  { %13418 = vst [vmem:[#allocation15_spill] sm:$0xff] %v11950_v6  ;;  %v6327_v6 = vpop.f32.mrf.mxu2  ;;  %v6781_v2 = vadd.f32 %v6700_v38, %v6388_v19 }
 0xc45   :  { %v7484_v14 = vpop.f32.mrf.mxu1 }
 0xc46   :  { %v11953_v53 = vadd.f32 %v7484_v14, %v11767_v50  ;;  %v6389_v50 = vadd.f32 %v6310_v60, %v11765_v59  ;;  %v13423_v14 = vld [vmem:[#allocation88_spill] sm:$0xff]  ;;  %v7605_v59 = vmul.f32 %v11806_v51, %v11806_v51 }
 0xc47   :  { %v7111_v42 = vpop.f32.mrf.mxu0 }
 0xc48   :  { %13419 = vst [vmem:[#allocation19_spill] sm:$0xff] %v11953_v53  ;;  %v6390_v53 = vadd.f32 %v6312_v16, %v13423_v14  ;;  %v6782_v60 = vadd.f32 %v6703_v63, %v6389_v50 }
 0xc4a   :  { %v6783_v16 = vadd.f32 %v6705_v36, %v6390_v53  ;;  %v6720_v53 = vpop.f32.mrf.mxu3 }
 0xc4d   :  { %v11955_v55 = vpop.f32.mrf.mxu1 }
 0xc4e   :  { %13420 = vst [vmem:[#allocation18_spill] sm:$0xff] %v11955_v55  ;;  %v6391_v55 = vadd.f32 %v6315_v4, %v11773_v21  ;;  %v6393_v21 = vadd.f32 %v6320_v10, %v11779_v0  ;;  %v7581_v4 = vadd.f32 %v7580_v58, %v11803_v30 }
 0xc50   :  { %v6784_v14 = vadd.f32 %v6708_v41, %v6391_v55  ;;  %v7582_v0 = vadd.f32 %v7581_v4, %v11806_v51 }
 0xc52   :  { %v11990_v63 = vadd.f32 %v7101_v54, %v6784_v14 }
 0xc55   :  { %v11957_v22 = vpop.f32.mrf.mxu1 }
 0xc56   :  { %13421 = vst [vmem:[#allocation21_spill] sm:$0xff] %v11957_v22  ;;  %v7602_v22 = vmul.f32 %v11797_v29, %v11797_v29 }
 0xc58   :  { %v7618_v33 = vadd.f32 %v7603_v37, %v7602_v22  ;;  %v11987_v22 = vadd.f32 %v7098_v28, %v6783_v16  ;;  %v6787_v28 = vadd.f32 %v6715_v39, %v6394_v7  ;;  %v7640_v7 = vadd.f32 %v11848_v46, %v11845_v48 }
 0xc59   :  { %v7665_v37 = vmul.f32 %v11854_v40, %v11854_v40 }
 0xc5a   :  { %v7619_v49 = vadd.f32 %v7618_v33, %v7604_v62  ;;  %v6786_v33 = vadd.f32 %v6713_v20, %v6393_v21  ;;  %v6395_v62 = vadd.f32 %v6325_v34, %v11785_v61  ;;  %v7662_v61 = vmul.f32 %v11845_v48, %v11845_v48 }
 0xc5b   :  { %v7664_v34 = vmul.f32 %v11851_v11, %v11851_v11  ;;  %v6396_v20 = vadd.f32 %v6327_v6, %v11788_v27  ;;  %v7610_v27 = vmul.f32 %v11821_v26, %v11821_v26  ;;  %v7641_v6 = vadd.f32 %v7640_v7, %v11851_v11 }
 0xc5c   :  { %v7620_v55 = vadd.f32 %v7619_v49, %v7605_v59  ;;  %v6330_v49 = vpop.f32.mrf.mxu2  ;;  %v12023_v59 = vadd.f32 %v7108_v45, %v6787_v28  ;;  %v7666_v21 = vmul.f32 %v11857_v12, %v11857_v12  ;;  %v7611_v45 = vmul.f32 %v11824_v44, %v11824_v44 }
 0xc5d   :  { %v11959_v8 = vpop.f32.mrf.mxu1  ;;  %v6397_v50 = vadd.f32 %v6330_v49, %v11791_v35  ;;  %v12028_v4 = vadd.f32 %v6720_v53, %v6396_v20  ;;  %v7612_v28 = vmul.f32 %v11827_v56, %v11827_v56  ;;  %v13426_v20 = vld [vmem:[#allocation51_spill] sm:$0xff] }
 0xc5e   :  { %13422 = vst [vmem:[#allocation33_spill] sm:$0xff] %v11959_v8  ;;  %v13424_v8 = vld [vmem:[#allocation20_spill] sm:$0xff]  ;;  %v7621_v10 = vadd.f32 %v7620_v55, %v7606_v47  ;;  %v7609_v47 = vmul.f32 %v11818_v3, %v11818_v3 }
 0xc5f   :  { %v6392_v57 = vadd.f32 %v6317_v32, %v13424_v8  ;;  %v11983_v8 = vadd.f32 %v7093_v43, %v6781_v2  ;;  %v11985_v32 = vadd.f32 %v7096_v25, %v6782_v60  ;;  %v7583_v43 = vadd.f32 %v7582_v0, %v11809_v9 }
 0xc60   :  { %v7663_v25 = vmul.f32 %v11848_v46, %v11848_v46  ;;  %v7642_v0 = vadd.f32 %v7641_v6, %v11854_v40 }
 0xc61   :  { %v6785_v36 = vadd.f32 %v6710_v5, %v6392_v57  ;;  %v7608_v57 = vmul.f32 %v11815_v15, %v11815_v15  ;;  %v12002_v5 = vadd.f32 %v7106_v17, %v6786_v33  ;;  %v7584_v54 = vadd.f32 %v7583_v43, %v11812_v13 }
 0xc62   :  { %v6788_v17 = vadd.f32 %v6718_v1, %v6395_v62  ;;  %v7678_v19 = vadd.f32 %v7663_v25, %v7662_v61  ;;  %v6723_v1 = vpop.f32.mrf.mxu3  ;;  %v7643_v53 = vadd.f32 %v7642_v0, %v11857_v12  ;;  %v7723_v43 = vmul.f32 %v11896_v23, %v11896_v23 }
 0xc63   :  { %v11998_v41 = vadd.f32 %v7103_v18, %v6785_v36  ;;  %v7622_v18 = vadd.f32 %v7621_v10, %v7607_v24  ;;  %v7585_v39 = vadd.f32 %v7584_v54, %v11815_v15  ;;  %v7667_v24 = vmul.f32 %v11860_v31, %v11860_v31  ;;  %v13425_v54 = vld [vmem:[#allocation49_spill] sm:$0xff] }
 0xc64   :  { %v7679_v16 = vadd.f32 %v7678_v19, %v7664_v34  ;;  %v12030_v35 = vadd.f32 %v7111_v42, %v6788_v17  ;;  %v12038_v33 = vadd.f32 %v6723_v1, %v6397_v50  ;;  %v7644_v49 = vadd.f32 %v7643_v53, %v11860_v31  ;;  %v13427_v42 = vld [vmem:[#allocation11_spill] sm:$0xff] }
 0xc65   :  { %v11981_v38 = vpop.f32.mrf.mxu1  ;;  %v7623_v58 = vadd.f32 %v7622_v18, %v7608_v57  ;;  %v7586_v60 = vadd.f32 %v7585_v39, %v11818_v3  ;;  %v7668_v57 = vmul.f32 %v11863_v52, %v11863_v52  ;;  %v7722_v61 = vmul.f32 %v13425_v54, %v13425_v54 }
 0xc66   :  { %v7680_v55 = vadd.f32 %v7679_v16, %v7665_v37  ;;  %v7700_v34 = vadd.f32 %v11896_v23, %v13425_v54  ;;  %v7724_v18 = vmul.f32 %v13426_v20, %v13426_v20  ;;  %v7669_v39 = vmul.f32 %v13427_v42, %v13427_v42 }
 0xc67   :  { %v7624_v14 = vadd.f32 %v7623_v58, %v7609_v47  ;;  %v7587_v36 = vadd.f32 %v7586_v60, %v11821_v26  ;;  %v7645_v19 = vadd.f32 %v7644_v49, %v11863_v52  ;;  %v7738_v37 = vadd.f32 %v7723_v43, %v7722_v61  ;;  %v13428_v58 = vld [vmem:[#allocation52_spill] sm:$0xff]  ;;  %v13429_v60 = vld [vmem:[#allocation35_spill] sm:$0xff] }
 0xc68   :  { %v7681_v10 = vadd.f32 %v7680_v55, %v7666_v21  ;;  %v7701_v50 = vadd.f32 %v7700_v34, %v13426_v20  ;;  %v7613_v16 = vmul.f32 %v13429_v60, %v13429_v60  ;;  %v13432_v43 = vld [vmem:[#allocation36_spill] sm:$0xff]  ;;  %v13436_v20 = vld [vmem:[#allocation55_spill] sm:$0xff] }
 0xc69   :  { %v7625_v62 = vadd.f32 %v7624_v14, %v7610_v27  ;;  %v7588_v25 = vadd.f32 %v7587_v36, %v11824_v44  ;;  %v7725_v27 = vmul.f32 %v13428_v58, %v13428_v58  ;;  %v13430_v14 = vld [vmem:[#allocation41_spill] sm:$0xff]  ;;  %v7646_v36 = vadd.f32 %v7645_v19, %v13427_v42  ;;  %v13452_v42 = vld [vmem:[#allocation15_spill] sm:$0xff] }
 0xc6a   :  { %v7682_v17 = vadd.f32 %v7681_v10, %v7667_v24  ;;  %v7670_v0 = vmul.f32 %v13430_v14, %v13430_v14  ;;  %v7702_v55 = vadd.f32 %v7701_v50, %v13428_v58  ;;  %v13431_v24 = vld [vmem:[#allocation53_spill] sm:$0xff]  ;;  %v13433_v10 = vld [vmem:[#allocation42_spill] sm:$0xff] }
 0xc6b   :  { %v7626_v47 = vadd.f32 %v7625_v62, %v7611_v45  ;;  %v7589_v7 = vadd.f32 %v7588_v25, %v11827_v56  ;;  %v7739_v45 = vadd.f32 %v7738_v37, %v7724_v18  ;;  %v7726_v62 = vmul.f32 %v13431_v24, %v13431_v24  ;;  %v13434_v18 = vld [vmem:[#allocation54_spill] sm:$0xff] }
 0xc6c   :  { %v7683_v21 = vadd.f32 %v7682_v17, %v7668_v57  ;;  %v7614_v25 = vmul.f32 %v13432_v43, %v13432_v43  ;;  %v7671_v57 = vmul.f32 %v13433_v10, %v13433_v10  ;;  %v7647_v49 = vadd.f32 %v7646_v36, %v13430_v14 }
 0xc6d   :  { %v12021_v2 = vpop.f32.mrf.mxu1  ;;  %v7627_v1 = vadd.f32 %v7626_v47, %v7612_v28  ;;  %v7590_v53 = vadd.f32 %v7589_v7, %v13429_v60  ;;  %v7740_v61 = vadd.f32 %v7739_v45, %v7725_v27  ;;  %v7703_v34 = vadd.f32 %v7702_v55, %v13431_v24  ;;  %v13435_v7 = vld [vmem:[#allocation43_spill] sm:$0xff]  ;;  %v13437_v45 = vld [vmem:[#allocation37_spill] sm:$0xff] }
 0xc6e   :  { %v7684_v28 = vadd.f32 %v7683_v21, %v7669_v39  ;;  %v7727_v47 = vmul.f32 %v13434_v18, %v13434_v18  ;;  %v7672_v50 = vmul.f32 %v13435_v7, %v13435_v7  ;;  %v7648_v39 = vadd.f32 %v7647_v49, %v13433_v10  ;;  %v13439_v49 = vld [vmem:[#allocation56_spill] sm:$0xff] }
 0xc6f   :  { %v7628_v17 = vadd.f32 %v7627_v1, %v7613_v16  ;;  %v7591_v19 = vadd.f32 %v7590_v53, %v13432_v43  ;;  %v7741_v21 = vadd.f32 %v7740_v61, %v7726_v62  ;;  %v7704_v58 = vadd.f32 %v7703_v34, %v13434_v18  ;;  %v13438_v1 = vld [vmem:[#allocation44_spill] sm:$0xff] }
 0xc70   :  { %v7685_v37 = vadd.f32 %v7684_v28, %v7670_v0  ;;  %v7728_v27 = vmul.f32 %v13436_v20, %v13436_v20  ;;  %v7615_v55 = vmul.f32 %v13437_v45, %v13437_v45  ;;  %v7673_v16 = vmul.f32 %v13438_v1, %v13438_v1 }
 0xc71   :  { %v7629_v36 = vadd.f32 %v7628_v17, %v7614_v25  ;;  %v7649_v0 = vadd.f32 %v7648_v39, %v13435_v7  ;;  %v7742_v53 = vadd.f32 %v7741_v21, %v7727_v47  ;;  %v7705_v28 = vadd.f32 %v7704_v58, %v13436_v20  ;;  %v13440_v25 = vld [vmem:[#allocation30_spill] sm:$0xff]  ;;  %v13442_v58 = vld [vmem:[#allocation57_spill] sm:$0xff] }
 0xc72   :  { %v7686_v24 = vadd.f32 %v7685_v37, %v7671_v57  ;;  %v7729_v62 = vmul.f32 %v13439_v49, %v13439_v49  ;;  %v7592_v34 = vadd.f32 %v7591_v19, %v13437_v45  ;;  %v7616_v17 = vmul.f32 %v13440_v25, %v13440_v25  ;;  %v13441_v57 = vld [vmem:[#allocation45_spill] sm:$0xff]  ;;  %v13443_v7 = vld [vmem:[#allocation46_spill] sm:$0xff] }
 0xc73   :  { %v7674_v37 = vmul.f32 %v13441_v57, %v13441_v57  ;;  %v7650_v23 = vadd.f32 %v7649_v0, %v13438_v1  ;;  %v7743_v39 = vadd.f32 %v7742_v53, %v7728_v27  ;;  %v7706_v47 = vadd.f32 %v7705_v28, %v13439_v49  ;;  %v13444_v0 = vld [vmem:[#allocation58_spill] sm:$0xff]  ;;  %v13445_v28 = vld [vmem:[#allocation31_spill] sm:$0xff] }
 0xc74   :  { %v7687_v18 = vadd.f32 %v7686_v24, %v7672_v50  ;;  %v7730_v21 = vmul.f32 %v13442_v58, %v13442_v58  ;;  %v7630_v20 = vadd.f32 %v7629_v36, %v7615_v55  ;;  %v12108_v54 = vadd.f32 %v7592_v34, %v13440_v25  ;;  %v13446_v34 = vld [vmem:[#allocation7_spill] sm:$0xff] }
 0xc75   :  { %v12062_v6 = vpop.f32.mrf.mxu1  ;;  %v7675_v10 = vmul.f32 %v13443_v7, %v13443_v7  ;;  %v7651_v24 = vadd.f32 %v7650_v23, %v13441_v57  ;;  %v7744_v50 = vadd.f32 %v7743_v39, %v7729_v62  ;;  %v7707_v14 = vadd.f32 %v7706_v47, %v13442_v58  ;;  %v13447_v62 = vld [vmem:[#allocation59_spill] sm:$0xff]  ;;  %v7113_v47 = vpop.f32.mrf.mxu0 }
 0xc76   :  { %v7688_v19 = vadd.f32 %v7687_v18, %v7673_v16  ;;  %v7731_v27 = vmul.f32 %v13444_v0, %v13444_v0  ;;  %v12116_v53 = vadd.f32 %v7630_v20, %v7616_v17  ;;  %v12120_v36 = vmul.f32 %v13445_v28, %v13445_v28  ;;  %v13448_v20 = vld [vmem:[#allocation6_spill] sm:$0xff]  ;;  %v13450_v1 = vld [vmem:[#allocation47_spill] sm:$0xff] }
 0xc77   :  { %v7783_v18 = vmul.f32 %v13446_v34, %v13446_v34  ;;  %v7652_v16 = vadd.f32 %v7651_v24, %v13443_v7  ;;  %v7745_v49 = vadd.f32 %v7744_v50, %v7730_v21  ;;  %v7708_v23 = vadd.f32 %v7707_v14, %v13444_v0  ;;  %v13451_v50 = vld [vmem:[#allocation60_spill] sm:$0xff] }
 0xc78   :  { %v7689_v55 = vadd.f32 %v7688_v19, %v7674_v37  ;;  %v7732_v39 = vmul.f32 %v13447_v62, %v13447_v62  ;;  %v7782_v17 = vmul.f32 %v13448_v20, %v13448_v20  ;;  %v7760_v57 = vadd.f32 %v13446_v34, %v13448_v20  ;;  %v13449_v37 = vld [vmem:[#allocation9_spill] sm:$0xff]  ;;  %v13453_v20 = vld [vmem:[#allocation18_spill] sm:$0xff] }
 0xc79   :  { %v7784_v19 = vmul.f32 %v13449_v37, %v13449_v37  ;;  %v7676_v24 = vmul.f32 %v13450_v1, %v13450_v1  ;;  %v7746_v21 = vadd.f32 %v7745_v49, %v7731_v27  ;;  %v7709_v14 = vadd.f32 %v7708_v23, %v13447_v62  ;;  %v13455_v23 = vld [vmem:[#allocation61_spill] sm:$0xff] }
 0xc7a   :  { %v7690_v58 = vadd.f32 %v7689_v55, %v7675_v10  ;;  %v7733_v0 = vmul.f32 %v13451_v50, %v13451_v50  ;;  %v7798_v10 = vadd.f32 %v7783_v18, %v7782_v17  ;;  %v7761_v55 = vadd.f32 %v7760_v57, %v13449_v37  ;;  %v13456_v17 = vld [vmem:[#allocation19_spill] sm:$0xff]  ;;  %v13457_v37 = vld [vmem:[#allocation21_spill] sm:$0xff] }
 0xc7b   :  { %v7785_v34 = vmul.f32 %v13452_v42, %v13452_v42  ;;  %v12146_v52 = vadd.f32 %v13453_v20, %v11983_v8  ;;  %v7653_v31 = vadd.f32 %v7652_v16, %v13450_v1  ;;  %v7747_v49 = vadd.f32 %v7746_v21, %v7732_v39  ;;  %v13458_v39 = vld [vmem:[#allocation3_spill] sm:$0xff] }
 0xc7c   :  { %v7710_v27 = vadd.f32 %v7709_v14, %v13451_v50  ;;  %v7734_v62 = vmul.f32 %v13455_v23, %v13455_v23  ;;  %v7799_v12 = vadd.f32 %v7798_v10, %v7784_v19  ;;  %v7762_v18 = vadd.f32 %v7761_v55, %v13452_v42  ;;  %v13459_v10 = vld [vmem:[#allocation33_spill] sm:$0xff]  ;;  %v13460_v42 = vld [vmem:[#allocation48_spill] sm:$0xff] }
 0xc7d   :  { %v12096_v61 = vpop.f32.mrf.mxu1  ;;  %13454 = vst [vmem:[#allocation23_spill] sm:$0xff] %v12146_v52  ;;  %v7786_v57 = vmul.f32 %v13456_v17, %v13456_v17  ;;  %v12157_v40 = vadd.f32 %v13457_v37, %v11985_v32  ;;  %v7691_v8 = vadd.f32 %v7690_v58, %v7676_v24  ;;  %v7748_v20 = vadd.f32 %v7747_v49, %v7733_v0  ;;  %v13461_v37 = vld [vmem:[#allocation4_spill] sm:$0xff] }
 0xc7e   :  { %v7711_v16 = vadd.f32 %v7710_v27, %v13455_v23  ;;  %v7735_v21 = vmul.f32 %v13458_v39, %v13458_v39  ;;  %v7800_v14 = vadd.f32 %v7799_v12, %v7785_v34  ;;  %v7763_v50 = vadd.f32 %v7762_v18, %v13456_v17  ;;  %v7116_v17 = vpop.f32.mrf.mxu0 }
 0xc7f   :  { %v7787_v19 = vmul.f32 %v12146_v52, %v12146_v52  ;;  %v12167_v55 = vadd.f32 %v13459_v10, %v11987_v22  ;;  %v7677_v32 = vmul.f32 %v13460_v42, %v13460_v42  ;;  %v7749_v58 = vadd.f32 %v7748_v20, %v7734_v62  ;;  %v13462_v20 = vld [vmem:[#allocation5_spill] sm:$0xff] }
 0xc80   :  { %v7712_v0 = vadd.f32 %v7711_v16, %v13458_v39  ;;  %v7736_v24 = vmul.f32 %v13461_v37, %v13461_v37  ;;  %v7801_v49 = vadd.f32 %v7800_v14, %v7786_v57  ;;  %v7764_v12 = vadd.f32 %v7763_v50, %v12146_v52 }
 0xc81   :  { %v7788_v34 = vmul.f32 %v12157_v40, %v12157_v40  ;;  %v12179_v27 = vadd.f32 %v11981_v38, %v11990_v63  ;;  %v7654_v22 = vadd.f32 %v7653_v31, %v13460_v42  ;;  %v7750_v18 = vadd.f32 %v7749_v58, %v7735_v21 }
 0xc82   :  { %v7713_v62 = vadd.f32 %v7712_v0, %v13461_v37  ;;  %v7737_v16 = vmul.f32 %v13462_v20, %v13462_v20  ;;  %v7802_v57 = vadd.f32 %v7801_v49, %v7787_v19  ;;  %v7765_v50 = vadd.f32 %v7764_v12, %v12157_v40  ;;  %v6332_v0 = vpop.f32.mrf.mxu2 }
 0xc83   :  { %v7789_v14 = vmul.f32 %v12167_v55, %v12167_v55  ;;  %v12190_v38 = vadd.f32 %v12021_v2, %v11998_v41  ;;  %v7594_v31 = vadd.f32 %v12108_v54, %v13445_v28  ;;  %v7692_v63 = vadd.f32 %v7691_v8, %v7677_v32 }
 0xc84   :  { %v7751_v21 = vadd.f32 %v7750_v18, %v7736_v24  ;;  %v7714_v58 = vadd.f32 %v7713_v62, %v13462_v20  ;;  %v7803_v52 = vadd.f32 %v7802_v57, %v7788_v34  ;;  %v7766_v19 = vadd.f32 %v7765_v50, %v12167_v55  ;;  %v13466_v62 = vld [vmem:[#allocation12_spill] sm:$0xff] }
 0xc85   :  { %v12139_v7 = vpop.f32.mrf.mxu1  ;;  %13463 = vst [vmem:[#allocation24_spill] sm:$0xff] %v12190_v38  ;;  %v7790_v49 = vmul.f32 %v12179_v27, %v12179_v27  ;;  %v12200_v12 = vadd.f32 %v12062_v6, %v12002_v5  ;;  %v7182_v41 = vadd.f32 %v7113_v47, %v12028_v4  ;;  %v7632_v2 = vadd.f32 %v12116_v53, %v12120_v36 }
 0xc86   :  { %v7655_v54 = vrot.slane %v7654_v22, 4  ;;  %v7752_v8 = vadd.f32 %v7751_v21, %v7737_v16  ;;  %v7804_v32 = vadd.f32 %v7803_v52, %v7789_v14  ;;  %v7767_v24 = vadd.f32 %v7766_v19, %v12179_v27  ;;  %v6725_v21 = vpop.f32.mrf.mxu3 }
 0xc87   :  { %13464 = vst [vmem:[#allocation25_spill] sm:$0xff] %v12200_v12  ;;  %v7791_v34 = vmul.f32 %v12190_v38, %v12190_v38  ;;  %v12210_v18 = vadd.f32 %v12096_v61, %v12023_v59  ;;  %v6398_v5 = vadd.f32 %v6332_v0, %v13466_v62  ;;  %v7595_v6 = vrot.slane %v7594_v31, 4 }
 0xc88   :  { %v7693_v57 = vrot.slane %v7692_v63, 4  ;;  %v7715_v4 = vrot.slane %v7714_v58, 4  ;;  %v7805_v47 = vadd.f32 %v7804_v32, %v7790_v49  ;;  %v7768_v53 = vadd.f32 %v7767_v24, %v12190_v38 }
 0xc89   :  { %13465 = vst [vmem:[#allocation26_spill] sm:$0xff] %v12210_v18  ;;  %v7792_v52 = vmul.f32 %v12200_v12, %v12200_v12  ;;  %v12218_v36 = vadd.f32 %v12139_v7, %v12030_v35  ;;  %v7183_v16 = vadd.f32 %v7116_v17, %v12038_v33  ;;  %v7633_v50 = vrot.slane %v7632_v2, 4  ;;  %v7118_v35 = vpop.f32.mrf.mxu0 }
 0xc8a   :  { %v7656_v59 = vadd.f32 %v7655_v54, %v7654_v22  ;;  %v7753_v61 = vrot.slane %v7752_v8, 4  ;;  %v7806_v0 = vadd.f32 %v7805_v47, %v7791_v34  ;;  %v7769_v19 = vadd.f32 %v7768_v53, %v12200_v12 }
 0xc8b   :  { %13467 = vst [vmem:[#allocation27_spill] sm:$0xff] %v12218_v36  ;;  %v7793_v49 = vmul.f32 %v12210_v18, %v12210_v18  ;;  %v7596_v24 = vadd.f32 %v7595_v6, %v7594_v31  ;;  %v7694_v62 = vadd.f32 %v7693_v57, %v7692_v63  ;;  %v7716_v38 = vadd.f32 %v7715_v4, %v7714_v58 }
 0xc8c   :  { %v7807_v7 = vadd.f32 %v7806_v0, %v7792_v52  ;;  %v7770_v33 = vadd.f32 %v7769_v19, %v12210_v18  ;;  %v7794_v17 = vmul.f32 %v12218_v36, %v12218_v36  ;;  %v6791_v54 = vadd.f32 %v6725_v21, %v6398_v5 }
 0xc8d   :  { %v7506_v10 = vpop.f32.mrf.mxu1  ;;  %v7634_v34 = vadd.f32 %v7633_v50, %v7632_v2  ;;  %v7657_v47 = vrot.slane %v7656_v59, 2  ;;  %v7754_v53 = vadd.f32 %v7753_v61, %v7752_v8  ;;  %v7597_v58 = vrot.slane %v7596_v24, 2 }
 0xc8e   :  { %v12224_v32 = vadd.f32 %v7506_v10, %v7182_v41  ;;  %v7808_v12 = vadd.f32 %v7807_v7, %v7793_v49  ;;  %v7771_v10 = vadd.f32 %v7770_v33, %v12218_v36  ;;  %v7184_v63 = vadd.f32 %v7118_v35, %v6791_v54 }
 0xc8f   :  { %v7695_v41 = vrot.slane %v7694_v62, 2  ;;  %v7717_v6 = vrot.slane %v7716_v38, 2  ;;  %v7635_v5 = vrot.slane %v7634_v34, 2  ;;  %v7658_v2 = vadd.f32 %v7657_v47, %v7656_v59 }
 0xc90   :  { %13468 = vst [vmem:[#allocation13_spill] sm:$0xff] %v12224_v32  ;;  %v7795_v31 = vmul.f32 %v12224_v32, %v12224_v32  ;;  %v7809_v57 = vadd.f32 %v7808_v12, %v7794_v17  ;;  %v7772_v4 = vadd.f32 %v7771_v10, %v12224_v32  ;;  %v7755_v8 = vrot.slane %v7754_v53, 2 }
 0xc91   :  { %v7598_v21 = vadd.f32 %v7597_v58, %v7596_v24  ;;  %v7696_v0 = vadd.f32 %v7695_v41, %v7694_v62  ;;  %v7718_v19 = vadd.f32 %v7717_v6, %v7716_v38  ;;  %v7636_v12 = vadd.f32 %v7635_v5, %v7634_v34 }
 0xc92   :  { %v7810_v50 = vadd.f32 %v7809_v57, %v7795_v31  ;;  %v7659_v33 = vrot.slane %v7658_v2, 1  ;;  %v7756_v17 = vadd.f32 %v7755_v8, %v7754_v53 }
 0xc93   :  { %v7599_v32 = vrot.slane %v7598_v21, 1  ;;  %v7697_v36 = vrot.slane %v7696_v0, 1  ;;  %v7719_v59 = vrot.slane %v7718_v19, 1  ;;  %v7637_v31 = vrot.slane %v7636_v12, 1 }
 0xc94   :  { %v7660_v57 = vadd.f32 %v7659_v33, %v7658_v2 }
 0xc95   :  { %v7509_v14 = vpop.f32.mrf.mxu1  ;;  %v7600_v62 = vadd.f32 %v7599_v32, %v7598_v21  ;;  %v7698_v38 = vadd.f32 %v7697_v36, %v7696_v0  ;;  %v7720_v58 = vadd.f32 %v7719_v59, %v7718_v19  ;;  %v7638_v34 = vadd.f32 %v7637_v31, %v7636_v12  ;;  %v7578_v31 = vld [vmem:[%s12831_s5] sm:$0x1] }
 0xc96   :  { %v12229_v22 = vadd.f32 %v7509_v14, %v7183_v16 }
 0xc97   :  { %v7699_v8 = vadd.f32 %v7698_v38, %v7638_v34  ;;  %v7579_v38 = vld [vmem:[%s12832_s6] sm:$0x1] }
 0xc98   :  { %v7796_v52 = vmul.f32 %v12229_v22, %v12229_v22  ;;  %v7773_v61 = vadd.f32 %v7772_v4, %v12229_v22  ;;  %v7757_v4 = vrot.slane %v7756_v17, 1 }
 0xc9a   :  { %v7811_v49 = vadd.f32 %v7810_v50, %v7796_v52  ;;  %v7661_v52 = vadd.f32 %v7660_v57, %v7600_v62  ;;  %v7758_v53 = vadd.f32 %v7757_v4, %v7756_v17 }
 0xc9c   :  { %v7721_v50 = vadd.f32 %v7720_v58, %v7661_v52  ;;  %v13469_v52 = vld [vmem:[#allocation34_spill] sm:$0xff] }
 0xc9d   :  { %v7511_v16 = vpop.f32.mrf.mxu1 }
 0xc9e   :  { %v7577_v14 = vadd.f32 %v7511_v16, %v7184_v63 }
 0xca0   :  { %v7774_v35 = vadd.f32 %v7773_v61, %v7577_v14  ;;  %v7797_v7 = vmul.f32 %v7577_v14, %v7577_v14 }
 0xca2   :  { %v7775_v54 = vrot.slane %v7774_v35, 4  ;;  %v7812_v10 = vadd.f32 %v7811_v49, %v7797_v7 }
 0xca4   :  { %v7776_v47 = vadd.f32 %v7775_v54, %v7774_v35  ;;  %v7813_v18 = vrot.slane %v7812_v10, 4  ;;  %v7759_v35 = vadd.f32 %v7758_v53, %v7699_v8 }
 0xca6   :  { %v7777_v63 = vrot.slane %v7776_v47, 2  ;;  %v7814_v24 = vadd.f32 %v7813_v18, %v7812_v10 }
 0xca8   :  { %v7778_v41 = vadd.f32 %v7777_v63, %v7776_v47  ;;  %v7815_v6 = vrot.slane %v7814_v24, 2 }
 0xcaa   :  { %v7779_v5 = vrot.slane %v7778_v41, 1  ;;  %v7816_v16 = vadd.f32 %v7815_v6, %v7814_v24 }
 0xcac   :  { %v7780_v61 = vadd.f32 %v7779_v5, %v7778_v41  ;;  %v7817_v49 = vrot.slane %v7816_v16, 1 }
 0xcae   :  { %v7781_v7 = vadd.f32 %v7780_v61, %v7721_v50  ;;  %v7818_v2 = vadd.f32 %v7817_v49, %v7816_v16 }
 0xcb0   :  { %v7819_v33 = vadd.f32 %v7818_v2, %v7759_v35  ;;  %v7820_v54 = vmul.f32 0.001953125, %v7781_v7  ;;  %v7842_v35 = vld [vmem:[%s12827_s0 + $0x18] sm:$0xff] }
 0xcb2   :  { %v7821_v18 = vmul.f32 0.001953125, %v7819_v33  ;;  %v7822_v32 = vmul.f32 %v7820_v54, %v7820_v54  ;;  %v7843_v33 = vld [vmem:[%s12827_s0 + $0x20] sm:$0xff] }
 0xcb4   :  { %v7823_v36 = vsub.f32 %v7821_v18, %v7822_v32  ;;  %v7844_v32 = vld [vmem:[%s12827_s0 + $0x28] sm:$0xff] }
 0xcb6   :  { %v7824_v21 = vmax.f32 %v7823_v36, 0.0 }
 0xcb8   :  { %v7825_v0 = vadd.f32 1e-05, %v7824_v21 }
 0xcba   :  { %8972 = vrsqrt.f32 %v7825_v0  ;;  %vm7832_vm4 = vweird.f32 %v7825_v0 }
 0xcc0   :  { %v8973_v19 = vpop.eup %8972 }
 0xcc1   :  { %v7827_v12 = vmul.f32 %v8973_v19, %v7825_v0  ;;  %vm7833_vm3 = vweird.f32 %v8973_v19 }
 0xcc2   :  { %vm7834_vm5 = vmor %vm7832_vm4, %vm7833_vm3 }
 0xcc3   :  { %v7828_v17 = vmul.f32 %v8973_v19, %v7827_v12 }
 0xcc5   :  { %v7829_v10 = vmul.f32 0.5, %v7828_v17 }
 0xcc7   :  { %v7830_v59 = vsub.f32 1.5, %v7829_v10  ;;  %v7846_v10 = vld [vmem:[%s12827_s0 + $0x38] sm:$0xff] }
 0xcc9   :  { %v7831_v47 = vmul.f32 %v8973_v19, %v7830_v59 }
 0xccb   :  { %v7835_v57 = vsel %vm7834_vm5, %v8973_v19, %v7831_v47  ;;  %v7845_v19 = vld [vmem:[%s12827_s0 + $0x30] sm:$0xff] }
 0xccc   :  { %v7836_v4 = vmul.f32 %v7835_v57, %v7578_v31 }
 0xcce   :  { %v12241_v63 = vperm.slane %v7836_v4, 0  ;;  %v7837_v62 = vmul.f32 %v7836_v4, %v7820_v54 }
 0xcd0   :  { %v7969_v24 = vmul.f32 %v12241_v63, %v7577_v14  ;;  %v7838_v58 = vsub.f32 %v7579_v38, %v7837_v62  ;;  %v7906_v34 = vmul.f32 %v12241_v63, %v11797_v29  ;;  %v7907_v53 = vmul.f32 %v12241_v63, %v13469_v52  ;;  %v7839_v29 = vld [vmem:[%s12827_s0] sm:$0xff]  ;;  %v7848_v62 = vld [vmem:[%s12827_s0 + $0x48] sm:$0xff]  ;;  %v7849_v52 = vld [vmem:[%s12827_s0 + $0x50] sm:$0xff] }
 0xcd1   :  { %v7908_v14 = vmul.f32 %v12241_v63, %v11803_v30  ;;  %v7909_v5 = vmul.f32 %v12241_v63, %v11806_v51  ;;  %v7910_v16 = vmul.f32 %v12241_v63, %v11809_v9  ;;  %v7840_v30 = vld [vmem:[%s12827_s0 + $0x8] sm:$0xff]  ;;  %v7841_v51 = vld [vmem:[%s12827_s0 + $0x10] sm:$0xff]  ;;  %v7911_v9 = vmul.f32 %v12241_v63, %v11812_v13 }
 0xcd2   :  { %v12247_v41 = vperm.slane %v7838_v58, 0  ;;  %v7912_v7 = vmul.f32 %v12241_v63, %v11815_v15  ;;  %v7913_v54 = vmul.f32 %v12241_v63, %v11818_v3  ;;  %v7914_v13 = vmul.f32 %v12241_v63, %v11821_v26 }
 0xcd3   :  { %v7915_v3 = vmul.f32 %v12241_v63, %v11824_v44  ;;  %v7916_v26 = vmul.f32 %v12241_v63, %v11827_v56  ;;  %v7917_v59 = vmul.f32 %v12241_v63, %v13429_v60  ;;  %v7847_v44 = vld [vmem:[%s12827_s0 + $0x40] sm:$0xff]  ;;  %v7918_v56 = vmul.f32 %v12241_v63, %v13432_v43 }
 0xcd4   :  { %v12250_v6 = vadd.f32 %v12247_v41, %v7969_v24  ;;  %v7973_v8 = vadd.f32 %v12247_v41, %v7906_v34  ;;  %v7974_v50 = vadd.f32 %v12247_v41, %v7907_v53  ;;  %v7975_v61 = vadd.f32 %v12247_v41, %v7908_v14 }
 0xcd5   :  { %v7976_v49 = vadd.f32 %v12247_v41, %v7909_v5  ;;  %v7977_v2 = vadd.f32 %v12247_v41, %v7910_v16  ;;  %v7978_v18 = vadd.f32 %v12247_v41, %v7911_v9  ;;  %v7979_v15 = vadd.f32 %v12247_v41, %v7912_v7  ;;  %v7850_v16 = vld [vmem:[%s12827_s0 + $0x58] sm:$0xff] }
 0xcd6   :  { %v8037_v36 = vadd.f32 %v7973_v8, %v7839_v29  ;;  %v8038_v21 = vadd.f32 %v7974_v50, %v7840_v30  ;;  %v8039_v0 = vadd.f32 %v7975_v61, %v7841_v51  ;;  %v7980_v12 = vadd.f32 %v12247_v41, %v7913_v54 }
 0xcd7   :  { %v8040_v17 = vadd.f32 %v7976_v49, %v7842_v35  ;;  %v7981_v47 = vadd.f32 %v12247_v41, %v7914_v13  ;;  %v8041_v31 = vadd.f32 %v7977_v2, %v7843_v33  ;;  %v7982_v57 = vadd.f32 %v12247_v41, %v7915_v3 }
 0xcd8   :  { %v7983_v4 = vadd.f32 %v12247_v41, %v7916_v26  ;;  %v8042_v24 = vadd.f32 %v7978_v18, %v7844_v32  ;;  %v8043_v60 = vadd.f32 %v7979_v15, %v7845_v19  ;;  %v8101_v38 = vmax.f32 %v8037_v36, 0.0  ;;  %v13470_v19 = vld [vmem:[#allocation38_spill] sm:$0xff] }
 0xcd9   :  { %v8102_v58 = vmax.f32 %v8038_v21, 0.0  ;;  %v8103_v34 = vmax.f32 %v8039_v0, 0.0  ;;  %v7919_v43 = vmul.f32 %v12241_v63, %v13437_v45  ;;  %v7984_v53 = vadd.f32 %v12247_v41, %v7917_v59  ;;  %v7851_v45 = vld [vmem:[%s12827_s0 + $0x60] sm:$0xff] }
 0xcda   :  { %v8044_v14 = vadd.f32 %v7980_v12, %v7846_v10  ;;  %v8104_v5 = vmax.f32 %v8040_v17, 0.0  ;;  %v7920_v8 = vmul.f32 %v12241_v63, %v13440_v25  ;;  %v7985_v50 = vadd.f32 %v12247_v41, %v7918_v56  ;;  %8165 = vst [vmem:[%s12833_s7] sm:$0xff] %v8101_v38  ;;  %v7852_v25 = vld [vmem:[%s12827_s0 + $0x68] sm:$0xff]  ;;  %v13471_v10 = vld [vmem:[#allocation39_spill] sm:$0xff]  ;;  %v7857_v56 = vld [vmem:[%s12827_s0 + $0x90] sm:$0xff] }
 0xcdb   :  { %v8045_v61 = vadd.f32 %v7981_v47, %v7847_v44  ;;  %v8105_v29 = vmax.f32 %v8041_v31, 0.0  ;;  %v7921_v30 = vmul.f32 %v12241_v63, %v13445_v28  ;;  %v7986_v51 = vadd.f32 %v12247_v41, %v7919_v43  ;;  %8166 = vst [vmem:[%s12833_s7 + $0x8] sm:$0xff] %v8102_v58  ;;  %v7853_v28 = vld [vmem:[%s12827_s0 + $0x70] sm:$0xff]  ;;  %v7858_v38 = vld [vmem:[%s12827_s0 + $0x98] sm:$0xff] }
 0xcdc   :  { %v8046_v9 = vadd.f32 %v7982_v57, %v7848_v62  ;;  %v8106_v49 = vmax.f32 %v8042_v24, 0.0  ;;  %v7922_v35 = vmul.f32 %v12241_v63, %v11845_v48  ;;  %v7987_v7 = vadd.f32 %v12247_v41, %v7920_v8  ;;  %8167 = vst [vmem:[%s12833_s7 + $0x10] sm:$0xff] %v8103_v34  ;;  %v7854_v48 = vld [vmem:[%s12827_s0 + $0x78] sm:$0xff]  ;;  %v13472_v57 = vld [vmem:[#allocation40_spill] sm:$0xff] }
 0xcdd   :  { %v8047_v2 = vadd.f32 %v7983_v4, %v7849_v52  ;;  %v8107_v33 = vmax.f32 %v8043_v60, 0.0  ;;  %v7923_v54 = vmul.f32 %v12241_v63, %v11848_v46  ;;  %v7988_v13 = vadd.f32 %v12247_v41, %v7921_v30  ;;  %8168 = vst [vmem:[%s12833_s7 + $0x18] sm:$0xff] %v8104_v5  ;;  %v7855_v46 = vld [vmem:[%s12827_s0 + $0x80] sm:$0xff]  ;;  %v13473_v58 = vld [vmem:[#allocation14_spill] sm:$0xff] }
 0xcde   :  { %v8048_v18 = vadd.f32 %v7984_v53, %v7850_v16  ;;  %v8108_v32 = vmax.f32 %v8044_v14, 0.0  ;;  %v7924_v15 = vmul.f32 %v12241_v63, %v11851_v11  ;;  %v7989_v36 = vadd.f32 %v12247_v41, %v7922_v35  ;;  %8169 = vst [vmem:[%s12833_s7 + $0x20] sm:$0xff] %v8105_v29  ;;  %v7856_v11 = vld [vmem:[%s12827_s0 + $0x88] sm:$0xff]  ;;  %v7859_v14 = vld [vmem:[%s12827_s0 + $0xa0] sm:$0xff]  ;;  %v13476_v35 = vld [vmem:[#allocation42_spill] sm:$0xff] }
 0xcdf   :  { %v8049_v21 = vadd.f32 %v7985_v50, %v7851_v45  ;;  %v8109_v0 = vmax.f32 %v8045_v61, 0.0  ;;  %v7925_v3 = vmul.f32 %v12241_v63, %v13470_v19  ;;  %v7990_v26 = vadd.f32 %v12247_v41, %v7923_v54  ;;  %8170 = vst [vmem:[%s12833_s7 + $0x28] sm:$0xff] %v8106_v49  ;;  %v13474_v5 = vld [vmem:[#allocation11_spill] sm:$0xff]  ;;  %v7860_v29 = vld [vmem:[%s12827_s0 + $0xa8] sm:$0xff]  ;;  %v13475_v45 = vld [vmem:[#allocation41_spill] sm:$0xff] }
 0xce0   :  { %v8050_v12 = vadd.f32 %v7986_v51, %v7852_v25  ;;  %v8110_v17 = vmax.f32 %v8046_v9, 0.0  ;;  %v7926_v59 = vmul.f32 %v12241_v63, %v13471_v10  ;;  %v7991_v47 = vadd.f32 %v12247_v41, %v7924_v15  ;;  %8171 = vst [vmem:[%s12833_s7 + $0x30] sm:$0xff] %v8107_v33  ;;  %v7861_v25 = vld [vmem:[%s12827_s0 + $0xb0] sm:$0xff]  ;;  %v7862_v54 = vld [vmem:[%s12827_s0 + $0xb8] sm:$0xff] }
 0xce1   :  { %v8051_v31 = vadd.f32 %v7987_v7, %v7853_v28  ;;  %v8111_v44 = vmax.f32 %v8047_v2, 0.0  ;;  %v7927_v4 = vmul.f32 %v12241_v63, %v13472_v57  ;;  %v7992_v24 = vadd.f32 %v12247_v41, %v7925_v3  ;;  %8172 = vst [vmem:[%s12833_s7 + $0x38] sm:$0xff] %v8108_v32 }
 0xce2   :  { %v8052_v62 = vadd.f32 %v7988_v13, %v7854_v48  ;;  %v8112_v60 = vmax.f32 %v8048_v18, 0.0  ;;  %v7928_v34 = vmul.f32 %v12241_v63, %v13473_v58  ;;  %v7993_v52 = vadd.f32 %v12247_v41, %v7926_v59  ;;  %8173 = vst [vmem:[%s12833_s7 + $0x40] sm:$0xff] %v8109_v0  ;;  %v13477_v13 = vld [vmem:[#allocation43_spill] sm:$0xff] }
 0xce3   :  { %v8053_v43 = vadd.f32 %v7989_v36, %v7855_v46  ;;  %v8113_v53 = vmax.f32 %v8049_v21, 0.0  ;;  %v7929_v16 = vmul.f32 %v12241_v63, %v13474_v5  ;;  %v7994_v8 = vadd.f32 %v12247_v41, %v7927_v4  ;;  %8174 = vst [vmem:[%s12833_s7 + $0x48] sm:$0xff] %v8110_v17  ;;  %v7863_v36 = vld [vmem:[%s12827_s0 + $0xc0] sm:$0xff]  ;;  %v13478_v21 = vld [vmem:[#allocation44_spill] sm:$0xff]  ;;  %v13481_v5 = vld [vmem:[#allocation49_spill] sm:$0xff] }
 0xce4   :  { %v8054_v50 = vadd.f32 %v7990_v26, %v7856_v11  ;;  %v8114_v61 = vmax.f32 %v8050_v12, 0.0  ;;  %v7930_v30 = vmul.f32 %v12241_v63, %v13475_v45  ;;  %v7995_v51 = vadd.f32 %v12247_v41, %v7928_v34  ;;  %8175 = vst [vmem:[%s12833_s7 + $0x50] sm:$0xff] %v8111_v44  ;;  %v7864_v26 = vld [vmem:[%s12827_s0 + $0xc8] sm:$0xff]  ;;  %v13479_v12 = vld [vmem:[#allocation45_spill] sm:$0xff]  ;;  %v7867_v34 = vld [vmem:[%s12827_s0 + $0xe0] sm:$0xff] }
 0xce5   :  { %v8055_v9 = vadd.f32 %v7991_v47, %v7857_v56  ;;  %v8115_v49 = vmax.f32 %v8051_v31, 0.0  ;;  %v7931_v7 = vmul.f32 %v12241_v63, %v13476_v35  ;;  %v7996_v2 = vadd.f32 %v12247_v41, %v7929_v16  ;;  %8176 = vst [vmem:[%s12833_s7 + $0x58] sm:$0xff] %v8112_v60  ;;  %v7865_v47 = vld [vmem:[%s12827_s0 + $0xd0] sm:$0xff]  ;;  %v13480_v31 = vld [vmem:[#allocation46_spill] sm:$0xff] }
 0xce6   :  { %v8056_v33 = vadd.f32 %v7992_v24, %v7858_v38  ;;  %v8116_v28 = vmax.f32 %v8052_v62, 0.0  ;;  %v7932_v18 = vmul.f32 %v12241_v63, %v13477_v13  ;;  %v7997_v32 = vadd.f32 %v12247_v41, %v7930_v30  ;;  %8177 = vst [vmem:[%s12833_s7 + $0x60] sm:$0xff] %v8113_v53  ;;  %v7866_v24 = vld [vmem:[%s12827_s0 + $0xd8] sm:$0xff] }
 0xce7   :  { %v8057_v48 = vadd.f32 %v7993_v52, %v7859_v14  ;;  %v8117_v15 = vmax.f32 %v8053_v43, 0.0  ;;  %v7933_v0 = vmul.f32 %v12241_v63, %v13478_v21  ;;  %v7998_v46 = vadd.f32 %v12247_v41, %v7931_v7  ;;  %8178 = vst [vmem:[%s12833_s7 + $0x68] sm:$0xff] %v8114_v61 }
 0xce8   :  { %v8058_v19 = vadd.f32 %v7994_v8, %v7860_v29  ;;  %v8118_v3 = vmax.f32 %v8054_v50, 0.0  ;;  %v7934_v17 = vmul.f32 %v12241_v63, %v13479_v12  ;;  %v7999_v11 = vadd.f32 %v12247_v41, %v7932_v18  ;;  %8179 = vst [vmem:[%s12833_s7 + $0x70] sm:$0xff] %v8115_v49  ;;  %v13482_v29 = vld [vmem:[#allocation50_spill] sm:$0xff] }
 0xce9   :  { %v8059_v10 = vadd.f32 %v7995_v51, %v7861_v25  ;;  %v8119_v59 = vmax.f32 %v8055_v9, 0.0  ;;  %v7935_v44 = vmul.f32 %v12241_v63, %v13480_v31  ;;  %v8000_v56 = vadd.f32 %v12247_v41, %v7933_v0  ;;  %8180 = vst [vmem:[%s12833_s7 + $0x78] sm:$0xff] %v8116_v28  ;;  %v7870_v49 = vld [vmem:[%s12827_s0 + $0xf8] sm:$0xff]  ;;  %v13483_v25 = vld [vmem:[#allocation51_spill] sm:$0xff] }
 0xcea   :  { %v8060_v57 = vadd.f32 %v7996_v2, %v7862_v54  ;;  %v8120_v4 = vmax.f32 %v8056_v33, 0.0  ;;  %v7936_v62 = vmul.f32 %v12241_v63, %v13450_v1  ;;  %v8001_v60 = vadd.f32 %v12247_v41, %v7934_v17  ;;  %8181 = vst [vmem:[%s12833_s7 + $0x80] sm:$0xff] %v8117_v15  ;;  %v7868_v1 = vld [vmem:[%s12827_s0 + $0xe8] sm:$0xff]  ;;  %v7871_v28 = vld [vmem:[%s12827_s0 + $0x100] sm:$0xff] }
 0xceb   :  { %v8061_v38 = vadd.f32 %v7997_v32, %v7863_v36  ;;  %v8121_v58 = vmax.f32 %v8057_v48, 0.0  ;;  %v7937_v52 = vmul.f32 %v12241_v63, %v13460_v42  ;;  %v8002_v43 = vadd.f32 %v12247_v41, %v7935_v44  ;;  %8182 = vst [vmem:[%s12833_s7 + $0x88] sm:$0xff] %v8118_v3  ;;  %v7869_v42 = vld [vmem:[%s12827_s0 + $0xf0] sm:$0xff]  ;;  %v13484_v54 = vld [vmem:[#allocation52_spill] sm:$0xff] }
 0xcec   :  { %v8062_v53 = vadd.f32 %v7998_v46, %v7864_v26  ;;  %v8122_v14 = vmax.f32 %v8058_v19, 0.0  ;;  %v7938_v16 = vmul.f32 %v12241_v63, %v13481_v5  ;;  %v8003_v8 = vadd.f32 %v12247_v41, %v7936_v62  ;;  %8183 = vst [vmem:[%s12833_s7 + $0x90] sm:$0xff] %v8119_v59  ;;  %v7872_v15 = vld [vmem:[%s12827_s0 + $0x108] sm:$0xff]  ;;  %v13485_v36 = vld [vmem:[#allocation53_spill] sm:$0xff]  ;;  %v13486_v26 = vld [vmem:[#allocation54_spill] sm:$0xff] }
 0xced   :  { %v8063_v50 = vadd.f32 %v7999_v11, %v7865_v47  ;;  %v8123_v61 = vmax.f32 %v8059_v10, 0.0  ;;  %v7939_v45 = vmul.f32 %v12241_v63, %v13482_v29  ;;  %v8004_v30 = vadd.f32 %v12247_v41, %v7937_v52  ;;  %8184 = vst [vmem:[%s12833_s7 + $0x98] sm:$0xff] %v8120_v4  ;;  %v7873_v3 = vld [vmem:[%s12827_s0 + $0x110] sm:$0xff]  ;;  %v7874_v59 = vld [vmem:[%s12827_s0 + $0x118] sm:$0xff]  ;;  %v13487_v47 = vld [vmem:[#allocation55_spill] sm:$0xff] }
 0xcee   :  { %v8064_v51 = vadd.f32 %v8000_v56, %v7866_v24  ;;  %v8124_v9 = vmax.f32 %v8060_v57, 0.0  ;;  %v7940_v35 = vmul.f32 %v12241_v63, %v13483_v25  ;;  %v8005_v7 = vadd.f32 %v12247_v41, %v7938_v16  ;;  %8185 = vst [vmem:[%s12833_s7 + $0xa0] sm:$0xff] %v8121_v58  ;;  %v7875_v4 = vld [vmem:[%s12827_s0 + $0x120] sm:$0xff]  ;;  %v13488_v24 = vld [vmem:[#allocation56_spill] sm:$0xff]  ;;  %v13489_v52 = vld [vmem:[#allocation57_spill] sm:$0xff] }
 0xcef   :  { %v8065_v2 = vadd.f32 %v8001_v60, %v7867_v34  ;;  %v8125_v33 = vmax.f32 %v8061_v38, 0.0  ;;  %v7941_v13 = vmul.f32 %v12241_v63, %v13484_v54  ;;  %v8006_v18 = vadd.f32 %v12247_v41, %v7939_v45  ;;  %8186 = vst [vmem:[%s12833_s7 + $0xa8] sm:$0xff] %v8122_v14  ;;  %v7876_v34 = vld [vmem:[%s12827_s0 + $0x128] sm:$0xff]  ;;  %v7877_v5 = vld [vmem:[%s12827_s0 + $0x130] sm:$0xff]  ;;  %v13490_v16 = vld [vmem:[#allocation58_spill] sm:$0xff] }
 0xcf0   :  { %v8066_v32 = vadd.f32 %v8002_v43, %v7868_v1  ;;  %v8126_v48 = vmax.f32 %v8062_v53, 0.0  ;;  %v7942_v21 = vmul.f32 %v12241_v63, %v13485_v36  ;;  %v8007_v0 = vadd.f32 %v12247_v41, %v7940_v35  ;;  %8187 = vst [vmem:[%s12833_s7 + $0xb0] sm:$0xff] %v8123_v61  ;;  %v7878_v29 = vld [vmem:[%s12827_s0 + $0x138] sm:$0xff]  ;;  %v13491_v45 = vld [vmem:[#allocation59_spill] sm:$0xff]  ;;  %v13492_v35 = vld [vmem:[#allocation60_spill] sm:$0xff] }
 0xcf1   :  { %v8067_v46 = vadd.f32 %v8003_v8, %v7869_v42  ;;  %v8127_v19 = vmax.f32 %v8063_v50, 0.0  ;;  %v7943_v12 = vmul.f32 %v12241_v63, %v13486_v26  ;;  %v8008_v17 = vadd.f32 %v12247_v41, %v7941_v13  ;;  %8188 = vst [vmem:[%s12833_s7 + $0xb8] sm:$0xff] %v8124_v9  ;;  %v7879_v25 = vld [vmem:[%s12827_s0 + $0x140] sm:$0xff]  ;;  %v7880_v54 = vld [vmem:[%s12827_s0 + $0x148] sm:$0xff] }
 0xcf2   :  { %v8068_v11 = vadd.f32 %v8004_v30, %v7870_v49  ;;  %v8128_v10 = vmax.f32 %v8064_v51, 0.0  ;;  %v7944_v31 = vmul.f32 %v12241_v63, %v13487_v47  ;;  %v8009_v44 = vadd.f32 %v12247_v41, %v7942_v21  ;;  %8189 = vst [vmem:[%s12833_s7 + $0xc0] sm:$0xff] %v8125_v33  ;;  %v13493_v47 = vld [vmem:[#allocation6_spill] sm:$0xff] }
 0xcf3   :  { %v8069_v56 = vadd.f32 %v8005_v7, %v7871_v28  ;;  %v8129_v57 = vmax.f32 %v8065_v2, 0.0  ;;  %v7945_v62 = vmul.f32 %v12241_v63, %v13488_v24  ;;  %v8010_v60 = vadd.f32 %v12247_v41, %v7943_v12  ;;  %8190 = vst [vmem:[%s12833_s7 + $0xc8] sm:$0xff] %v8126_v48 }
 0xcf4   :  { %v8070_v38 = vadd.f32 %v8006_v18, %v7872_v15  ;;  %v8130_v58 = vmax.f32 %v8066_v32, 0.0  ;;  %v7946_v43 = vmul.f32 %v12241_v63, %v13489_v52  ;;  %v8011_v53 = vadd.f32 %v12247_v41, %v7944_v31  ;;  %8191 = vst [vmem:[%s12833_s7 + $0xd0] sm:$0xff] %v8127_v19  ;;  %v7881_v15 = vld [vmem:[%s12827_s0 + $0x150] sm:$0xff] }
 0xcf5   :  { %v8071_v14 = vadd.f32 %v8007_v0, %v7873_v3  ;;  %v8131_v1 = vmax.f32 %v8067_v46, 0.0  ;;  %v7947_v8 = vmul.f32 %v12241_v63, %v13490_v16  ;;  %v8012_v50 = vadd.f32 %v12247_v41, %v7945_v62  ;;  %8192 = vst [vmem:[%s12833_s7 + $0xd8] sm:$0xff] %v8128_v10 }
 0xcf6   :  { %v8072_v61 = vadd.f32 %v8008_v17, %v7874_v59  ;;  %v8132_v42 = vmax.f32 %v8068_v11, 0.0  ;;  %v7948_v30 = vmul.f32 %v12241_v63, %v13491_v45  ;;  %v8013_v51 = vadd.f32 %v12247_v41, %v7946_v43  ;;  %8193 = vst [vmem:[%s12833_s7 + $0xe0] sm:$0xff] %v8129_v57 }
 0xcf7   :  { %v8073_v9 = vadd.f32 %v8009_v44, %v7875_v4  ;;  %v8133_v49 = vmax.f32 %v8069_v56, 0.0  ;;  %v7949_v7 = vmul.f32 %v12241_v63, %v13492_v35  ;;  %v8014_v2 = vadd.f32 %v12247_v41, %v7947_v8  ;;  %8194 = vst [vmem:[%s12833_s7 + $0xe8] sm:$0xff] %v8130_v58  ;;  %v13494_v4 = vld [vmem:[#allocation7_spill] sm:$0xff]  ;;  %v7886_v58 = vld [vmem:[%s12827_s0 + $0x178] sm:$0xff] }
 0xcf8   :  { %v8074_v33 = vadd.f32 %v8010_v60, %v7876_v34  ;;  %v8134_v28 = vmax.f32 %v8070_v38, 0.0  ;;  %v7950_v13 = vmul.f32 %v12241_v63, %v13455_v23  ;;  %v8015_v18 = vadd.f32 %v12247_v41, %v7948_v30  ;;  %8195 = vst [vmem:[%s12833_s7 + $0xf0] sm:$0xff] %v8131_v1  ;;  %v7882_v23 = vld [vmem:[%s12827_s0 + $0x158] sm:$0xff]  ;;  %v13495_v34 = vld [vmem:[#allocation9_spill] sm:$0xff]  ;;  %v7887_v1 = vld [vmem:[%s12827_s0 + $0x180] sm:$0xff] }
 0xcf9   :  { %v8075_v32 = vadd.f32 %v8011_v53, %v7877_v5  ;;  %v8135_v48 = vmax.f32 %v8071_v14, 0.0  ;;  %v7951_v36 = vmul.f32 %v12241_v63, %v13458_v39  ;;  %v8016_v21 = vadd.f32 %v12247_v41, %v7949_v7  ;;  %8196 = vst [vmem:[%s12833_s7 + $0xf8] sm:$0xff] %v8132_v42  ;;  %v7883_v39 = vld [vmem:[%s12827_s0 + $0x160] sm:$0xff]  ;;  %v7888_v42 = vld [vmem:[%s12827_s0 + $0x188] sm:$0xff] }
 0xcfa   :  { %v8076_v0 = vadd.f32 %v8012_v50, %v7878_v29  ;;  %v8136_v46 = vmax.f32 %v8072_v61, 0.0  ;;  %v7952_v19 = vmul.f32 %v12241_v63, %v13461_v37  ;;  %v8017_v3 = vadd.f32 %v12247_v41, %v7950_v13  ;;  %8197 = vst [vmem:[%s12833_s7 + $0x100] sm:$0xff] %v8133_v49  ;;  %v7884_v37 = vld [vmem:[%s12827_s0 + $0x168] sm:$0xff]  ;;  %v13496_v5 = vld [vmem:[#allocation15_spill] sm:$0xff]  ;;  %v7889_v49 = vld [vmem:[%s12827_s0 + $0x190] sm:$0xff] }
 0xcfb   :  { %v8077_v26 = vadd.f32 %v8013_v51, %v7879_v25  ;;  %v8137_v12 = vmax.f32 %v8073_v9, 0.0  ;;  %v7953_v17 = vmul.f32 %v12241_v63, %v13462_v20  ;;  %v8018_v11 = vadd.f32 %v12247_v41, %v7951_v36  ;;  %8198 = vst [vmem:[%s12833_s7 + $0x108] sm:$0xff] %v8134_v28  ;;  %v7885_v20 = vld [vmem:[%s12827_s0 + $0x170] sm:$0xff]  ;;  %v13497_v29 = vld [vmem:[#allocation19_spill] sm:$0xff]  ;;  %v7890_v28 = vld [vmem:[%s12827_s0 + $0x198] sm:$0xff] }
 0xcfc   :  { %v8078_v10 = vadd.f32 %v8014_v2, %v7880_v54  ;;  %v8138_v59 = vmax.f32 %v8074_v33, 0.0  ;;  %v7954_v31 = vmul.f32 %v12241_v63, %v13493_v47  ;;  %v8019_v44 = vadd.f32 %v12247_v41, %v7952_v19  ;;  %8199 = vst [vmem:[%s12833_s7 + $0x110] sm:$0xff] %v8135_v48  ;;  %v13498_v25 = vld [vmem:[#allocation23_spill] sm:$0xff] }
 0xcfd   :  { %v8079_v56 = vadd.f32 %v8015_v18, %v7881_v15  ;;  %v8139_v57 = vmax.f32 %v8075_v32, 0.0  ;;  %v7955_v24 = vmul.f32 %v12241_v63, %v13494_v4  ;;  %v8020_v62 = vadd.f32 %v12247_v41, %v7953_v17  ;;  %8200 = vst [vmem:[%s12833_s7 + $0x118] sm:$0xff] %v8136_v46  ;;  %v7891_v48 = vld [vmem:[%s12827_s0 + $0x1a0] sm:$0xff] }
 0xcfe   :  { %v8080_v60 = vadd.f32 %v8016_v21, %v7882_v23  ;;  %v8140_v38 = vmax.f32 %v8076_v0, 0.0  ;;  %v7956_v52 = vmul.f32 %v12241_v63, %v13495_v34  ;;  %v8021_v43 = vadd.f32 %v12247_v41, %v7954_v31  ;;  %8201 = vst [vmem:[%s12833_s7 + $0x120] sm:$0xff] %v8137_v12 }
 0xcff   :  { %v8081_v53 = vadd.f32 %v8017_v3, %v7883_v39  ;;  %v8141_v14 = vmax.f32 %v8077_v26, 0.0  ;;  %v7957_v16 = vmul.f32 %v12241_v63, %v13496_v5  ;;  %v8022_v8 = vadd.f32 %v12247_v41, %v7955_v24  ;;  %8202 = vst [vmem:[%s12833_s7 + $0x128] sm:$0xff] %v8138_v59  ;;  %v13499_v26 = vld [vmem:[#allocation24_spill] sm:$0xff] }
 0xd00   :  { %v8082_v50 = vadd.f32 %v8018_v11, %v7884_v37  ;;  %v8142_v61 = vmax.f32 %v8078_v10, 0.0  ;;  %v7958_v45 = vmul.f32 %v12241_v63, %v13497_v29  ;;  %v8023_v30 = vadd.f32 %v12247_v41, %v7956_v52  ;;  %8203 = vst [vmem:[%s12833_s7 + $0x130] sm:$0xff] %v8139_v57  ;;  %v13500_v10 = vld [vmem:[#allocation25_spill] sm:$0xff] }
 0xd01   :  { %v8083_v51 = vadd.f32 %v8019_v44, %v7885_v20  ;;  %v8143_v9 = vmax.f32 %v8079_v56, 0.0  ;;  %v7959_v35 = vmul.f32 %v12241_v63, %v13498_v25  ;;  %v8024_v7 = vadd.f32 %v12247_v41, %v7957_v16  ;;  %8204 = vst [vmem:[%s12833_s7 + $0x138] sm:$0xff] %v8140_v38  ;;  %v7895_v44 = vld [vmem:[%s12827_s0 + $0x1c0] sm:$0xff]  ;;  %v13501_v56 = vld [vmem:[#allocation26_spill] sm:$0xff] }
 0xd02   :  { %v8084_v2 = vadd.f32 %v8020_v62, %v7886_v58  ;;  %v8144_v33 = vmax.f32 %v8080_v60, 0.0  ;;  %v7960_v54 = vmul.f32 %v12241_v63, %v12157_v40  ;;  %v8025_v13 = vadd.f32 %v12247_v41, %v7958_v45  ;;  %8205 = vst [vmem:[%s12833_s7 + $0x140] sm:$0xff] %v8141_v14  ;;  %v7892_v40 = vld [vmem:[%s12827_s0 + $0x1a8] sm:$0xff]  ;;  %v13502_v60 = vld [vmem:[#allocation27_spill] sm:$0xff] }
 0xd03   :  { %v8085_v18 = vadd.f32 %v8021_v43, %v7887_v1  ;;  %v8145_v32 = vmax.f32 %v8081_v53, 0.0  ;;  %v7961_v15 = vmul.f32 %v12241_v63, %v12167_v55  ;;  %v8026_v36 = vadd.f32 %v12247_v41, %v7959_v35  ;;  %8206 = vst [vmem:[%s12833_s7 + $0x148] sm:$0xff] %v8142_v61  ;;  %v7893_v55 = vld [vmem:[%s12827_s0 + $0x1b0] sm:$0xff]  ;;  %v7896_v62 = vld [vmem:[%s12827_s0 + $0x1c8] sm:$0xff]  ;;  %v7899_v45 = vld [vmem:[%s12827_s0 + $0x1e0] sm:$0xff] }
 0xd04   :  { %v8086_v21 = vadd.f32 %v8022_v8, %v7888_v42  ;;  %v8146_v0 = vmax.f32 %v8082_v50, 0.0  ;;  %v7962_v46 = vmul.f32 %v12241_v63, %v12179_v27  ;;  %v8027_v23 = vadd.f32 %v12247_v41, %v7960_v54  ;;  %8207 = vst [vmem:[%s12833_s7 + $0x150] sm:$0xff] %v8143_v9  ;;  %v7894_v27 = vld [vmem:[%s12827_s0 + $0x1b8] sm:$0xff]  ;;  %v7897_v43 = vld [vmem:[%s12827_s0 + $0x1d0] sm:$0xff] }
 0xd05   :  { %v8087_v19 = vadd.f32 %v8023_v30, %v7889_v49  ;;  %v8147_v3 = vmax.f32 %v8083_v51, 0.0  ;;  %v7963_v12 = vmul.f32 %v12241_v63, %v13499_v26  ;;  %v8028_v39 = vadd.f32 %v12247_v41, %v7961_v15  ;;  %8208 = vst [vmem:[%s12833_s7 + $0x158] sm:$0xff] %v8144_v33  ;;  %v13503_v53 = vld [vmem:[#allocation13_spill] sm:$0xff]  ;;  %v7898_v8 = vld [vmem:[%s12827_s0 + $0x1d8] sm:$0xff] }
 0xd06   :  { %v8088_v17 = vadd.f32 %v8024_v7, %v7890_v28  ;;  %v8148_v11 = vmax.f32 %v8084_v2, 0.0  ;;  %v7964_v59 = vmul.f32 %v12241_v63, %v13500_v10  ;;  %v8029_v37 = vadd.f32 %v12247_v41, %v7962_v46  ;;  %8209 = vst [vmem:[%s12833_s7 + $0x160] sm:$0xff] %v8145_v32  ;;  %v7901_v35 = vld [vmem:[%s12827_s0 + $0x1f0] sm:$0xff] }
 0xd07   :  { %v8089_v47 = vadd.f32 %v8025_v13, %v7891_v48  ;;  %v8149_v31 = vmax.f32 %v8085_v18, 0.0  ;;  %v7965_v57 = vmul.f32 %v12241_v63, %v13501_v56  ;;  %v8030_v20 = vadd.f32 %v12247_v41, %v7963_v12  ;;  %8210 = vst [vmem:[%s12833_s7 + $0x168] sm:$0xff] %v8146_v0 }
 0xd08   :  { %v8090_v4 = vadd.f32 %v8026_v36, %v7892_v40  ;;  %v8150_v24 = vmax.f32 %v8086_v21, 0.0  ;;  %v7966_v38 = vmul.f32 %v12241_v63, %v13502_v60  ;;  %v8031_v58 = vadd.f32 %v12247_v41, %v7964_v59  ;;  %8211 = vst [vmem:[%s12833_s7 + $0x170] sm:$0xff] %v8147_v3 }
 0xd09   :  { %v8091_v34 = vadd.f32 %v8027_v23, %v7893_v55  ;;  %v8151_v52 = vmax.f32 %v8087_v19, 0.0  ;;  %v7967_v14 = vmul.f32 %v12241_v63, %v13503_v53  ;;  %v8032_v1 = vadd.f32 %v12247_v41, %v7965_v57  ;;  %8212 = vst [vmem:[%s12833_s7 + $0x178] sm:$0xff] %v8148_v11 }
 0xd0a   :  { %v8092_v5 = vadd.f32 %v8028_v39, %v7894_v27  ;;  %v8152_v16 = vmax.f32 %v8088_v17, 0.0  ;;  %v7968_v50 = vmul.f32 %v12241_v63, %v12229_v22  ;;  %v8033_v61 = vadd.f32 %v12247_v41, %v7966_v38  ;;  %8213 = vst [vmem:[%s12833_s7 + $0x180] sm:$0xff] %v8149_v31  ;;  %v7900_v22 = vld [vmem:[%s12827_s0 + $0x1e8] sm:$0xff] }
 0xd0b   :  { %v8093_v42 = vadd.f32 %v8029_v37, %v7895_v44  ;;  %v8153_v29 = vmax.f32 %v8089_v47, 0.0  ;;  %v8034_v30 = vadd.f32 %v12247_v41, %v7967_v14  ;;  %v8094_v51 = vadd.f32 %v8030_v20, %v7896_v62  ;;  %8214 = vst [vmem:[%s12833_s7 + $0x188] sm:$0xff] %v8150_v24 }
 0xd0c   :  { %v8154_v9 = vmax.f32 %v8090_v4, 0.0  ;;  %v8035_v63 = vadd.f32 %v12247_v41, %v7968_v50  ;;  %v8095_v49 = vadd.f32 %v8031_v58, %v7897_v43  ;;  %v8155_v25 = vmax.f32 %v8091_v34, 0.0  ;;  %8215 = vst [vmem:[%s12833_s7 + $0x190] sm:$0xff] %v8151_v52  ;;  %v7902_v41 = vld [vmem:[%s12827_s0 + $0x1f8] sm:$0xff] }
 0xd0d   :  { %v8096_v7 = vadd.f32 %v8032_v1, %v7898_v8  ;;  %v8156_v2 = vmax.f32 %v8092_v5, 0.0  ;;  %8216 = vst [vmem:[%s12833_s7 + $0x198] sm:$0xff] %v8152_v16  ;;  %v8097_v33 = vadd.f32 %v8033_v61, %v7899_v45  ;;  %v8157_v28 = vmax.f32 %v8093_v42, 0.0 }
 0xd0e   :  { %8217 = vst [vmem:[%s12833_s7 + $0x1a0] sm:$0xff] %v8153_v29  ;;  %v8098_v54 = vadd.f32 %v8034_v30, %v7900_v22  ;;  %v8158_v13 = vmax.f32 %v8094_v51, 0.0  ;;  %v8099_v18 = vadd.f32 %v8035_v63, %v7901_v35  ;;  %v8159_v32 = vmax.f32 %v8095_v49, 0.0 }
 0xd0f   :  { %8218 = vst [vmem:[%s12833_s7 + $0x1a8] sm:$0xff] %v8154_v9  ;;  %v8100_v48 = vadd.f32 %v12250_v6, %v7902_v41  ;;  %v8160_v15 = vmax.f32 %v8096_v7, 0.0  ;;  %v8161_v36 = vmax.f32 %v8097_v33, 0.0 }
 0xd10   :  { %8219 = vst [vmem:[%s12833_s7 + $0x1b0] sm:$0xff] %v8155_v25  ;;  %v8162_v21 = vmax.f32 %v8098_v54, 0.0  ;;  %v8163_v0 = vmax.f32 %v8099_v18, 0.0 }
 0xd11   :  { %8220 = vst [vmem:[%s12833_s7 + $0x1b8] sm:$0xff] %v8156_v2  ;;  %v8164_v6 = vmax.f32 %v8100_v48, 0.0 }
 0xd12   :  { %8221 = vst [vmem:[%s12833_s7 + $0x1c0] sm:$0xff] %v8157_v28 }
 0xd13   :  { %8222 = vst [vmem:[%s12833_s7 + $0x1c8] sm:$0xff] %v8158_v13 }
 0xd14   :  { %8223 = vst [vmem:[%s12833_s7 + $0x1d0] sm:$0xff] %v8159_v32 }
 0xd15   :  { %8224 = vst [vmem:[%s12833_s7 + $0x1d8] sm:$0xff] %v8160_v15 }
 0xd16   :  { %8225 = vst [vmem:[%s12833_s7 + $0x1e0] sm:$0xff] %v8161_v36 }
 0xd17   :  { %8226 = vst [vmem:[%s12833_s7 + $0x1e8] sm:$0xff] %v8162_v21 }
 0xd18   :  { %8227 = vst [vmem:[%s12833_s7 + $0x1f0] sm:$0xff] %v8163_v0 }
 0xd19   :  { %8228 = vst [vmem:[%s12833_s7 + $0x1f8] sm:$0xff] %v8164_v6 }

</bundles_post_ra>
